<compile_context>
chip_gen: v7x
topology: tpu7x:2x2x1
jax: 0.10.0
libtpu: 0.0.40
codegen_flags: <defaults>
</compile_context>

<pallas_src>
import jax
import jax.numpy as jnp
from jax.experimental import pallas as pl
from jax.experimental.pallas import tpu as pltpu

IN_DIM = 3 * 32 * 32   # 3072
H1 = 1024
H2 = 256
H3 = 256
OUT = 1
MAX_TM = 512           # batch tile cap (keeps footprint well under v7x VMEM)


# --------------------------------------------------------------------------
# Kernel
# --------------------------------------------------------------------------
def _mlp_kernel(x_ref, w1_ref, b1_ref, w2_ref, b2_ref, w3_ref, b3_ref,
                w4_ref, b4_ref, y_ref):
    """Whole MLP for one batch tile, fully resident in VMEM.

    Weights/activations feed the MXU in bf16; accumulation is f32."""
    # Cast the f32 input tile to bf16 in-kernel (free under the HBM bound).
    x = x_ref[...].astype(jnp.bfloat16)
    # Linear(3072 -> 1024) + ReLU
    h1 = jnp.maximum(
        jnp.dot(x, w1_ref[...], preferred_element_type=jnp.float32)
        + b1_ref[...], 0.0)
    # Linear(1024 -> 256) + ReLU
    h2 = jnp.maximum(
        jnp.dot(h1.astype(jnp.bfloat16), w2_ref[...],
                preferred_element_type=jnp.float32) + b2_ref[...], 0.0)
    # Dropout == identity in eval mode.  Linear(256 -> 256) + ReLU
    h3 = jnp.maximum(
        jnp.dot(h2.astype(jnp.bfloat16), w3_ref[...],
                preferred_element_type=jnp.float32) + b3_ref[...], 0.0)
    # Linear(256 -> 1) as a VPU/XLU lane reduction (w4 stored as (1,256) row):
    # avoids a 1-lane-wide MXU matmul.
    y = jnp.sum(h3 * w4_ref[...], axis=-1, keepdims=True) + b4_ref[...]
    y_ref[...] = y.astype(y_ref.dtype)


# --------------------------------------------------------------------------
# Spec / tiling helpers
# --------------------------------------------------------------------------
def _const_spec(shape):
    """BlockSpec for a grid-invariant (weight/bias) input.

    Requests single-buffering -- the block never changes across the grid, so
    the default double-buffer only wastes VMEM.  Falls back to the default if
    pipeline_mode is unavailable.  Returns (spec, single_buffered)."""
    idx = lambda m: (0,) * len(shape)
    try:
        return pl.BlockSpec(shape, idx, pipeline_mode=pl.Buffered(1)), True
    except TypeError:
        return pl.BlockSpec(shape, idx), False


def _batch_tiling(B):
    """Returns (B_pad, TM).  B is padded so every block is full-size; small
    batches run as a single sublane-aligned block, large batches tile at
    MAX_TM rows per grid step."""
    b8 = max(8, ((B + 7) // 8) * 8)          # sublane-aligned
    if b8 <= MAX_TM:
        return b8, b8                        # single block over the batch
    tm = MAX_TM
    return ((B + tm - 1) // tm) * tm, tm


def _vmem_limit_bytes(tm, weights_single_buffered):
    """Footprint-derived scoped-VMEM limit, legal on all generations (v7x has
    only 64 MiB/TC)."""
    x_bytes = 2 * tm * IN_DIM * 4                       # f32 x, double-buffered
    w_bytes = (IN_DIM * H1 + H1 * H2 + H2 * H3) * 2     # bf16 weights
    if not weights_single_buffered:
        w_bytes *= 2
    act_bytes = tm * IN_DIM * 2 + tm * (H1 + 2 * H2) * 4   # bf16 x + f32 h1..h3
    need = x_bytes + w_bytes + act_bytes + (4 << 20)        # + slack
    cap = 64 << 20                                          # v7x per-TC VMEM
    try:
        cap = pltpu.get_tpu_info().vmem_capacity_bytes
    except Exception:
        pass
    return int(min(cap, max(28 << 20, need)))


# --------------------------------------------------------------------------
# Params
# --------------------------------------------------------------------------
def prepare_params(params):
    """One-time conversion of f32 params to the kernel's streaming layout.

    Call ONCE and reuse the result across forward calls, so the per-call HBM
    traffic is the ~6.5 MiB of bf16 weights (not a 13 MiB f32 read + cast).

    Expects weights as (in, out) and biases as (out,)/(1, out).  NOTE: PyTorch
    nn.Linear stores weight as (out, in) -- transpose before passing here."""
    w1, b1, w2, b2, w3, b3, w4, b4 = params
    return (
        jnp.asarray(w1, jnp.bfloat16),                      # (3072, 1024)
        jnp.asarray(b1, jnp.float32).reshape(1, H1),
        jnp.asarray(w2, jnp.bfloat16),                      # (1024, 256)
        jnp.asarray(b2, jnp.float32).reshape(1, H2),
        jnp.asarray(w3, jnp.bfloat16),                      # (256, 256)
        jnp.asarray(b3, jnp.float32).reshape(1, H3),
        jnp.asarray(w4, jnp.float32).reshape(1, H3),        # (256,1) -> (1,256)
        jnp.asarray(b4, jnp.float32).reshape(1, OUT),
    )


def _init_linear(key, fan_in, fan_out):
    """Deterministic PyTorch-default-style init U(-1/sqrt(fan_in), 1/sqrt(fan_in)).
    Weight stored as (in, out)."""
    kw, kb = jax.random.split(key)
    bound = 1.0 / jnp.sqrt(fan_in)
    w = jax.random.uniform(kw, (fan_in, fan_out), jnp.float32, -bound, bound)
    b = jax.random.uniform(kb, (1, fan_out), jnp.float32, -bound, bound)
    return w, b


def init_params(seed=0):
    keys = jax.random.split(jax.random.PRNGKey(seed), 4)
    w1, b1 = _init_linear(keys[0], IN_DIM, H1)
    w2, b2 = _init_linear(keys[1], H1, H2)
    w3, b3 = _init_linear(keys[2], H2, H3)
    w4, b4 = _init_linear(keys[3], H3, OUT)
    return (w1, b1, w2, b2, w3, b3, w4, b4)


# --------------------------------------------------------------------------
# Forward
# --------------------------------------------------------------------------
def reward_predictor_forward(x_nchw, prepared_params):
    """x_nchw: (B, 3, 32, 32) float32.  prepared_params: output of
    prepare_params().  Returns dict matching the PyTorch forward."""
    B = x_nchw.shape[0]
    x_flat = x_nchw.reshape(B, -1)          # channel-major flatten, stays f32
    w1b, b1, w2b, b2, w3b, b3, w4_row, b4 = prepared_params

    B_pad, TM = _batch_tiling(B)
    if B_pad != B:
        x_flat = jnp.pad(x_flat, ((0, B_pad - B), (0, 0)))
    n_tiles = B_pad // TM

    # Grid-invariant weight/bias specs (single-buffered when supported).
    const_shapes = ((IN_DIM, H1), (1, H1), (H1, H2), (1, H2),
                    (H2, H3), (1, H3), (1, H3), (1, OUT))
    const_specs = []
    single_buffered = True
    for shp in const_shapes:
        spec, sb = _const_spec(shp)
        const_specs.append(spec)
        single_buffered = single_buffered and sb

    kernel_args = (x_flat, w1b, b1, w2b, b2, w3b, b3, w4_row, b4)
    flops = 2 * B_pad * (IN_DIM * H1 + H1 * H2 + H2 * H3 + H3)
    bytes_accessed = int(sum(a.size * a.dtype.itemsize for a in kernel_args)
                         + B_pad * OUT * 4)

    # Small/medium grids: single TC (avoids both v7x TCs re-streaming the full
    # weight set when weight-bound).  Large grids: split across cores.
    dim_sem = ("arbitrary",) if n_tiles <= 3 else ("parallel",)

    y = pl.pallas_call(
        _mlp_kernel,
        out_shape=jax.ShapeDtypeStruct((B_pad, OUT), jnp.float32),
        grid_spec=pltpu.PrefetchScalarGridSpec(
            num_scalar_prefetch=0,
            grid=(n_tiles,),
            in_specs=[pl.BlockSpec((TM, IN_DIM), lambda m: (m, 0))]  # x tile
                     + const_specs,                                  # W1..b4
            out_specs=pl.BlockSpec((TM, OUT), lambda m: (m, 0)),
        ),
        compiler_params=pltpu.CompilerParams(
            dimension_semantics=dim_sem,
            vmem_limit_bytes=_vmem_limit_bytes(TM, single_buffered),
        ),
        cost_estimate=pl.CostEstimate(
            flops=flops, transcendentals=0, bytes_accessed=bytes_accessed),
    )(*kernel_args)

    y = jnp.squeeze(y[:B])   # torch .squeeze(): (B,1) -> (B,)  (B==1 -> scalar)
    return {
        "outcome_pred": y,
        "color_pred": None,            # color_adversary=False
        "adversary_pred": None,
        "paddle_pred": None,           # paddle_predictor=False
        "paddle_detached_pred": None,
    }


# --------------------------------------------------------------------------
# Reference & test
# --------------------------------------------------------------------------
def _reference_forward(x_nchw, params):
    """Pure-JAX reference mimicking the kernel's bf16 weight/input quantization
    (all math in f32)."""
    w1, b1, w2, b2, w3, b3, w4, b4 = params
    q = lambda a: a.astype(jnp.bfloat16).astype(jnp.float32)
    x = q(x_nchw.reshape(x_nchw.shape[0], -1))
    h1 = jnp.maximum(x @ q(w1) + b1, 0.0)
    h2 = jnp.maximum(h1 @ q(w2) + b2, 0.0)
    h3 = jnp.maximum(h2 @ q(w3) + b3, 0.0)
    return jnp.squeeze(h3 @ w4 + b4)


if __name__ == "__main__":
    key = jax.random.PRNGKey(0)
    x = jax.random.normal(key, (2, 3, 32, 32), dtype=jnp.float32)  # B=2, NCHW

    params = init_params(seed=0)
    prepared = prepare_params(params)        # one-time bf16 conversion

    out = reward_predictor_forward(x, prepared)
    y = jax.block_until_ready(out["outcome_pred"])

    y_ref = _reference_forward(x, params)
    assert y.shape == (2,)
    # bf16 weight/activation streaming inside the kernel -> loosened tolerance
    # vs the f32 PyTorch math (only MXU/activation rounding remains vs this ref).
    assert jnp.allclose(y, y_ref, atol=1e-2, rtol=1e-2), (y, y_ref)

    print("KERNEL_OK")
</pallas_src>

<mosaic_0001>
module attributes {stable_mosaic.version = 11 : i64} {
  func.func @_mlp_kernel(%arg0: i32, %arg1: memref<8x3072xf32, #tpu.memory_space<vmem>>, %arg2: memref<3072x1024xbf16, #tpu.memory_space<vmem>>, %arg3: memref<1x1024xf32, #tpu.memory_space<vmem>>, %arg4: memref<1024x256xbf16, #tpu.memory_space<vmem>>, %arg5: memref<1x256xf32, #tpu.memory_space<vmem>>, %arg6: memref<256x256xbf16, #tpu.memory_space<vmem>>, %arg7: memref<1x256xf32, #tpu.memory_space<vmem>>, %arg8: memref<1x256xf32, #tpu.memory_space<vmem>>, %arg9: memref<1x1xf32, #tpu.memory_space<vmem>>, %arg10: memref<8x1xf32, #tpu.memory_space<vmem>>) attributes {dimension_semantics = [#tpu.dimension_semantics<arbitrary>], iteration_bounds = array<i64: 1>, scalar_prefetch = 0 : i64, scratch_operands = 0 : i64, tpu.core_type = #tpu.core_type<tc>, window_params = [{transform_indices = @transform_0, window_bounds = array<i64: 8, 3072>}, {pipeline_mode = #tpu.pipeline_mode<synchronous>, transform_indices = @transform_1, window_bounds = array<i64: 3072, 1024>}, {pipeline_mode = #tpu.pipeline_mode<synchronous>, transform_indices = @transform_2, window_bounds = array<i64: 1, 1024>}, {pipeline_mode = #tpu.pipeline_mode<synchronous>, transform_indices = @transform_3, window_bounds = array<i64: 1024, 256>}, {pipeline_mode = #tpu.pipeline_mode<synchronous>, transform_indices = @transform_4, window_bounds = array<i64: 1, 256>}, {pipeline_mode = #tpu.pipeline_mode<synchronous>, transform_indices = @transform_5, window_bounds = array<i64: 256, 256>}, {pipeline_mode = #tpu.pipeline_mode<synchronous>, transform_indices = @transform_6, window_bounds = array<i64: 1, 256>}, {pipeline_mode = #tpu.pipeline_mode<synchronous>, transform_indices = @transform_7, window_bounds = array<i64: 1, 256>}, {pipeline_mode = #tpu.pipeline_mode<synchronous>, transform_indices = @transform_8, window_bounds = array<i64: 1, 1>}, {transform_indices = @transform_9, window_bounds = array<i64: 8, 1>}]} {
    %c0 = arith.constant 0 : index
    %c0_0 = arith.constant 0 : index
    %0 = vector.load %arg1[%c0, %c0_0] : memref<8x3072xf32, #tpu.memory_space<vmem>>, vector<8x3072xf32>
    %1 = arith.truncf %0 : vector<8x3072xf32> to vector<8x3072xbf16>
    %c0_1 = arith.constant 0 : index
    %c0_2 = arith.constant 0 : index
    %2 = vector.load %arg2[%c0_1, %c0_2] : memref<3072x1024xbf16, #tpu.memory_space<vmem>>, vector<3072x1024xbf16>
    %cst = arith.constant dense<0.000000e+00> : vector<8x1024xf32>
    %3 = tpu.matmul %1, %2, %cst {dimension_numbers = #tpu.dot_dimension_numbers<[1], [0], [0], [1], [0, 0, 1, 1], [], []>} : vector<8x3072xbf16>, vector<3072x1024xbf16>, vector<8x1024xf32> -> vector<8x1024xf32>
    %c0_3 = arith.constant 0 : index
    %c0_4 = arith.constant 0 : index
    %4 = vector.load %arg3[%c0_3, %c0_4] : memref<1x1024xf32, #tpu.memory_space<vmem>>, vector<1x1024xf32>
    %5 = vector.broadcast %4 : vector<1x1024xf32> to vector<8x1024xf32>
    %6 = arith.addf %3, %5 : vector<8x1024xf32>
    %cst_5 = arith.constant 0.000000e+00 : f32
    %7 = vector.broadcast %cst_5 : f32 to vector<8x1024xf32>
    %8 = arith.maximumf %6, %7 : vector<8x1024xf32>
    %9 = arith.truncf %8 : vector<8x1024xf32> to vector<8x1024xbf16>
    %c0_6 = arith.constant 0 : index
    %c0_7 = arith.constant 0 : index
    %10 = vector.load %arg4[%c0_6, %c0_7] : memref<1024x256xbf16, #tpu.memory_space<vmem>>, vector<1024x256xbf16>
    %cst_8 = arith.constant dense<0.000000e+00> : vector<8x256xf32>
    %11 = tpu.matmul %9, %10, %cst_8 {dimension_numbers = #tpu.dot_dimension_numbers<[1], [0], [0], [1], [0, 0, 1, 1], [], []>} : vector<8x1024xbf16>, vector<1024x256xbf16>, vector<8x256xf32> -> vector<8x256xf32>
    %c0_9 = arith.constant 0 : index
    %c0_10 = arith.constant 0 : index
    %12 = vector.load %arg5[%c0_9, %c0_10] : memref<1x256xf32, #tpu.memory_space<vmem>>, vector<1x256xf32>
    %13 = vector.broadcast %12 : vector<1x256xf32> to vector<8x256xf32>
    %14 = arith.addf %11, %13 : vector<8x256xf32>
    %cst_11 = arith.constant 0.000000e+00 : f32
    %15 = vector.broadcast %cst_11 : f32 to vector<8x256xf32>
    %16 = arith.maximumf %14, %15 : vector<8x256xf32>
    %17 = arith.truncf %16 : vector<8x256xf32> to vector<8x256xbf16>
    %c0_12 = arith.constant 0 : index
    %c0_13 = arith.constant 0 : index
    %18 = vector.load %arg6[%c0_12, %c0_13] : memref<256x256xbf16, #tpu.memory_space<vmem>>, vector<256x256xbf16>
    %cst_14 = arith.constant dense<0.000000e+00> : vector<8x256xf32>
    %19 = tpu.matmul %17, %18, %cst_14 {dimension_numbers = #tpu.dot_dimension_numbers<[1], [0], [0], [1], [0, 0, 1, 1], [], []>} : vector<8x256xbf16>, vector<256x256xbf16>, vector<8x256xf32> -> vector<8x256xf32>
    %c0_15 = arith.constant 0 : index
    %c0_16 = arith.constant 0 : index
    %20 = vector.load %arg7[%c0_15, %c0_16] : memref<1x256xf32, #tpu.memory_space<vmem>>, vector<1x256xf32>
    %21 = vector.broadcast %20 : vector<1x256xf32> to vector<8x256xf32>
    %22 = arith.addf %19, %21 : vector<8x256xf32>
    %cst_17 = arith.constant 0.000000e+00 : f32
    %23 = vector.broadcast %cst_17 : f32 to vector<8x256xf32>
    %24 = arith.maximumf %22, %23 : vector<8x256xf32>
    %c0_18 = arith.constant 0 : index
    %c0_19 = arith.constant 0 : index
    %25 = vector.load %arg8[%c0_18, %c0_19] : memref<1x256xf32, #tpu.memory_space<vmem>>, vector<1x256xf32>
    %26 = vector.broadcast %25 : vector<1x256xf32> to vector<8x256xf32>
    %27 = arith.mulf %24, %26 : vector<8x256xf32>
    %cst_20 = arith.constant dense<0.000000e+00> : vector<8xf32>
    %28 = vector.multi_reduction <add>, %27, %cst_20 [1] : vector<8x256xf32> to vector<8xf32>
    %29 = vector.shape_cast %28 : vector<8xf32> to vector<8x1xf32>
    %c0_21 = arith.constant 0 : index
    %c0_22 = arith.constant 0 : index
    %30 = vector.load %arg9[%c0_21, %c0_22] : memref<1x1xf32, #tpu.memory_space<vmem>>, vector<1x1xf32>
    %31 = vector.broadcast %30 : vector<1x1xf32> to vector<8x1xf32>
    %32 = arith.addf %29, %31 : vector<8x1xf32>
    %c0_23 = arith.constant 0 : index
    %c0_24 = arith.constant 0 : index
    %33 = vector.load %arg10[%c0_23, %c0_24] : memref<8x1xf32, #tpu.memory_space<vmem>>, vector<8x1xf32>
    tpu.vector_store %arg10[%c0_23, %c0_24], %32 {strides = array<i32>} : memref<8x1xf32, #tpu.memory_space<vmem>>, vector<8x1xf32>,
    return
  }
  func.func @transform_0(%arg0: i32) -> (i32, i32) {
    %c0_i32 = arith.constant 0 : i32
    %c0_i32_0 = arith.constant 0 : i32
    return %arg0, %c0_i32 : i32, i32
  }
  func.func @transform_1(%arg0: i32) -> (i32, i32) {
    %c0_i32 = arith.constant 0 : i32
    %c0_i32_0 = arith.constant 0 : i32
    %c0_i32_1 = arith.constant 0 : i32
    return %c0_i32, %c0_i32_0 : i32, i32
  }
  func.func @transform_2(%arg0: i32) -> (i32, i32) {
    %c0_i32 = arith.constant 0 : i32
    %c0_i32_0 = arith.constant 0 : i32
    %c0_i32_1 = arith.constant 0 : i32
    return %c0_i32, %c0_i32_0 : i32, i32
  }
  func.func @transform_3(%arg0: i32) -> (i32, i32) {
    %c0_i32 = arith.constant 0 : i32
    %c0_i32_0 = arith.constant 0 : i32
    %c0_i32_1 = arith.constant 0 : i32
    return %c0_i32, %c0_i32_0 : i32, i32
  }
  func.func @transform_4(%arg0: i32) -> (i32, i32) {
    %c0_i32 = arith.constant 0 : i32
    %c0_i32_0 = arith.constant 0 : i32
    %c0_i32_1 = arith.constant 0 : i32
    return %c0_i32, %c0_i32_0 : i32, i32
  }
  func.func @transform_5(%arg0: i32) -> (i32, i32) {
    %c0_i32 = arith.constant 0 : i32
    %c0_i32_0 = arith.constant 0 : i32
    %c0_i32_1 = arith.constant 0 : i32
    return %c0_i32, %c0_i32_0 : i32, i32
  }
  func.func @transform_6(%arg0: i32) -> (i32, i32) {
    %c0_i32 = arith.constant 0 : i32
    %c0_i32_0 = arith.constant 0 : i32
    %c0_i32_1 = arith.constant 0 : i32
    return %c0_i32, %c0_i32_0 : i32, i32
  }
  func.func @transform_7(%arg0: i32) -> (i32, i32) {
    %c0_i32 = arith.constant 0 : i32
    %c0_i32_0 = arith.constant 0 : i32
    %c0_i32_1 = arith.constant 0 : i32
    return %c0_i32, %c0_i32_0 : i32, i32
  }
  func.func @transform_8(%arg0: i32) -> (i32, i32) {
    %c0_i32 = arith.constant 0 : i32
    %c0_i32_0 = arith.constant 0 : i32
    %c0_i32_1 = arith.constant 0 : i32
    return %c0_i32, %c0_i32_0 : i32, i32
  }
  func.func @transform_9(%arg0: i32) -> (i32, i32) {
    %c0_i32 = arith.constant 0 : i32
    %c0_i32_0 = arith.constant 0 : i32
    return %arg0, %c0_i32 : i32, i32
  }
}

</mosaic_0001>

<bundles_post_ra>
// kernel: tpu_custom_call.1
= control target key start
LH: loop header
LB: loop body
LE: loop exit
PB: predicated region body
PF: predicated region fallthrough
CT: control target
= control target key end

     0   :  { %s15342_s0 = inlined_call_operand.hbm [shape: f32[8,3072], index: 0, kind: input, shape index: {}]   ;;  %s15343_s1 = inlined_call_operand.hbm [shape: bf16[3072,1024], index: 1, kind: input, shape index: {}]   ;;  %s15344_s2 = inlined_call_operand.hbm [shape: f32[1,1024], index: 2, kind: input, shape index: {}]   ;;  %s15345_s3 = inlined_call_operand.hbm [shape: bf16[1024,256], index: 3, kind: input, shape index: {}]   ;;  %s15346_s4 = inlined_call_operand.hbm [shape: f32[1,256], index: 4, kind: input, shape index: {}]   ;;  %s15347_s5 = inlined_call_operand.hbm [shape: bf16[256,256], index: 5, kind: input, shape index: {}]   ;;  %s15348_s6 = inlined_call_operand.hbm [shape: f32[1,256], index: 6, kind: input, shape index: {}]   ;;  %s15349_s7 = inlined_call_operand.hbm [shape: f32[1,256], index: 7, kind: input, shape index: {}]   ;;  %s15350_s8 = inlined_call_operand.<no memory space> [shape: f32[1,1], index: 8, kind: input, shape index: {}]   ;;  %s15351_s9 = inlined_call_operand.vmem [shape: f32[8,1], index: 9, kind: output, shape index: {}]  }
   0x1   :  { %v14_v0 = vstv %s15350_s8 }
   0x2   :  { %15 = vst [vmem:[#allocation2] sm:$0x1] %v14_v0 }
   0x3   :  { %16 = vsyncpa [#allocation4], 0 }
   0x4   :  { %17 = vsyncpa [#allocation6], 0 }
   0x5   :  { %18 = vsyncpa [#allocation9], 0 }
   0x6   :  { %19 = vsyncpa [#allocation12], 0 }
   0x7   :  { %20 = vsyncpa [#allocation15], 0  ;;  %s14986_s11 = smov [#allocation5]   ;;  %s14800_s15 = scalar_lea.hbm %s15343_s1, 196608 }
   0x8   :  { %s36_s12 = sshll.u32 %s14986_s11, 4  ;;  %p14801_p0 = scmp.ne.s32.totalorder %s15343_s1, %s14800_s15  ;;  %s37_s12 = int_to_ptr.vmem [resolvable:$true] %s36_s12 }
   0x9   :  { %p14804_p1 = scmp.lt.u32.totalorder %s14800_s15, %s15343_s1 }
   0xb   :  { %p14806_p2 = pnand %p14804_p1, %p14801_p0 }
   0xd   :  { %14809 = shalt.err (!%p14806_p2)
}
   0xe   :  { %s14810_s8 = scalar_lea.vmem %s37_s12, 196608  ;;  %p14815_p4 = scmp.lt.s32.totalorder %s37_s12, %s37_s12 }
   0xf   :  { %p14811_p3 = scmp.ne.s32.totalorder %s37_s12, %s14810_s8  ;;  %p14816_p5 = scmp.lt.s32.totalorder %s14810_s8, %s14810_s8 }
  0x11   :  { %p14817_p6 = por %p14816_p5, %p14815_p4 }
  0x13   :  { %p14818_p7 = pnand %p14817_p6, %p14811_p3 }
  0x15   :  { %14821 = shalt.err (!%p14818_p7)
}
  0x16   :  { %s14987_s20 = smov 512   ;;  %s14988_s21 = smov 32  }
  0x17   :  { %42 = dma.hbm_to_vmem [thread:$0]  %s15343_s1, 196608, %s37_s12, [#allocation6], %s14987_s20, %s14987_s20, %s14988_s21  }
  0x18   :  { %s14989_s24 = smov [#allocation8]   ;;  %s14822_s28 = scalar_lea.hbm %s15345_s3, 16384 }
  0x19   :  { %s58_s25 = sshll.u32 %s14989_s24, 4  ;;  %p14823_p8 = scmp.ne.s32.totalorder %s15345_s3, %s14822_s28  ;;  %s59_s25 = int_to_ptr.vmem [resolvable:$true] %s58_s25 }
  0x1a   :  { %p14826_p9 = scmp.lt.u32.totalorder %s14822_s28, %s15345_s3 }
  0x1c   :  { %p14828_p10 = pnand %p14826_p9, %p14823_p8 }
  0x1e   :  { %14831 = shalt.err (!%p14828_p10)
}
  0x1f   :  { %s14832_s13 = scalar_lea.vmem %s59_s25, 16384  ;;  %p14837_p12 = scmp.lt.s32.totalorder %s59_s25, %s59_s25 }
  0x20   :  { %p14833_p11 = scmp.ne.s32.totalorder %s59_s25, %s14832_s13  ;;  %p14838_p13 = scmp.lt.s32.totalorder %s14832_s13, %s14832_s13 }
  0x22   :  { %p14839_p0 = por %p14838_p13, %p14837_p12 }
  0x24   :  { %p14840_p1 = pnand %p14839_p0, %p14833_p11 }
  0x26   :  { %14843 = shalt.err (!%p14840_p1)
}
  0x27   :  { %s14990_s1 = smov 128   ;;  %s14991_s12 = smov 8  }
  0x28   :  { %64 = dma.hbm_to_vmem [thread:$0]  %s15345_s3, 16384, %s59_s25, [#allocation9], %s14990_s1, %s14990_s1, %s14991_s12  }
  0x29   :  { %s14992_s16 = smov [#allocation11]   ;;  %s14993_s18 = smov [#allocation3]  }
  0x2a   :  { %s80_s17 = sshll.u32 %s14992_s16, 4  ;;  %s27_s19 = sshll.u32 %s14993_s18, 4  ;;  %s81_s17 = int_to_ptr.vmem [resolvable:$true] %s80_s17  ;;  %s28_s19 = int_to_ptr.vmem [resolvable:$true] %s27_s19 }
  0x2b   :  { %s14844_s21 = scalar_lea.hbm %s15347_s5, 4096 }
  0x2c   :  { %p14845_p2 = scmp.ne.s32.totalorder %s15347_s5, %s14844_s21  ;;  %p14848_p3 = scmp.lt.u32.totalorder %s14844_s21, %s15347_s5 }
  0x2e   :  { %p14850_p4 = pnand %p14848_p3, %p14845_p2 }
  0x30   :  { %14853 = shalt.err (!%p14850_p4)
}
  0x31   :  { %s14854_s3 = scalar_lea.vmem %s81_s17, 4096  ;;  %p14859_p6 = scmp.lt.s32.totalorder %s81_s17, %s81_s17 }
  0x32   :  { %p14855_p5 = scmp.ne.s32.totalorder %s81_s17, %s14854_s3  ;;  %p14860_p7 = scmp.lt.s32.totalorder %s14854_s3, %s14854_s3 }
  0x34   :  { %p14861_p8 = por %p14860_p7, %p14859_p6 }
  0x36   :  { %p14862_p9 = pnand %p14861_p8, %p14855_p5 }
  0x38   :  { %14865 = shalt.err (!%p14862_p9)
}
  0x39   :  { %86 = dma.hbm_to_vmem [thread:$0]  %s15347_s5, 4096, %s81_s17, [#allocation12], %s14990_s1, %s14990_s1, %s14991_s12  }
  0x3a   :  { %s14866_s30 = scalar_lea.hbm %s15342_s0, 3072 }
  0x3b   :  { %p14867_p10 = scmp.ne.s32.totalorder %s15342_s0, %s14866_s30  ;;  %p14870_p11 = scmp.lt.u32.totalorder %s14866_s30, %s15342_s0 }
  0x3d   :  { %p14872_p12 = pnand %p14870_p11, %p14867_p10 }
  0x3f   :  { %14875 = shalt.err (!%p14872_p12)
}
  0x40   :  { %s14876_s15 = scalar_lea.vmem %s28_s19, 3072  ;;  %p14881_p0 = scmp.lt.s32.totalorder %s28_s19, %s28_s19 }
  0x41   :  { %p14877_p13 = scmp.ne.s32.totalorder %s28_s19, %s14876_s15  ;;  %p14882_p1 = scmp.lt.s32.totalorder %s14876_s15, %s14876_s15 }
  0x43   :  { %p14883_p2 = por %p14882_p1, %p14881_p0 }
  0x45   :  { %p14884_p3 = pnand %p14883_p2, %p14877_p13 }
  0x47   :  { %14887 = shalt.err (!%p14884_p3)
}
  0x48   :  { %30 = dma.hbm_to_vmem [thread:$0]  %s15342_s0, 3072, %s28_s19, [#allocation4]  }
  0x49   :  { %s14994_s12 = smov [#allocation7]   ;;  %s14995_s17 = smov [#allocation10]  }
  0x4a   :  { %s49_s16 = sshll.u32 %s14994_s12, 4  ;;  %s71_s18 = sshll.u32 %s14995_s17, 4  ;;  %s50_s16 = int_to_ptr.vmem [resolvable:$true] %s49_s16  ;;  %s72_s18 = int_to_ptr.vmem [resolvable:$true] %s71_s18 }
  0x4b   :  { %s14888_s21 = scalar_lea.hbm %s15344_s2, 128 }
  0x4c   :  { %p14889_p4 = scmp.ne.s32.totalorder %s15344_s2, %s14888_s21  ;;  %p14892_p5 = scmp.lt.u32.totalorder %s14888_s21, %s15344_s2 }
  0x4e   :  { %p14894_p6 = pnand %p14892_p5, %p14889_p4 }
  0x50   :  { %14897 = shalt.err (!%p14894_p6)
}
  0x51   :  { %s14898_s0 = scalar_lea.vmem %s50_s16, 128  ;;  %p14903_p8 = scmp.lt.s32.totalorder %s50_s16, %s50_s16 }
  0x52   :  { %p14899_p7 = scmp.ne.s32.totalorder %s50_s16, %s14898_s0  ;;  %p14904_p9 = scmp.lt.s32.totalorder %s14898_s0, %s14898_s0 }
  0x54   :  { %p14905_p10 = por %p14904_p9, %p14903_p8 }
  0x56   :  { %p14906_p11 = pnand %p14905_p10, %p14899_p7 }
  0x58   :  { %14909 = shalt.err (!%p14906_p11)
}
  0x59   :  { %52 = dma.hbm_to_vmem [thread:$0]  %s15344_s2, 128, %s50_s16, [#allocation6]  }
  0x5a   :  { %s14910_s28 = scalar_lea.hbm %s15346_s4, 32 }
  0x5b   :  { %p14911_p12 = scmp.ne.s32.totalorder %s15346_s4, %s14910_s28  ;;  %p14914_p13 = scmp.lt.u32.totalorder %s14910_s28, %s15346_s4 }
  0x5d   :  { %p14916_p0 = pnand %p14914_p13, %p14911_p12 }
  0x5f   :  { %14919 = shalt.err (!%p14916_p0)
}
  0x60   :  { %s14920_s13 = scalar_lea.vmem %s72_s18, 32  ;;  %p14925_p2 = scmp.lt.s32.totalorder %s72_s18, %s72_s18 }
  0x61   :  { %p14921_p1 = scmp.ne.s32.totalorder %s72_s18, %s14920_s13  ;;  %p14926_p3 = scmp.lt.s32.totalorder %s14920_s13, %s14920_s13 }
  0x63   :  { %p14927_p4 = por %p14926_p3, %p14925_p2 }
  0x65   :  { %p14928_p5 = pnand %p14927_p4, %p14921_p1 }
  0x67   :  { %14931 = shalt.err (!%p14928_p5)
}
  0x68   :  { %74 = dma.hbm_to_vmem [thread:$0]  %s15346_s4, 32, %s72_s18, [#allocation9]  }
  0x69   :  { %s14996_s15 = smov [#allocation13]   ;;  %s14997_s1 = smov [#allocation14]  }
  0x6a   :  { %s93_s5 = sshll.u32 %s14996_s15, 4  ;;  %s103_s12 = sshll.u32 %s14997_s1, 4  ;;  %s94_s5 = int_to_ptr.vmem [resolvable:$true] %s93_s5  ;;  %s104_s12 = int_to_ptr.vmem [resolvable:$true] %s103_s12 }
  0x6b   :  { %s14932_s8 = scalar_lea.hbm %s15348_s6, 32 }
  0x6c   :  { %p14933_p6 = scmp.ne.s32.totalorder %s15348_s6, %s14932_s8  ;;  %p14936_p7 = scmp.lt.u32.totalorder %s14932_s8, %s15348_s6 }
  0x6e   :  { %p14938_p8 = pnand %p14936_p7, %p14933_p6 }
  0x70   :  { %14941 = shalt.err (!%p14938_p8)
}
  0x71   :  { %s14942_s4 = scalar_lea.vmem %s94_s5, 32  ;;  %p14947_p10 = scmp.lt.s32.totalorder %s94_s5, %s94_s5 }
  0x72   :  { %p14943_p9 = scmp.ne.s32.totalorder %s94_s5, %s14942_s4  ;;  %p14948_p11 = scmp.lt.s32.totalorder %s14942_s4, %s14942_s4 }
  0x74   :  { %p14949_p12 = por %p14948_p11, %p14947_p10 }
  0x76   :  { %p14950_p13 = pnand %p14949_p12, %p14943_p9 }
  0x78   :  { %14953 = shalt.err (!%p14950_p13)
}
  0x79   :  { %96 = dma.hbm_to_vmem [thread:$0]  %s15348_s6, 32, %s94_s5, [#allocation12]  }
  0x7a   :  { %s14954_s19 = scalar_lea.hbm %s15349_s7, 32 }
  0x7b   :  { %p14955_p0 = scmp.ne.s32.totalorder %s15349_s7, %s14954_s19  ;;  %p14958_p1 = scmp.lt.u32.totalorder %s14954_s19, %s15349_s7 }
  0x7d   :  { %p14960_p2 = pnand %p14958_p1, %p14955_p0 }
  0x7f   :  { %14963 = shalt.err (!%p14960_p2)
}
  0x80   :  { %s14964_s29 = scalar_lea.vmem %s104_s12, 32  ;;  %p14969_p4 = scmp.lt.s32.totalorder %s104_s12, %s104_s12 }
  0x81   :  { %p14965_p3 = scmp.ne.s32.totalorder %s104_s12, %s14964_s29  ;;  %p14970_p5 = scmp.lt.s32.totalorder %s14964_s29, %s14964_s29 }
  0x83   :  { %p14971_p6 = por %p14970_p5, %p14969_p4 }
  0x85   :  { %p14972_p7 = pnand %p14971_p6, %p14965_p3 }
  0x87   :  { %14975 = shalt.err (!%p14972_p7)
}
  0x88   :  { %106 = dma.hbm_to_vmem [thread:$0]  %s15349_s7, 32, %s104_s12, [#allocation15]  }
  0x89   :  { %14976 = dma.done.wait [#allocation4], 3072  }
  0x8a   :  { %14977 = vsyncadd [#allocation4], 4294964224 }
  0x8b   :  { %14978 = dma.done.wait [#allocation6], 196736  }
  0x8c   :  { %14979 = vsyncadd [#allocation6], 4294770560 }
  0x8d   :  { %14980 = dma.done.wait [#allocation9], 16416  }
  0x8e   :  { %14981 = vsyncadd [#allocation9], 4294950880 }
  0x8f   :  { %14982 = dma.done.wait [#allocation12], 4128  }
  0x90   :  { %14983 = vsyncadd [#allocation12], 4294963168 }
  0x91   :  { %14984 = dma.done.wait [#allocation15], 32  }
  0x92   :  { %14985 = vsyncadd [#allocation15], 4294967264  ;;  %v181_v1 = vld [vmem:[#allocation5] sm:$0xff]  ;;  %v134_v54 = vld [vmem:[#allocation3 + $0x8] sm:$0xff]  ;;  %vm12643_vm0 = vcmask 7168  }
  0x93   :  { %v185_v2 = vld [vmem:[#allocation5 + $0x20] sm:$0xff]  ;;  %v15147_v58 = vpack.c.bf16 %v134_v54, %v134_v54  ;;  %v136_v59 = vld [vmem:[#allocation3 + $0x18] sm:$0xff] }
  0x94   :  { %v309_v3 = vld [vmem:[#allocation5 + $0x400] sm:$0xff]  ;;  %v12655_v4 = vcombine.high %v181_v1, %v185_v2  ;;  %v12654_v6 = vcombine.low %v181_v1, %v185_v2  ;;  %v15149_v62 = vpack.c.bf16 %v136_v59, %v136_v59 }
  0x95   :  { %v313_v5 = vld [vmem:[#allocation5 + $0x420] sm:$0xff]  ;;  %9471 = vmatprep.mubr.bf16.mxu1 %v15147_v58 }
  0x96   :  { %v189_v7 = vld [vmem:[#allocation5 + $0x40] sm:$0xff]  ;;  %v12783_v9 = vcombine.high %v309_v3, %v313_v5  ;;  %v12782_v10 = vcombine.low %v309_v3, %v313_v5  ;;  %9439 = vmatprep.subr.bf16.mxu1 %v12655_v4  ;;  %9512 = vmatprep.mubr.bf16.mxu0 %v15149_v62 }
  0x97   :  { %v193_v8 = vld [vmem:[#allocation5 + $0x60] sm:$0xff]  ;;  %9440 = vmatpush1.bf16.msra.mxu1 %v12654_v6 }
  0x98   :  { %v12663_v11 = vcombine.high %v189_v7, %v193_v8  ;;  %v317_v12 = vld [vmem:[#allocation5 + $0x440] sm:$0xff]  ;;  %9480 = vmatprep.subr.bf16.mxu0 %v12783_v9  ;;  %v12662_v19 = vcombine.low %v189_v7, %v193_v8 }
  0x99   :  { %v321_v13 = vld [vmem:[#allocation5 + $0x460] sm:$0xff]  ;;  %9481 = vmatpush1.bf16.msra.mxu0 %v12782_v10 }
  0x9a   :  { %v197_v14 = vld [vmem:[#allocation5 + $0x80] sm:$0xff]  ;;  %v12791_v15 = vcombine.high %v317_v12, %v321_v13  ;;  %9441 = vmatprep.subr.bf16.mxu1 %v12663_v11  ;;  %v12790_v20 = vcombine.low %v317_v12, %v321_v13 }
  0x9b   :  { %v201_v16 = vld [vmem:[#allocation5 + $0xa0] sm:$0xff]  ;;  %9442 = vmatpush1.bf16.msra.mxu1 %v12662_v19 }
  0x9c   :  { %v325_v17 = vld [vmem:[#allocation5 + $0x480] sm:$0xff]  ;;  %v12671_v21 = vcombine.high %v197_v14, %v201_v16  ;;  %9482 = vmatprep.subr.bf16.mxu0 %v12791_v15  ;;  %v12670_v27 = vcombine.low %v197_v14, %v201_v16 }
  0x9d   :  { %v329_v18 = vld [vmem:[#allocation5 + $0x4a0] sm:$0xff]  ;;  %9483 = vmatpush1.bf16.msra.mxu0 %v12790_v20 }
  0x9e   :  { %v12799_v22 = vcombine.high %v325_v17, %v329_v18  ;;  %v205_v23 = vld [vmem:[#allocation5 + $0xc0] sm:$0xff]  ;;  %9443 = vmatprep.subr.bf16.mxu1 %v12671_v21  ;;  %v12798_v28 = vcombine.low %v325_v17, %v329_v18 }
  0x9f   :  { %v209_v24 = vld [vmem:[#allocation5 + $0xe0] sm:$0xff]  ;;  %9444 = vmatpush1.bf16.msra.mxu1 %v12670_v27 }
  0xa0   :  { %v333_v25 = vld [vmem:[#allocation5 + $0x4c0] sm:$0xff]  ;;  %v12679_v29 = vcombine.high %v205_v23, %v209_v24  ;;  %9484 = vmatprep.subr.bf16.mxu0 %v12799_v22  ;;  %v12678_v35 = vcombine.low %v205_v23, %v209_v24 }
  0xa1   :  { %v337_v26 = vld [vmem:[#allocation5 + $0x4e0] sm:$0xff]  ;;  %9485 = vmatpush1.bf16.msra.mxu0 %v12798_v28 }
  0xa2   :  { %v12807_v30 = vcombine.high %v333_v25, %v337_v26  ;;  %v213_v31 = vld [vmem:[#allocation5 + $0x100] sm:$0xff]  ;;  %9445 = vmatprep.subr.bf16.mxu1 %v12679_v29  ;;  %v12806_v36 = vcombine.low %v333_v25, %v337_v26 }
  0xa3   :  { %v217_v32 = vld [vmem:[#allocation5 + $0x120] sm:$0xff]  ;;  %9446 = vmatpush1.bf16.msra.mxu1 %v12678_v35 }
  0xa4   :  { %v341_v33 = vld [vmem:[#allocation5 + $0x500] sm:$0xff]  ;;  %v12687_v37 = vcombine.high %v213_v31, %v217_v32  ;;  %9486 = vmatprep.subr.bf16.mxu0 %v12807_v30  ;;  %v12686_v43 = vcombine.low %v213_v31, %v217_v32 }
  0xa5   :  { %v345_v34 = vld [vmem:[#allocation5 + $0x520] sm:$0xff]  ;;  %9487 = vmatpush1.bf16.msra.mxu0 %v12806_v36 }
  0xa6   :  { %v12815_v38 = vcombine.high %v341_v33, %v345_v34  ;;  %v221_v39 = vld [vmem:[#allocation5 + $0x140] sm:$0xff]  ;;  %9447 = vmatprep.subr.bf16.mxu1 %v12687_v37  ;;  %v12814_v44 = vcombine.low %v341_v33, %v345_v34 }
  0xa7   :  { %v225_v40 = vld [vmem:[#allocation5 + $0x160] sm:$0xff]  ;;  %9448 = vmatpush1.bf16.msra.mxu1 %v12686_v43 }
  0xa8   :  { %v349_v41 = vld [vmem:[#allocation5 + $0x540] sm:$0xff]  ;;  %v12695_v45 = vcombine.high %v221_v39, %v225_v40  ;;  %9488 = vmatprep.subr.bf16.mxu0 %v12815_v38  ;;  %v12694_v51 = vcombine.low %v221_v39, %v225_v40 }
  0xa9   :  { %v353_v42 = vld [vmem:[#allocation5 + $0x560] sm:$0xff]  ;;  %9489 = vmatpush1.bf16.msra.mxu0 %v12814_v44 }
  0xaa   :  { %v12823_v46 = vcombine.high %v349_v41, %v353_v42  ;;  %v229_v47 = vld [vmem:[#allocation5 + $0x180] sm:$0xff]  ;;  %9449 = vmatprep.subr.bf16.mxu1 %v12695_v45  ;;  %v12822_v52 = vcombine.low %v349_v41, %v353_v42 }
  0xab   :  { %v233_v48 = vld [vmem:[#allocation5 + $0x1a0] sm:$0xff]  ;;  %9450 = vmatpush1.bf16.msra.mxu1 %v12694_v51 }
  0xac   :  { %v357_v49 = vld [vmem:[#allocation5 + $0x580] sm:$0xff]  ;;  %v12703_v53 = vcombine.high %v229_v47, %v233_v48  ;;  %9490 = vmatprep.subr.bf16.mxu0 %v12823_v46  ;;  %v12702_v63 = vcombine.low %v229_v47, %v233_v48 }
  0xad   :  { %v361_v50 = vld [vmem:[#allocation5 + $0x5a0] sm:$0xff]  ;;  %9491 = vmatpush1.bf16.msra.mxu0 %v12822_v52 }
  0xae   :  { %v12831_v55 = vcombine.high %v357_v49, %v361_v50  ;;  %v237_v56 = vld [vmem:[#allocation5 + $0x1c0] sm:$0xff]  ;;  %9451 = vmatprep.subr.bf16.mxu1 %v12703_v53  ;;  %v12830_v0 = vcombine.low %v357_v49, %v361_v50 }
  0xaf   :  { %v241_v57 = vld [vmem:[#allocation5 + $0x1e0] sm:$0xff]  ;;  %9452 = vmatpush1.bf16.msra.mxu1 %v12702_v63 }
  0xb0   :  { %v365_v60 = vld [vmem:[#allocation5 + $0x5c0] sm:$0xff]  ;;  %v12711_v1 = vcombine.high %v237_v56, %v241_v57  ;;  %9492 = vmatprep.subr.bf16.mxu0 %v12831_v55  ;;  %v12710_v7 = vcombine.low %v237_v56, %v241_v57 }
  0xb1   :  { %v369_v61 = vld [vmem:[#allocation5 + $0x5e0] sm:$0xff]  ;;  %9493 = vmatpush1.bf16.msra.mxu0 %v12830_v0 }
  0xb2   :  { %v12839_v2 = vcombine.high %v365_v60, %v369_v61  ;;  %v245_v3 = vld [vmem:[#allocation5 + $0x200] sm:$0xff]  ;;  %9453 = vmatprep.subr.bf16.mxu1 %v12711_v1  ;;  %v12838_v8 = vcombine.low %v365_v60, %v369_v61 }
  0xb3   :  { %v249_v4 = vld [vmem:[#allocation5 + $0x220] sm:$0xff]  ;;  %9454 = vmatpush1.bf16.msra.mxu1 %v12710_v7 }
  0xb4   :  { %v373_v5 = vld [vmem:[#allocation5 + $0x600] sm:$0xff]  ;;  %v12719_v9 = vcombine.high %v245_v3, %v249_v4  ;;  %9494 = vmatprep.subr.bf16.mxu0 %v12839_v2  ;;  %v12718_v15 = vcombine.low %v245_v3, %v249_v4 }
  0xb5   :  { %v377_v6 = vld [vmem:[#allocation5 + $0x620] sm:$0xff]  ;;  %9495 = vmatpush1.bf16.msra.mxu0 %v12838_v8 }
  0xb6   :  { %v12847_v10 = vcombine.high %v373_v5, %v377_v6  ;;  %v253_v11 = vld [vmem:[#allocation5 + $0x240] sm:$0xff]  ;;  %9455 = vmatprep.subr.bf16.mxu1 %v12719_v9  ;;  %v12846_v16 = vcombine.low %v373_v5, %v377_v6  ;;  %v182_v5 = vld [vmem:[#allocation5 + $0x8] sm:$0xff] }
  0xb7   :  { %v257_v12 = vld [vmem:[#allocation5 + $0x260] sm:$0xff]  ;;  %9456 = vmatpush1.bf16.msra.mxu1 %v12718_v15  ;;  %v186_v6 = vld [vmem:[#allocation5 + $0x28] sm:$0xff] }
  0xb8   :  { %v381_v13 = vld [vmem:[#allocation5 + $0x640] sm:$0xff]  ;;  %v12727_v17 = vcombine.high %v253_v11, %v257_v12  ;;  %9496 = vmatprep.subr.bf16.mxu0 %v12847_v10  ;;  %v12726_v23 = vcombine.low %v253_v11, %v257_v12  ;;  %v12657_v12 = vcombine.high %v182_v5, %v186_v6  ;;  %v190_v15 = vld [vmem:[#allocation5 + $0x48] sm:$0xff] }
  0xb9   :  { %v385_v14 = vld [vmem:[#allocation5 + $0x660] sm:$0xff]  ;;  %9497 = vmatpush1.bf16.msra.mxu0 %v12846_v16  ;;  %v194_v16 = vld [vmem:[#allocation5 + $0x68] sm:$0xff] }
  0xba   :  { %v12855_v18 = vcombine.high %v381_v13, %v385_v14  ;;  %v261_v19 = vld [vmem:[#allocation5 + $0x280] sm:$0xff]  ;;  %9457 = vmatprep.subr.bf16.mxu1 %v12727_v17  ;;  %v12854_v24 = vcombine.low %v381_v13, %v385_v14  ;;  %v135_v13 = vld [vmem:[#allocation3 + $0x10] sm:$0xff] }
  0xbb   :  { %v265_v20 = vld [vmem:[#allocation5 + $0x2a0] sm:$0xff]  ;;  %9458 = vmatpush1.bf16.msra.mxu1 %v12726_v23 }
  0xbc   :  { %v389_v21 = vld [vmem:[#allocation5 + $0x680] sm:$0xff]  ;;  %v12735_v25 = vcombine.high %v261_v19, %v265_v20  ;;  %9498 = vmatprep.subr.bf16.mxu0 %v12855_v18  ;;  %v12734_v31 = vcombine.low %v261_v19, %v265_v20  ;;  %v138_v20 = vld [vmem:[#allocation3 + $0x28] sm:$0xff] }
  0xbd   :  { %v393_v22 = vld [vmem:[#allocation5 + $0x6a0] sm:$0xff]  ;;  %9499 = vmatpush1.bf16.msra.mxu0 %v12854_v24  ;;  %v12665_v24 = vcombine.high %v190_v15, %v194_v16 }
  0xbe   :  { %v12863_v26 = vcombine.high %v389_v21, %v393_v22  ;;  %v269_v27 = vld [vmem:[#allocation5 + $0x2c0] sm:$0xff]  ;;  %9459 = vmatprep.subr.bf16.mxu1 %v12735_v25  ;;  %v12862_v32 = vcombine.low %v389_v21, %v393_v22  ;;  %v12656_v21 = vcombine.low %v182_v5, %v186_v6  ;;  %v15155_v22 = vpack.c.bf16 %v135_v13, %v135_v13  ;;  %v238_v6 = vld [vmem:[#allocation5 + $0x1c8] sm:$0xff] }
  0xbf   :  { %v273_v28 = vld [vmem:[#allocation5 + $0x2e0] sm:$0xff]  ;;  %9460 = vmatpush1.bf16.msra.mxu1 %v12734_v31  ;;  %v12664_v31 = vcombine.low %v190_v15, %v194_v16  ;;  %v250_v16 = vld [vmem:[#allocation5 + $0x228] sm:$0xff] }
  0xc0   :  { %v397_v29 = vld [vmem:[#allocation5 + $0x6c0] sm:$0xff]  ;;  %v12743_v33 = vcombine.high %v269_v27, %v273_v28  ;;  %9500 = vmatprep.subr.bf16.mxu0 %v12863_v26  ;;  %v12742_v39 = vcombine.low %v269_v27, %v273_v28  ;;  %v198_v26 = vld [vmem:[#allocation5 + $0x88] sm:$0xff]  ;;  %v15157_v28 = vpack.c.bf16 %v138_v20, %v138_v20 }
  0xc1   :  { %v401_v30 = vld [vmem:[#allocation5 + $0x6e0] sm:$0xff]  ;;  %9501 = vmatpush1.bf16.msra.mxu0 %v12862_v32  ;;  %v202_v27 = vld [vmem:[#allocation5 + $0xa8] sm:$0xff] }
  0xc2   :  { %v12871_v34 = vcombine.high %v397_v29, %v401_v30  ;;  %v277_v35 = vld [vmem:[#allocation5 + $0x300] sm:$0xff]  ;;  %9461 = vmatprep.subr.bf16.mxu1 %v12743_v33  ;;  %v12870_v40 = vcombine.low %v397_v29, %v401_v30  ;;  %v12673_v33 = vcombine.high %v198_v26, %v202_v27 }
  0xc3   :  { %v281_v36 = vld [vmem:[#allocation5 + $0x320] sm:$0xff]  ;;  %9462 = vmatpush1.bf16.msra.mxu1 %v12742_v39  ;;  %v12672_v39 = vcombine.low %v198_v26, %v202_v27  ;;  %v258_v26 = vld [vmem:[#allocation5 + $0x268] sm:$0xff] }
  0xc4   :  { %v405_v37 = vld [vmem:[#allocation5 + $0x700] sm:$0xff]  ;;  %v12751_v41 = vcombine.high %v277_v35, %v281_v36  ;;  %9502 = vmatprep.subr.bf16.mxu0 %v12871_v34  ;;  %v12750_v47 = vcombine.low %v277_v35, %v281_v36  ;;  %v206_v36 = vld [vmem:[#allocation5 + $0xc8] sm:$0xff] }
  0xc5   :  { %v409_v38 = vld [vmem:[#allocation5 + $0x720] sm:$0xff]  ;;  %9503 = vmatpush1.bf16.msra.mxu0 %v12870_v40 }
  0xc6   :  { %v12879_v42 = vcombine.high %v405_v37, %v409_v38  ;;  %v285_v43 = vld [vmem:[#allocation5 + $0x340] sm:$0xff]  ;;  %9463 = vmatprep.subr.bf16.mxu1 %v12751_v41  ;;  %v12878_v48 = vcombine.low %v405_v37, %v409_v38  ;;  %v210_v38 = vld [vmem:[#allocation5 + $0xe8] sm:$0xff] }
  0xc7   :  { %v289_v44 = vld [vmem:[#allocation5 + $0x360] sm:$0xff]  ;;  %9464 = vmatpush1.bf16.msra.mxu1 %v12750_v47  ;;  %v12681_v41 = vcombine.high %v206_v36, %v210_v38  ;;  %v12680_v47 = vcombine.low %v206_v36, %v210_v38 }
  0xc8   :  { %v413_v45 = vld [vmem:[#allocation5 + $0x740] sm:$0xff]  ;;  %v12759_v49 = vcombine.high %v285_v43, %v289_v44  ;;  %9504 = vmatprep.subr.bf16.mxu0 %v12879_v42  ;;  %v12758_v55 = vcombine.low %v285_v43, %v289_v44  ;;  %v214_v44 = vld [vmem:[#allocation5 + $0x108] sm:$0xff] }
  0xc9   :  { %v417_v46 = vld [vmem:[#allocation5 + $0x760] sm:$0xff]  ;;  %9505 = vmatpush1.bf16.msra.mxu0 %v12878_v48 }
  0xca   :  { %v12887_v50 = vcombine.high %v413_v45, %v417_v46  ;;  %v293_v51 = vld [vmem:[#allocation5 + $0x380] sm:$0xff]  ;;  %9465 = vmatprep.subr.bf16.mxu1 %v12759_v49  ;;  %v12886_v56 = vcombine.low %v413_v45, %v417_v46  ;;  %v218_v46 = vld [vmem:[#allocation5 + $0x128] sm:$0xff] }
  0xcb   :  { %v297_v52 = vld [vmem:[#allocation5 + $0x3a0] sm:$0xff]  ;;  %9466 = vmatpush1.bf16.msra.mxu1 %v12758_v55  ;;  %v12689_v49 = vcombine.high %v214_v44, %v218_v46  ;;  %v12688_v55 = vcombine.low %v214_v44, %v218_v46 }
  0xcc   :  { %v421_v53 = vld [vmem:[#allocation5 + $0x780] sm:$0xff]  ;;  %v12767_v57 = vcombine.high %v293_v51, %v297_v52  ;;  %9506 = vmatprep.subr.bf16.mxu0 %v12887_v50  ;;  %v12766_v1 = vcombine.low %v293_v51, %v297_v52  ;;  %v222_v52 = vld [vmem:[#allocation5 + $0x148] sm:$0xff] }
  0xcd   :  { %v425_v54 = vld [vmem:[#allocation5 + $0x7a0] sm:$0xff]  ;;  %9507 = vmatpush1.bf16.msra.mxu0 %v12886_v56 }
  0xce   :  { %v12895_v59 = vcombine.high %v421_v53, %v425_v54  ;;  %v301_v60 = vld [vmem:[#allocation5 + $0x3c0] sm:$0xff]  ;;  %9467 = vmatprep.subr.bf16.mxu1 %v12767_v57  ;;  %v12894_v2 = vcombine.low %v421_v53, %v425_v54  ;;  %v226_v54 = vld [vmem:[#allocation5 + $0x168] sm:$0xff] }
  0xcf   :  { %v305_v61 = vld [vmem:[#allocation5 + $0x3e0] sm:$0xff]  ;;  %9468 = vmatpush1.bf16.msra.mxu1 %v12766_v1  ;;  %v12697_v57 = vcombine.high %v222_v52, %v226_v54  ;;  %v12696_v1 = vcombine.low %v222_v52, %v226_v54 }
  0xd0   :  { %v429_v63 = vld [vmem:[#allocation5 + $0x7c0] sm:$0xff]  ;;  %v12775_v3 = vcombine.high %v301_v60, %v305_v61  ;;  %9508 = vmatprep.subr.bf16.mxu0 %v12895_v59  ;;  %v12774_v9 = vcombine.low %v301_v60, %v305_v61  ;;  %v230_v61 = vld [vmem:[#allocation5 + $0x188] sm:$0xff] }
  0xd1   :  { %v433_v0 = vld [vmem:[#allocation5 + $0x7e0] sm:$0xff]  ;;  %9509 = vmatpush1.bf16.msra.mxu0 %v12894_v2 }
  0xd2   :  { %v12903_v4 = vcombine.high %v429_v63, %v433_v0  ;;  %v437_v7 = vld [vmem:[#allocation5 + $0x800] sm:$0xff]  ;;  %9469 = vmatprep.subr.bf16.mxu1 %v12775_v3  ;;  %v12902_v11 = vcombine.low %v429_v63, %v433_v0  ;;  %v234_v0 = vld [vmem:[#allocation5 + $0x1a8] sm:$0xff] }
  0xd3   :  { %v441_v8 = vld [vmem:[#allocation5 + $0x820] sm:$0xff]  ;;  %9470 = vmatpush1.bf16.msra.mxu1 %v12774_v9  ;;  %v12705_v3 = vcombine.high %v230_v61, %v234_v0  ;;  %v12704_v9 = vcombine.low %v230_v61, %v234_v0 }
  0xd4   :  { %v133_v10 = vld [vmem:[#allocation3] sm:$0xff]  ;;  %9510 = vmatprep.subr.bf16.mxu0 %v12903_v4  ;;  %v12911_v14 = vcombine.high %v437_v7, %v441_v8  ;;  %v12910_v23 = vcombine.low %v437_v7, %v441_v8  ;;  %9931 = vmatprep.subr.bf16.mxu1 %v12657_v12  ;;  %v242_v8 = vld [vmem:[#allocation5 + $0x1e8] sm:$0xff] }
  0xd5   :  { %v15153_v17 = vpack.c.bf16 %v133_v10, %v133_v10  ;;  %v445_v18 = vld [vmem:[#allocation5 + $0x840] sm:$0xff]  ;;  %9511 = vmatpush1.bf16.msra.mxu0 %v12902_v11  ;;  %v12713_v11 = vcombine.high %v238_v6, %v242_v8 }
  0xd6   :  { %v449_v19 = vld [vmem:[#allocation5 + $0x860] sm:$0xff]  ;;  %9521 = vmatprep.subr.bf16.mxu0 %v12911_v14  ;;  %v246_v14 = vld [vmem:[#allocation5 + $0x208] sm:$0xff] }
  0xd7   :  { %v12919_v25 = vcombine.high %v445_v18, %v449_v19  ;;  %9472 = vmatmul.mubr.bf16.vlgmr.msra.gmra.mrb[0].mxu1 %v15153_v17  ;;  %v453_v29 = vld [vmem:[#allocation5 + $0x880] sm:$0xff]  ;;  %v12918_v32 = vcombine.low %v445_v18, %v449_v19  ;;  %v12712_v18 = vcombine.low %v238_v6, %v242_v8  ;;  %v12721_v20 = vcombine.high %v246_v14, %v250_v16 }
  0xd8   :  { %v457_v30 = vld [vmem:[#allocation5 + $0x8a0] sm:$0xff]  ;;  %9513 = vmatmul.mubr.bf16.vlgmr.msra.gmra.mrb[0].mxu0 %v15155_v22  ;;  %9932 = vmatpush1.bf16.msra.mxu1 %v12656_v21  ;;  %v12720_v27 = vcombine.low %v246_v14, %v250_v16 }
  0xd9   :  { %9522 = vmatpush1.bf16.msra.mxu0 %v12910_v23  ;;  %9933 = vmatprep.subr.bf16.mxu1 %v12665_v24  ;;  %v461_v34 = vld [vmem:[#allocation5 + $0x8c0] sm:$0xff]  ;;  %v12927_v37 = vcombine.high %v453_v29, %v457_v30  ;;  %v12926_v40 = vcombine.low %v453_v29, %v457_v30  ;;  %v254_v24 = vld [vmem:[#allocation5 + $0x248] sm:$0xff] }
  0xda   :  { %v465_v35 = vld [vmem:[#allocation5 + $0x8e0] sm:$0xff]  ;;  %9523 = vmatprep.subr.bf16.mxu0 %v12919_v25  ;;  %9553 = vmatprep.mubr.bf16.mxu0 %v15157_v28  ;;  %v12729_v30 = vcombine.high %v254_v24, %v258_v26  ;;  %v12728_v36 = vcombine.low %v254_v24, %v258_v26 }
  0xdb   :  { %9963 = vmatprep.mubr.bf16.mxu1 %v15147_v58  ;;  %v469_v42 = vld [vmem:[#allocation5 + $0x900] sm:$0xff]  ;;  %v12935_v45 = vcombine.high %v461_v34, %v465_v35  ;;  %v12934_v48 = vcombine.low %v461_v34, %v465_v35  ;;  %v266_v35 = vld [vmem:[#allocation5 + $0x2a8] sm:$0xff] }
  0xdc   :  { %9934 = vmatpush1.bf16.msra.mxu1 %v12664_v31  ;;  %v473_v43 = vld [vmem:[#allocation5 + $0x920] sm:$0xff] }
  0xdd   :  { %9524 = vmatpush1.bf16.msra.mxu0 %v12918_v32  ;;  %9935 = vmatprep.subr.bf16.mxu1 %v12673_v33  ;;  %v477_v50 = vld [vmem:[#allocation5 + $0x940] sm:$0xff]  ;;  %v12943_v53 = vcombine.high %v469_v42, %v473_v43  ;;  %v12942_v56 = vcombine.low %v469_v42, %v473_v43  ;;  %v262_v33 = vld [vmem:[#allocation5 + $0x288] sm:$0xff] }
  0xde   :  { %9525 = vmatprep.subr.bf16.mxu0 %v12927_v37  ;;  %v481_v51 = vld [vmem:[#allocation5 + $0x960] sm:$0xff]  ;;  %v12737_v38 = vcombine.high %v262_v33, %v266_v35  ;;  %v274_v43 = vld [vmem:[#allocation5 + $0x2e8] sm:$0xff]  ;;  %v12736_v44 = vcombine.low %v262_v33, %v266_v35 }
  0xdf   :  { %v485_v59 = vld [vmem:[#allocation5 + $0x980] sm:$0xff]  ;;  %v12951_v63 = vcombine.high %v477_v50, %v481_v51  ;;  %v12950_v2 = vcombine.low %v477_v50, %v481_v51  ;;  %v282_v51 = vld [vmem:[#allocation5 + $0x328] sm:$0xff] }
  0xe0   :  { %9936 = vmatpush1.bf16.msra.mxu1 %v12672_v39  ;;  %v489_v60 = vld [vmem:[#allocation5 + $0x9a0] sm:$0xff] }
  0xe1   :  { %9526 = vmatpush1.bf16.msra.mxu0 %v12926_v40  ;;  %9937 = vmatprep.subr.bf16.mxu1 %v12681_v41  ;;  %v493_v4 = vld [vmem:[#allocation5 + $0x9c0] sm:$0xff]  ;;  %v12959_v7 = vcombine.high %v485_v59, %v489_v60  ;;  %v12958_v10 = vcombine.low %v485_v59, %v489_v60  ;;  %v270_v41 = vld [vmem:[#allocation5 + $0x2c8] sm:$0xff] }
  0xe2   :  { %9527 = vmatprep.subr.bf16.mxu0 %v12935_v45  ;;  %v497_v5 = vld [vmem:[#allocation5 + $0x9e0] sm:$0xff]  ;;  %v12745_v46 = vcombine.high %v270_v41, %v274_v43  ;;  %v12744_v52 = vcombine.low %v270_v41, %v274_v43  ;;  %v290_v60 = vld [vmem:[#allocation5 + $0x368] sm:$0xff] }
  0xe3   :  { %v501_v12 = vld [vmem:[#allocation5 + $0xa00] sm:$0xff]  ;;  %v12967_v15 = vcombine.high %v493_v4, %v497_v5  ;;  %v12966_v19 = vcombine.low %v493_v4, %v497_v5  ;;  %v298_v5 = vld [vmem:[#allocation5 + $0x3a8] sm:$0xff] }
  0xe4   :  { %9938 = vmatpush1.bf16.msra.mxu1 %v12680_v47  ;;  %v505_v13 = vld [vmem:[#allocation5 + $0xa20] sm:$0xff]  ;;  %v330_v43 = vld [vmem:[#allocation5 + $0x4a8] sm:$0xff] }
  0xe5   :  { %9528 = vmatpush1.bf16.msra.mxu0 %v12934_v48  ;;  %9939 = vmatprep.subr.bf16.mxu1 %v12689_v49  ;;  %v509_v21 = vld [vmem:[#allocation5 + $0xa40] sm:$0xff]  ;;  %v12975_v25 = vcombine.high %v501_v12, %v505_v13  ;;  %v12974_v29 = vcombine.low %v501_v12, %v505_v13  ;;  %v278_v49 = vld [vmem:[#allocation5 + $0x308] sm:$0xff] }
  0xe6   :  { %9529 = vmatprep.subr.bf16.mxu0 %v12943_v53  ;;  %v513_v23 = vld [vmem:[#allocation5 + $0xa60] sm:$0xff]  ;;  %v12753_v54 = vcombine.high %v278_v49, %v282_v51  ;;  %v12752_v61 = vcombine.low %v278_v49, %v282_v51  ;;  %v306_v13 = vld [vmem:[#allocation5 + $0x3e8] sm:$0xff] }
  0xe7   :  { %v517_v31 = vld [vmem:[#allocation5 + $0xa80] sm:$0xff]  ;;  %v12983_v34 = vcombine.high %v509_v21, %v513_v23  ;;  %v12982_v37 = vcombine.low %v509_v21, %v513_v23  ;;  %v314_v23 = vld [vmem:[#allocation5 + $0x428] sm:$0xff] }
  0xe8   :  { %9940 = vmatpush1.bf16.msra.mxu1 %v12688_v55  ;;  %v521_v32 = vld [vmem:[#allocation5 + $0xaa0] sm:$0xff] }
  0xe9   :  { %9530 = vmatpush1.bf16.msra.mxu0 %v12942_v56  ;;  %9941 = vmatprep.subr.bf16.mxu1 %v12697_v57  ;;  %v525_v39 = vld [vmem:[#allocation5 + $0xac0] sm:$0xff]  ;;  %v12991_v42 = vcombine.high %v517_v31, %v521_v32  ;;  %v12990_v45 = vcombine.low %v517_v31, %v521_v32  ;;  %v286_v57 = vld [vmem:[#allocation5 + $0x348] sm:$0xff] }
  0xea   :  { %9531 = vmatprep.subr.bf16.mxu0 %v12951_v63  ;;  %v529_v40 = vld [vmem:[#allocation5 + $0xae0] sm:$0xff]  ;;  %v12761_v0 = vcombine.high %v286_v57, %v290_v60  ;;  %v12760_v6 = vcombine.low %v286_v57, %v290_v60  ;;  %v318_v31 = vld [vmem:[#allocation5 + $0x448] sm:$0xff] }
  0xeb   :  { %v533_v47 = vld [vmem:[#allocation5 + $0xb00] sm:$0xff]  ;;  %v12999_v50 = vcombine.high %v525_v39, %v529_v40  ;;  %v12998_v53 = vcombine.low %v525_v39, %v529_v40  ;;  %v322_v32 = vld [vmem:[#allocation5 + $0x468] sm:$0xff] }
  0xec   :  { %9942 = vmatpush1.bf16.msra.mxu1 %v12696_v1  ;;  %v537_v48 = vld [vmem:[#allocation5 + $0xb20] sm:$0xff] }
  0xed   :  { %9532 = vmatpush1.bf16.msra.mxu0 %v12950_v2  ;;  %9943 = vmatprep.subr.bf16.mxu1 %v12705_v3  ;;  %v541_v55 = vld [vmem:[#allocation5 + $0xb40] sm:$0xff]  ;;  %v13007_v59 = vcombine.high %v533_v47, %v537_v48  ;;  %v13006_v63 = vcombine.low %v533_v47, %v537_v48  ;;  %v294_v3 = vld [vmem:[#allocation5 + $0x388] sm:$0xff] }
  0xee   :  { %9533 = vmatprep.subr.bf16.mxu0 %v12959_v7  ;;  %v545_v56 = vld [vmem:[#allocation5 + $0xb60] sm:$0xff]  ;;  %v12769_v8 = vcombine.high %v294_v3, %v298_v5  ;;  %v12768_v14 = vcombine.low %v294_v3, %v298_v5 }
  0xef   :  { %v549_v1 = vld [vmem:[#allocation5 + $0xb80] sm:$0xff]  ;;  %v13015_v4 = vcombine.high %v541_v55, %v545_v56  ;;  %v13014_v7 = vcombine.low %v541_v55, %v545_v56 }
  0xf0   :  { %9944 = vmatpush1.bf16.msra.mxu1 %v12704_v9  ;;  %v553_v2 = vld [vmem:[#allocation5 + $0xba0] sm:$0xff] }
  0xf1   :  { %9534 = vmatpush1.bf16.msra.mxu0 %v12958_v10  ;;  %9945 = vmatprep.subr.bf16.mxu1 %v12713_v11  ;;  %v557_v9 = vld [vmem:[#allocation5 + $0xbc0] sm:$0xff]  ;;  %v302_v11 = vld [vmem:[#allocation5 + $0x3c8] sm:$0xff]  ;;  %v13023_v12 = vcombine.high %v549_v1, %v553_v2 }
  0xf2   :  { %9535 = vmatprep.subr.bf16.mxu0 %v12967_v15  ;;  %v561_v10 = vld [vmem:[#allocation5 + $0xbe0] sm:$0xff]  ;;  %v13022_v15 = vcombine.low %v549_v1, %v553_v2  ;;  %v12777_v16 = vcombine.high %v302_v11, %v306_v13 }
  0xf3   :  { %v13031_v21 = vcombine.high %v557_v9, %v561_v10  ;;  %v137_v24 = vld [vmem:[#allocation3 + $0x20] sm:$0xff]  ;;  %v13030_v26 = vcombine.low %v557_v9, %v561_v10 }
  0xf4   :  { %9946 = vmatpush1.bf16.msra.mxu1 %v12712_v18  ;;  %v565_v18 = vld [vmem:[#allocation5 + $0xc00] sm:$0xff] }
  0xf5   :  { %9536 = vmatpush1.bf16.msra.mxu0 %v12966_v19  ;;  %9947 = vmatprep.subr.bf16.mxu1 %v12721_v20  ;;  %v569_v19 = vld [vmem:[#allocation5 + $0xc20] sm:$0xff]  ;;  %v310_v20 = vld [vmem:[#allocation5 + $0x408] sm:$0xff] }
  0xf6   :  { %9537 = vmatprep.subr.bf16.mxu0 %v12975_v25  ;;  %v12776_v25 = vcombine.low %v302_v11, %v306_v13  ;;  %v13039_v33 = vcombine.high %v565_v18, %v569_v19  ;;  %v12784_v35 = vcombine.low %v310_v20, %v314_v23  ;;  %v581_v39 = vld [vmem:[#allocation5 + $0xc80] sm:$0xff] }
  0xf7   :  { %v585_v41 = vld [vmem:[#allocation5 + $0xca0] sm:$0xff] }
  0xf8   :  { %9948 = vmatpush1.bf16.msra.mxu1 %v12720_v27  ;;  %v12785_v27 = vcombine.high %v310_v20, %v314_v23  ;;  %v589_v48 = vld [vmem:[#allocation5 + $0xcc0] sm:$0xff]  ;;  %v13055_v51 = vcombine.high %v581_v39, %v585_v41  ;;  %v366_v20 = vld [vmem:[#allocation5 + $0x5c8] sm:$0xff] }
  0xf9   :  { %9538 = vmatpush1.bf16.msra.mxu0 %v12974_v29  ;;  %9949 = vmatprep.subr.bf16.mxu1 %v12729_v30  ;;  %v573_v29 = vld [vmem:[#allocation5 + $0xc40] sm:$0xff] }
  0xfa   :  { %9539 = vmatprep.subr.bf16.mxu0 %v12983_v34  ;;  %v577_v30 = vld [vmem:[#allocation5 + $0xc60] sm:$0xff]  ;;  %v140_v34 = vld [vmem:[#allocation3 + $0x38] sm:$0xff] }
  0xfb   :  { %v13047_v40 = vcombine.high %v573_v29, %v577_v30  ;;  %v593_v49 = vld [vmem:[#allocation5 + $0xce0] sm:$0xff] }
  0xfc   :  { %9950 = vmatpush1.bf16.msra.mxu1 %v12728_v36  ;;  %v15163_v36 = vpack.c.bf16 %v137_v24, %v137_v24  ;;  %v597_v56 = vld [vmem:[#allocation5 + $0xd00] sm:$0xff]  ;;  %v13063_v60 = vcombine.high %v589_v48, %v593_v49 }
  0xfd   :  { %9540 = vmatpush1.bf16.msra.mxu0 %v12982_v37  ;;  %9951 = vmatprep.subr.bf16.mxu1 %v12737_v38  ;;  %v13038_v37 = vcombine.low %v565_v18, %v569_v19  ;;  %v12793_v38 = vcombine.high %v318_v31, %v322_v32  ;;  %v601_v57 = vld [vmem:[#allocation5 + $0xd20] sm:$0xff] }
  0xfe   :  { %9541 = vmatprep.subr.bf16.mxu0 %v12991_v42  ;;  %v326_v42 = vld [vmem:[#allocation5 + $0x488] sm:$0xff]  ;;  %v605_v2 = vld [vmem:[#allocation5 + $0xd40] sm:$0xff]  ;;  %v13071_v5 = vcombine.high %v597_v56, %v601_v57 }
  0xff   :  { %v12801_v47 = vcombine.high %v326_v42, %v330_v43  ;;  %v609_v3 = vld [vmem:[#allocation5 + $0xd60] sm:$0xff] }
 0x100   :  { %9952 = vmatpush1.bf16.msra.mxu1 %v12736_v44  ;;  %v15165_v44 = vpack.c.bf16 %v140_v34, %v140_v34  ;;  %v613_v10 = vld [vmem:[#allocation5 + $0xd80] sm:$0xff]  ;;  %v13079_v13 = vcombine.high %v605_v2, %v609_v3 }
 0x101   :  { %9542 = vmatpush1.bf16.msra.mxu0 %v12990_v45  ;;  %9953 = vmatprep.subr.bf16.mxu1 %v12745_v46  ;;  %v12792_v45 = vcombine.low %v318_v31, %v322_v32  ;;  %v13046_v46 = vcombine.low %v573_v29, %v577_v30  ;;  %v617_v11 = vld [vmem:[#allocation5 + $0xda0] sm:$0xff]  ;;  %v374_v30 = vld [vmem:[#allocation5 + $0x608] sm:$0xff] }
 0x102   :  { %9543 = vmatprep.subr.bf16.mxu0 %v12999_v50  ;;  %v334_v50 = vld [vmem:[#allocation5 + $0x4c8] sm:$0xff]  ;;  %v13087_v19 = vcombine.high %v613_v10, %v617_v11  ;;  %v621_v23 = vld [vmem:[#allocation5 + $0xdc0] sm:$0xff] }
 0x103   :  { %v625_v24 = vld [vmem:[#allocation5 + $0xde0] sm:$0xff]  ;;  %v378_v31 = vld [vmem:[#allocation5 + $0x628] sm:$0xff] }
 0x104   :  { %9954 = vmatpush1.bf16.msra.mxu1 %v12744_v52  ;;  %v338_v52 = vld [vmem:[#allocation5 + $0x4e8] sm:$0xff]  ;;  %v13095_v29 = vcombine.high %v621_v23, %v625_v24  ;;  %v629_v32 = vld [vmem:[#allocation5 + $0xe00] sm:$0xff] }
 0x105   :  { %9544 = vmatpush1.bf16.msra.mxu0 %v12998_v53  ;;  %9955 = vmatprep.subr.bf16.mxu1 %v12753_v54  ;;  %v12800_v53 = vcombine.low %v326_v42, %v330_v43  ;;  %v13054_v54 = vcombine.low %v581_v39, %v585_v41  ;;  %v12809_v55 = vcombine.high %v334_v50, %v338_v52  ;;  %v382_v39 = vld [vmem:[#allocation5 + $0x648] sm:$0xff]  ;;  %v637_v41 = vld [vmem:[#allocation5 + $0xe40] sm:$0xff] }
 0x106   :  { %9545 = vmatprep.subr.bf16.mxu0 %v13007_v59  ;;  %v342_v59 = vld [vmem:[#allocation5 + $0x508] sm:$0xff]  ;;  %v641_v42 = vld [vmem:[#allocation5 + $0xe60] sm:$0xff]  ;;  %v12848_v43 = vcombine.low %v374_v30, %v378_v31 }
 0x108   :  { %9956 = vmatpush1.bf16.msra.mxu1 %v12752_v61  ;;  %v346_v61 = vld [vmem:[#allocation5 + $0x528] sm:$0xff] }
 0x109   :  { %9546 = vmatpush1.bf16.msra.mxu0 %v13006_v63  ;;  %9957 = vmatprep.subr.bf16.mxu1 %v12761_v0  ;;  %v12808_v63 = vcombine.low %v334_v50, %v338_v52  ;;  %v13062_v0 = vcombine.low %v589_v48, %v593_v49  ;;  %v12817_v1 = vcombine.high %v342_v59, %v346_v61  ;;  %v390_v48 = vld [vmem:[#allocation5 + $0x688] sm:$0xff]  ;;  %v645_v50 = vld [vmem:[#allocation5 + $0xe80] sm:$0xff] }
 0x10a   :  { %9547 = vmatprep.subr.bf16.mxu0 %v13015_v4  ;;  %v350_v4 = vld [vmem:[#allocation5 + $0x548] sm:$0xff] }
 0x10b   :  { %v394_v49 = vld [vmem:[#allocation5 + $0x6a8] sm:$0xff] }
 0x10c   :  { %9958 = vmatpush1.bf16.msra.mxu1 %v12760_v6  ;;  %v354_v6 = vld [vmem:[#allocation5 + $0x568] sm:$0xff] }
 0x10d   :  { %9548 = vmatpush1.bf16.msra.mxu0 %v13014_v7  ;;  %9959 = vmatprep.subr.bf16.mxu1 %v12769_v8  ;;  %v12816_v7 = vcombine.low %v342_v59, %v346_v61  ;;  %v13070_v8 = vcombine.low %v597_v56, %v601_v57  ;;  %v12825_v9 = vcombine.high %v350_v4, %v354_v6  ;;  %v398_v56 = vld [vmem:[#allocation5 + $0x6c8] sm:$0xff]  ;;  %v653_v59 = vld [vmem:[#allocation5 + $0xec0] sm:$0xff] }
 0x10e   :  { %9549 = vmatprep.subr.bf16.mxu0 %v13023_v12  ;;  %v358_v12 = vld [vmem:[#allocation5 + $0x588] sm:$0xff]  ;;  %v12864_v61 = vcombine.low %v390_v48, %v394_v49 }
 0x10f   :  { %v402_v57 = vld [vmem:[#allocation5 + $0x6e8] sm:$0xff] }
 0x110   :  { %9960 = vmatpush1.bf16.msra.mxu1 %v12768_v14  ;;  %v362_v14 = vld [vmem:[#allocation5 + $0x5a8] sm:$0xff] }
 0x111   :  { %9550 = vmatpush1.bf16.msra.mxu0 %v13022_v15  ;;  %9961 = vmatprep.subr.bf16.mxu1 %v12777_v16  ;;  %v12824_v15 = vcombine.low %v350_v4, %v354_v6  ;;  %v13078_v16 = vcombine.low %v605_v2, %v609_v3  ;;  %v12833_v18 = vcombine.high %v358_v12, %v362_v14  ;;  %v406_v2 = vld [vmem:[#allocation5 + $0x708] sm:$0xff]  ;;  %v661_v4 = vld [vmem:[#allocation5 + $0xf00] sm:$0xff] }
 0x112   :  { %9551 = vmatprep.subr.bf16.mxu0 %v13031_v21  ;;  %v370_v21 = vld [vmem:[#allocation5 + $0x5e8] sm:$0xff]  ;;  %v12872_v6 = vcombine.low %v398_v56, %v402_v57 }
 0x113   :  { %v12840_v34 = vcombine.low %v366_v20, %v370_v21  ;;  %v410_v3 = vld [vmem:[#allocation5 + $0x728] sm:$0xff] }
 0x114   :  { %9962 = vmatpush1.bf16.msra.mxu1 %v12776_v25  ;;  %v12832_v25 = vcombine.low %v358_v12, %v362_v14  ;;  %v669_v12 = vld [vmem:[#allocation5 + $0xf40] sm:$0xff]  ;;  %v12880_v14 = vcombine.low %v406_v2, %v410_v3 }
 0x115   :  { %9552 = vmatpush1.bf16.msra.mxu0 %v13030_v26  ;;  %9972 = vmatprep.subr.bf16.mxu1 %v12785_v27  ;;  %v13086_v26 = vcombine.low %v613_v10, %v617_v11  ;;  %v12841_v27 = vcombine.high %v366_v20, %v370_v21  ;;  %v414_v10 = vld [vmem:[#allocation5 + $0x748] sm:$0xff]  ;;  %v677_v21 = vld [vmem:[#allocation5 + $0xf80] sm:$0xff] }
 0x116   :  { %9562 = vmatprep.subr.bf16.mxu0 %v13039_v33  ;;  %v633_v33 = vld [vmem:[#allocation5 + $0xe20] sm:$0xff]  ;;  %v418_v11 = vld [vmem:[#allocation5 + $0x768] sm:$0xff] }
 0x117   :  { %9964 = vmatmul.mubr.bf16.vlgmr.msra.gmra.mrb[4].mxu1 %v15153_v17  ;;  %v426_v20 = vld [vmem:[#allocation5 + $0x7a8] sm:$0xff] }
 0x118   :  { %9554 = vmatmul.mubr.bf16.vlgmr.msra.gmra.mrb[0].mxu0 %v15163_v36  ;;  %9973 = vmatpush1.bf16.msra.mxu1 %v12784_v35  ;;  %v13094_v35 = vcombine.low %v621_v23, %v625_v24  ;;  %v681_v23 = vld [vmem:[#allocation5 + $0xfa0] sm:$0xff]  ;;  %v12888_v24 = vcombine.low %v414_v10, %v418_v11 }
 0x119   :  { %9563 = vmatpush1.bf16.msra.mxu0 %v13038_v37  ;;  %9974 = vmatprep.subr.bf16.mxu1 %v12793_v38  ;;  %v12849_v37 = vcombine.high %v374_v30, %v378_v31  ;;  %v13103_v38 = vcombine.high %v629_v32, %v633_v33  ;;  %v434_v30 = vld [vmem:[#allocation5 + $0x7e8] sm:$0xff]  ;;  %v685_v31 = vld [vmem:[#allocation5 + $0xfc0] sm:$0xff] }
 0x11a   :  { %9564 = vmatprep.subr.bf16.mxu0 %v13047_v40  ;;  %9594 = vmatprep.mubr.bf16.mxu0 %v15165_v44  ;;  %v386_v40 = vld [vmem:[#allocation5 + $0x668] sm:$0xff] }
 0x11b   :  { %10004 = vmatprep.mubr.bf16.mxu1 %v15149_v62  ;;  %v12856_v52 = vcombine.low %v382_v39, %v386_v40 }
 0x11c   :  { %9975 = vmatpush1.bf16.msra.mxu1 %v12792_v45  ;;  %v13102_v45 = vcombine.low %v629_v32, %v633_v33  ;;  %v689_v32 = vld [vmem:[#allocation5 + $0xfe0] sm:$0xff] }
 0x11d   :  { %9565 = vmatpush1.bf16.msra.mxu0 %v13046_v46  ;;  %9976 = vmatprep.subr.bf16.mxu1 %v12801_v47  ;;  %v12857_v46 = vcombine.high %v382_v39, %v386_v40  ;;  %v13111_v47 = vcombine.high %v637_v41, %v641_v42  ;;  %v442_v39 = vld [vmem:[#allocation5 + $0x828] sm:$0xff]  ;;  %v693_v40 = vld [vmem:[#allocation5 + $0x1000] sm:$0xff] }
 0x11e   :  { %9566 = vmatprep.subr.bf16.mxu0 %v13055_v51  ;;  %v649_v51 = vld [vmem:[#allocation5 + $0xea0] sm:$0xff] }
 0x120   :  { %9977 = vmatpush1.bf16.msra.mxu1 %v12800_v53  ;;  %v13110_v53 = vcombine.low %v637_v41, %v641_v42  ;;  %v697_v41 = vld [vmem:[#allocation5 + $0x1020] sm:$0xff] }
 0x121   :  { %9567 = vmatpush1.bf16.msra.mxu0 %v13054_v54  ;;  %9978 = vmatprep.subr.bf16.mxu1 %v12809_v55  ;;  %v12865_v54 = vcombine.high %v390_v48, %v394_v49  ;;  %v13119_v55 = vcombine.high %v645_v50, %v649_v51  ;;  %v446_v48 = vld [vmem:[#allocation5 + $0x848] sm:$0xff] }
 0x122   :  { %9568 = vmatprep.subr.bf16.mxu0 %v13063_v60  ;;  %v657_v60 = vld [vmem:[#allocation5 + $0xee0] sm:$0xff]  ;;  %v450_v49 = vld [vmem:[#allocation5 + $0x868] sm:$0xff] }
 0x124   :  { %9979 = vmatpush1.bf16.msra.mxu1 %v12808_v63  ;;  %v13118_v63 = vcombine.low %v645_v50, %v649_v51  ;;  %v701_v50 = vld [vmem:[#allocation5 + $0x1040] sm:$0xff] }
 0x125   :  { %9569 = vmatpush1.bf16.msra.mxu0 %v13062_v0  ;;  %9980 = vmatprep.subr.bf16.mxu1 %v12817_v1  ;;  %v12873_v0 = vcombine.high %v398_v56, %v402_v57  ;;  %v13127_v1 = vcombine.high %v653_v59, %v657_v60  ;;  %v705_v51 = vld [vmem:[#allocation5 + $0x1060] sm:$0xff]  ;;  %v12921_v56 = vcombine.high %v446_v48, %v450_v49 }
 0x126   :  { %9570 = vmatprep.subr.bf16.mxu0 %v13071_v5  ;;  %v665_v5 = vld [vmem:[#allocation5 + $0xf20] sm:$0xff]  ;;  %v13175_v57 = vcombine.high %v701_v50, %v705_v51 }
 0x128   :  { %9981 = vmatpush1.bf16.msra.mxu1 %v12816_v7  ;;  %v13126_v7 = vcombine.low %v653_v59, %v657_v60  ;;  %v454_v59 = vld [vmem:[#allocation5 + $0x888] sm:$0xff] }
 0x129   :  { %9571 = vmatpush1.bf16.msra.mxu0 %v13070_v8  ;;  %9982 = vmatprep.subr.bf16.mxu1 %v12825_v9  ;;  %v12881_v8 = vcombine.high %v406_v2, %v410_v3  ;;  %v13135_v9 = vcombine.high %v661_v4, %v665_v5  ;;  %v458_v60 = vld [vmem:[#allocation5 + $0x8a8] sm:$0xff]  ;;  %v13174_v2 = vcombine.low %v701_v50, %v705_v51 }
 0x12a   :  { %9572 = vmatprep.subr.bf16.mxu0 %v13079_v13  ;;  %v673_v13 = vld [vmem:[#allocation5 + $0xf60] sm:$0xff]  ;;  %v12929_v3 = vcombine.high %v454_v59, %v458_v60  ;;  %v502_v50 = vld [vmem:[#allocation5 + $0xa08] sm:$0xff] }
 0x12b   :  { %v506_v51 = vld [vmem:[#allocation5 + $0xa28] sm:$0xff] }
 0x12c   :  { %9983 = vmatpush1.bf16.msra.mxu1 %v12824_v15  ;;  %v13134_v15 = vcombine.low %v661_v4, %v665_v5  ;;  %v462_v5 = vld [vmem:[#allocation5 + $0x8c8] sm:$0xff] }
 0x12d   :  { %9573 = vmatpush1.bf16.msra.mxu0 %v13078_v16  ;;  %9984 = vmatprep.subr.bf16.mxu1 %v12833_v18  ;;  %v12889_v16 = vcombine.high %v414_v10, %v418_v11  ;;  %v13143_v18 = vcombine.high %v669_v12, %v673_v13 }
 0x12e   :  { %9574 = vmatprep.subr.bf16.mxu0 %v13087_v19  ;;  %v422_v19 = vld [vmem:[#allocation5 + $0x788] sm:$0xff] }
 0x12f   :  { %v12896_v33 = vcombine.low %v422_v19, %v426_v20 }
 0x130   :  { %9985 = vmatpush1.bf16.msra.mxu1 %v12832_v25  ;;  %v13142_v25 = vcombine.low %v669_v12, %v673_v13  ;;  %v470_v13 = vld [vmem:[#allocation5 + $0x908] sm:$0xff] }
 0x131   :  { %9575 = vmatpush1.bf16.msra.mxu0 %v13086_v26  ;;  %9986 = vmatprep.subr.bf16.mxu1 %v12841_v27  ;;  %v12897_v26 = vcombine.high %v422_v19, %v426_v20  ;;  %v13151_v27 = vcombine.high %v677_v21, %v681_v23 }
 0x132   :  { %9576 = vmatprep.subr.bf16.mxu0 %v13095_v29  ;;  %v430_v29 = vld [vmem:[#allocation5 + $0x7c8] sm:$0xff] }
 0x133   :  { %v12904_v42 = vcombine.low %v430_v29, %v434_v30 }
 0x134   :  { %9987 = vmatpush1.bf16.msra.mxu1 %v12840_v34  ;;  %v13150_v34 = vcombine.low %v677_v21, %v681_v23  ;;  %v478_v23 = vld [vmem:[#allocation5 + $0x948] sm:$0xff] }
 0x135   :  { %9577 = vmatpush1.bf16.msra.mxu0 %v13094_v35  ;;  %9988 = vmatprep.subr.bf16.mxu1 %v12849_v37  ;;  %v12905_v35 = vcombine.high %v430_v29, %v434_v30  ;;  %v13159_v37 = vcombine.high %v685_v31, %v689_v32 }
 0x136   :  { %9578 = vmatprep.subr.bf16.mxu0 %v13103_v38  ;;  %v438_v38 = vld [vmem:[#allocation5 + $0x808] sm:$0xff] }
 0x138   :  { %9989 = vmatpush1.bf16.msra.mxu1 %v12848_v43  ;;  %v13158_v43 = vcombine.low %v685_v31, %v689_v32  ;;  %v486_v32 = vld [vmem:[#allocation5 + $0x988] sm:$0xff] }
 0x139   :  { %9579 = vmatpush1.bf16.msra.mxu0 %v13102_v45  ;;  %9990 = vmatprep.subr.bf16.mxu1 %v12857_v46  ;;  %v12913_v45 = vcombine.high %v438_v38, %v442_v39  ;;  %v139_v46 = vld [vmem:[#allocation3 + $0x30] sm:$0xff] }
 0x13a   :  { %9580 = vmatprep.subr.bf16.mxu0 %v13111_v47  ;;  %v13167_v47 = vcombine.high %v693_v40, %v697_v41 }
 0x13c   :  { %9991 = vmatpush1.bf16.msra.mxu1 %v12856_v52  ;;  %v142_v52 = vld [vmem:[#allocation3 + $0x48] sm:$0xff] }
 0x13d   :  { %9581 = vmatpush1.bf16.msra.mxu0 %v13110_v53  ;;  %9992 = vmatprep.subr.bf16.mxu1 %v12865_v54  ;;  %v12912_v53 = vcombine.low %v438_v38, %v442_v39  ;;  %v15171_v54 = vpack.c.bf16 %v139_v46, %v139_v46 }
 0x13e   :  { %9582 = vmatprep.subr.bf16.mxu0 %v13119_v55  ;;  %v13166_v55 = vcombine.low %v693_v40, %v697_v41  ;;  %v494_v41 = vld [vmem:[#allocation5 + $0x9c8] sm:$0xff] }
 0x140   :  { %9993 = vmatpush1.bf16.msra.mxu1 %v12864_v61  ;;  %v15173_v61 = vpack.c.bf16 %v142_v52, %v142_v52  ;;  %v757_v52 = vld [vmem:[#allocation5 + $0x1200] sm:$0xff] }
 0x141   :  { %9583 = vmatpush1.bf16.msra.mxu0 %v13118_v63  ;;  %9994 = vmatprep.subr.bf16.mxu1 %v12873_v0  ;;  %v709_v63 = vld [vmem:[#allocation5 + $0x1080] sm:$0xff] }
 0x142   :  { %9584 = vmatprep.subr.bf16.mxu0 %v13127_v1  ;;  %v713_v0 = vld [vmem:[#allocation5 + $0x10a0] sm:$0xff]  ;;  %v12920_v1 = vcombine.low %v446_v48, %v450_v49 }
 0x143   :  { %v13183_v4 = vcombine.high %v709_v63, %v713_v0  ;;  %v13182_v10 = vcombine.low %v709_v63, %v713_v0  ;;  %v514_v63 = vld [vmem:[#allocation5 + $0xa68] sm:$0xff]  ;;  %v765_v0 = vld [vmem:[#allocation5 + $0x1240] sm:$0xff] }
 0x144   :  { %9995 = vmatpush1.bf16.msra.mxu1 %v12872_v6  ;;  %v466_v6 = vld [vmem:[#allocation5 + $0x8e8] sm:$0xff] }
 0x145   :  { %9585 = vmatpush1.bf16.msra.mxu0 %v13126_v7  ;;  %9996 = vmatprep.subr.bf16.mxu1 %v12881_v8  ;;  %v717_v7 = vld [vmem:[#allocation5 + $0x10c0] sm:$0xff]  ;;  %v12937_v11 = vcombine.high %v462_v5, %v466_v6 }
 0x146   :  { %9586 = vmatprep.subr.bf16.mxu0 %v13135_v9  ;;  %v721_v8 = vld [vmem:[#allocation5 + $0x10e0] sm:$0xff]  ;;  %v12928_v9 = vcombine.low %v454_v59, %v458_v60  ;;  %v510_v60 = vld [vmem:[#allocation5 + $0xa48] sm:$0xff] }
 0x147   :  { %v13191_v12 = vcombine.high %v717_v7, %v721_v8  ;;  %v13190_v19 = vcombine.low %v717_v7, %v721_v8  ;;  %v522_v7 = vld [vmem:[#allocation5 + $0xaa8] sm:$0xff]  ;;  %v773_v8 = vld [vmem:[#allocation5 + $0x1280] sm:$0xff] }
 0x148   :  { %9997 = vmatpush1.bf16.msra.mxu1 %v12880_v14  ;;  %v474_v14 = vld [vmem:[#allocation5 + $0x928] sm:$0xff] }
 0x149   :  { %9587 = vmatpush1.bf16.msra.mxu0 %v13134_v15  ;;  %9998 = vmatprep.subr.bf16.mxu1 %v12889_v16  ;;  %v725_v15 = vld [vmem:[#allocation5 + $0x1100] sm:$0xff]  ;;  %v12945_v20 = vcombine.high %v470_v13, %v474_v14 }
 0x14a   :  { %9588 = vmatprep.subr.bf16.mxu0 %v13143_v18  ;;  %v729_v16 = vld [vmem:[#allocation5 + $0x1120] sm:$0xff]  ;;  %v12936_v18 = vcombine.low %v462_v5, %v466_v6  ;;  %v518_v6 = vld [vmem:[#allocation5 + $0xa88] sm:$0xff] }
 0x14b   :  { %v13199_v21 = vcombine.high %v725_v15, %v729_v16  ;;  %v13198_v29 = vcombine.low %v725_v15, %v729_v16  ;;  %v530_v15 = vld [vmem:[#allocation5 + $0xae8] sm:$0xff]  ;;  %v781_v16 = vld [vmem:[#allocation5 + $0x12c0] sm:$0xff] }
 0x14c   :  { %9999 = vmatpush1.bf16.msra.mxu1 %v12888_v24  ;;  %v482_v24 = vld [vmem:[#allocation5 + $0x968] sm:$0xff] }
 0x14d   :  { %9589 = vmatpush1.bf16.msra.mxu0 %v13142_v25  ;;  %10000 = vmatprep.subr.bf16.mxu1 %v12897_v26  ;;  %v733_v25 = vld [vmem:[#allocation5 + $0x1140] sm:$0xff]  ;;  %v12953_v30 = vcombine.high %v478_v23, %v482_v24 }
 0x14e   :  { %9590 = vmatprep.subr.bf16.mxu0 %v13151_v27  ;;  %v737_v26 = vld [vmem:[#allocation5 + $0x1160] sm:$0xff]  ;;  %v12944_v27 = vcombine.low %v470_v13, %v474_v14  ;;  %v526_v14 = vld [vmem:[#allocation5 + $0xac8] sm:$0xff] }
 0x14f   :  { %v13207_v31 = vcombine.high %v733_v25, %v737_v26  ;;  %v13206_v38 = vcombine.low %v733_v25, %v737_v26  ;;  %v538_v25 = vld [vmem:[#allocation5 + $0xb28] sm:$0xff]  ;;  %v789_v26 = vld [vmem:[#allocation5 + $0x1300] sm:$0xff] }
 0x150   :  { %10001 = vmatpush1.bf16.msra.mxu1 %v12896_v33  ;;  %v490_v33 = vld [vmem:[#allocation5 + $0x9a8] sm:$0xff] }
 0x151   :  { %9591 = vmatpush1.bf16.msra.mxu0 %v13150_v34  ;;  %10002 = vmatprep.subr.bf16.mxu1 %v12905_v35  ;;  %v741_v34 = vld [vmem:[#allocation5 + $0x1180] sm:$0xff]  ;;  %v12961_v39 = vcombine.high %v486_v32, %v490_v33  ;;  %v12960_v46 = vcombine.low %v486_v32, %v490_v33  ;;  %v542_v33 = vld [vmem:[#allocation5 + $0xb48] sm:$0xff] }
 0x152   :  { %9592 = vmatprep.subr.bf16.mxu0 %v13159_v37  ;;  %v745_v35 = vld [vmem:[#allocation5 + $0x11a0] sm:$0xff]  ;;  %v12952_v37 = vcombine.low %v478_v23, %v482_v24  ;;  %v534_v24 = vld [vmem:[#allocation5 + $0xb08] sm:$0xff] }
 0x153   :  { %v13215_v40 = vcombine.high %v741_v34, %v745_v35 }
 0x154   :  { %10003 = vmatpush1.bf16.msra.mxu1 %v12904_v42  ;;  %v498_v42 = vld [vmem:[#allocation5 + $0x9e8] sm:$0xff] }
 0x155   :  { %9593 = vmatpush1.bf16.msra.mxu0 %v13158_v43  ;;  %10013 = vmatprep.subr.bf16.mxu1 %v12913_v45  ;;  %v749_v43 = vld [vmem:[#allocation5 + $0x11c0] sm:$0xff]  ;;  %v12969_v48 = vcombine.high %v494_v41, %v498_v42 }
 0x156   :  { %9603 = vmatprep.subr.bf16.mxu0 %v13167_v47  ;;  %v753_v45 = vld [vmem:[#allocation5 + $0x11e0] sm:$0xff]  ;;  %v13214_v47 = vcombine.low %v741_v34, %v745_v35  ;;  %v546_v34 = vld [vmem:[#allocation5 + $0xb68] sm:$0xff] }
 0x157   :  { %10005 = vmatmul.mubr.bf16.vlgmr.msra.gmra.mrb[4].mxu1 %v15155_v22  ;;  %v13223_v49 = vcombine.high %v749_v43, %v753_v45  ;;  %v797_v35 = vld [vmem:[#allocation5 + $0x1340] sm:$0xff] }
 0x158   :  { %9595 = vmatmul.mubr.bf16.vlgmr.msra.gmra.mrb[0].mxu0 %v15171_v54  ;;  %10014 = vmatpush1.bf16.msra.mxu1 %v12912_v53  ;;  %v761_v53 = vld [vmem:[#allocation5 + $0x1220] sm:$0xff] }
 0x159   :  { %9604 = vmatpush1.bf16.msra.mxu0 %v13166_v55  ;;  %10015 = vmatprep.subr.bf16.mxu1 %v12921_v56  ;;  %v12968_v55 = vcombine.low %v494_v41, %v498_v42  ;;  %v13222_v56 = vcombine.low %v749_v43, %v753_v45  ;;  %v13231_v59 = vcombine.high %v757_v52, %v761_v53  ;;  %v550_v42 = vld [vmem:[#allocation5 + $0xb88] sm:$0xff]  ;;  %v805_v45 = vld [vmem:[#allocation5 + $0x1380] sm:$0xff] }
 0x15a   :  { %9605 = vmatprep.subr.bf16.mxu0 %v13175_v57  ;;  %9635 = vmatprep.mubr.bf16.mxu0 %v15173_v61  ;;  %v12977_v57 = vcombine.high %v502_v50, %v506_v51  ;;  %v554_v43 = vld [vmem:[#allocation5 + $0xba8] sm:$0xff] }
 0x15b   :  { %10045 = vmatprep.mubr.bf16.mxu1 %v15157_v28 }
 0x15c   :  { %10016 = vmatpush1.bf16.msra.mxu1 %v12920_v1  ;;  %v769_v1 = vld [vmem:[#allocation5 + $0x1260] sm:$0xff] }
 0x15d   :  { %9606 = vmatpush1.bf16.msra.mxu0 %v13174_v2  ;;  %10017 = vmatprep.subr.bf16.mxu1 %v12929_v3  ;;  %v12976_v2 = vcombine.low %v502_v50, %v506_v51  ;;  %v13230_v3 = vcombine.low %v757_v52, %v761_v53  ;;  %v13239_v5 = vcombine.high %v765_v0, %v769_v1  ;;  %v558_v51 = vld [vmem:[#allocation5 + $0xbc8] sm:$0xff]  ;;  %v813_v53 = vld [vmem:[#allocation5 + $0x13c0] sm:$0xff] }
 0x15e   :  { %9607 = vmatprep.subr.bf16.mxu0 %v13183_v4  ;;  %v12985_v4 = vcombine.high %v510_v60, %v514_v63  ;;  %v562_v52 = vld [vmem:[#allocation5 + $0xbe8] sm:$0xff] }
 0x160   :  { %10018 = vmatpush1.bf16.msra.mxu1 %v12928_v9  ;;  %v777_v9 = vld [vmem:[#allocation5 + $0x12a0] sm:$0xff] }
 0x161   :  { %9608 = vmatpush1.bf16.msra.mxu0 %v13182_v10  ;;  %10019 = vmatprep.subr.bf16.mxu1 %v12937_v11  ;;  %v12984_v10 = vcombine.low %v510_v60, %v514_v63  ;;  %v13238_v11 = vcombine.low %v765_v0, %v769_v1  ;;  %v13247_v13 = vcombine.high %v773_v8, %v777_v9  ;;  %v566_v63 = vld [vmem:[#allocation5 + $0xc08] sm:$0xff]  ;;  %v821_v1 = vld [vmem:[#allocation5 + $0x1400] sm:$0xff] }
 0x162   :  { %9609 = vmatprep.subr.bf16.mxu0 %v13191_v12  ;;  %v12993_v12 = vcombine.high %v518_v6, %v522_v7  ;;  %v570_v0 = vld [vmem:[#allocation5 + $0xc28] sm:$0xff] }
 0x164   :  { %10020 = vmatpush1.bf16.msra.mxu1 %v12936_v18  ;;  %v785_v18 = vld [vmem:[#allocation5 + $0x12e0] sm:$0xff] }
 0x165   :  { %9610 = vmatpush1.bf16.msra.mxu0 %v13190_v19  ;;  %10021 = vmatprep.subr.bf16.mxu1 %v12945_v20  ;;  %v12992_v19 = vcombine.low %v518_v6, %v522_v7  ;;  %v13246_v20 = vcombine.low %v773_v8, %v777_v9  ;;  %v13255_v23 = vcombine.high %v781_v16, %v785_v18  ;;  %v141_v6 = vld [vmem:[#allocation3 + $0x40] sm:$0xff]  ;;  %v574_v8 = vld [vmem:[#allocation5 + $0xc48] sm:$0xff] }
 0x166   :  { %9611 = vmatprep.subr.bf16.mxu0 %v13199_v21  ;;  %v13001_v21 = vcombine.high %v526_v14, %v530_v15  ;;  %v578_v9 = vld [vmem:[#allocation5 + $0xc68] sm:$0xff] }
 0x168   :  { %10022 = vmatpush1.bf16.msra.mxu1 %v12944_v27  ;;  %v793_v27 = vld [vmem:[#allocation5 + $0x1320] sm:$0xff] }
 0x169   :  { %9612 = vmatpush1.bf16.msra.mxu0 %v13198_v29  ;;  %10023 = vmatprep.subr.bf16.mxu1 %v12953_v30  ;;  %v13000_v29 = vcombine.low %v526_v14, %v530_v15  ;;  %v13254_v30 = vcombine.low %v781_v16, %v785_v18  ;;  %v13263_v32 = vcombine.high %v789_v26, %v793_v27 }
 0x16a   :  { %9613 = vmatprep.subr.bf16.mxu0 %v13207_v31  ;;  %v13009_v31 = vcombine.high %v534_v24, %v538_v25  ;;  %v15179_v14 = vpack.c.bf16 %v141_v6, %v141_v6  ;;  %v13049_v16 = vcombine.high %v574_v8, %v578_v9  ;;  %v626_v6 = vld [vmem:[#allocation5 + $0xde8] sm:$0xff] }
 0x16c   :  { %10024 = vmatpush1.bf16.msra.mxu1 %v12952_v37  ;;  %v801_v37 = vld [vmem:[#allocation5 + $0x1360] sm:$0xff] }
 0x16d   :  { %9614 = vmatpush1.bf16.msra.mxu0 %v13206_v38  ;;  %10025 = vmatprep.subr.bf16.mxu1 %v12961_v39  ;;  %v13008_v38 = vcombine.low %v534_v24, %v538_v25  ;;  %v13262_v39 = vcombine.low %v789_v26, %v793_v27  ;;  %v13271_v41 = vcombine.high %v797_v35, %v801_v37  ;;  %v841_v24 = vld [vmem:[#allocation5 + $0x14a0] sm:$0xff] }
 0x16e   :  { %9615 = vmatprep.subr.bf16.mxu0 %v13215_v40  ;;  %v13017_v40 = vcombine.high %v542_v33, %v546_v34  ;;  %v13048_v25 = vcombine.low %v574_v8, %v578_v9  ;;  %v877_v8 = vld [vmem:[#allocation5 + $0x15c0] sm:$0xff] }
 0x16f   :  { %v881_v9 = vld [vmem:[#allocation5 + $0x15e0] sm:$0xff] }
 0x170   :  { %10026 = vmatpush1.bf16.msra.mxu1 %v12960_v46  ;;  %v809_v46 = vld [vmem:[#allocation5 + $0x13a0] sm:$0xff] }
 0x171   :  { %9616 = vmatpush1.bf16.msra.mxu0 %v13214_v47  ;;  %10027 = vmatprep.subr.bf16.mxu1 %v12969_v48  ;;  %v13016_v47 = vcombine.low %v542_v33, %v546_v34  ;;  %v13270_v48 = vcombine.low %v797_v35, %v801_v37  ;;  %v13279_v50 = vcombine.high %v805_v45, %v809_v46  ;;  %v849_v33 = vld [vmem:[#allocation5 + $0x14e0] sm:$0xff] }
 0x172   :  { %9617 = vmatprep.subr.bf16.mxu0 %v13223_v49  ;;  %v13025_v49 = vcombine.high %v550_v42, %v554_v43 }
 0x174   :  { %10028 = vmatpush1.bf16.msra.mxu1 %v12968_v55  ;;  %v817_v55 = vld [vmem:[#allocation5 + $0x13e0] sm:$0xff] }
 0x175   :  { %9618 = vmatpush1.bf16.msra.mxu0 %v13222_v56  ;;  %10029 = vmatprep.subr.bf16.mxu1 %v12977_v57  ;;  %v13024_v56 = vcombine.low %v550_v42, %v554_v43  ;;  %v13278_v57 = vcombine.low %v805_v45, %v809_v46  ;;  %v13287_v60 = vcombine.high %v813_v53, %v817_v55  ;;  %v857_v42 = vld [vmem:[#allocation5 + $0x1520] sm:$0xff] }
 0x176   :  { %9619 = vmatprep.subr.bf16.mxu0 %v13231_v59  ;;  %v13033_v59 = vcombine.high %v558_v51, %v562_v52 }
 0x178   :  { %10030 = vmatpush1.bf16.msra.mxu1 %v12976_v2  ;;  %v825_v2 = vld [vmem:[#allocation5 + $0x1420] sm:$0xff] }
 0x179   :  { %9620 = vmatpush1.bf16.msra.mxu0 %v13230_v3  ;;  %10031 = vmatprep.subr.bf16.mxu1 %v12985_v4  ;;  %v13032_v3 = vcombine.low %v558_v51, %v562_v52  ;;  %v13286_v4 = vcombine.low %v813_v53, %v817_v55  ;;  %v13295_v7 = vcombine.high %v821_v1, %v825_v2  ;;  %v865_v51 = vld [vmem:[#allocation5 + $0x1560] sm:$0xff] }
 0x17a   :  { %9621 = vmatprep.subr.bf16.mxu0 %v13239_v5  ;;  %v13041_v5 = vcombine.high %v566_v63, %v570_v0  ;;  %v13294_v15 = vcombine.low %v821_v1, %v825_v2 }
 0x17c   :  { %10032 = vmatpush1.bf16.msra.mxu1 %v12984_v10  ;;  %v829_v10 = vld [vmem:[#allocation5 + $0x1440] sm:$0xff] }
 0x17d   :  { %9622 = vmatpush1.bf16.msra.mxu0 %v13238_v11  ;;  %10033 = vmatprep.subr.bf16.mxu1 %v12993_v12  ;;  %v833_v11 = vld [vmem:[#allocation5 + $0x1460] sm:$0xff]  ;;  %v144_v12 = vld [vmem:[#allocation3 + $0x58] sm:$0xff] }
 0x17e   :  { %9623 = vmatprep.subr.bf16.mxu0 %v13247_v13  ;;  %v13040_v13 = vcombine.low %v566_v63, %v570_v0  ;;  %v13303_v18 = vcombine.high %v829_v10, %v833_v11  ;;  %v13302_v26 = vcombine.low %v829_v10, %v833_v11  ;;  %v873_v63 = vld [vmem:[#allocation5 + $0x15a0] sm:$0xff] }
 0x180   :  { %10034 = vmatpush1.bf16.msra.mxu1 %v12992_v19  ;;  %v582_v19 = vld [vmem:[#allocation5 + $0xc88] sm:$0xff] }
 0x181   :  { %9624 = vmatpush1.bf16.msra.mxu0 %v13246_v20  ;;  %10035 = vmatprep.subr.bf16.mxu1 %v13001_v21  ;;  %v586_v20 = vld [vmem:[#allocation5 + $0xca8] sm:$0xff]  ;;  %v15181_v21 = vpack.c.bf16 %v144_v12, %v144_v12 }
 0x182   :  { %9625 = vmatprep.subr.bf16.mxu0 %v13255_v23  ;;  %v837_v23 = vld [vmem:[#allocation5 + $0x1480] sm:$0xff]  ;;  %v13057_v27 = vcombine.high %v582_v19, %v586_v20  ;;  %v13056_v34 = vcombine.low %v582_v19, %v586_v20  ;;  %v634_v19 = vld [vmem:[#allocation5 + $0xe28] sm:$0xff] }
 0x183   :  { %v13310_v35 = vcombine.low %v837_v23, %v841_v24  ;;  %v885_v20 = vld [vmem:[#allocation5 + $0x1600] sm:$0xff] }
 0x184   :  { %10036 = vmatpush1.bf16.msra.mxu1 %v13000_v29  ;;  %v13311_v29 = vcombine.high %v837_v23, %v841_v24  ;;  %v889_v23 = vld [vmem:[#allocation5 + $0x1620] sm:$0xff] }
 0x185   :  { %9626 = vmatpush1.bf16.msra.mxu0 %v13254_v30  ;;  %10037 = vmatprep.subr.bf16.mxu1 %v13009_v31  ;;  %v590_v30 = vld [vmem:[#allocation5 + $0xcc8] sm:$0xff] }
 0x186   :  { %9627 = vmatprep.subr.bf16.mxu0 %v13263_v32  ;;  %v594_v31 = vld [vmem:[#allocation5 + $0xce8] sm:$0xff]  ;;  %v845_v32 = vld [vmem:[#allocation5 + $0x14c0] sm:$0xff] }
 0x187   :  { %v13065_v37 = vcombine.high %v590_v30, %v594_v31  ;;  %v13064_v43 = vcombine.low %v590_v30, %v594_v31  ;;  %v13318_v45 = vcombine.low %v845_v32, %v849_v33  ;;  %v642_v30 = vld [vmem:[#allocation5 + $0xe68] sm:$0xff]  ;;  %v893_v31 = vld [vmem:[#allocation5 + $0x1640] sm:$0xff] }
 0x188   :  { %10038 = vmatpush1.bf16.msra.mxu1 %v13008_v38  ;;  %v13319_v38 = vcombine.high %v845_v32, %v849_v33  ;;  %v897_v32 = vld [vmem:[#allocation5 + $0x1660] sm:$0xff] }
 0x189   :  { %9628 = vmatpush1.bf16.msra.mxu0 %v13262_v39  ;;  %10039 = vmatprep.subr.bf16.mxu1 %v13017_v40  ;;  %v598_v39 = vld [vmem:[#allocation5 + $0xd08] sm:$0xff] }
 0x18a   :  { %9629 = vmatprep.subr.bf16.mxu0 %v13271_v41  ;;  %v602_v40 = vld [vmem:[#allocation5 + $0xd28] sm:$0xff]  ;;  %v853_v41 = vld [vmem:[#allocation5 + $0x1500] sm:$0xff] }
 0x18b   :  { %v13073_v46 = vcombine.high %v598_v39, %v602_v40  ;;  %v13072_v52 = vcombine.low %v598_v39, %v602_v40  ;;  %v13326_v53 = vcombine.low %v853_v41, %v857_v42  ;;  %v650_v39 = vld [vmem:[#allocation5 + $0xea8] sm:$0xff]  ;;  %v901_v40 = vld [vmem:[#allocation5 + $0x1680] sm:$0xff] }
 0x18c   :  { %10040 = vmatpush1.bf16.msra.mxu1 %v13016_v47  ;;  %v13327_v47 = vcombine.high %v853_v41, %v857_v42  ;;  %v905_v41 = vld [vmem:[#allocation5 + $0x16a0] sm:$0xff] }
 0x18d   :  { %9630 = vmatpush1.bf16.msra.mxu0 %v13270_v48  ;;  %10041 = vmatprep.subr.bf16.mxu1 %v13025_v49  ;;  %v606_v48 = vld [vmem:[#allocation5 + $0xd48] sm:$0xff] }
 0x18e   :  { %9631 = vmatprep.subr.bf16.mxu0 %v13279_v50  ;;  %v610_v49 = vld [vmem:[#allocation5 + $0xd68] sm:$0xff]  ;;  %v861_v50 = vld [vmem:[#allocation5 + $0x1540] sm:$0xff] }
 0x18f   :  { %v13081_v55 = vcombine.high %v606_v48, %v610_v49  ;;  %v13080_v0 = vcombine.low %v606_v48, %v610_v49  ;;  %v13334_v1 = vcombine.low %v861_v50, %v865_v51  ;;  %v658_v48 = vld [vmem:[#allocation5 + $0xee8] sm:$0xff]  ;;  %v909_v49 = vld [vmem:[#allocation5 + $0x16c0] sm:$0xff] }
 0x190   :  { %10042 = vmatpush1.bf16.msra.mxu1 %v13024_v56  ;;  %v13335_v56 = vcombine.high %v861_v50, %v865_v51  ;;  %v913_v50 = vld [vmem:[#allocation5 + $0x16e0] sm:$0xff] }
 0x191   :  { %9632 = vmatpush1.bf16.msra.mxu0 %v13278_v57  ;;  %10043 = vmatprep.subr.bf16.mxu1 %v13033_v59  ;;  %v614_v57 = vld [vmem:[#allocation5 + $0xd88] sm:$0xff] }
 0x192   :  { %9633 = vmatprep.subr.bf16.mxu0 %v13287_v60  ;;  %v618_v59 = vld [vmem:[#allocation5 + $0xda8] sm:$0xff]  ;;  %v869_v60 = vld [vmem:[#allocation5 + $0x1580] sm:$0xff] }
 0x193   :  { %v13089_v2 = vcombine.high %v614_v57, %v618_v59  ;;  %v13088_v11 = vcombine.low %v614_v57, %v618_v59  ;;  %v666_v57 = vld [vmem:[#allocation5 + $0xf28] sm:$0xff]  ;;  %v917_v59 = vld [vmem:[#allocation5 + $0x1700] sm:$0xff] }
 0x194   :  { %10044 = vmatpush1.bf16.msra.mxu1 %v13032_v3 }
 0x195   :  { %9634 = vmatpush1.bf16.msra.mxu0 %v13286_v4  ;;  %10054 = vmatprep.subr.bf16.mxu1 %v13041_v5  ;;  %v13343_v4 = vcombine.high %v869_v60, %v873_v63  ;;  %v622_v5 = vld [vmem:[#allocation5 + $0xdc8] sm:$0xff] }
 0x196   :  { %9644 = vmatprep.subr.bf16.mxu0 %v13295_v7  ;;  %v13096_v24 = vcombine.low %v622_v5, %v626_v6 }
 0x197   :  { %10046 = vmatmul.mubr.bf16.vlgmr.msra.gmra.mrb[4].mxu1 %v15163_v36 }
 0x198   :  { %9636 = vmatmul.mubr.bf16.vlgmr.msra.gmra.mrb[0].mxu0 %v15179_v14  ;;  %10055 = vmatpush1.bf16.msra.mxu1 %v13040_v13  ;;  %v13342_v13 = vcombine.low %v869_v60, %v873_v63  ;;  %v921_v60 = vld [vmem:[#allocation5 + $0x1720] sm:$0xff] }
 0x199   :  { %9645 = vmatpush1.bf16.msra.mxu0 %v13294_v15  ;;  %10056 = vmatprep.subr.bf16.mxu1 %v13049_v16  ;;  %v13097_v15 = vcombine.high %v622_v5, %v626_v6  ;;  %v13351_v16 = vcombine.high %v877_v8, %v881_v9  ;;  %v674_v5 = vld [vmem:[#allocation5 + $0xf68] sm:$0xff]  ;;  %v925_v6 = vld [vmem:[#allocation5 + $0x1740] sm:$0xff] }
 0x19a   :  { %9646 = vmatprep.subr.bf16.mxu0 %v13303_v18  ;;  %9676 = vmatprep.mubr.bf16.mxu0 %v15181_v21  ;;  %v630_v18 = vld [vmem:[#allocation5 + $0xe08] sm:$0xff] }
 0x19b   :  { %10086 = vmatprep.mubr.bf16.mxu1 %v15165_v44  ;;  %v13104_v33 = vcombine.low %v630_v18, %v634_v19 }
 0x19c   :  { %10057 = vmatpush1.bf16.msra.mxu1 %v13048_v25  ;;  %v13350_v25 = vcombine.low %v877_v8, %v881_v9  ;;  %v929_v8 = vld [vmem:[#allocation5 + $0x1760] sm:$0xff] }
 0x19d   :  { %9647 = vmatpush1.bf16.msra.mxu0 %v13302_v26  ;;  %10058 = vmatprep.subr.bf16.mxu1 %v13057_v27  ;;  %v13105_v26 = vcombine.high %v630_v18, %v634_v19  ;;  %v13359_v27 = vcombine.high %v885_v20, %v889_v23  ;;  %v937_v18 = vld [vmem:[#allocation5 + $0x17a0] sm:$0xff] }
 0x19e   :  { %9648 = vmatprep.subr.bf16.mxu0 %v13311_v29  ;;  %v638_v29 = vld [vmem:[#allocation5 + $0xe48] sm:$0xff] }
 0x19f   :  { %v13112_v42 = vcombine.low %v638_v29, %v642_v30 }
 0x1a0   :  { %10059 = vmatpush1.bf16.msra.mxu1 %v13056_v34  ;;  %v13358_v34 = vcombine.low %v885_v20, %v889_v23  ;;  %v13398_v20 = vcombine.low %v925_v6, %v929_v8 }
 0x1a1   :  { %9649 = vmatpush1.bf16.msra.mxu0 %v13310_v35  ;;  %10060 = vmatprep.subr.bf16.mxu1 %v13065_v37  ;;  %v13113_v35 = vcombine.high %v638_v29, %v642_v30  ;;  %v13367_v37 = vcombine.high %v893_v31, %v897_v32  ;;  %v945_v29 = vld [vmem:[#allocation5 + $0x17e0] sm:$0xff] }
 0x1a2   :  { %9650 = vmatprep.subr.bf16.mxu0 %v13319_v38  ;;  %v646_v38 = vld [vmem:[#allocation5 + $0xe88] sm:$0xff] }
 0x1a3   :  { %v13120_v51 = vcombine.low %v646_v38, %v650_v39 }
 0x1a4   :  { %10061 = vmatpush1.bf16.msra.mxu1 %v13064_v43  ;;  %v13366_v43 = vcombine.low %v893_v31, %v897_v32 }
 0x1a5   :  { %9651 = vmatpush1.bf16.msra.mxu0 %v13318_v45  ;;  %10062 = vmatprep.subr.bf16.mxu1 %v13073_v46  ;;  %v13121_v45 = vcombine.high %v646_v38, %v650_v39  ;;  %v13375_v46 = vcombine.high %v901_v40, %v905_v41  ;;  %v953_v38 = vld [vmem:[#allocation5 + $0x1820] sm:$0xff] }
 0x1a6   :  { %9652 = vmatprep.subr.bf16.mxu0 %v13327_v47  ;;  %v654_v47 = vld [vmem:[#allocation5 + $0xec8] sm:$0xff] }
 0x1a7   :  { %v13128_v63 = vcombine.low %v654_v47, %v658_v48 }
 0x1a8   :  { %10063 = vmatpush1.bf16.msra.mxu1 %v13072_v52  ;;  %v13374_v52 = vcombine.low %v901_v40, %v905_v41 }
 0x1a9   :  { %9653 = vmatpush1.bf16.msra.mxu0 %v13326_v53  ;;  %10064 = vmatprep.subr.bf16.mxu1 %v13081_v55  ;;  %v13129_v53 = vcombine.high %v654_v47, %v658_v48  ;;  %v13383_v55 = vcombine.high %v909_v49, %v913_v50  ;;  %v957_v47 = vld [vmem:[#allocation5 + $0x1840] sm:$0xff] }
 0x1aa   :  { %v15187_v3 = vpop.f32.mrb[0].mxu1  ;;  %9654 = vmatprep.subr.bf16.mxu0 %v13335_v56  ;;  %v662_v56 = vld [vmem:[#allocation5 + $0xf08] sm:$0xff]  ;;  %v961_v48 = vld [vmem:[#allocation5 + $0x1860] sm:$0xff] }
 0x1ab   :  { %v15189_v7 = vpop.f32.mrb[1].mxu1  ;;  %v13136_v9 = vcombine.low %v662_v56, %v666_v57 }
 0x1ac   :  { %v9477_v10 = vpop.f32.mrb[2].mxu1  ;;  %10065 = vmatpush1.bf16.msra.mxu1 %v13080_v0  ;;  %v13382_v0 = vcombine.low %v909_v49, %v913_v50  ;;  %v146_v49 = vld [vmem:[#allocation3 + $0x68] sm:$0xff] }
 0x1ad   :  { %9655 = vmatpush1.bf16.msra.mxu0 %v13334_v1  ;;  %v9478_v12 = vpop.f32.mrb[3].mxu1  ;;  %10066 = vmatprep.subr.bf16.mxu1 %v13089_v2  ;;  %v13137_v1 = vcombine.high %v662_v56, %v666_v57  ;;  %v13391_v2 = vcombine.high %v917_v59, %v921_v60  ;;  %v13390_v10 = vcombine.low %v917_v59, %v921_v60  ;;  %v710_v56 = vld [vmem:[#allocation5 + $0x1088] sm:$0xff]  ;;  %v965_v60 = vld [vmem:[#allocation5 + $0x1880] sm:$0xff] }
 0x1ae   :  { %9656 = vmatprep.subr.bf16.mxu0 %v13343_v4  ;;  %v670_v4 = vld [vmem:[#allocation5 + $0xf48] sm:$0xff]  ;;  %v13399_v12 = vcombine.high %v925_v6, %v929_v8  ;;  %v15193_v59 = vpack.c.bf16 %v146_v49, %v146_v49  ;;  %v973_v8 = vld [vmem:[#allocation5 + $0x18c0] sm:$0xff] }
 0x1af   :  { %v13144_v19 = vcombine.low %v670_v4, %v674_v5  ;;  %v714_v57 = vld [vmem:[#allocation5 + $0x10a8] sm:$0xff] }
 0x1b0   :  { %10067 = vmatpush1.bf16.msra.mxu1 %v13088_v11  ;;  %v13145_v11 = vcombine.high %v670_v4, %v674_v5  ;;  %v718_v5 = vld [vmem:[#allocation5 + $0x10c8] sm:$0xff] }
 0x1b1   :  { %9657 = vmatpush1.bf16.msra.mxu0 %v13342_v13  ;;  %10068 = vmatprep.subr.bf16.mxu1 %v13097_v15  ;;  %v678_v13 = vld [vmem:[#allocation5 + $0xf88] sm:$0xff] }
 0x1b2   :  { %9658 = vmatprep.subr.bf16.mxu0 %v13351_v16  ;;  %v682_v15 = vld [vmem:[#allocation5 + $0xfa8] sm:$0xff]  ;;  %v933_v16 = vld [vmem:[#allocation5 + $0x1780] sm:$0xff] }
 0x1b3   :  { %v13153_v23 = vcombine.high %v678_v13, %v682_v15  ;;  %v13152_v30 = vcombine.low %v678_v13, %v682_v15  ;;  %v13406_v31 = vcombine.low %v933_v16, %v937_v18  ;;  %v722_v6 = vld [vmem:[#allocation5 + $0x10e8] sm:$0xff] }
 0x1b4   :  { %10069 = vmatpush1.bf16.msra.mxu1 %v13096_v24  ;;  %v13407_v24 = vcombine.high %v933_v16, %v937_v18  ;;  %v726_v15 = vld [vmem:[#allocation5 + $0x1108] sm:$0xff]  ;;  %v981_v18 = vld [vmem:[#allocation5 + $0x1900] sm:$0xff] }
 0x1b5   :  { %9659 = vmatpush1.bf16.msra.mxu0 %v13350_v25  ;;  %10070 = vmatprep.subr.bf16.mxu1 %v13105_v26  ;;  %v686_v25 = vld [vmem:[#allocation5 + $0xfc8] sm:$0xff] }
 0x1b6   :  { %9660 = vmatprep.subr.bf16.mxu0 %v13359_v27  ;;  %v690_v26 = vld [vmem:[#allocation5 + $0xfe8] sm:$0xff]  ;;  %v941_v27 = vld [vmem:[#allocation5 + $0x17c0] sm:$0xff] }
 0x1b7   :  { %v13161_v32 = vcombine.high %v686_v25, %v690_v26  ;;  %v13160_v39 = vcombine.low %v686_v25, %v690_v26  ;;  %v13414_v40 = vcombine.low %v941_v27, %v945_v29  ;;  %v730_v16 = vld [vmem:[#allocation5 + $0x1128] sm:$0xff] }
 0x1b8   :  { %10071 = vmatpush1.bf16.msra.mxu1 %v13104_v33  ;;  %v13415_v33 = vcombine.high %v941_v27, %v945_v29  ;;  %v734_v26 = vld [vmem:[#allocation5 + $0x1148] sm:$0xff]  ;;  %v989_v29 = vld [vmem:[#allocation5 + $0x1940] sm:$0xff] }
 0x1b9   :  { %9661 = vmatpush1.bf16.msra.mxu0 %v13358_v34  ;;  %10072 = vmatprep.subr.bf16.mxu1 %v13113_v35  ;;  %v694_v34 = vld [vmem:[#allocation5 + $0x1008] sm:$0xff] }
 0x1ba   :  { %9662 = vmatprep.subr.bf16.mxu0 %v13367_v37  ;;  %v698_v35 = vld [vmem:[#allocation5 + $0x1028] sm:$0xff]  ;;  %v949_v37 = vld [vmem:[#allocation5 + $0x1800] sm:$0xff] }
 0x1bb   :  { %v13169_v41 = vcombine.high %v694_v34, %v698_v35  ;;  %v13168_v50 = vcombine.low %v694_v34, %v698_v35  ;;  %v738_v27 = vld [vmem:[#allocation5 + $0x1168] sm:$0xff] }
 0x1bc   :  { %10073 = vmatpush1.bf16.msra.mxu1 %v13112_v42  ;;  %v143_v42 = vld [vmem:[#allocation3 + $0x50] sm:$0xff]  ;;  %v742_v35 = vld [vmem:[#allocation5 + $0x1188] sm:$0xff] }
 0x1bd   :  { %9663 = vmatpush1.bf16.msra.mxu0 %v13366_v43  ;;  %10074 = vmatprep.subr.bf16.mxu1 %v13121_v45  ;;  %v13423_v43 = vcombine.high %v949_v37, %v953_v38  ;;  %v702_v45 = vld [vmem:[#allocation5 + $0x1048] sm:$0xff] }
 0x1be   :  { %9664 = vmatprep.subr.bf16.mxu0 %v13375_v46  ;;  %v706_v46 = vld [vmem:[#allocation5 + $0x1068] sm:$0xff] }
 0x1c0   :  { %10075 = vmatpush1.bf16.msra.mxu1 %v13120_v51  ;;  %v15191_v51 = vpack.c.bf16 %v143_v42, %v143_v42 }
 0x1c1   :  { %9665 = vmatpush1.bf16.msra.mxu0 %v13374_v52  ;;  %10076 = vmatprep.subr.bf16.mxu1 %v13129_v53  ;;  %v13422_v52 = vcombine.low %v949_v37, %v953_v38  ;;  %v13177_v53 = vcombine.high %v702_v45, %v706_v46  ;;  %v746_v37 = vld [vmem:[#allocation5 + $0x11a8] sm:$0xff]  ;;  %v997_v38 = vld [vmem:[#allocation5 + $0x1980] sm:$0xff] }
 0x1c2   :  { %9666 = vmatprep.subr.bf16.mxu0 %v13383_v55  ;;  %v13431_v55 = vcombine.high %v957_v47, %v961_v48  ;;  %v13217_v42 = vcombine.high %v742_v35, %v746_v37  ;;  %v13216_v49 = vcombine.low %v742_v35, %v746_v37  ;;  %v794_v35 = vld [vmem:[#allocation5 + $0x1328] sm:$0xff]  ;;  %v1045_v37 = vld [vmem:[#allocation5 + $0x1b00] sm:$0xff] }
 0x1c4   :  { %10077 = vmatpush1.bf16.msra.mxu1 %v13128_v63  ;;  %v969_v63 = vld [vmem:[#allocation5 + $0x18a0] sm:$0xff] }
 0x1c5   :  { %9667 = vmatpush1.bf16.msra.mxu0 %v13382_v0  ;;  %10078 = vmatprep.subr.bf16.mxu1 %v13137_v1  ;;  %v13176_v0 = vcombine.low %v702_v45, %v706_v46  ;;  %v13430_v1 = vcombine.low %v957_v47, %v961_v48  ;;  %v13439_v4 = vcombine.high %v965_v60, %v969_v63  ;;  %v750_v45 = vld [vmem:[#allocation5 + $0x11c8] sm:$0xff]  ;;  %v1005_v47 = vld [vmem:[#allocation5 + $0x19c0] sm:$0xff] }
 0x1c6   :  { %9668 = vmatprep.subr.bf16.mxu0 %v13391_v2  ;;  %v13185_v2 = vcombine.high %v710_v56, %v714_v57  ;;  %v754_v46 = vld [vmem:[#allocation5 + $0x11e8] sm:$0xff]  ;;  %v1009_v48 = vld [vmem:[#allocation5 + $0x19e0] sm:$0xff] }
 0x1c8   :  { %10079 = vmatpush1.bf16.msra.mxu1 %v13136_v9  ;;  %v977_v9 = vld [vmem:[#allocation5 + $0x18e0] sm:$0xff] }
 0x1c9   :  { %9669 = vmatpush1.bf16.msra.mxu0 %v13390_v10  ;;  %10080 = vmatprep.subr.bf16.mxu1 %v13145_v11  ;;  %v13184_v10 = vcombine.low %v710_v56, %v714_v57  ;;  %v13438_v11 = vcombine.low %v965_v60, %v969_v63  ;;  %v13447_v13 = vcombine.high %v973_v8, %v977_v9  ;;  %v762_v56 = vld [vmem:[#allocation5 + $0x1228] sm:$0xff]  ;;  %v1013_v57 = vld [vmem:[#allocation5 + $0x1a00] sm:$0xff] }
 0x1ca   :  { %9670 = vmatprep.subr.bf16.mxu0 %v13399_v12  ;;  %v13193_v12 = vcombine.high %v718_v5, %v722_v6  ;;  %v1017_v60 = vld [vmem:[#allocation5 + $0x1a20] sm:$0xff]  ;;  %v13224_v63 = vcombine.low %v750_v45, %v754_v46 }
 0x1cc   :  { %10081 = vmatpush1.bf16.msra.mxu1 %v13144_v19  ;;  %v985_v19 = vld [vmem:[#allocation5 + $0x1920] sm:$0xff] }
 0x1cd   :  { %9671 = vmatpush1.bf16.msra.mxu0 %v13398_v20  ;;  %10082 = vmatprep.subr.bf16.mxu1 %v13153_v23  ;;  %v13192_v20 = vcombine.low %v718_v5, %v722_v6  ;;  %v13446_v23 = vcombine.low %v973_v8, %v977_v9  ;;  %v13455_v25 = vcombine.high %v981_v18, %v985_v19  ;;  %v770_v5 = vld [vmem:[#allocation5 + $0x1268] sm:$0xff]  ;;  %v1021_v6 = vld [vmem:[#allocation5 + $0x1a40] sm:$0xff] }
 0x1ce   :  { %9672 = vmatprep.subr.bf16.mxu0 %v13407_v24  ;;  %v13201_v24 = vcombine.high %v726_v15, %v730_v16  ;;  %v1025_v8 = vld [vmem:[#allocation5 + $0x1a60] sm:$0xff] }
 0x1d0   :  { %10083 = vmatpush1.bf16.msra.mxu1 %v13152_v30  ;;  %v993_v30 = vld [vmem:[#allocation5 + $0x1960] sm:$0xff] }
 0x1d1   :  { %9673 = vmatpush1.bf16.msra.mxu0 %v13406_v31  ;;  %10084 = vmatprep.subr.bf16.mxu1 %v13161_v32  ;;  %v13200_v31 = vcombine.low %v726_v15, %v730_v16  ;;  %v13454_v32 = vcombine.low %v981_v18, %v985_v19  ;;  %v13463_v34 = vcombine.high %v989_v29, %v993_v30  ;;  %v778_v15 = vld [vmem:[#allocation5 + $0x12a8] sm:$0xff]  ;;  %v1029_v16 = vld [vmem:[#allocation5 + $0x1a80] sm:$0xff] }
 0x1d2   :  { %9674 = vmatprep.subr.bf16.mxu0 %v13415_v33  ;;  %v13209_v33 = vcombine.high %v734_v26, %v738_v27  ;;  %v1033_v18 = vld [vmem:[#allocation5 + $0x1aa0] sm:$0xff] }
 0x1d4   :  { %10085 = vmatpush1.bf16.msra.mxu1 %v13160_v39  ;;  %v1001_v39 = vld [vmem:[#allocation5 + $0x19a0] sm:$0xff] }
 0x1d5   :  { %9675 = vmatpush1.bf16.msra.mxu0 %v13414_v40  ;;  %10095 = vmatprep.subr.bf16.mxu1 %v13169_v41  ;;  %v13208_v40 = vcombine.low %v734_v26, %v738_v27  ;;  %v13462_v41 = vcombine.low %v989_v29, %v993_v30  ;;  %v786_v26 = vld [vmem:[#allocation5 + $0x12e8] sm:$0xff]  ;;  %v1037_v27 = vld [vmem:[#allocation5 + $0x1ac0] sm:$0xff] }
 0x1d6   :  { %9685 = vmatprep.subr.bf16.mxu0 %v13423_v43  ;;  %v13471_v43 = vcombine.high %v997_v38, %v1001_v39  ;;  %v1041_v29 = vld [vmem:[#allocation5 + $0x1ae0] sm:$0xff] }
 0x1d7   :  { %10087 = vmatmul.mubr.bf16.vlgmr.msra.gmra.mrb[4].mxu1 %v15171_v54 }
 0x1d8   :  { %9677 = vmatmul.mubr.bf16.vlgmr.msra.gmra.mrb[0].mxu0 %v15191_v51  ;;  %10096 = vmatpush1.bf16.msra.mxu1 %v13168_v50  ;;  %v13470_v50 = vcombine.low %v997_v38, %v1001_v39  ;;  %v1049_v38 = vld [vmem:[#allocation5 + $0x1b20] sm:$0xff] }
 0x1d9   :  { %9686 = vmatpush1.bf16.msra.mxu0 %v13422_v52  ;;  %10097 = vmatprep.subr.bf16.mxu1 %v13177_v53  ;;  %v13225_v52 = vcombine.high %v750_v45, %v754_v46  ;;  %v13479_v53 = vcombine.high %v1005_v47, %v1009_v48  ;;  %v802_v45 = vld [vmem:[#allocation5 + $0x1368] sm:$0xff]  ;;  %v1053_v46 = vld [vmem:[#allocation5 + $0x1b40] sm:$0xff] }
 0x1da   :  { %9687 = vmatprep.subr.bf16.mxu0 %v13431_v55  ;;  %9717 = vmatprep.mubr.bf16.mxu0 %v15193_v59  ;;  %v758_v55 = vld [vmem:[#allocation5 + $0x1208] sm:$0xff] }
 0x1db   :  { %10127 = vmatprep.mubr.bf16.mxu1 %v15173_v61  ;;  %v13232_v9 = vcombine.low %v758_v55, %v762_v56 }
 0x1dc   :  { %10098 = vmatpush1.bf16.msra.mxu1 %v13176_v0  ;;  %v13478_v0 = vcombine.low %v1005_v47, %v1009_v48  ;;  %v1057_v47 = vld [vmem:[#allocation5 + $0x1b60] sm:$0xff] }
 0x1dd   :  { %9688 = vmatpush1.bf16.msra.mxu0 %v13430_v1  ;;  %10099 = vmatprep.subr.bf16.mxu1 %v13185_v2  ;;  %v13233_v1 = vcombine.high %v758_v55, %v762_v56  ;;  %v13487_v2 = vcombine.high %v1013_v57, %v1017_v60  ;;  %v810_v55 = vld [vmem:[#allocation5 + $0x13a8] sm:$0xff]  ;;  %v1061_v56 = vld [vmem:[#allocation5 + $0x1b80] sm:$0xff] }
 0x1de   :  { %9689 = vmatprep.subr.bf16.mxu0 %v13439_v4  ;;  %v766_v4 = vld [vmem:[#allocation5 + $0x1248] sm:$0xff] }
 0x1df   :  { %v13240_v19 = vcombine.low %v766_v4, %v770_v5 }
 0x1e0   :  { %10100 = vmatpush1.bf16.msra.mxu1 %v13184_v10  ;;  %v13486_v10 = vcombine.low %v1013_v57, %v1017_v60  ;;  %v1065_v57 = vld [vmem:[#allocation5 + $0x1ba0] sm:$0xff] }
 0x1e1   :  { %9690 = vmatpush1.bf16.msra.mxu0 %v13438_v11  ;;  %10101 = vmatprep.subr.bf16.mxu1 %v13193_v12  ;;  %v13241_v11 = vcombine.high %v766_v4, %v770_v5  ;;  %v13495_v12 = vcombine.high %v1021_v6, %v1025_v8  ;;  %v818_v4 = vld [vmem:[#allocation5 + $0x13e8] sm:$0xff]  ;;  %v1069_v5 = vld [vmem:[#allocation5 + $0x1bc0] sm:$0xff] }
 0x1e2   :  { %9691 = vmatprep.subr.bf16.mxu0 %v13447_v13  ;;  %v774_v13 = vld [vmem:[#allocation5 + $0x1288] sm:$0xff] }
 0x1e3   :  { %v13248_v30 = vcombine.low %v774_v13, %v778_v15 }
 0x1e4   :  { %10102 = vmatpush1.bf16.msra.mxu1 %v13192_v20  ;;  %v13494_v20 = vcombine.low %v1021_v6, %v1025_v8  ;;  %v1073_v6 = vld [vmem:[#allocation5 + $0x1be0] sm:$0xff] }
 0x1e5   :  { %9692 = vmatpush1.bf16.msra.mxu0 %v13446_v23  ;;  %10103 = vmatprep.subr.bf16.mxu1 %v13201_v24  ;;  %v13249_v23 = vcombine.high %v774_v13, %v778_v15  ;;  %v13503_v24 = vcombine.high %v1029_v16, %v1033_v18  ;;  %v826_v13 = vld [vmem:[#allocation5 + $0x1428] sm:$0xff]  ;;  %v1077_v15 = vld [vmem:[#allocation5 + $0x1c00] sm:$0xff] }
 0x1e6   :  { %9693 = vmatprep.subr.bf16.mxu0 %v13455_v25  ;;  %v782_v25 = vld [vmem:[#allocation5 + $0x12c8] sm:$0xff] }
 0x1e7   :  { %v13256_v39 = vcombine.low %v782_v25, %v786_v26 }
 0x1e8   :  { %10104 = vmatpush1.bf16.msra.mxu1 %v13200_v31  ;;  %v13502_v31 = vcombine.low %v1029_v16, %v1033_v18  ;;  %v1081_v16 = vld [vmem:[#allocation5 + $0x1c20] sm:$0xff] }
 0x1e9   :  { %9694 = vmatpush1.bf16.msra.mxu0 %v13454_v32  ;;  %10105 = vmatprep.subr.bf16.mxu1 %v13209_v33  ;;  %v13257_v32 = vcombine.high %v782_v25, %v786_v26  ;;  %v13511_v33 = vcombine.high %v1037_v27, %v1041_v29  ;;  %v830_v25 = vld [vmem:[#allocation5 + $0x1448] sm:$0xff] }
 0x1ea   :  { %9695 = vmatprep.subr.bf16.mxu0 %v13463_v34  ;;  %v790_v34 = vld [vmem:[#allocation5 + $0x1308] sm:$0xff] }
 0x1eb   :  { %v13264_v48 = vcombine.low %v790_v34, %v794_v35  ;;  %v834_v26 = vld [vmem:[#allocation5 + $0x1468] sm:$0xff] }
 0x1ec   :  { %10106 = vmatpush1.bf16.msra.mxu1 %v13208_v40  ;;  %v13510_v40 = vcombine.low %v1037_v27, %v1041_v29  ;;  %v1085_v27 = vld [vmem:[#allocation5 + $0x1c40] sm:$0xff] }
 0x1ed   :  { %9696 = vmatpush1.bf16.msra.mxu0 %v13462_v41  ;;  %10107 = vmatprep.subr.bf16.mxu1 %v13217_v42  ;;  %v13265_v41 = vcombine.high %v790_v34, %v794_v35  ;;  %v13519_v42 = vcombine.high %v1045_v37, %v1049_v38  ;;  %v1089_v29 = vld [vmem:[#allocation5 + $0x1c60] sm:$0xff]  ;;  %v13305_v34 = vcombine.high %v830_v25, %v834_v26 }
 0x1ee   :  { %9697 = vmatprep.subr.bf16.mxu0 %v13471_v43  ;;  %v798_v43 = vld [vmem:[#allocation5 + $0x1348] sm:$0xff]  ;;  %v13559_v35 = vcombine.high %v1085_v27, %v1089_v29 }
 0x1ef   :  { %v13272_v60 = vcombine.low %v798_v43, %v802_v45 }
 0x1f0   :  { %10108 = vmatpush1.bf16.msra.mxu1 %v13216_v49  ;;  %v13518_v49 = vcombine.low %v1045_v37, %v1049_v38  ;;  %v838_v37 = vld [vmem:[#allocation5 + $0x1488] sm:$0xff] }
 0x1f1   :  { %9698 = vmatpush1.bf16.msra.mxu0 %v13470_v50  ;;  %10109 = vmatprep.subr.bf16.mxu1 %v13225_v52  ;;  %v13273_v50 = vcombine.high %v798_v43, %v802_v45  ;;  %v13527_v52 = vcombine.high %v1053_v46, %v1057_v47  ;;  %v842_v38 = vld [vmem:[#allocation5 + $0x14a8] sm:$0xff]  ;;  %v13558_v43 = vcombine.low %v1085_v27, %v1089_v29 }
 0x1f2   :  { %9699 = vmatprep.subr.bf16.mxu0 %v13479_v53  ;;  %v806_v53 = vld [vmem:[#allocation5 + $0x1388] sm:$0xff]  ;;  %v13313_v45 = vcombine.high %v838_v37, %v842_v38 }
 0x1f3   :  { %v13280_v8 = vcombine.low %v806_v53, %v810_v55  ;;  %v878_v27 = vld [vmem:[#allocation5 + $0x15c8] sm:$0xff] }
 0x1f4   :  { %10110 = vmatpush1.bf16.msra.mxu1 %v13224_v63  ;;  %v13526_v63 = vcombine.low %v1053_v46, %v1057_v47  ;;  %v846_v47 = vld [vmem:[#allocation5 + $0x14c8] sm:$0xff] }
 0x1f5   :  { %9700 = vmatpush1.bf16.msra.mxu0 %v13478_v0  ;;  %10111 = vmatprep.subr.bf16.mxu1 %v13233_v1  ;;  %v13281_v0 = vcombine.high %v806_v53, %v810_v55  ;;  %v13535_v1 = vcombine.high %v1061_v56, %v1065_v57  ;;  %v882_v29 = vld [vmem:[#allocation5 + $0x15e8] sm:$0xff] }
 0x1f6   :  { %9701 = vmatprep.subr.bf16.mxu0 %v13487_v2  ;;  %v814_v2 = vld [vmem:[#allocation5 + $0x13c8] sm:$0xff] }
 0x1f7   :  { %v13288_v18 = vcombine.low %v814_v2, %v818_v4 }
 0x1f8   :  { %10112 = vmatpush1.bf16.msra.mxu1 %v13232_v9  ;;  %v13534_v9 = vcombine.low %v1061_v56, %v1065_v57  ;;  %v854_v57 = vld [vmem:[#allocation5 + $0x1508] sm:$0xff] }
 0x1f9   :  { %9702 = vmatpush1.bf16.msra.mxu0 %v13486_v10  ;;  %10113 = vmatprep.subr.bf16.mxu1 %v13241_v11  ;;  %v13289_v10 = vcombine.high %v814_v2, %v818_v4  ;;  %v13543_v11 = vcombine.high %v1069_v5, %v1073_v6 }
 0x1fa   :  { %9703 = vmatprep.subr.bf16.mxu0 %v13495_v12  ;;  %v822_v12 = vld [vmem:[#allocation5 + $0x1408] sm:$0xff] }
 0x1fc   :  { %10114 = vmatpush1.bf16.msra.mxu1 %v13240_v19  ;;  %v13542_v19 = vcombine.low %v1069_v5, %v1073_v6  ;;  %v862_v6 = vld [vmem:[#allocation5 + $0x1548] sm:$0xff] }
 0x1fd   :  { %9704 = vmatpush1.bf16.msra.mxu0 %v13494_v20  ;;  %10115 = vmatprep.subr.bf16.mxu1 %v13249_v23  ;;  %v13297_v20 = vcombine.high %v822_v12, %v826_v13  ;;  %v145_v23 = vld [vmem:[#allocation3 + $0x60] sm:$0xff] }
 0x1fe   :  { %9705 = vmatprep.subr.bf16.mxu0 %v13503_v24  ;;  %v13551_v24 = vcombine.high %v1077_v15, %v1081_v16 }
 0x200   :  { %10116 = vmatpush1.bf16.msra.mxu1 %v13248_v30  ;;  %v148_v30 = vld [vmem:[#allocation3 + $0x78] sm:$0xff] }
 0x201   :  { %9706 = vmatpush1.bf16.msra.mxu0 %v13502_v31  ;;  %10117 = vmatprep.subr.bf16.mxu1 %v13257_v32  ;;  %v13296_v31 = vcombine.low %v822_v12, %v826_v13  ;;  %v15199_v32 = vpack.c.bf16 %v145_v23, %v145_v23 }
 0x202   :  { %9707 = vmatprep.subr.bf16.mxu0 %v13511_v33  ;;  %v13550_v33 = vcombine.low %v1077_v15, %v1081_v16  ;;  %v870_v16 = vld [vmem:[#allocation5 + $0x1588] sm:$0xff] }
 0x204   :  { %10118 = vmatpush1.bf16.msra.mxu1 %v13256_v39  ;;  %v15201_v39 = vpack.c.bf16 %v148_v30, %v148_v30  ;;  %v1133_v30 = vld [vmem:[#allocation5 + $0x1dc0] sm:$0xff] }
 0x205   :  { %9708 = vmatpush1.bf16.msra.mxu0 %v13510_v40  ;;  %10119 = vmatprep.subr.bf16.mxu1 %v13265_v41  ;;  %v1093_v40 = vld [vmem:[#allocation5 + $0x1c80] sm:$0xff] }
 0x206   :  { %9709 = vmatprep.subr.bf16.mxu0 %v13519_v42  ;;  %v1097_v41 = vld [vmem:[#allocation5 + $0x1ca0] sm:$0xff]  ;;  %v13304_v42 = vcombine.low %v830_v25, %v834_v26 }
 0x207   :  { %v13567_v46 = vcombine.high %v1093_v40, %v1097_v41  ;;  %v13566_v53 = vcombine.low %v1093_v40, %v1097_v41  ;;  %v890_v40 = vld [vmem:[#allocation5 + $0x1628] sm:$0xff]  ;;  %v1141_v41 = vld [vmem:[#allocation5 + $0x1e00] sm:$0xff] }
 0x208   :  { %10120 = vmatpush1.bf16.msra.mxu1 %v13264_v48  ;;  %v850_v48 = vld [vmem:[#allocation5 + $0x14e8] sm:$0xff] }
 0x209   :  { %9710 = vmatpush1.bf16.msra.mxu0 %v13518_v49  ;;  %10121 = vmatprep.subr.bf16.mxu1 %v13273_v50  ;;  %v1101_v49 = vld [vmem:[#allocation5 + $0x1cc0] sm:$0xff]  ;;  %v13321_v55 = vcombine.high %v846_v47, %v850_v48 }
 0x20a   :  { %9711 = vmatprep.subr.bf16.mxu0 %v13527_v52  ;;  %v1105_v50 = vld [vmem:[#allocation5 + $0x1ce0] sm:$0xff]  ;;  %v13312_v52 = vcombine.low %v838_v37, %v842_v38  ;;  %v886_v38 = vld [vmem:[#allocation5 + $0x1608] sm:$0xff] }
 0x20b   :  { %v13575_v56 = vcombine.high %v1101_v49, %v1105_v50  ;;  %v13574_v2 = vcombine.low %v1101_v49, %v1105_v50  ;;  %v898_v49 = vld [vmem:[#allocation5 + $0x1668] sm:$0xff]  ;;  %v1149_v50 = vld [vmem:[#allocation5 + $0x1e40] sm:$0xff] }
 0x20c   :  { %10122 = vmatpush1.bf16.msra.mxu1 %v13272_v60  ;;  %v858_v60 = vld [vmem:[#allocation5 + $0x1528] sm:$0xff] }
 0x20d   :  { %9712 = vmatpush1.bf16.msra.mxu0 %v13526_v63  ;;  %10123 = vmatprep.subr.bf16.mxu1 %v13281_v0  ;;  %v1109_v63 = vld [vmem:[#allocation5 + $0x1d00] sm:$0xff]  ;;  %v13329_v4 = vcombine.high %v854_v57, %v858_v60 }
 0x20e   :  { %9713 = vmatprep.subr.bf16.mxu0 %v13535_v1  ;;  %v1113_v0 = vld [vmem:[#allocation5 + $0x1d20] sm:$0xff]  ;;  %v13320_v1 = vcombine.low %v846_v47, %v850_v48  ;;  %v894_v48 = vld [vmem:[#allocation5 + $0x1648] sm:$0xff] }
 0x20f   :  { %v13583_v5 = vcombine.high %v1109_v63, %v1113_v0  ;;  %v13582_v12 = vcombine.low %v1109_v63, %v1113_v0  ;;  %v906_v63 = vld [vmem:[#allocation5 + $0x16a8] sm:$0xff]  ;;  %v1157_v0 = vld [vmem:[#allocation5 + $0x1e80] sm:$0xff] }
 0x210   :  { %10124 = vmatpush1.bf16.msra.mxu1 %v13280_v8  ;;  %v866_v8 = vld [vmem:[#allocation5 + $0x1568] sm:$0xff] }
 0x211   :  { %9714 = vmatpush1.bf16.msra.mxu0 %v13534_v9  ;;  %10125 = vmatprep.subr.bf16.mxu1 %v13289_v10  ;;  %v1117_v9 = vld [vmem:[#allocation5 + $0x1d40] sm:$0xff]  ;;  %v13337_v13 = vcombine.high %v862_v6, %v866_v8  ;;  %v13336_v23 = vcombine.low %v862_v6, %v866_v8  ;;  %v910_v8 = vld [vmem:[#allocation5 + $0x16c8] sm:$0xff] }
 0x212   :  { %9715 = vmatprep.subr.bf16.mxu0 %v13543_v11  ;;  %v1121_v10 = vld [vmem:[#allocation5 + $0x1d60] sm:$0xff]  ;;  %v13328_v11 = vcombine.low %v854_v57, %v858_v60  ;;  %v902_v60 = vld [vmem:[#allocation5 + $0x1688] sm:$0xff] }
 0x213   :  { %v13591_v15 = vcombine.high %v1117_v9, %v1121_v10 }
 0x214   :  { %10126 = vmatpush1.bf16.msra.mxu1 %v13288_v18  ;;  %v874_v18 = vld [vmem:[#allocation5 + $0x15a8] sm:$0xff] }
 0x215   :  { %9716 = vmatpush1.bf16.msra.mxu0 %v13542_v19  ;;  %10136 = vmatprep.subr.bf16.mxu1 %v13297_v20  ;;  %v1125_v19 = vld [vmem:[#allocation5 + $0x1d80] sm:$0xff]  ;;  %v13345_v25 = vcombine.high %v870_v16, %v874_v18 }
 0x216   :  { %9726 = vmatprep.subr.bf16.mxu0 %v13551_v24  ;;  %v1129_v20 = vld [vmem:[#allocation5 + $0x1da0] sm:$0xff]  ;;  %v13590_v24 = vcombine.low %v1117_v9, %v1121_v10  ;;  %v914_v9 = vld [vmem:[#allocation5 + $0x16e8] sm:$0xff] }
 0x217   :  { %10128 = vmatmul.mubr.bf16.vlgmr.msra.gmra.mrb[4].mxu1 %v15179_v14  ;;  %v13599_v26 = vcombine.high %v1125_v19, %v1129_v20  ;;  %v1165_v10 = vld [vmem:[#allocation5 + $0x1ec0] sm:$0xff] }
 0x218   :  { %9718 = vmatmul.mubr.bf16.vlgmr.msra.gmra.mrb[0].mxu0 %v15199_v32  ;;  %10137 = vmatpush1.bf16.msra.mxu1 %v13296_v31  ;;  %v1137_v31 = vld [vmem:[#allocation5 + $0x1de0] sm:$0xff] }
 0x219   :  { %9727 = vmatpush1.bf16.msra.mxu0 %v13550_v33  ;;  %10138 = vmatprep.subr.bf16.mxu1 %v13305_v34  ;;  %v13344_v33 = vcombine.low %v870_v16, %v874_v18  ;;  %v13598_v34 = vcombine.low %v1125_v19, %v1129_v20  ;;  %v13607_v37 = vcombine.high %v1133_v30, %v1137_v31  ;;  %v918_v18 = vld [vmem:[#allocation5 + $0x1708] sm:$0xff]  ;;  %v1173_v20 = vld [vmem:[#allocation5 + $0x1f00] sm:$0xff] }
 0x21a   :  { %9728 = vmatprep.subr.bf16.mxu0 %v13559_v35  ;;  %9758 = vmatprep.mubr.bf16.mxu0 %v15201_v39  ;;  %v13353_v35 = vcombine.high %v878_v27, %v882_v29  ;;  %v922_v19 = vld [vmem:[#allocation5 + $0x1728] sm:$0xff] }
 0x21b   :  { %10168 = vmatprep.mubr.bf16.mxu1 %v15181_v21 }
 0x21c   :  { %10139 = vmatpush1.bf16.msra.mxu1 %v13304_v42  ;;  %v1145_v42 = vld [vmem:[#allocation5 + $0x1e20] sm:$0xff] }
 0x21d   :  { %9729 = vmatpush1.bf16.msra.mxu0 %v13558_v43  ;;  %10140 = vmatprep.subr.bf16.mxu1 %v13313_v45  ;;  %v13352_v43 = vcombine.low %v878_v27, %v882_v29  ;;  %v13606_v45 = vcombine.low %v1133_v30, %v1137_v31  ;;  %v13615_v47 = vcombine.high %v1141_v41, %v1145_v42  ;;  %v926_v29 = vld [vmem:[#allocation5 + $0x1748] sm:$0xff]  ;;  %v1181_v31 = vld [vmem:[#allocation5 + $0x1f40] sm:$0xff] }
 0x21e   :  { %9730 = vmatprep.subr.bf16.mxu0 %v13567_v46  ;;  %v13361_v46 = vcombine.high %v886_v38, %v890_v40  ;;  %v930_v30 = vld [vmem:[#allocation5 + $0x1768] sm:$0xff] }
 0x220   :  { %10141 = vmatpush1.bf16.msra.mxu1 %v13312_v52  ;;  %v1153_v52 = vld [vmem:[#allocation5 + $0x1e60] sm:$0xff] }
 0x221   :  { %9731 = vmatpush1.bf16.msra.mxu0 %v13566_v53  ;;  %10142 = vmatprep.subr.bf16.mxu1 %v13321_v55  ;;  %v13360_v53 = vcombine.low %v886_v38, %v890_v40  ;;  %v13614_v55 = vcombine.low %v1141_v41, %v1145_v42  ;;  %v13623_v57 = vcombine.high %v1149_v50, %v1153_v52  ;;  %v934_v40 = vld [vmem:[#allocation5 + $0x1788] sm:$0xff]  ;;  %v1189_v42 = vld [vmem:[#allocation5 + $0x1f80] sm:$0xff] }
 0x222   :  { %9732 = vmatprep.subr.bf16.mxu0 %v13575_v56  ;;  %v13369_v56 = vcombine.high %v894_v48, %v898_v49  ;;  %v938_v41 = vld [vmem:[#allocation5 + $0x17a8] sm:$0xff] }
 0x224   :  { %10143 = vmatpush1.bf16.msra.mxu1 %v13320_v1  ;;  %v1161_v1 = vld [vmem:[#allocation5 + $0x1ea0] sm:$0xff] }
 0x225   :  { %9733 = vmatpush1.bf16.msra.mxu0 %v13574_v2  ;;  %10144 = vmatprep.subr.bf16.mxu1 %v13329_v4  ;;  %v13368_v2 = vcombine.low %v894_v48, %v898_v49  ;;  %v13622_v4 = vcombine.low %v1149_v50, %v1153_v52  ;;  %v13631_v6 = vcombine.high %v1157_v0, %v1161_v1  ;;  %v942_v49 = vld [vmem:[#allocation5 + $0x17c8] sm:$0xff]  ;;  %v1197_v52 = vld [vmem:[#allocation5 + $0x1fc0] sm:$0xff] }
 0x226   :  { %9734 = vmatprep.subr.bf16.mxu0 %v13583_v5  ;;  %v13377_v5 = vcombine.high %v902_v60, %v906_v63  ;;  %v946_v50 = vld [vmem:[#allocation5 + $0x17e8] sm:$0xff] }
 0x228   :  { %10145 = vmatpush1.bf16.msra.mxu1 %v13328_v11  ;;  %v1169_v11 = vld [vmem:[#allocation5 + $0x1ee0] sm:$0xff] }
 0x229   :  { %9735 = vmatpush1.bf16.msra.mxu0 %v13582_v12  ;;  %10146 = vmatprep.subr.bf16.mxu1 %v13337_v13  ;;  %v13376_v12 = vcombine.low %v902_v60, %v906_v63  ;;  %v13630_v13 = vcombine.low %v1157_v0, %v1161_v1  ;;  %v13639_v16 = vcombine.high %v1165_v10, %v1169_v11  ;;  %v950_v63 = vld [vmem:[#allocation5 + $0x1808] sm:$0xff]  ;;  %v1205_v1 = vld [vmem:[#allocation5 + $0x2000] sm:$0xff] }
 0x22a   :  { %9736 = vmatprep.subr.bf16.mxu0 %v13591_v15  ;;  %v13385_v15 = vcombine.high %v910_v8, %v914_v9  ;;  %v954_v0 = vld [vmem:[#allocation5 + $0x1828] sm:$0xff] }
 0x22c   :  { %10147 = vmatpush1.bf16.msra.mxu1 %v13336_v23  ;;  %v1177_v23 = vld [vmem:[#allocation5 + $0x1f20] sm:$0xff] }
 0x22d   :  { %9737 = vmatpush1.bf16.msra.mxu0 %v13590_v24  ;;  %10148 = vmatprep.subr.bf16.mxu1 %v13345_v25  ;;  %v13384_v24 = vcombine.low %v910_v8, %v914_v9  ;;  %v13638_v25 = vcombine.low %v1165_v10, %v1169_v11  ;;  %v13647_v27 = vcombine.high %v1173_v20, %v1177_v23  ;;  %v147_v8 = vld [vmem:[#allocation3 + $0x70] sm:$0xff]  ;;  %v958_v10 = vld [vmem:[#allocation5 + $0x1848] sm:$0xff] }
 0x22e   :  { %9738 = vmatprep.subr.bf16.mxu0 %v13599_v26  ;;  %v13393_v26 = vcombine.high %v918_v18, %v922_v19  ;;  %v962_v11 = vld [vmem:[#allocation5 + $0x1868] sm:$0xff] }
 0x230   :  { %10149 = vmatpush1.bf16.msra.mxu1 %v13344_v33  ;;  %v1185_v33 = vld [vmem:[#allocation5 + $0x1f60] sm:$0xff] }
 0x231   :  { %9739 = vmatpush1.bf16.msra.mxu0 %v13598_v34  ;;  %10150 = vmatprep.subr.bf16.mxu1 %v13353_v35  ;;  %v13392_v34 = vcombine.low %v918_v18, %v922_v19  ;;  %v13646_v35 = vcombine.low %v1173_v20, %v1177_v23  ;;  %v13655_v38 = vcombine.high %v1181_v31, %v1185_v33 }
 0x232   :  { %9740 = vmatprep.subr.bf16.mxu0 %v13607_v37  ;;  %v13401_v37 = vcombine.high %v926_v29, %v930_v30  ;;  %v15207_v18 = vpack.c.bf16 %v147_v8, %v147_v8  ;;  %v13433_v20 = vcombine.high %v958_v10, %v962_v11  ;;  %v1253_v8 = vld [vmem:[#allocation5 + $0x2180] sm:$0xff] }
 0x234   :  { %10151 = vmatpush1.bf16.msra.mxu1 %v13352_v43  ;;  %v1193_v43 = vld [vmem:[#allocation5 + $0x1fa0] sm:$0xff] }
 0x235   :  { %9741 = vmatpush1.bf16.msra.mxu0 %v13606_v45  ;;  %10152 = vmatprep.subr.bf16.mxu1 %v13361_v46  ;;  %v13400_v45 = vcombine.low %v926_v29, %v930_v30  ;;  %v13654_v46 = vcombine.low %v1181_v31, %v1185_v33  ;;  %v13663_v48 = vcombine.high %v1189_v42, %v1193_v43  ;;  %v1225_v29 = vld [vmem:[#allocation5 + $0x20a0] sm:$0xff] }
 0x236   :  { %9742 = vmatprep.subr.bf16.mxu0 %v13615_v47  ;;  %v13409_v47 = vcombine.high %v934_v40, %v938_v41  ;;  %v13432_v30 = vcombine.low %v958_v10, %v962_v11 }
 0x238   :  { %10153 = vmatpush1.bf16.msra.mxu1 %v13360_v53  ;;  %v1201_v53 = vld [vmem:[#allocation5 + $0x1fe0] sm:$0xff] }
 0x239   :  { %9743 = vmatpush1.bf16.msra.mxu0 %v13614_v55  ;;  %10154 = vmatprep.subr.bf16.mxu1 %v13369_v56  ;;  %v13408_v55 = vcombine.low %v934_v40, %v938_v41  ;;  %v13662_v56 = vcombine.low %v1189_v42, %v1193_v43  ;;  %v13671_v60 = vcombine.high %v1197_v52, %v1201_v53  ;;  %v1233_v40 = vld [vmem:[#allocation5 + $0x20e0] sm:$0xff] }
 0x23a   :  { %9744 = vmatprep.subr.bf16.mxu0 %v13623_v57  ;;  %v13417_v57 = vcombine.high %v942_v49, %v946_v50 }
 0x23c   :  { %10155 = vmatpush1.bf16.msra.mxu1 %v13368_v2  ;;  %v1209_v2 = vld [vmem:[#allocation5 + $0x2020] sm:$0xff] }
 0x23d   :  { %9745 = vmatpush1.bf16.msra.mxu0 %v13622_v4  ;;  %10156 = vmatprep.subr.bf16.mxu1 %v13377_v5  ;;  %v13416_v4 = vcombine.low %v942_v49, %v946_v50  ;;  %v13670_v5 = vcombine.low %v1197_v52, %v1201_v53  ;;  %v13679_v9 = vcombine.high %v1205_v1, %v1209_v2  ;;  %v1241_v49 = vld [vmem:[#allocation5 + $0x2120] sm:$0xff] }
 0x23e   :  { %9746 = vmatprep.subr.bf16.mxu0 %v13631_v6  ;;  %v13425_v6 = vcombine.high %v950_v63, %v954_v0  ;;  %v13678_v19 = vcombine.low %v1205_v1, %v1209_v2 }
 0x240   :  { %10157 = vmatpush1.bf16.msra.mxu1 %v13376_v12  ;;  %v1213_v12 = vld [vmem:[#allocation5 + $0x2040] sm:$0xff] }
 0x241   :  { %9747 = vmatpush1.bf16.msra.mxu0 %v13630_v13  ;;  %10158 = vmatprep.subr.bf16.mxu1 %v13385_v15  ;;  %v1217_v13 = vld [vmem:[#allocation5 + $0x2060] sm:$0xff]  ;;  %v150_v15 = vld [vmem:[#allocation3 + $0x88] sm:$0xff] }
 0x242   :  { %9748 = vmatprep.subr.bf16.mxu0 %v13639_v16  ;;  %v13424_v16 = vcombine.low %v950_v63, %v954_v0  ;;  %v13687_v23 = vcombine.high %v1213_v12, %v1217_v13  ;;  %v13686_v31 = vcombine.low %v1213_v12, %v1217_v13  ;;  %v1249_v63 = vld [vmem:[#allocation5 + $0x2160] sm:$0xff] }
 0x244   :  { %10159 = vmatpush1.bf16.msra.mxu1 %v13384_v24  ;;  %v966_v24 = vld [vmem:[#allocation5 + $0x1888] sm:$0xff] }
 0x245   :  { %9749 = vmatpush1.bf16.msra.mxu0 %v13638_v25  ;;  %10160 = vmatprep.subr.bf16.mxu1 %v13393_v26  ;;  %v970_v25 = vld [vmem:[#allocation5 + $0x18a8] sm:$0xff]  ;;  %v15209_v26 = vpack.c.bf16 %v150_v15, %v150_v15 }
 0x246   :  { %9750 = vmatprep.subr.bf16.mxu0 %v13647_v27  ;;  %v1221_v27 = vld [vmem:[#allocation5 + $0x2080] sm:$0xff]  ;;  %v13441_v33 = vcombine.high %v966_v24, %v970_v25  ;;  %v13440_v41 = vcombine.low %v966_v24, %v970_v25  ;;  %v1006_v15 = vld [vmem:[#allocation5 + $0x19c8] sm:$0xff] }
 0x247   :  { %v13694_v42 = vcombine.low %v1221_v27, %v1225_v29 }
 0x248   :  { %10161 = vmatpush1.bf16.msra.mxu1 %v13392_v34  ;;  %v13695_v34 = vcombine.high %v1221_v27, %v1225_v29  ;;  %v1014_v29 = vld [vmem:[#allocation5 + $0x1a08] sm:$0xff] }
 0x249   :  { %9751 = vmatpush1.bf16.msra.mxu0 %v13646_v35  ;;  %10162 = vmatprep.subr.bf16.mxu1 %v13401_v37  ;;  %v974_v35 = vld [vmem:[#allocation5 + $0x18c8] sm:$0xff] }
 0x24a   :  { %9752 = vmatprep.subr.bf16.mxu0 %v13655_v38  ;;  %v978_v37 = vld [vmem:[#allocation5 + $0x18e8] sm:$0xff]  ;;  %v1229_v38 = vld [vmem:[#allocation5 + $0x20c0] sm:$0xff] }
 0x24b   :  { %v13449_v43 = vcombine.high %v974_v35, %v978_v37  ;;  %v13448_v50 = vcombine.low %v974_v35, %v978_v37  ;;  %v13702_v52 = vcombine.low %v1229_v38, %v1233_v40 }
 0x24c   :  { %10163 = vmatpush1.bf16.msra.mxu1 %v13400_v45  ;;  %v13703_v45 = vcombine.high %v1229_v38, %v1233_v40  ;;  %v1022_v40 = vld [vmem:[#allocation5 + $0x1a48] sm:$0xff] }
 0x24d   :  { %9753 = vmatpush1.bf16.msra.mxu0 %v13654_v46  ;;  %10164 = vmatprep.subr.bf16.mxu1 %v13409_v47  ;;  %v982_v46 = vld [vmem:[#allocation5 + $0x1908] sm:$0xff] }
 0x24e   :  { %9754 = vmatprep.subr.bf16.mxu0 %v13663_v48  ;;  %v986_v47 = vld [vmem:[#allocation5 + $0x1928] sm:$0xff]  ;;  %v1237_v48 = vld [vmem:[#allocation5 + $0x2100] sm:$0xff] }
 0x24f   :  { %v13457_v53 = vcombine.high %v982_v46, %v986_v47  ;;  %v13456_v0 = vcombine.low %v982_v46, %v986_v47  ;;  %v13710_v1 = vcombine.low %v1237_v48, %v1241_v49 }
 0x250   :  { %10165 = vmatpush1.bf16.msra.mxu1 %v13408_v55  ;;  %v13711_v55 = vcombine.high %v1237_v48, %v1241_v49  ;;  %v1030_v49 = vld [vmem:[#allocation5 + $0x1a88] sm:$0xff] }
 0x251   :  { %9755 = vmatpush1.bf16.msra.mxu0 %v13662_v56  ;;  %10166 = vmatprep.subr.bf16.mxu1 %v13417_v57  ;;  %v990_v56 = vld [vmem:[#allocation5 + $0x1948] sm:$0xff] }
 0x252   :  { %9756 = vmatprep.subr.bf16.mxu0 %v13671_v60  ;;  %v994_v57 = vld [vmem:[#allocation5 + $0x1968] sm:$0xff]  ;;  %v1245_v60 = vld [vmem:[#allocation5 + $0x2140] sm:$0xff] }
 0x253   :  { %v13465_v2 = vcombine.high %v990_v56, %v994_v57  ;;  %v13464_v10 = vcombine.low %v990_v56, %v994_v57  ;;  %v13718_v11 = vcombine.low %v1245_v60, %v1249_v63 }
 0x254   :  { %10167 = vmatpush1.bf16.msra.mxu1 %v13416_v4  ;;  %v13719_v4 = vcombine.high %v1245_v60, %v1249_v63  ;;  %v1038_v63 = vld [vmem:[#allocation5 + $0x1ac8] sm:$0xff] }
 0x255   :  { %9757 = vmatpush1.bf16.msra.mxu0 %v13670_v5  ;;  %10177 = vmatprep.subr.bf16.mxu1 %v13425_v6  ;;  %v998_v5 = vld [vmem:[#allocation5 + $0x1988] sm:$0xff] }
 0x256   :  { %9767 = vmatprep.subr.bf16.mxu0 %v13679_v9  ;;  %v1002_v6 = vld [vmem:[#allocation5 + $0x19a8] sm:$0xff]  ;;  %v1257_v9 = vld [vmem:[#allocation5 + $0x21a0] sm:$0xff] }
 0x257   :  { %10169 = vmatmul.mubr.bf16.vlgmr.msra.gmra.mrb[4].mxu1 %v15191_v51  ;;  %v13473_v12 = vcombine.high %v998_v5, %v1002_v6  ;;  %v13727_v13 = vcombine.high %v1253_v8, %v1257_v9  ;;  %v13726_v24 = vcombine.low %v1253_v8, %v1257_v9  ;;  %v1046_v9 = vld [vmem:[#allocation5 + $0x1b08] sm:$0xff] }
 0x258   :  { %9759 = vmatmul.mubr.bf16.vlgmr.msra.gmra.mrb[0].mxu0 %v15207_v18  ;;  %10178 = vmatpush1.bf16.msra.mxu1 %v13424_v16  ;;  %v1010_v16 = vld [vmem:[#allocation5 + $0x19e8] sm:$0xff] }
 0x259   :  { %9768 = vmatpush1.bf16.msra.mxu0 %v13678_v19  ;;  %10179 = vmatprep.subr.bf16.mxu1 %v13433_v20  ;;  %v1261_v19 = vld [vmem:[#allocation5 + $0x21c0] sm:$0xff]  ;;  %v13481_v25 = vcombine.high %v1006_v15, %v1010_v16 }
 0x25a   :  { %9769 = vmatprep.subr.bf16.mxu0 %v13687_v23  ;;  %9799 = vmatprep.mubr.bf16.mxu0 %v15209_v26  ;;  %v1265_v20 = vld [vmem:[#allocation5 + $0x21e0] sm:$0xff]  ;;  %v13472_v23 = vcombine.low %v998_v5, %v1002_v6 }
 0x25b   :  { %10209 = vmatprep.mubr.bf16.mxu1 %v15193_v59  ;;  %v13735_v27 = vcombine.high %v1261_v19, %v1265_v20  ;;  %v13734_v35 = vcombine.low %v1261_v19, %v1265_v20  ;;  %v1054_v20 = vld [vmem:[#allocation5 + $0x1b48] sm:$0xff] }
 0x25c   :  { %10180 = vmatpush1.bf16.msra.mxu1 %v13432_v30  ;;  %v1018_v30 = vld [vmem:[#allocation5 + $0x1a28] sm:$0xff] }
 0x25d   :  { %9770 = vmatpush1.bf16.msra.mxu0 %v13686_v31  ;;  %10181 = vmatprep.subr.bf16.mxu1 %v13441_v33  ;;  %v1269_v31 = vld [vmem:[#allocation5 + $0x2200] sm:$0xff]  ;;  %v13489_v37 = vcombine.high %v1014_v29, %v1018_v30 }
 0x25e   :  { %9771 = vmatprep.subr.bf16.mxu0 %v13695_v34  ;;  %v1273_v33 = vld [vmem:[#allocation5 + $0x2220] sm:$0xff]  ;;  %v13480_v34 = vcombine.low %v1006_v15, %v1010_v16 }
 0x25f   :  { %v13743_v38 = vcombine.high %v1269_v31, %v1273_v33  ;;  %v13742_v46 = vcombine.low %v1269_v31, %v1273_v33  ;;  %v1062_v33 = vld [vmem:[#allocation5 + $0x1b88] sm:$0xff] }
 0x260   :  { %10182 = vmatpush1.bf16.msra.mxu1 %v13440_v41  ;;  %v1026_v41 = vld [vmem:[#allocation5 + $0x1a68] sm:$0xff] }
 0x261   :  { %9772 = vmatpush1.bf16.msra.mxu0 %v13694_v42  ;;  %10183 = vmatprep.subr.bf16.mxu1 %v13449_v43  ;;  %v1277_v42 = vld [vmem:[#allocation5 + $0x2240] sm:$0xff]  ;;  %v13497_v47 = vcombine.high %v1022_v40, %v1026_v41 }
 0x262   :  { %9773 = vmatprep.subr.bf16.mxu0 %v13703_v45  ;;  %v1281_v43 = vld [vmem:[#allocation5 + $0x2260] sm:$0xff]  ;;  %v13488_v45 = vcombine.low %v1014_v29, %v1018_v30 }
 0x263   :  { %v13751_v48 = vcombine.high %v1277_v42, %v1281_v43  ;;  %v13750_v56 = vcombine.low %v1277_v42, %v1281_v43  ;;  %v1070_v43 = vld [vmem:[#allocation5 + $0x1bc8] sm:$0xff] }
 0x264   :  { %10184 = vmatpush1.bf16.msra.mxu1 %v13448_v50  ;;  %v1034_v50 = vld [vmem:[#allocation5 + $0x1aa8] sm:$0xff] }
 0x265   :  { %9774 = vmatpush1.bf16.msra.mxu0 %v13702_v52  ;;  %10185 = vmatprep.subr.bf16.mxu1 %v13457_v53  ;;  %v1285_v52 = vld [vmem:[#allocation5 + $0x2280] sm:$0xff]  ;;  %v13505_v57 = vcombine.high %v1030_v49, %v1034_v50 }
 0x266   :  { %9775 = vmatprep.subr.bf16.mxu0 %v13711_v55  ;;  %v1289_v53 = vld [vmem:[#allocation5 + $0x22a0] sm:$0xff]  ;;  %v13496_v55 = vcombine.low %v1022_v40, %v1026_v41 }
 0x267   :  { %v13759_v60 = vcombine.high %v1285_v52, %v1289_v53  ;;  %v13758_v5 = vcombine.low %v1285_v52, %v1289_v53  ;;  %v1078_v53 = vld [vmem:[#allocation5 + $0x1c08] sm:$0xff] }
 0x268   :  { %10186 = vmatpush1.bf16.msra.mxu1 %v13456_v0  ;;  %v1042_v0 = vld [vmem:[#allocation5 + $0x1ae8] sm:$0xff] }
 0x269   :  { %9776 = vmatpush1.bf16.msra.mxu0 %v13710_v1  ;;  %10187 = vmatprep.subr.bf16.mxu1 %v13465_v2  ;;  %v1293_v1 = vld [vmem:[#allocation5 + $0x22c0] sm:$0xff]  ;;  %v13513_v6 = vcombine.high %v1038_v63, %v1042_v0 }
 0x26a   :  { %9777 = vmatprep.subr.bf16.mxu0 %v13719_v4  ;;  %v1297_v2 = vld [vmem:[#allocation5 + $0x22e0] sm:$0xff]  ;;  %v13504_v4 = vcombine.low %v1030_v49, %v1034_v50 }
 0x26b   :  { %v13767_v8 = vcombine.high %v1293_v1, %v1297_v2  ;;  %v13766_v15 = vcombine.low %v1293_v1, %v1297_v2  ;;  %v149_v1 = vld [vmem:[#allocation3 + $0x80] sm:$0xff] }
 0x26c   :  { %10188 = vmatpush1.bf16.msra.mxu1 %v13464_v10  ;;  %v1050_v10 = vld [vmem:[#allocation5 + $0x1b28] sm:$0xff] }
 0x26d   :  { %9778 = vmatpush1.bf16.msra.mxu0 %v13718_v11  ;;  %10189 = vmatprep.subr.bf16.mxu1 %v13473_v12  ;;  %v1301_v11 = vld [vmem:[#allocation5 + $0x2300] sm:$0xff]  ;;  %v13521_v16 = vcombine.high %v1046_v9, %v1050_v10 }
 0x26e   :  { %9779 = vmatprep.subr.bf16.mxu0 %v13727_v13  ;;  %v1305_v12 = vld [vmem:[#allocation5 + $0x2320] sm:$0xff]  ;;  %v13512_v13 = vcombine.low %v1038_v63, %v1042_v0 }
 0x26f   :  { %v13775_v19 = vcombine.high %v1301_v11, %v1305_v12  ;;  %v13774_v29 = vcombine.low %v1301_v11, %v1305_v12  ;;  %v15215_v11 = vpack.c.bf16 %v149_v1, %v149_v1  ;;  %v1126_v1 = vld [vmem:[#allocation5 + $0x1d88] sm:$0xff] }
 0x270   :  { %10190 = vmatpush1.bf16.msra.mxu1 %v13472_v23  ;;  %v1058_v23 = vld [vmem:[#allocation5 + $0x1b68] sm:$0xff] }
 0x271   :  { %9780 = vmatpush1.bf16.msra.mxu0 %v13726_v24  ;;  %10191 = vmatprep.subr.bf16.mxu1 %v13481_v25  ;;  %v1309_v24 = vld [vmem:[#allocation5 + $0x2340] sm:$0xff]  ;;  %v13529_v30 = vcombine.high %v1054_v20, %v1058_v23 }
 0x272   :  { %9781 = vmatprep.subr.bf16.mxu0 %v13735_v27  ;;  %v1313_v25 = vld [vmem:[#allocation5 + $0x2360] sm:$0xff]  ;;  %v13520_v27 = vcombine.low %v1046_v9, %v1050_v10  ;;  %v152_v9 = vld [vmem:[#allocation3 + $0x98] sm:$0xff] }
 0x273   :  { %v13783_v31 = vcombine.high %v1309_v24, %v1313_v25  ;;  %v13782_v40 = vcombine.low %v1309_v24, %v1313_v25  ;;  %v1353_v24 = vld [vmem:[#allocation5 + $0x24a0] sm:$0xff] }
 0x274   :  { %10192 = vmatpush1.bf16.msra.mxu1 %v13480_v34  ;;  %v1066_v34 = vld [vmem:[#allocation5 + $0x1ba8] sm:$0xff] }
 0x275   :  { %9782 = vmatpush1.bf16.msra.mxu0 %v13734_v35  ;;  %10193 = vmatprep.subr.bf16.mxu1 %v13489_v37  ;;  %v1317_v35 = vld [vmem:[#allocation5 + $0x2380] sm:$0xff]  ;;  %v13537_v41 = vcombine.high %v1062_v33, %v1066_v34 }
 0x276   :  { %9783 = vmatprep.subr.bf16.mxu0 %v13743_v38  ;;  %v1321_v37 = vld [vmem:[#allocation5 + $0x23a0] sm:$0xff]  ;;  %v13528_v38 = vcombine.low %v1054_v20, %v1058_v23  ;;  %v15217_v20 = vpack.c.bf16 %v152_v9, %v152_v9 }
 0x277   :  { %v13791_v42 = vcombine.high %v1317_v35, %v1321_v37  ;;  %v13790_v49 = vcombine.low %v1317_v35, %v1321_v37  ;;  %v1349_v23 = vld [vmem:[#allocation5 + $0x2480] sm:$0xff] }
 0x278   :  { %10194 = vmatpush1.bf16.msra.mxu1 %v13488_v45  ;;  %v1074_v45 = vld [vmem:[#allocation5 + $0x1be8] sm:$0xff]  ;;  %v1361_v35 = vld [vmem:[#allocation5 + $0x24e0] sm:$0xff] }
 0x279   :  { %9784 = vmatpush1.bf16.msra.mxu0 %v13742_v46  ;;  %10195 = vmatprep.subr.bf16.mxu1 %v13497_v47  ;;  %v1325_v46 = vld [vmem:[#allocation5 + $0x23c0] sm:$0xff]  ;;  %v13545_v50 = vcombine.high %v1070_v43, %v1074_v45 }
 0x27a   :  { %9785 = vmatprep.subr.bf16.mxu0 %v13751_v48  ;;  %v1329_v47 = vld [vmem:[#allocation5 + $0x23e0] sm:$0xff]  ;;  %v13536_v48 = vcombine.low %v1062_v33, %v1066_v34  ;;  %v1106_v33 = vld [vmem:[#allocation5 + $0x1ce8] sm:$0xff] }
 0x27b   :  { %v13799_v52 = vcombine.high %v1325_v46, %v1329_v47  ;;  %v13798_v63 = vcombine.low %v1325_v46, %v1329_v47  ;;  %v1357_v34 = vld [vmem:[#allocation5 + $0x24c0] sm:$0xff] }
 0x27c   :  { %10196 = vmatpush1.bf16.msra.mxu1 %v13496_v55  ;;  %v1082_v55 = vld [vmem:[#allocation5 + $0x1c28] sm:$0xff]  ;;  %v1369_v46 = vld [vmem:[#allocation5 + $0x2520] sm:$0xff] }
 0x27d   :  { %9786 = vmatpush1.bf16.msra.mxu0 %v13750_v56  ;;  %10197 = vmatprep.subr.bf16.mxu1 %v13505_v57  ;;  %v1333_v56 = vld [vmem:[#allocation5 + $0x2400] sm:$0xff]  ;;  %v13553_v0 = vcombine.high %v1078_v53, %v1082_v55  ;;  %v13552_v10 = vcombine.low %v1078_v53, %v1082_v55  ;;  %v1122_v53 = vld [vmem:[#allocation5 + $0x1d68] sm:$0xff] }
 0x27e   :  { %9787 = vmatprep.subr.bf16.mxu0 %v13759_v60  ;;  %v1337_v57 = vld [vmem:[#allocation5 + $0x2420] sm:$0xff]  ;;  %v13544_v60 = vcombine.low %v1070_v43, %v1074_v45  ;;  %v1114_v43 = vld [vmem:[#allocation5 + $0x1d28] sm:$0xff] }
 0x27f   :  { %v13807_v2 = vcombine.high %v1333_v56, %v1337_v57  ;;  %v13806_v12 = vcombine.low %v1333_v56, %v1337_v57  ;;  %v1365_v45 = vld [vmem:[#allocation5 + $0x2500] sm:$0xff] }
 0x280   :  { %10198 = vmatpush1.bf16.msra.mxu1 %v13504_v4  ;;  %v1086_v4 = vld [vmem:[#allocation5 + $0x1c48] sm:$0xff]  ;;  %v1373_v55 = vld [vmem:[#allocation5 + $0x2540] sm:$0xff] }
 0x281   :  { %9788 = vmatpush1.bf16.msra.mxu0 %v13758_v5  ;;  %10199 = vmatprep.subr.bf16.mxu1 %v13513_v6  ;;  %v1090_v5 = vld [vmem:[#allocation5 + $0x1c68] sm:$0xff]  ;;  %v1341_v6 = vld [vmem:[#allocation5 + $0x2440] sm:$0xff] }
 0x282   :  { %9789 = vmatprep.subr.bf16.mxu0 %v13767_v8  ;;  %v1345_v8 = vld [vmem:[#allocation5 + $0x2460] sm:$0xff]  ;;  %v13560_v25 = vcombine.low %v1086_v4, %v1090_v5 }
 0x283   :  { %v1377_v56 = vld [vmem:[#allocation5 + $0x2560] sm:$0xff] }
 0x284   :  { %10200 = vmatpush1.bf16.msra.mxu1 %v13512_v13  ;;  %v13561_v13 = vcombine.high %v1086_v4, %v1090_v5  ;;  %v1381_v4 = vld [vmem:[#allocation5 + $0x2580] sm:$0xff] }
 0x285   :  { %9790 = vmatpush1.bf16.msra.mxu0 %v13766_v15  ;;  %10201 = vmatprep.subr.bf16.mxu1 %v13521_v16  ;;  %v13815_v15 = vcombine.high %v1341_v6, %v1345_v8  ;;  %v1094_v16 = vld [vmem:[#allocation5 + $0x1c88] sm:$0xff]  ;;  %v1385_v5 = vld [vmem:[#allocation5 + $0x25a0] sm:$0xff] }
 0x286   :  { %9791 = vmatprep.subr.bf16.mxu0 %v13775_v19  ;;  %v1098_v19 = vld [vmem:[#allocation5 + $0x1ca8] sm:$0xff] }
 0x287   :  { %v13568_v37 = vcombine.low %v1094_v16, %v1098_v19 }
 0x288   :  { %10202 = vmatpush1.bf16.msra.mxu1 %v13520_v27  ;;  %v13814_v27 = vcombine.low %v1341_v6, %v1345_v8  ;;  %v13846_v8 = vcombine.low %v1373_v55, %v1377_v56 }
 0x289   :  { %9792 = vmatpush1.bf16.msra.mxu0 %v13774_v29  ;;  %10203 = vmatprep.subr.bf16.mxu1 %v13529_v30  ;;  %v13569_v29 = vcombine.high %v1094_v16, %v1098_v19  ;;  %v13823_v30 = vcombine.high %v1349_v23, %v1353_v24  ;;  %v1393_v16 = vld [vmem:[#allocation5 + $0x25e0] sm:$0xff] }
 0x28a   :  { %9793 = vmatprep.subr.bf16.mxu0 %v13783_v31  ;;  %v1102_v31 = vld [vmem:[#allocation5 + $0x1cc8] sm:$0xff] }
 0x28b   :  { %v13576_v47 = vcombine.low %v1102_v31, %v1106_v33 }
 0x28c   :  { %10204 = vmatpush1.bf16.msra.mxu1 %v13528_v38  ;;  %v13822_v38 = vcombine.low %v1349_v23, %v1353_v24  ;;  %v13854_v23 = vcombine.low %v1381_v4, %v1385_v5 }
 0x28d   :  { %9794 = vmatpush1.bf16.msra.mxu0 %v13782_v40  ;;  %10205 = vmatprep.subr.bf16.mxu1 %v13537_v41  ;;  %v13577_v40 = vcombine.high %v1102_v31, %v1106_v33  ;;  %v13831_v41 = vcombine.high %v1357_v34, %v1361_v35  ;;  %v1401_v31 = vld [vmem:[#allocation5 + $0x2620] sm:$0xff] }
 0x28e   :  { %9795 = vmatprep.subr.bf16.mxu0 %v13791_v42  ;;  %v1110_v42 = vld [vmem:[#allocation5 + $0x1d08] sm:$0xff] }
 0x28f   :  { %v13584_v57 = vcombine.low %v1110_v42, %v1114_v43 }
 0x290   :  { %10206 = vmatpush1.bf16.msra.mxu1 %v13536_v48  ;;  %v13830_v48 = vcombine.low %v1357_v34, %v1361_v35 }
 0x291   :  { %9796 = vmatpush1.bf16.msra.mxu0 %v13790_v49  ;;  %10207 = vmatprep.subr.bf16.mxu1 %v13545_v50  ;;  %v13585_v49 = vcombine.high %v1110_v42, %v1114_v43  ;;  %v13839_v50 = vcombine.high %v1365_v45, %v1369_v46  ;;  %v1409_v42 = vld [vmem:[#allocation5 + $0x2660] sm:$0xff] }
 0x292   :  { %9797 = vmatprep.subr.bf16.mxu0 %v13799_v52  ;;  %v1118_v52 = vld [vmem:[#allocation5 + $0x1d48] sm:$0xff] }
 0x293   :  { %v13592_v6 = vcombine.low %v1118_v52, %v1122_v53 }
 0x294   :  { %10208 = vmatpush1.bf16.msra.mxu1 %v13544_v60  ;;  %v13838_v60 = vcombine.low %v1365_v45, %v1369_v46 }
 0x295   :  { %9798 = vmatpush1.bf16.msra.mxu0 %v13798_v63  ;;  %10218 = vmatprep.subr.bf16.mxu1 %v13553_v0  ;;  %v13593_v63 = vcombine.high %v1118_v52, %v1122_v53  ;;  %v13847_v0 = vcombine.high %v1373_v55, %v1377_v56  ;;  %v1417_v52 = vld [vmem:[#allocation5 + $0x26a0] sm:$0xff] }
 0x296   :  { %9808 = vmatprep.subr.bf16.mxu0 %v13807_v2  ;;  %v1130_v2 = vld [vmem:[#allocation5 + $0x1da8] sm:$0xff] }
 0x297   :  { %10210 = vmatmul.mubr.bf16.vlgmr.msra.gmra.mrb[4].mxu1 %v15199_v32  ;;  %v13601_v9 = vcombine.high %v1126_v1, %v1130_v2  ;;  %v13600_v19 = vcombine.low %v1126_v1, %v1130_v2  ;;  %v1425_v1 = vld [vmem:[#allocation5 + $0x26e0] sm:$0xff] }
 0x298   :  { %9800 = vmatmul.mubr.bf16.vlgmr.msra.gmra.mrb[0].mxu0 %v15215_v11  ;;  %10219 = vmatpush1.bf16.msra.mxu1 %v13552_v10  ;;  %v13855_v10 = vcombine.high %v1381_v4, %v1385_v5 }
 0x299   :  { %9809 = vmatpush1.bf16.msra.mxu0 %v13806_v12  ;;  %10220 = vmatprep.subr.bf16.mxu1 %v13561_v13  ;;  %v1134_v12 = vld [vmem:[#allocation5 + $0x1dc8] sm:$0xff] }
 0x29a   :  { %9810 = vmatprep.subr.bf16.mxu0 %v13815_v15  ;;  %9840 = vmatprep.mubr.bf16.mxu0 %v15217_v20  ;;  %v1138_v13 = vld [vmem:[#allocation5 + $0x1de8] sm:$0xff]  ;;  %v1389_v15 = vld [vmem:[#allocation5 + $0x25c0] sm:$0xff] }
 0x29b   :  { %10250 = vmatprep.mubr.bf16.mxu1 %v15201_v39  ;;  %v13609_v24 = vcombine.high %v1134_v12, %v1138_v13  ;;  %v13608_v33 = vcombine.low %v1134_v12, %v1138_v13  ;;  %v13862_v34 = vcombine.low %v1389_v15, %v1393_v16  ;;  %v1433_v12 = vld [vmem:[#allocation5 + $0x2720] sm:$0xff] }
 0x29c   :  { %10221 = vmatpush1.bf16.msra.mxu1 %v13560_v25  ;;  %v13863_v25 = vcombine.high %v1389_v15, %v1393_v16 }
 0x29d   :  { %9811 = vmatpush1.bf16.msra.mxu0 %v13814_v27  ;;  %10222 = vmatprep.subr.bf16.mxu1 %v13569_v29  ;;  %v1142_v27 = vld [vmem:[#allocation5 + $0x1e08] sm:$0xff] }
 0x29e   :  { %9812 = vmatprep.subr.bf16.mxu0 %v13823_v30  ;;  %v1146_v29 = vld [vmem:[#allocation5 + $0x1e28] sm:$0xff]  ;;  %v1397_v30 = vld [vmem:[#allocation5 + $0x2600] sm:$0xff] }
 0x29f   :  { %v13617_v35 = vcombine.high %v1142_v27, %v1146_v29  ;;  %v13616_v43 = vcombine.low %v1142_v27, %v1146_v29  ;;  %v13870_v45 = vcombine.low %v1397_v30, %v1401_v31  ;;  %v1441_v27 = vld [vmem:[#allocation5 + $0x2760] sm:$0xff] }
 0x2a0   :  { %10223 = vmatpush1.bf16.msra.mxu1 %v13568_v37  ;;  %v13871_v37 = vcombine.high %v1397_v30, %v1401_v31 }
 0x2a1   :  { %9813 = vmatpush1.bf16.msra.mxu0 %v13822_v38  ;;  %10224 = vmatprep.subr.bf16.mxu1 %v13577_v40  ;;  %v1150_v38 = vld [vmem:[#allocation5 + $0x1e48] sm:$0xff] }
 0x2a2   :  { %9814 = vmatprep.subr.bf16.mxu0 %v13831_v41  ;;  %v1154_v40 = vld [vmem:[#allocation5 + $0x1e68] sm:$0xff]  ;;  %v1405_v41 = vld [vmem:[#allocation5 + $0x2640] sm:$0xff] }
 0x2a3   :  { %v13625_v46 = vcombine.high %v1150_v38, %v1154_v40  ;;  %v13624_v53 = vcombine.low %v1150_v38, %v1154_v40  ;;  %v13878_v55 = vcombine.low %v1405_v41, %v1409_v42  ;;  %v1449_v38 = vld [vmem:[#allocation5 + $0x27a0] sm:$0xff] }
 0x2a4   :  { %10225 = vmatpush1.bf16.msra.mxu1 %v13576_v47  ;;  %v13879_v47 = vcombine.high %v1405_v41, %v1409_v42 }
 0x2a5   :  { %9815 = vmatpush1.bf16.msra.mxu0 %v13830_v48  ;;  %10226 = vmatprep.subr.bf16.mxu1 %v13585_v49  ;;  %v1158_v48 = vld [vmem:[#allocation5 + $0x1e88] sm:$0xff] }
 0x2a6   :  { %9816 = vmatprep.subr.bf16.mxu0 %v13839_v50  ;;  %v1162_v49 = vld [vmem:[#allocation5 + $0x1ea8] sm:$0xff]  ;;  %v1413_v50 = vld [vmem:[#allocation5 + $0x2680] sm:$0xff] }
 0x2a7   :  { %v13633_v56 = vcombine.high %v1158_v48, %v1162_v49  ;;  %v13632_v2 = vcombine.low %v1158_v48, %v1162_v49  ;;  %v13886_v4 = vcombine.low %v1413_v50, %v1417_v52  ;;  %v1457_v48 = vld [vmem:[#allocation5 + $0x27e0] sm:$0xff] }
 0x2a8   :  { %10227 = vmatpush1.bf16.msra.mxu1 %v13584_v57  ;;  %v13887_v57 = vcombine.high %v1413_v50, %v1417_v52 }
 0x2a9   :  { %9817 = vmatpush1.bf16.msra.mxu0 %v13838_v60  ;;  %10228 = vmatprep.subr.bf16.mxu1 %v13593_v63  ;;  %v1166_v60 = vld [vmem:[#allocation5 + $0x1ec8] sm:$0xff] }
 0x2aa   :  { %9818 = vmatprep.subr.bf16.mxu0 %v13847_v0  ;;  %v1170_v63 = vld [vmem:[#allocation5 + $0x1ee8] sm:$0xff]  ;;  %v1421_v0 = vld [vmem:[#allocation5 + $0x26c0] sm:$0xff] }
 0x2ab   :  { %v13641_v5 = vcombine.high %v1166_v60, %v1170_v63  ;;  %v13640_v13 = vcombine.low %v1166_v60, %v1170_v63  ;;  %v13894_v15 = vcombine.low %v1421_v0, %v1425_v1  ;;  %v1465_v60 = vld [vmem:[#allocation5 + $0x2820] sm:$0xff] }
 0x2ac   :  { %10229 = vmatpush1.bf16.msra.mxu1 %v13592_v6  ;;  %v13895_v6 = vcombine.high %v1421_v0, %v1425_v1 }
 0x2ad   :  { %9819 = vmatpush1.bf16.msra.mxu0 %v13846_v8  ;;  %10230 = vmatprep.subr.bf16.mxu1 %v13601_v9  ;;  %v1174_v8 = vld [vmem:[#allocation5 + $0x1f08] sm:$0xff] }
 0x2ae   :  { %9820 = vmatprep.subr.bf16.mxu0 %v13855_v10  ;;  %v1178_v9 = vld [vmem:[#allocation5 + $0x1f28] sm:$0xff]  ;;  %v1429_v10 = vld [vmem:[#allocation5 + $0x2700] sm:$0xff] }
 0x2af   :  { %v13649_v16 = vcombine.high %v1174_v8, %v1178_v9  ;;  %v13648_v29 = vcombine.low %v1174_v8, %v1178_v9  ;;  %v13902_v30 = vcombine.low %v1429_v10, %v1433_v12  ;;  %v1469_v8 = vld [vmem:[#allocation5 + $0x2840] sm:$0xff] }
 0x2b0   :  { %10231 = vmatpush1.bf16.msra.mxu1 %v13600_v19  ;;  %v13903_v19 = vcombine.high %v1429_v10, %v1433_v12  ;;  %v1473_v9 = vld [vmem:[#allocation5 + $0x2860] sm:$0xff]  ;;  %v154_v10 = vld [vmem:[#allocation3 + $0xa8] sm:$0xff] }
 0x2b1   :  { %9821 = vmatpush1.bf16.msra.mxu0 %v13854_v23  ;;  %10232 = vmatprep.subr.bf16.mxu1 %v13609_v24  ;;  %v1182_v23 = vld [vmem:[#allocation5 + $0x1f48] sm:$0xff] }
 0x2b2   :  { %9822 = vmatprep.subr.bf16.mxu0 %v13863_v25  ;;  %v1186_v24 = vld [vmem:[#allocation5 + $0x1f68] sm:$0xff]  ;;  %v1437_v25 = vld [vmem:[#allocation5 + $0x2740] sm:$0xff] }
 0x2b3   :  { %v13657_v31 = vcombine.high %v1182_v23, %v1186_v24  ;;  %v13656_v40 = vcombine.low %v1182_v23, %v1186_v24  ;;  %v13910_v41 = vcombine.low %v1437_v25, %v1441_v27  ;;  %v1222_v23 = vld [vmem:[#allocation5 + $0x2088] sm:$0xff] }
 0x2b4   :  { %10233 = vmatpush1.bf16.msra.mxu1 %v13608_v33  ;;  %v13911_v33 = vcombine.high %v1437_v25, %v1441_v27  ;;  %v1226_v24 = vld [vmem:[#allocation5 + $0x20a8] sm:$0xff]  ;;  %v15225_v25 = vpack.c.bf16 %v154_v10, %v154_v10  ;;  %v1477_v27 = vld [vmem:[#allocation5 + $0x2880] sm:$0xff] }
 0x2b5   :  { %9823 = vmatpush1.bf16.msra.mxu0 %v13862_v34  ;;  %10234 = vmatprep.subr.bf16.mxu1 %v13617_v35  ;;  %v1190_v34 = vld [vmem:[#allocation5 + $0x1f88] sm:$0xff] }
 0x2b6   :  { %9824 = vmatprep.subr.bf16.mxu0 %v13871_v37  ;;  %v1194_v35 = vld [vmem:[#allocation5 + $0x1fa8] sm:$0xff]  ;;  %v1445_v37 = vld [vmem:[#allocation5 + $0x2780] sm:$0xff] }
 0x2b7   :  { %v13665_v42 = vcombine.high %v1190_v34, %v1194_v35  ;;  %v13664_v49 = vcombine.low %v1190_v34, %v1194_v35  ;;  %v13918_v50 = vcombine.low %v1445_v37, %v1449_v38  ;;  %v1230_v35 = vld [vmem:[#allocation5 + $0x20c8] sm:$0xff] }
 0x2b8   :  { %10235 = vmatpush1.bf16.msra.mxu1 %v13616_v43  ;;  %v13919_v43 = vcombine.high %v1445_v37, %v1449_v38  ;;  %v1234_v37 = vld [vmem:[#allocation5 + $0x20e8] sm:$0xff]  ;;  %v1485_v38 = vld [vmem:[#allocation5 + $0x28c0] sm:$0xff] }
 0x2b9   :  { %9825 = vmatpush1.bf16.msra.mxu0 %v13870_v45  ;;  %10236 = vmatprep.subr.bf16.mxu1 %v13625_v46  ;;  %v1198_v45 = vld [vmem:[#allocation5 + $0x1fc8] sm:$0xff] }
 0x2ba   :  { %9826 = vmatprep.subr.bf16.mxu0 %v13879_v47  ;;  %v1202_v46 = vld [vmem:[#allocation5 + $0x1fe8] sm:$0xff]  ;;  %v1453_v47 = vld [vmem:[#allocation5 + $0x27c0] sm:$0xff] }
 0x2bb   :  { %v13673_v52 = vcombine.high %v1198_v45, %v1202_v46  ;;  %v13672_v63 = vcombine.low %v1198_v45, %v1202_v46  ;;  %v13926_v0 = vcombine.low %v1453_v47, %v1457_v48  ;;  %v1238_v46 = vld [vmem:[#allocation5 + $0x2108] sm:$0xff] }
 0x2bc   :  { %10237 = vmatpush1.bf16.msra.mxu1 %v13624_v53  ;;  %v13927_v53 = vcombine.high %v1453_v47, %v1457_v48  ;;  %v1242_v47 = vld [vmem:[#allocation5 + $0x2128] sm:$0xff]  ;;  %v1493_v48 = vld [vmem:[#allocation5 + $0x2900] sm:$0xff] }
 0x2bd   :  { %9827 = vmatpush1.bf16.msra.mxu0 %v13878_v55  ;;  %10238 = vmatprep.subr.bf16.mxu1 %v13633_v56  ;;  %v1206_v55 = vld [vmem:[#allocation5 + $0x2008] sm:$0xff] }
 0x2be   :  { %9828 = vmatprep.subr.bf16.mxu0 %v13887_v57  ;;  %v1210_v56 = vld [vmem:[#allocation5 + $0x2028] sm:$0xff]  ;;  %v1461_v57 = vld [vmem:[#allocation5 + $0x2800] sm:$0xff] }
 0x2bf   :  { %v13681_v1 = vcombine.high %v1206_v55, %v1210_v56  ;;  %v13680_v12 = vcombine.low %v1206_v55, %v1210_v56  ;;  %v1246_v56 = vld [vmem:[#allocation5 + $0x2148] sm:$0xff] }
 0x2c0   :  { %10239 = vmatpush1.bf16.msra.mxu1 %v13632_v2  ;;  %v151_v2 = vld [vmem:[#allocation3 + $0x90] sm:$0xff] }
 0x2c1   :  { %9829 = vmatpush1.bf16.msra.mxu0 %v13886_v4  ;;  %10240 = vmatprep.subr.bf16.mxu1 %v13641_v5  ;;  %v13935_v4 = vcombine.high %v1461_v57, %v1465_v60  ;;  %v1214_v5 = vld [vmem:[#allocation5 + $0x2048] sm:$0xff] }
 0x2c2   :  { %9830 = vmatprep.subr.bf16.mxu0 %v13895_v6  ;;  %v1218_v6 = vld [vmem:[#allocation5 + $0x2068] sm:$0xff] }
 0x2c4   :  { %10241 = vmatpush1.bf16.msra.mxu1 %v13640_v13  ;;  %v15223_v13 = vpack.c.bf16 %v151_v2, %v151_v2 }
 0x2c5   :  { %9831 = vmatpush1.bf16.msra.mxu0 %v13894_v15  ;;  %10242 = vmatprep.subr.bf16.mxu1 %v13649_v16  ;;  %v13934_v15 = vcombine.low %v1461_v57, %v1465_v60  ;;  %v13689_v16 = vcombine.high %v1214_v5, %v1218_v6  ;;  %v1250_v57 = vld [vmem:[#allocation5 + $0x2168] sm:$0xff]  ;;  %v1501_v60 = vld [vmem:[#allocation5 + $0x2940] sm:$0xff] }
 0x2c6   :  { %9832 = vmatprep.subr.bf16.mxu0 %v13903_v19  ;;  %v13943_v19 = vcombine.high %v1469_v8, %v1473_v9  ;;  %v13721_v2 = vcombine.high %v1246_v56, %v1250_v57  ;;  %v13720_v10 = vcombine.low %v1246_v56, %v1250_v57  ;;  %v1290_v56 = vld [vmem:[#allocation5 + $0x22a8] sm:$0xff]  ;;  %v1541_v57 = vld [vmem:[#allocation5 + $0x2a80] sm:$0xff] }
 0x2c8   :  { %10243 = vmatpush1.bf16.msra.mxu1 %v13648_v29  ;;  %v1481_v29 = vld [vmem:[#allocation5 + $0x28a0] sm:$0xff] }
 0x2c9   :  { %9833 = vmatpush1.bf16.msra.mxu0 %v13902_v30  ;;  %10244 = vmatprep.subr.bf16.mxu1 %v13657_v31  ;;  %v13688_v30 = vcombine.low %v1214_v5, %v1218_v6  ;;  %v13942_v31 = vcombine.low %v1469_v8, %v1473_v9  ;;  %v13951_v34 = vcombine.high %v1477_v27, %v1481_v29  ;;  %v1254_v5 = vld [vmem:[#allocation5 + $0x2188] sm:$0xff]  ;;  %v1509_v8 = vld [vmem:[#allocation5 + $0x2980] sm:$0xff] }
 0x2ca   :  { %9834 = vmatprep.subr.bf16.mxu0 %v13911_v33  ;;  %v13697_v33 = vcombine.high %v1222_v23, %v1226_v24  ;;  %v1258_v6 = vld [vmem:[#allocation5 + $0x21a8] sm:$0xff]  ;;  %v1513_v9 = vld [vmem:[#allocation5 + $0x29a0] sm:$0xff] }
 0x2cc   :  { %10245 = vmatpush1.bf16.msra.mxu1 %v13656_v40  ;;  %v1489_v40 = vld [vmem:[#allocation5 + $0x28e0] sm:$0xff] }
 0x2cd   :  { %9835 = vmatpush1.bf16.msra.mxu0 %v13910_v41  ;;  %10246 = vmatprep.subr.bf16.mxu1 %v13665_v42  ;;  %v13696_v41 = vcombine.low %v1222_v23, %v1226_v24  ;;  %v13950_v42 = vcombine.low %v1477_v27, %v1481_v29  ;;  %v13959_v45 = vcombine.high %v1485_v38, %v1489_v40  ;;  %v1266_v23 = vld [vmem:[#allocation5 + $0x21e8] sm:$0xff]  ;;  %v1517_v24 = vld [vmem:[#allocation5 + $0x29c0] sm:$0xff] }
 0x2ce   :  { %9836 = vmatprep.subr.bf16.mxu0 %v13919_v43  ;;  %v13705_v43 = vcombine.high %v1230_v35, %v1234_v37  ;;  %v1521_v27 = vld [vmem:[#allocation5 + $0x29e0] sm:$0xff]  ;;  %v13728_v29 = vcombine.low %v1254_v5, %v1258_v6 }
 0x2d0   :  { %10247 = vmatpush1.bf16.msra.mxu1 %v13664_v49  ;;  %v1497_v49 = vld [vmem:[#allocation5 + $0x2920] sm:$0xff] }
 0x2d1   :  { %9837 = vmatpush1.bf16.msra.mxu0 %v13918_v50  ;;  %10248 = vmatprep.subr.bf16.mxu1 %v13673_v52  ;;  %v13704_v50 = vcombine.low %v1230_v35, %v1234_v37  ;;  %v13958_v52 = vcombine.low %v1485_v38, %v1489_v40  ;;  %v13967_v55 = vcombine.high %v1493_v48, %v1497_v49  ;;  %v1274_v35 = vld [vmem:[#allocation5 + $0x2228] sm:$0xff]  ;;  %v1525_v37 = vld [vmem:[#allocation5 + $0x2a00] sm:$0xff] }
 0x2d2   :  { %9838 = vmatprep.subr.bf16.mxu0 %v13927_v53  ;;  %v13713_v53 = vcombine.high %v1238_v46, %v1242_v47  ;;  %v1529_v38 = vld [vmem:[#allocation5 + $0x2a20] sm:$0xff] }
 0x2d4   :  { %10249 = vmatpush1.bf16.msra.mxu1 %v13672_v63  ;;  %v1505_v63 = vld [vmem:[#allocation5 + $0x2960] sm:$0xff] }
 0x2d5   :  { %9839 = vmatpush1.bf16.msra.mxu0 %v13926_v0  ;;  %10259 = vmatprep.subr.bf16.mxu1 %v13681_v1  ;;  %v13712_v0 = vcombine.low %v1238_v46, %v1242_v47  ;;  %v13966_v1 = vcombine.low %v1493_v48, %v1497_v49  ;;  %v1282_v46 = vld [vmem:[#allocation5 + $0x2268] sm:$0xff]  ;;  %v1533_v47 = vld [vmem:[#allocation5 + $0x2a40] sm:$0xff] }
 0x2d6   :  { %9849 = vmatprep.subr.bf16.mxu0 %v13935_v4  ;;  %v13975_v4 = vcombine.high %v1501_v60, %v1505_v63  ;;  %v1537_v48 = vld [vmem:[#allocation5 + $0x2a60] sm:$0xff] }
 0x2d7   :  { %10251 = vmatmul.mubr.bf16.vlgmr.msra.gmra.mrb[4].mxu1 %v15207_v18 }
 0x2d8   :  { %9841 = vmatmul.mubr.bf16.vlgmr.msra.gmra.mrb[0].mxu0 %v15223_v13  ;;  %10260 = vmatpush1.bf16.msra.mxu1 %v13680_v12  ;;  %v13974_v12 = vcombine.low %v1501_v60, %v1505_v63  ;;  %v1545_v60 = vld [vmem:[#allocation5 + $0x2aa0] sm:$0xff] }
 0x2d9   :  { %9850 = vmatpush1.bf16.msra.mxu0 %v13934_v15  ;;  %10261 = vmatprep.subr.bf16.mxu1 %v13689_v16  ;;  %v13729_v15 = vcombine.high %v1254_v5, %v1258_v6  ;;  %v13983_v16 = vcombine.high %v1509_v8, %v1513_v9  ;;  %v1298_v5 = vld [vmem:[#allocation5 + $0x22e8] sm:$0xff]  ;;  %v1549_v6 = vld [vmem:[#allocation5 + $0x2ac0] sm:$0xff] }
 0x2da   :  { %9851 = vmatprep.subr.bf16.mxu0 %v13943_v19  ;;  %9881 = vmatprep.mubr.bf16.mxu0 %v15225_v25  ;;  %v1262_v19 = vld [vmem:[#allocation5 + $0x21c8] sm:$0xff] }
 0x2db   :  { %10291 = vmatprep.mubr.bf16.mxu1 %v15209_v26  ;;  %v13736_v40 = vcombine.low %v1262_v19, %v1266_v23 }
 0x2dc   :  { %10262 = vmatpush1.bf16.msra.mxu1 %v13688_v30  ;;  %v13982_v30 = vcombine.low %v1509_v8, %v1513_v9  ;;  %v1553_v8 = vld [vmem:[#allocation5 + $0x2ae0] sm:$0xff] }
 0x2dd   :  { %9852 = vmatpush1.bf16.msra.mxu0 %v13942_v31  ;;  %10263 = vmatprep.subr.bf16.mxu1 %v13697_v33  ;;  %v13737_v31 = vcombine.high %v1262_v19, %v1266_v23  ;;  %v13991_v33 = vcombine.high %v1517_v24, %v1521_v27  ;;  %v1306_v19 = vld [vmem:[#allocation5 + $0x2328] sm:$0xff]  ;;  %v1557_v23 = vld [vmem:[#allocation5 + $0x2b00] sm:$0xff] }
 0x2de   :  { %9853 = vmatprep.subr.bf16.mxu0 %v13951_v34  ;;  %v1270_v34 = vld [vmem:[#allocation5 + $0x2208] sm:$0xff] }
 0x2df   :  { %v13744_v49 = vcombine.low %v1270_v34, %v1274_v35 }
 0x2e0   :  { %10264 = vmatpush1.bf16.msra.mxu1 %v13696_v41  ;;  %v13990_v41 = vcombine.low %v1517_v24, %v1521_v27  ;;  %v1561_v24 = vld [vmem:[#allocation5 + $0x2b20] sm:$0xff] }
 0x2e1   :  { %9854 = vmatpush1.bf16.msra.mxu0 %v13950_v42  ;;  %10265 = vmatprep.subr.bf16.mxu1 %v13705_v43  ;;  %v13745_v42 = vcombine.high %v1270_v34, %v1274_v35  ;;  %v13999_v43 = vcombine.high %v1525_v37, %v1529_v38  ;;  %v1314_v34 = vld [vmem:[#allocation5 + $0x2368] sm:$0xff]  ;;  %v1565_v35 = vld [vmem:[#allocation5 + $0x2b40] sm:$0xff] }
 0x2e2   :  { %9855 = vmatprep.subr.bf16.mxu0 %v13959_v45  ;;  %v1278_v45 = vld [vmem:[#allocation5 + $0x2248] sm:$0xff] }
 0x2e3   :  { %v13752_v63 = vcombine.low %v1278_v45, %v1282_v46 }
 0x2e4   :  { %10266 = vmatpush1.bf16.msra.mxu1 %v13704_v50  ;;  %v13998_v50 = vcombine.low %v1525_v37, %v1529_v38  ;;  %v1569_v37 = vld [vmem:[#allocation5 + $0x2b60] sm:$0xff] }
 0x2e5   :  { %9856 = vmatpush1.bf16.msra.mxu0 %v13958_v52  ;;  %10267 = vmatprep.subr.bf16.mxu1 %v13713_v53  ;;  %v13753_v52 = vcombine.high %v1278_v45, %v1282_v46  ;;  %v14007_v53 = vcombine.high %v1533_v47, %v1537_v48  ;;  %v1322_v45 = vld [vmem:[#allocation5 + $0x23a8] sm:$0xff]  ;;  %v1573_v46 = vld [vmem:[#allocation5 + $0x2b80] sm:$0xff] }
 0x2e6   :  { %9857 = vmatprep.subr.bf16.mxu0 %v13967_v55  ;;  %v1286_v55 = vld [vmem:[#allocation5 + $0x2288] sm:$0xff] }
 0x2e7   :  { %v13760_v9 = vcombine.low %v1286_v55, %v1290_v56 }
 0x2e8   :  { %10268 = vmatpush1.bf16.msra.mxu1 %v13712_v0  ;;  %v14006_v0 = vcombine.low %v1533_v47, %v1537_v48  ;;  %v1577_v47 = vld [vmem:[#allocation5 + $0x2ba0] sm:$0xff] }
 0x2e9   :  { %9858 = vmatpush1.bf16.msra.mxu0 %v13966_v1  ;;  %10269 = vmatprep.subr.bf16.mxu1 %v13721_v2  ;;  %v13761_v1 = vcombine.high %v1286_v55, %v1290_v56  ;;  %v14015_v2 = vcombine.high %v1541_v57, %v1545_v60  ;;  %v1330_v55 = vld [vmem:[#allocation5 + $0x23e8] sm:$0xff]  ;;  %v1581_v56 = vld [vmem:[#allocation5 + $0x2bc0] sm:$0xff] }
 0x2ea   :  { %9859 = vmatprep.subr.bf16.mxu0 %v13975_v4  ;;  %v1294_v4 = vld [vmem:[#allocation5 + $0x22c8] sm:$0xff] }
 0x2eb   :  { %v13768_v27 = vcombine.low %v1294_v4, %v1298_v5 }
 0x2ec   :  { %10270 = vmatpush1.bf16.msra.mxu1 %v13720_v10  ;;  %v14014_v10 = vcombine.low %v1541_v57, %v1545_v60  ;;  %v1585_v57 = vld [vmem:[#allocation5 + $0x2be0] sm:$0xff] }
 0x2ed   :  { %9860 = vmatpush1.bf16.msra.mxu0 %v13974_v12  ;;  %10271 = vmatprep.subr.bf16.mxu1 %v13729_v15  ;;  %v13769_v12 = vcombine.high %v1294_v4, %v1298_v5  ;;  %v14023_v15 = vcombine.high %v1549_v6, %v1553_v8  ;;  %v1338_v4 = vld [vmem:[#allocation5 + $0x2428] sm:$0xff]  ;;  %v1589_v5 = vld [vmem:[#allocation5 + $0x2c00] sm:$0xff] }
 0x2ee   :  { %9861 = vmatprep.subr.bf16.mxu0 %v13983_v16  ;;  %v1302_v16 = vld [vmem:[#allocation5 + $0x2308] sm:$0xff] }
 0x2ef   :  { %v13776_v38 = vcombine.low %v1302_v16, %v1306_v19 }
 0x2f0   :  { %10272 = vmatpush1.bf16.msra.mxu1 %v13728_v29  ;;  %v14022_v29 = vcombine.low %v1549_v6, %v1553_v8  ;;  %v1593_v6 = vld [vmem:[#allocation5 + $0x2c20] sm:$0xff] }
 0x2f1   :  { %9862 = vmatpush1.bf16.msra.mxu0 %v13982_v30  ;;  %10273 = vmatprep.subr.bf16.mxu1 %v13737_v31  ;;  %v13777_v30 = vcombine.high %v1302_v16, %v1306_v19  ;;  %v14031_v31 = vcombine.high %v1557_v23, %v1561_v24  ;;  %v1342_v16 = vld [vmem:[#allocation5 + $0x2448] sm:$0xff] }
 0x2f2   :  { %9863 = vmatprep.subr.bf16.mxu0 %v13991_v33  ;;  %v1310_v33 = vld [vmem:[#allocation5 + $0x2348] sm:$0xff] }
 0x2f3   :  { %v13784_v48 = vcombine.low %v1310_v33, %v1314_v34  ;;  %v1346_v19 = vld [vmem:[#allocation5 + $0x2468] sm:$0xff] }
 0x2f4   :  { %10274 = vmatpush1.bf16.msra.mxu1 %v13736_v40  ;;  %v14030_v40 = vcombine.low %v1557_v23, %v1561_v24  ;;  %v1597_v23 = vld [vmem:[#allocation5 + $0x2c40] sm:$0xff] }
 0x2f5   :  { %9864 = vmatpush1.bf16.msra.mxu0 %v13990_v41  ;;  %10275 = vmatprep.subr.bf16.mxu1 %v13745_v42  ;;  %v13785_v41 = vcombine.high %v1310_v33, %v1314_v34  ;;  %v14039_v42 = vcombine.high %v1565_v35, %v1569_v37  ;;  %v1601_v24 = vld [vmem:[#allocation5 + $0x2c60] sm:$0xff]  ;;  %v13817_v33 = vcombine.high %v1342_v16, %v1346_v19 }
 0x2f6   :  { %9865 = vmatprep.subr.bf16.mxu0 %v13999_v43  ;;  %v1318_v43 = vld [vmem:[#allocation5 + $0x2388] sm:$0xff]  ;;  %v14071_v34 = vcombine.high %v1597_v23, %v1601_v24 }
 0x2f7   :  { %v13792_v60 = vcombine.low %v1318_v43, %v1322_v45 }
 0x2f8   :  { %10276 = vmatpush1.bf16.msra.mxu1 %v13744_v49  ;;  %v14038_v49 = vcombine.low %v1565_v35, %v1569_v37  ;;  %v1350_v35 = vld [vmem:[#allocation5 + $0x2488] sm:$0xff] }
 0x2f9   :  { %9866 = vmatpush1.bf16.msra.mxu0 %v13998_v50  ;;  %10277 = vmatprep.subr.bf16.mxu1 %v13753_v52  ;;  %v13793_v50 = vcombine.high %v1318_v43, %v1322_v45  ;;  %v14047_v52 = vcombine.high %v1573_v46, %v1577_v47  ;;  %v1354_v37 = vld [vmem:[#allocation5 + $0x24a8] sm:$0xff]  ;;  %v14070_v43 = vcombine.low %v1597_v23, %v1601_v24 }
 0x2fa   :  { %9867 = vmatprep.subr.bf16.mxu0 %v14007_v53  ;;  %v1326_v53 = vld [vmem:[#allocation5 + $0x23c8] sm:$0xff]  ;;  %v13825_v45 = vcombine.high %v1350_v35, %v1354_v37 }
 0x2fb   :  { %v13800_v8 = vcombine.low %v1326_v53, %v1330_v55  ;;  %v1382_v23 = vld [vmem:[#allocation5 + $0x2588] sm:$0xff] }
 0x2fc   :  { %10278 = vmatpush1.bf16.msra.mxu1 %v13752_v63  ;;  %v14046_v63 = vcombine.low %v1573_v46, %v1577_v47  ;;  %v1358_v47 = vld [vmem:[#allocation5 + $0x24c8] sm:$0xff] }
 0x2fd   :  { %9868 = vmatpush1.bf16.msra.mxu0 %v14006_v0  ;;  %10279 = vmatprep.subr.bf16.mxu1 %v13761_v1  ;;  %v13801_v0 = vcombine.high %v1326_v53, %v1330_v55  ;;  %v14055_v1 = vcombine.high %v1581_v56, %v1585_v57  ;;  %v1386_v24 = vld [vmem:[#allocation5 + $0x25a8] sm:$0xff] }
 0x2fe   :  { %9869 = vmatprep.subr.bf16.mxu0 %v14015_v2  ;;  %v1334_v2 = vld [vmem:[#allocation5 + $0x2408] sm:$0xff] }
 0x300   :  { %10280 = vmatpush1.bf16.msra.mxu1 %v13760_v9  ;;  %v14054_v9 = vcombine.low %v1581_v56, %v1585_v57  ;;  %v1366_v57 = vld [vmem:[#allocation5 + $0x2508] sm:$0xff] }
 0x301   :  { %9870 = vmatpush1.bf16.msra.mxu0 %v14014_v10  ;;  %10281 = vmatprep.subr.bf16.mxu1 %v13769_v12  ;;  %v13809_v10 = vcombine.high %v1334_v2, %v1338_v4  ;;  %v153_v12 = vld [vmem:[#allocation3 + $0xa0] sm:$0xff] }
 0x302   :  { %9871 = vmatprep.subr.bf16.mxu0 %v14023_v15  ;;  %v14063_v15 = vcombine.high %v1589_v5, %v1593_v6 }
 0x304   :  { %10282 = vmatpush1.bf16.msra.mxu1 %v13768_v27  ;;  %v156_v27 = vld [vmem:[#allocation3 + $0xb8] sm:$0xff] }
 0x305   :  { %9872 = vmatpush1.bf16.msra.mxu0 %v14022_v29  ;;  %10283 = vmatprep.subr.bf16.mxu1 %v13777_v30  ;;  %v13808_v29 = vcombine.low %v1334_v2, %v1338_v4  ;;  %v15231_v30 = vpack.c.bf16 %v153_v12, %v153_v12 }
 0x306   :  { %9873 = vmatprep.subr.bf16.mxu0 %v14031_v31  ;;  %v14062_v31 = vcombine.low %v1589_v5, %v1593_v6  ;;  %v1374_v6 = vld [vmem:[#allocation5 + $0x2548] sm:$0xff] }
 0x308   :  { %10284 = vmatpush1.bf16.msra.mxu1 %v13776_v38  ;;  %v15233_v38 = vpack.c.bf16 %v156_v27, %v156_v27  ;;  %v1637_v27 = vld [vmem:[#allocation5 + $0x2d80] sm:$0xff] }
 0x309   :  { %9874 = vmatpush1.bf16.msra.mxu0 %v14030_v40  ;;  %10285 = vmatprep.subr.bf16.mxu1 %v13785_v41  ;;  %v1605_v40 = vld [vmem:[#allocation5 + $0x2c80] sm:$0xff] }
 0x30a   :  { %9875 = vmatprep.subr.bf16.mxu0 %v14039_v42  ;;  %v1609_v41 = vld [vmem:[#allocation5 + $0x2ca0] sm:$0xff]  ;;  %v13816_v42 = vcombine.low %v1342_v16, %v1346_v19 }
 0x30b   :  { %v14079_v46 = vcombine.high %v1605_v40, %v1609_v41  ;;  %v14078_v53 = vcombine.low %v1605_v40, %v1609_v41  ;;  %v1394_v40 = vld [vmem:[#allocation5 + $0x25e8] sm:$0xff]  ;;  %v1645_v41 = vld [vmem:[#allocation5 + $0x2dc0] sm:$0xff] }
 0x30c   :  { %10286 = vmatpush1.bf16.msra.mxu1 %v13784_v48  ;;  %v1362_v48 = vld [vmem:[#allocation5 + $0x24e8] sm:$0xff] }
 0x30d   :  { %9876 = vmatpush1.bf16.msra.mxu0 %v14038_v49  ;;  %10287 = vmatprep.subr.bf16.mxu1 %v13793_v50  ;;  %v1613_v49 = vld [vmem:[#allocation5 + $0x2cc0] sm:$0xff]  ;;  %v13833_v55 = vcombine.high %v1358_v47, %v1362_v48 }
 0x30e   :  { %9877 = vmatprep.subr.bf16.mxu0 %v14047_v52  ;;  %v1617_v50 = vld [vmem:[#allocation5 + $0x2ce0] sm:$0xff]  ;;  %v13824_v52 = vcombine.low %v1350_v35, %v1354_v37  ;;  %v1390_v37 = vld [vmem:[#allocation5 + $0x25c8] sm:$0xff] }
 0x30f   :  { %v14087_v56 = vcombine.high %v1613_v49, %v1617_v50  ;;  %v14086_v2 = vcombine.low %v1613_v49, %v1617_v50  ;;  %v1402_v49 = vld [vmem:[#allocation5 + $0x2628] sm:$0xff]  ;;  %v1653_v50 = vld [vmem:[#allocation5 + $0x2e00] sm:$0xff] }
 0x310   :  { %10288 = vmatpush1.bf16.msra.mxu1 %v13792_v60  ;;  %v1370_v60 = vld [vmem:[#allocation5 + $0x2528] sm:$0xff] }
 0x311   :  { %9878 = vmatpush1.bf16.msra.mxu0 %v14046_v63  ;;  %10289 = vmatprep.subr.bf16.mxu1 %v13801_v0  ;;  %v1621_v63 = vld [vmem:[#allocation5 + $0x2d00] sm:$0xff]  ;;  %v13841_v4 = vcombine.high %v1366_v57, %v1370_v60  ;;  %v13840_v12 = vcombine.low %v1366_v57, %v1370_v60  ;;  %v1406_v60 = vld [vmem:[#allocation5 + $0x2648] sm:$0xff] }
 0x312   :  { %9879 = vmatprep.subr.bf16.mxu0 %v14055_v1  ;;  %v1625_v0 = vld [vmem:[#allocation5 + $0x2d20] sm:$0xff]  ;;  %v13832_v1 = vcombine.low %v1358_v47, %v1362_v48  ;;  %v1398_v48 = vld [vmem:[#allocation5 + $0x2608] sm:$0xff] }
 0x313   :  { %v14095_v5 = vcombine.high %v1621_v63, %v1625_v0 }
 0x314   :  { %10290 = vmatpush1.bf16.msra.mxu1 %v13800_v8  ;;  %v1378_v8 = vld [vmem:[#allocation5 + $0x2568] sm:$0xff] }
 0x315   :  { %9880 = vmatpush1.bf16.msra.mxu0 %v14054_v9  ;;  %10300 = vmatprep.subr.bf16.mxu1 %v13809_v10  ;;  %v1629_v9 = vld [vmem:[#allocation5 + $0x2d40] sm:$0xff]  ;;  %v13849_v16 = vcombine.high %v1374_v6, %v1378_v8 }
 0x316   :  { %9890 = vmatprep.subr.bf16.mxu0 %v14063_v15  ;;  %v1633_v10 = vld [vmem:[#allocation5 + $0x2d60] sm:$0xff]  ;;  %v14094_v15 = vcombine.low %v1621_v63, %v1625_v0  ;;  %v1410_v63 = vld [vmem:[#allocation5 + $0x2668] sm:$0xff] }
 0x317   :  { %10292 = vmatmul.mubr.bf16.vlgmr.msra.gmra.mrb[4].mxu1 %v15215_v11  ;;  %v14103_v19 = vcombine.high %v1629_v9, %v1633_v10  ;;  %v1661_v0 = vld [vmem:[#allocation5 + $0x2e40] sm:$0xff] }
 0x318   :  { %9882 = vmatmul.mubr.bf16.vlgmr.msra.gmra.mrb[0].mxu0 %v15231_v30  ;;  %10301 = vmatpush1.bf16.msra.mxu1 %v13808_v29  ;;  %v1641_v29 = vld [vmem:[#allocation5 + $0x2da0] sm:$0xff] }
 0x319   :  { %9891 = vmatpush1.bf16.msra.mxu0 %v14062_v31  ;;  %10302 = vmatprep.subr.bf16.mxu1 %v13817_v33  ;;  %v13848_v31 = vcombine.low %v1374_v6, %v1378_v8  ;;  %v14102_v33 = vcombine.low %v1629_v9, %v1633_v10  ;;  %v14111_v35 = vcombine.high %v1637_v27, %v1641_v29  ;;  %v1414_v8 = vld [vmem:[#allocation5 + $0x2688] sm:$0xff]  ;;  %v1669_v10 = vld [vmem:[#allocation5 + $0x2e80] sm:$0xff] }
 0x31a   :  { %9892 = vmatprep.subr.bf16.mxu0 %v14071_v34  ;;  %9922 = vmatprep.mubr.bf16.mxu0 %v15233_v38  ;;  %v13857_v34 = vcombine.high %v1382_v23, %v1386_v24  ;;  %v1418_v9 = vld [vmem:[#allocation5 + $0x26a8] sm:$0xff] }
 0x31b   :  { %10332 = vmatprep.mubr.bf16.mxu1 %v15217_v20 }
 0x31c   :  { %10303 = vmatpush1.bf16.msra.mxu1 %v13816_v42  ;;  %v1649_v42 = vld [vmem:[#allocation5 + $0x2de0] sm:$0xff] }
 0x31d   :  { %9893 = vmatpush1.bf16.msra.mxu0 %v14070_v43  ;;  %10304 = vmatprep.subr.bf16.mxu1 %v13825_v45  ;;  %v13856_v43 = vcombine.low %v1382_v23, %v1386_v24  ;;  %v14110_v45 = vcombine.low %v1637_v27, %v1641_v29  ;;  %v14119_v47 = vcombine.high %v1645_v41, %v1649_v42  ;;  %v1422_v24 = vld [vmem:[#allocation5 + $0x26c8] sm:$0xff]  ;;  %v1677_v29 = vld [vmem:[#allocation5 + $0x2ec0] sm:$0xff] }
 0x31e   :  { %9894 = vmatprep.subr.bf16.mxu0 %v14079_v46  ;;  %v13865_v46 = vcombine.high %v1390_v37, %v1394_v40  ;;  %v1426_v27 = vld [vmem:[#allocation5 + $0x26e8] sm:$0xff] }
 0x320   :  { %10305 = vmatpush1.bf16.msra.mxu1 %v13824_v52  ;;  %v1657_v52 = vld [vmem:[#allocation5 + $0x2e20] sm:$0xff] }
 0x321   :  { %9895 = vmatpush1.bf16.msra.mxu0 %v14078_v53  ;;  %10306 = vmatprep.subr.bf16.mxu1 %v13833_v55  ;;  %v13864_v53 = vcombine.low %v1390_v37, %v1394_v40  ;;  %v14118_v55 = vcombine.low %v1645_v41, %v1649_v42  ;;  %v14127_v57 = vcombine.high %v1653_v50, %v1657_v52  ;;  %v1430_v40 = vld [vmem:[#allocation5 + $0x2708] sm:$0xff]  ;;  %v1685_v42 = vld [vmem:[#allocation5 + $0x2f00] sm:$0xff] }
 0x322   :  { %9896 = vmatprep.subr.bf16.mxu0 %v14087_v56  ;;  %v13873_v56 = vcombine.high %v1398_v48, %v1402_v49  ;;  %v1434_v41 = vld [vmem:[#allocation5 + $0x2728] sm:$0xff] }
 0x324   :  { %10307 = vmatpush1.bf16.msra.mxu1 %v13832_v1  ;;  %v1665_v1 = vld [vmem:[#allocation5 + $0x2e60] sm:$0xff] }
 0x325   :  { %9897 = vmatpush1.bf16.msra.mxu0 %v14086_v2  ;;  %10308 = vmatprep.subr.bf16.mxu1 %v13841_v4  ;;  %v13872_v2 = vcombine.low %v1398_v48, %v1402_v49  ;;  %v14126_v4 = vcombine.low %v1653_v50, %v1657_v52  ;;  %v14135_v6 = vcombine.high %v1661_v0, %v1665_v1  ;;  %v1438_v49 = vld [vmem:[#allocation5 + $0x2748] sm:$0xff]  ;;  %v1693_v52 = vld [vmem:[#allocation5 + $0x2f40] sm:$0xff] }
 0x326   :  { %9898 = vmatprep.subr.bf16.mxu0 %v14095_v5  ;;  %v13881_v5 = vcombine.high %v1406_v60, %v1410_v63  ;;  %v1442_v50 = vld [vmem:[#allocation5 + $0x2768] sm:$0xff] }
 0x328   :  { %10309 = vmatpush1.bf16.msra.mxu1 %v13840_v12  ;;  %v1673_v12 = vld [vmem:[#allocation5 + $0x2ea0] sm:$0xff] }
 0x329   :  { %9899 = vmatpush1.bf16.msra.mxu0 %v14094_v15  ;;  %10310 = vmatprep.subr.bf16.mxu1 %v13849_v16  ;;  %v13880_v15 = vcombine.low %v1406_v60, %v1410_v63  ;;  %v14134_v16 = vcombine.low %v1661_v0, %v1665_v1  ;;  %v14143_v23 = vcombine.high %v1669_v10, %v1673_v12  ;;  %v1446_v63 = vld [vmem:[#allocation5 + $0x2788] sm:$0xff]  ;;  %v1701_v1 = vld [vmem:[#allocation5 + $0x2f80] sm:$0xff] }
 0x32a   :  { %9900 = vmatprep.subr.bf16.mxu0 %v14103_v19  ;;  %v13889_v19 = vcombine.high %v1414_v8, %v1418_v9  ;;  %v1450_v0 = vld [vmem:[#allocation5 + $0x27a8] sm:$0xff] }
 0x32c   :  { %10311 = vmatpush1.bf16.msra.mxu1 %v13848_v31  ;;  %v1681_v31 = vld [vmem:[#allocation5 + $0x2ee0] sm:$0xff] }
 0x32d   :  { %9901 = vmatpush1.bf16.msra.mxu0 %v14102_v33  ;;  %10312 = vmatprep.subr.bf16.mxu1 %v13857_v34  ;;  %v13888_v33 = vcombine.low %v1414_v8, %v1418_v9  ;;  %v14142_v34 = vcombine.low %v1669_v10, %v1673_v12  ;;  %v14151_v37 = vcombine.high %v1677_v29, %v1681_v31  ;;  %v1454_v9 = vld [vmem:[#allocation5 + $0x27c8] sm:$0xff]  ;;  %v1709_v12 = vld [vmem:[#allocation5 + $0x2fc0] sm:$0xff] }
 0x32e   :  { %9902 = vmatprep.subr.bf16.mxu0 %v14111_v35  ;;  %v13897_v35 = vcombine.high %v1422_v24, %v1426_v27  ;;  %v1458_v10 = vld [vmem:[#allocation5 + $0x27e8] sm:$0xff] }
 0x330   :  { %10313 = vmatpush1.bf16.msra.mxu1 %v13856_v43  ;;  %v1689_v43 = vld [vmem:[#allocation5 + $0x2f20] sm:$0xff] }
 0x331   :  { %9903 = vmatpush1.bf16.msra.mxu0 %v14110_v45  ;;  %10314 = vmatprep.subr.bf16.mxu1 %v13865_v46  ;;  %v13896_v45 = vcombine.low %v1422_v24, %v1426_v27  ;;  %v14150_v46 = vcombine.low %v1677_v29, %v1681_v31  ;;  %v14159_v48 = vcombine.high %v1685_v42, %v1689_v43  ;;  %v1462_v27 = vld [vmem:[#allocation5 + $0x2808] sm:$0xff]  ;;  %v183_v31 = vld [vmem:[#allocation5 + $0x10] sm:$0xff] }
 0x332   :  { %9904 = vmatprep.subr.bf16.mxu0 %v14119_v47  ;;  %v13905_v47 = vcombine.high %v1430_v40, %v1434_v41  ;;  %v1466_v29 = vld [vmem:[#allocation5 + $0x2828] sm:$0xff] }
 0x334   :  { %10315 = vmatpush1.bf16.msra.mxu1 %v13864_v53  ;;  %v1697_v53 = vld [vmem:[#allocation5 + $0x2f60] sm:$0xff] }
 0x335   :  { %9905 = vmatpush1.bf16.msra.mxu0 %v14118_v55  ;;  %10316 = vmatprep.subr.bf16.mxu1 %v13873_v56  ;;  %v13904_v55 = vcombine.low %v1430_v40, %v1434_v41  ;;  %v14158_v56 = vcombine.low %v1685_v42, %v1689_v43  ;;  %v14167_v60 = vcombine.high %v1693_v52, %v1697_v53  ;;  %v1470_v42 = vld [vmem:[#allocation5 + $0x2848] sm:$0xff] }
 0x336   :  { %9906 = vmatprep.subr.bf16.mxu0 %v14127_v57  ;;  %v13913_v57 = vcombine.high %v1438_v49, %v1442_v50  ;;  %v13937_v40 = vcombine.high %v1462_v27, %v1466_v29  ;;  %v1474_v43 = vld [vmem:[#allocation5 + $0x2868] sm:$0xff] }
 0x338   :  { %10317 = vmatpush1.bf16.msra.mxu1 %v13872_v2  ;;  %v1705_v2 = vld [vmem:[#allocation5 + $0x2fa0] sm:$0xff] }
 0x339   :  { %9907 = vmatpush1.bf16.msra.mxu0 %v14126_v4  ;;  %10318 = vmatprep.subr.bf16.mxu1 %v13881_v5  ;;  %v13912_v4 = vcombine.low %v1438_v49, %v1442_v50  ;;  %v14166_v5 = vcombine.low %v1693_v52, %v1697_v53  ;;  %v14175_v8 = vcombine.high %v1701_v1, %v1705_v2  ;;  %v1478_v53 = vld [vmem:[#allocation5 + $0x2888] sm:$0xff] }
 0x33a   :  { %9908 = vmatprep.subr.bf16.mxu0 %v14135_v6  ;;  %v13921_v6 = vcombine.high %v1446_v63, %v1450_v0  ;;  %v13945_v50 = vcombine.high %v1470_v42, %v1474_v43 }
 0x33c   :  { %10319 = vmatpush1.bf16.msra.mxu1 %v13880_v15  ;;  %v1713_v15 = vld [vmem:[#allocation5 + $0x2fe0] sm:$0xff] }
 0x33d   :  { %9909 = vmatpush1.bf16.msra.mxu0 %v14134_v16  ;;  %10320 = vmatprep.subr.bf16.mxu1 %v13889_v19  ;;  %v13920_v16 = vcombine.low %v1446_v63, %v1450_v0  ;;  %v14174_v19 = vcombine.low %v1701_v1, %v1705_v2  ;;  %v14183_v24 = vcombine.high %v1709_v12, %v1713_v15  ;;  %v1486_v2 = vld [vmem:[#allocation5 + $0x28c8] sm:$0xff] }
 0x33e   :  { %9910 = vmatprep.subr.bf16.mxu0 %v14143_v23  ;;  %v13929_v23 = vcombine.high %v1454_v9, %v1458_v10 }
 0x340   :  { %10321 = vmatpush1.bf16.msra.mxu1 %v13888_v33  ;;  %v187_v33 = vld [vmem:[#allocation5 + $0x30] sm:$0xff] }
 0x341   :  { %9911 = vmatpush1.bf16.msra.mxu0 %v14142_v34  ;;  %10322 = vmatprep.subr.bf16.mxu1 %v13897_v35  ;;  %v13928_v34 = vcombine.low %v1454_v9, %v1458_v10  ;;  %v14182_v35 = vcombine.low %v1709_v12, %v1713_v15  ;;  %v12659_v41 = vcombine.high %v183_v31, %v187_v33  ;;  %v1494_v15 = vld [vmem:[#allocation5 + $0x2908] sm:$0xff] }
 0x342   :  { %9912 = vmatprep.subr.bf16.mxu0 %v14151_v37  ;;  %v155_v37 = vld [vmem:[#allocation3 + $0xb0] sm:$0xff]  ;;  %v12658_v49 = vcombine.low %v183_v31, %v187_v33  ;;  %v1502_v33 = vld [vmem:[#allocation5 + $0x2948] sm:$0xff] }
 0x344   :  { %10323 = vmatpush1.bf16.msra.mxu1 %v13896_v45  ;;  %v191_v45 = vld [vmem:[#allocation5 + $0x50] sm:$0xff] }
 0x345   :  { %9913 = vmatpush1.bf16.msra.mxu0 %v14150_v46  ;;  %10324 = vmatprep.subr.bf16.mxu1 %v13905_v47  ;;  %v195_v46 = vld [vmem:[#allocation5 + $0x70] sm:$0xff]  ;;  %v15239_v47 = vpack.c.bf16 %v155_v37, %v155_v37 }
 0x346   :  { %9914 = vmatprep.subr.bf16.mxu0 %v14159_v48  ;;  %v13936_v48 = vcombine.low %v1462_v27, %v1466_v29  ;;  %v12667_v52 = vcombine.high %v191_v45, %v195_v46  ;;  %v12666_v63 = vcombine.low %v191_v45, %v195_v46  ;;  %v227_v37 = vld [vmem:[#allocation5 + $0x170] sm:$0xff]  ;;  %v1510_v45 = vld [vmem:[#allocation5 + $0x2988] sm:$0xff] }
 0x347   :  { %v1514_v46 = vld [vmem:[#allocation5 + $0x29a8] sm:$0xff] }
 0x348   :  { %10325 = vmatpush1.bf16.msra.mxu1 %v13904_v55  ;;  %v1482_v55 = vld [vmem:[#allocation5 + $0x28a8] sm:$0xff] }
 0x349   :  { %9915 = vmatpush1.bf16.msra.mxu0 %v14158_v56  ;;  %10326 = vmatprep.subr.bf16.mxu1 %v13913_v57  ;;  %v199_v56 = vld [vmem:[#allocation5 + $0x90] sm:$0xff]  ;;  %v13953_v0 = vcombine.high %v1478_v53, %v1482_v55 }
 0x34a   :  { %9916 = vmatprep.subr.bf16.mxu0 %v14167_v60  ;;  %v203_v57 = vld [vmem:[#allocation5 + $0xb0] sm:$0xff]  ;;  %v13944_v60 = vcombine.low %v1470_v42, %v1474_v43 }
 0x34b   :  { %v12675_v1 = vcombine.high %v199_v56, %v203_v57  ;;  %v12674_v9 = vcombine.low %v199_v56, %v203_v57  ;;  %v1518_v56 = vld [vmem:[#allocation5 + $0x29c8] sm:$0xff] }
 0x34c   :  { %10327 = vmatpush1.bf16.msra.mxu1 %v13912_v4  ;;  %v1490_v4 = vld [vmem:[#allocation5 + $0x28e8] sm:$0xff] }
 0x34d   :  { %9917 = vmatpush1.bf16.msra.mxu0 %v14166_v5  ;;  %10328 = vmatprep.subr.bf16.mxu1 %v13921_v6  ;;  %v207_v5 = vld [vmem:[#allocation5 + $0xd0] sm:$0xff]  ;;  %v13961_v10 = vcombine.high %v1486_v2, %v1490_v4  ;;  %v1522_v57 = vld [vmem:[#allocation5 + $0x29e8] sm:$0xff] }
 0x34e   :  { %9918 = vmatprep.subr.bf16.mxu0 %v14175_v8  ;;  %v211_v6 = vld [vmem:[#allocation5 + $0xf0] sm:$0xff]  ;;  %v13952_v8 = vcombine.low %v1478_v53, %v1482_v55  ;;  %v13985_v53 = vcombine.high %v1510_v45, %v1514_v46 }
 0x34f   :  { %v12683_v12 = vcombine.high %v207_v5, %v211_v6  ;;  %v12682_v27 = vcombine.low %v207_v5, %v211_v6  ;;  %v1526_v5 = vld [vmem:[#allocation5 + $0x2a08] sm:$0xff] }
 0x350   :  { %10329 = vmatpush1.bf16.msra.mxu1 %v13920_v16  ;;  %v1498_v16 = vld [vmem:[#allocation5 + $0x2928] sm:$0xff] }
 0x351   :  { %9919 = vmatpush1.bf16.msra.mxu0 %v14174_v19  ;;  %10330 = vmatprep.subr.bf16.mxu1 %v13929_v23  ;;  %v215_v19 = vld [vmem:[#allocation5 + $0x110] sm:$0xff]  ;;  %v13969_v29 = vcombine.high %v1494_v15, %v1498_v16  ;;  %v1530_v6 = vld [vmem:[#allocation5 + $0x2a28] sm:$0xff] }
 0x352   :  { %9920 = vmatprep.subr.bf16.mxu0 %v14183_v24  ;;  %v219_v23 = vld [vmem:[#allocation5 + $0x130] sm:$0xff]  ;;  %v13960_v24 = vcombine.low %v1486_v2, %v1490_v4  ;;  %v13993_v2 = vcombine.high %v1518_v56, %v1522_v57 }
 0x353   :  { %v12691_v31 = vcombine.high %v215_v19, %v219_v23 }
 0x354   :  { %10331 = vmatpush1.bf16.msra.mxu1 %v13928_v34  ;;  %v1506_v34 = vld [vmem:[#allocation5 + $0x2968] sm:$0xff] }
 0x355   :  { %9921 = vmatpush1.bf16.msra.mxu0 %v14182_v35  ;;  %10341 = vmatprep.subr.bf16.mxu1 %v13937_v40  ;;  %v223_v35 = vld [vmem:[#allocation5 + $0x150] sm:$0xff]  ;;  %v13968_v40 = vcombine.low %v1494_v15, %v1498_v16  ;;  %v13977_v42 = vcombine.high %v1502_v33, %v1506_v34  ;;  %v14001_v15 = vcombine.high %v1526_v5, %v1530_v6 }
 0x356   :  { %10423 = vmatprep.subr.bf16.mxu0 %v12659_v41  ;;  %v12690_v41 = vcombine.low %v215_v19, %v219_v23  ;;  %v12699_v43 = vcombine.high %v223_v35, %v227_v37  ;;  %v1534_v19 = vld [vmem:[#allocation5 + $0x2a48] sm:$0xff] }
 0x357   :  { %10333 = vmatmul.mubr.bf16.vlgmr.msra.gmra.mrb[4].mxu1 %v15223_v13  ;;  %v1538_v23 = vld [vmem:[#allocation5 + $0x2a68] sm:$0xff] }
 0x358   :  { %9923 = vmatmul.mubr.bf16.vlgmr.msra.gmra.mrb[0].mxu0 %v15239_v47  ;;  %10342 = vmatpush1.bf16.msra.mxu1 %v13936_v48  ;;  %v231_v48 = vld [vmem:[#allocation5 + $0x190] sm:$0xff] }
 0x359   :  { %10424 = vmatpush1.bf16.msra.mxu0 %v12658_v49  ;;  %10343 = vmatprep.subr.bf16.mxu1 %v13945_v50  ;;  %v235_v49 = vld [vmem:[#allocation5 + $0x1b0] sm:$0xff]  ;;  %v13976_v50 = vcombine.low %v1502_v33, %v1506_v34  ;;  %v14009_v33 = vcombine.high %v1534_v19, %v1538_v23 }
 0x35a   :  { %10425 = vmatprep.subr.bf16.mxu0 %v12667_v52  ;;  %10373 = vmatprep.mubr.bf16.mxu1 %v15225_v25  ;;  %v12698_v52 = vcombine.low %v223_v35, %v227_v37  ;;  %v12707_v55 = vcombine.high %v231_v48, %v235_v49  ;;  %v1542_v35 = vld [vmem:[#allocation5 + $0x2a88] sm:$0xff] }
 0x35b   :  { %10455 = vmatprep.mubr.bf16.mxu0 %v15147_v58  ;;  %v1546_v37 = vld [vmem:[#allocation5 + $0x2aa8] sm:$0xff] }
 0x35c   :  { %10344 = vmatpush1.bf16.msra.mxu1 %v13944_v60  ;;  %v239_v60 = vld [vmem:[#allocation5 + $0x1d0] sm:$0xff] }
 0x35d   :  { %10426 = vmatpush1.bf16.msra.mxu0 %v12666_v63  ;;  %10345 = vmatprep.subr.bf16.mxu1 %v13953_v0  ;;  %v243_v63 = vld [vmem:[#allocation5 + $0x1f0] sm:$0xff]  ;;  %v13984_v0 = vcombine.low %v1510_v45, %v1514_v46  ;;  %v14017_v45 = vcombine.high %v1542_v35, %v1546_v37 }
 0x35e   :  { %10427 = vmatprep.subr.bf16.mxu0 %v12675_v1  ;;  %v12706_v1 = vcombine.low %v231_v48, %v235_v49  ;;  %v12715_v4 = vcombine.high %v239_v60, %v243_v63  ;;  %v1550_v48 = vld [vmem:[#allocation5 + $0x2ac8] sm:$0xff] }
 0x35f   :  { %v1554_v49 = vld [vmem:[#allocation5 + $0x2ae8] sm:$0xff] }
 0x360   :  { %10346 = vmatpush1.bf16.msra.mxu1 %v13952_v8  ;;  %v247_v8 = vld [vmem:[#allocation5 + $0x210] sm:$0xff] }
 0x361   :  { %10428 = vmatpush1.bf16.msra.mxu0 %v12674_v9  ;;  %10347 = vmatprep.subr.bf16.mxu1 %v13961_v10  ;;  %v251_v9 = vld [vmem:[#allocation5 + $0x230] sm:$0xff]  ;;  %v13992_v10 = vcombine.low %v1518_v56, %v1522_v57  ;;  %v14025_v56 = vcombine.high %v1550_v48, %v1554_v49 }
 0x362   :  { %10429 = vmatprep.subr.bf16.mxu0 %v12683_v12  ;;  %v12714_v12 = vcombine.low %v239_v60, %v243_v63  ;;  %v12723_v16 = vcombine.high %v247_v8, %v251_v9  ;;  %v1558_v60 = vld [vmem:[#allocation5 + $0x2b08] sm:$0xff] }
 0x363   :  { %v1562_v63 = vld [vmem:[#allocation5 + $0x2b28] sm:$0xff] }
 0x364   :  { %10348 = vmatpush1.bf16.msra.mxu1 %v13960_v24  ;;  %v255_v24 = vld [vmem:[#allocation5 + $0x250] sm:$0xff] }
 0x365   :  { %10430 = vmatpush1.bf16.msra.mxu0 %v12682_v27  ;;  %10349 = vmatprep.subr.bf16.mxu1 %v13969_v29  ;;  %v259_v27 = vld [vmem:[#allocation5 + $0x270] sm:$0xff]  ;;  %v14000_v29 = vcombine.low %v1526_v5, %v1530_v6  ;;  %v14033_v5 = vcombine.high %v1558_v60, %v1562_v63 }
 0x366   :  { %10431 = vmatprep.subr.bf16.mxu0 %v12691_v31  ;;  %v12722_v31 = vcombine.low %v247_v8, %v251_v9  ;;  %v12731_v34 = vcombine.high %v255_v24, %v259_v27  ;;  %v1566_v8 = vld [vmem:[#allocation5 + $0x2b48] sm:$0xff] }
 0x367   :  { %v1570_v9 = vld [vmem:[#allocation5 + $0x2b68] sm:$0xff] }
 0x368   :  { %10350 = vmatpush1.bf16.msra.mxu1 %v13968_v40  ;;  %v263_v40 = vld [vmem:[#allocation5 + $0x290] sm:$0xff] }
 0x369   :  { %10432 = vmatpush1.bf16.msra.mxu0 %v12690_v41  ;;  %10351 = vmatprep.subr.bf16.mxu1 %v13977_v42  ;;  %v267_v41 = vld [vmem:[#allocation5 + $0x2b0] sm:$0xff]  ;;  %v14008_v42 = vcombine.low %v1534_v19, %v1538_v23  ;;  %v14041_v19 = vcombine.high %v1566_v8, %v1570_v9 }
 0x36a   :  { %10433 = vmatprep.subr.bf16.mxu0 %v12699_v43  ;;  %v12730_v43 = vcombine.low %v255_v24, %v259_v27  ;;  %v12739_v46 = vcombine.high %v263_v40, %v267_v41  ;;  %v1574_v24 = vld [vmem:[#allocation5 + $0x2b88] sm:$0xff] }
 0x36b   :  { %v1578_v27 = vld [vmem:[#allocation5 + $0x2ba8] sm:$0xff] }
 0x36c   :  { %10352 = vmatpush1.bf16.msra.mxu1 %v13976_v50  ;;  %v271_v50 = vld [vmem:[#allocation5 + $0x2d0] sm:$0xff] }
 0x36d   :  { %10434 = vmatpush1.bf16.msra.mxu0 %v12698_v52  ;;  %10353 = vmatprep.subr.bf16.mxu1 %v13985_v53  ;;  %v275_v52 = vld [vmem:[#allocation5 + $0x2f0] sm:$0xff]  ;;  %v14016_v53 = vcombine.low %v1542_v35, %v1546_v37  ;;  %v14049_v35 = vcombine.high %v1574_v24, %v1578_v27 }
 0x36e   :  { %10435 = vmatprep.subr.bf16.mxu0 %v12707_v55  ;;  %v12738_v55 = vcombine.low %v263_v40, %v267_v41  ;;  %v12747_v57 = vcombine.high %v271_v50, %v275_v52  ;;  %v1582_v40 = vld [vmem:[#allocation5 + $0x2bc8] sm:$0xff] }
 0x36f   :  { %v1586_v41 = vld [vmem:[#allocation5 + $0x2be8] sm:$0xff] }
 0x370   :  { %10354 = vmatpush1.bf16.msra.mxu1 %v13984_v0  ;;  %v279_v0 = vld [vmem:[#allocation5 + $0x310] sm:$0xff] }
 0x371   :  { %10436 = vmatpush1.bf16.msra.mxu0 %v12706_v1  ;;  %10355 = vmatprep.subr.bf16.mxu1 %v13993_v2  ;;  %v283_v1 = vld [vmem:[#allocation5 + $0x330] sm:$0xff]  ;;  %v14024_v2 = vcombine.low %v1550_v48, %v1554_v49  ;;  %v14057_v48 = vcombine.high %v1582_v40, %v1586_v41 }
 0x372   :  { %10437 = vmatprep.subr.bf16.mxu0 %v12715_v4  ;;  %v12746_v4 = vcombine.low %v271_v50, %v275_v52  ;;  %v12755_v6 = vcombine.high %v279_v0, %v283_v1  ;;  %v1590_v50 = vld [vmem:[#allocation5 + $0x2c08] sm:$0xff] }
 0x373   :  { %v1594_v52 = vld [vmem:[#allocation5 + $0x2c28] sm:$0xff] }
 0x374   :  { %10356 = vmatpush1.bf16.msra.mxu1 %v13992_v10  ;;  %v287_v10 = vld [vmem:[#allocation5 + $0x350] sm:$0xff] }
 0x375   :  { %10438 = vmatpush1.bf16.msra.mxu0 %v12714_v12  ;;  %10357 = vmatprep.subr.bf16.mxu1 %v14001_v15  ;;  %v291_v12 = vld [vmem:[#allocation5 + $0x370] sm:$0xff]  ;;  %v14032_v15 = vcombine.low %v1558_v60, %v1562_v63  ;;  %v14065_v60 = vcombine.high %v1590_v50, %v1594_v52 }
 0x376   :  { %10439 = vmatprep.subr.bf16.mxu0 %v12723_v16  ;;  %v12754_v16 = vcombine.low %v279_v0, %v283_v1  ;;  %v12763_v23 = vcombine.high %v287_v10, %v291_v12  ;;  %v1598_v0 = vld [vmem:[#allocation5 + $0x2c48] sm:$0xff] }
 0x377   :  { %v1602_v1 = vld [vmem:[#allocation5 + $0x2c68] sm:$0xff] }
 0x378   :  { %10358 = vmatpush1.bf16.msra.mxu1 %v14000_v29  ;;  %v295_v29 = vld [vmem:[#allocation5 + $0x390] sm:$0xff] }
 0x379   :  { %10440 = vmatpush1.bf16.msra.mxu0 %v12722_v31  ;;  %10359 = vmatprep.subr.bf16.mxu1 %v14009_v33  ;;  %v299_v31 = vld [vmem:[#allocation5 + $0x3b0] sm:$0xff]  ;;  %v14040_v33 = vcombine.low %v1566_v8, %v1570_v9  ;;  %v14073_v8 = vcombine.high %v1598_v0, %v1602_v1 }
 0x37a   :  { %10441 = vmatprep.subr.bf16.mxu0 %v12731_v34  ;;  %v12762_v34 = vcombine.low %v287_v10, %v291_v12  ;;  %v12771_v37 = vcombine.high %v295_v29, %v299_v31  ;;  %v1606_v10 = vld [vmem:[#allocation5 + $0x2c88] sm:$0xff] }
 0x37b   :  { %v1610_v12 = vld [vmem:[#allocation5 + $0x2ca8] sm:$0xff] }
 0x37c   :  { %10360 = vmatpush1.bf16.msra.mxu1 %v14008_v42  ;;  %v303_v42 = vld [vmem:[#allocation5 + $0x3d0] sm:$0xff] }
 0x37d   :  { %10442 = vmatpush1.bf16.msra.mxu0 %v12730_v43  ;;  %10361 = vmatprep.subr.bf16.mxu1 %v14017_v45  ;;  %v307_v43 = vld [vmem:[#allocation5 + $0x3f0] sm:$0xff]  ;;  %v14048_v45 = vcombine.low %v1574_v24, %v1578_v27  ;;  %v14081_v24 = vcombine.high %v1606_v10, %v1610_v12 }
 0x37e   :  { %10443 = vmatprep.subr.bf16.mxu0 %v12739_v46  ;;  %v12770_v46 = vcombine.low %v295_v29, %v299_v31  ;;  %v12779_v49 = vcombine.high %v303_v42, %v307_v43  ;;  %v1614_v29 = vld [vmem:[#allocation5 + $0x2cc8] sm:$0xff] }
 0x37f   :  { %v1618_v31 = vld [vmem:[#allocation5 + $0x2ce8] sm:$0xff] }
 0x380   :  { %10362 = vmatpush1.bf16.msra.mxu1 %v14016_v53  ;;  %v311_v53 = vld [vmem:[#allocation5 + $0x410] sm:$0xff] }
 0x381   :  { %10444 = vmatpush1.bf16.msra.mxu0 %v12738_v55  ;;  %10363 = vmatprep.subr.bf16.mxu1 %v14025_v56  ;;  %v315_v55 = vld [vmem:[#allocation5 + $0x430] sm:$0xff]  ;;  %v14056_v56 = vcombine.low %v1582_v40, %v1586_v41  ;;  %v14089_v40 = vcombine.high %v1614_v29, %v1618_v31 }
 0x382   :  { %10445 = vmatprep.subr.bf16.mxu0 %v12747_v57  ;;  %v12778_v57 = vcombine.low %v303_v42, %v307_v43  ;;  %v12787_v63 = vcombine.high %v311_v53, %v315_v55  ;;  %v1622_v42 = vld [vmem:[#allocation5 + $0x2d08] sm:$0xff] }
 0x383   :  { %v1626_v43 = vld [vmem:[#allocation5 + $0x2d28] sm:$0xff] }
 0x384   :  { %10364 = vmatpush1.bf16.msra.mxu1 %v14024_v2  ;;  %v319_v2 = vld [vmem:[#allocation5 + $0x450] sm:$0xff] }
 0x385   :  { %10446 = vmatpush1.bf16.msra.mxu0 %v12746_v4  ;;  %10365 = vmatprep.subr.bf16.mxu1 %v14033_v5  ;;  %v323_v4 = vld [vmem:[#allocation5 + $0x470] sm:$0xff]  ;;  %v14064_v5 = vcombine.low %v1590_v50, %v1594_v52  ;;  %v14097_v50 = vcombine.high %v1622_v42, %v1626_v43 }
 0x386   :  { %10447 = vmatprep.subr.bf16.mxu0 %v12755_v6  ;;  %v12786_v6 = vcombine.low %v311_v53, %v315_v55  ;;  %v12795_v9 = vcombine.high %v319_v2, %v323_v4  ;;  %v1630_v53 = vld [vmem:[#allocation5 + $0x2d48] sm:$0xff] }
 0x387   :  { %v1634_v55 = vld [vmem:[#allocation5 + $0x2d68] sm:$0xff] }
 0x388   :  { %10366 = vmatpush1.bf16.msra.mxu1 %v14032_v15  ;;  %v327_v15 = vld [vmem:[#allocation5 + $0x490] sm:$0xff] }
 0x389   :  { %10448 = vmatpush1.bf16.msra.mxu0 %v12754_v16  ;;  %10367 = vmatprep.subr.bf16.mxu1 %v14041_v19  ;;  %v331_v16 = vld [vmem:[#allocation5 + $0x4b0] sm:$0xff]  ;;  %v14072_v19 = vcombine.low %v1598_v0, %v1602_v1  ;;  %v14105_v0 = vcombine.high %v1630_v53, %v1634_v55 }
 0x38a   :  { %10449 = vmatprep.subr.bf16.mxu0 %v12763_v23  ;;  %v12794_v23 = vcombine.low %v319_v2, %v323_v4  ;;  %v12803_v27 = vcombine.high %v327_v15, %v331_v16  ;;  %v1638_v2 = vld [vmem:[#allocation5 + $0x2d88] sm:$0xff] }
 0x38b   :  { %v1642_v4 = vld [vmem:[#allocation5 + $0x2da8] sm:$0xff] }
 0x38c   :  { %10368 = vmatpush1.bf16.msra.mxu1 %v14040_v33  ;;  %v335_v33 = vld [vmem:[#allocation5 + $0x4d0] sm:$0xff] }
 0x38d   :  { %10450 = vmatpush1.bf16.msra.mxu0 %v12762_v34  ;;  %10369 = vmatprep.subr.bf16.mxu1 %v14049_v35  ;;  %v339_v34 = vld [vmem:[#allocation5 + $0x4f0] sm:$0xff]  ;;  %v14080_v35 = vcombine.low %v1606_v10, %v1610_v12  ;;  %v14113_v10 = vcombine.high %v1638_v2, %v1642_v4 }
 0x38e   :  { %10451 = vmatprep.subr.bf16.mxu0 %v12771_v37  ;;  %v12802_v37 = vcombine.low %v327_v15, %v331_v16  ;;  %v12811_v41 = vcombine.high %v335_v33, %v339_v34  ;;  %v1646_v15 = vld [vmem:[#allocation5 + $0x2dc8] sm:$0xff] }
 0x38f   :  { %v1650_v16 = vld [vmem:[#allocation5 + $0x2de8] sm:$0xff] }
 0x390   :  { %10370 = vmatpush1.bf16.msra.mxu1 %v14048_v45  ;;  %v343_v45 = vld [vmem:[#allocation5 + $0x510] sm:$0xff] }
 0x391   :  { %10452 = vmatpush1.bf16.msra.mxu0 %v12770_v46  ;;  %10371 = vmatprep.subr.bf16.mxu1 %v14057_v48  ;;  %v347_v46 = vld [vmem:[#allocation5 + $0x530] sm:$0xff]  ;;  %v14088_v48 = vcombine.low %v1614_v29, %v1618_v31  ;;  %v14121_v29 = vcombine.high %v1646_v15, %v1650_v16 }
 0x392   :  { %10453 = vmatprep.subr.bf16.mxu0 %v12779_v49  ;;  %v12810_v49 = vcombine.low %v335_v33, %v339_v34  ;;  %v12819_v52 = vcombine.high %v343_v45, %v347_v46  ;;  %v1654_v33 = vld [vmem:[#allocation5 + $0x2e08] sm:$0xff] }
 0x393   :  { %v1658_v34 = vld [vmem:[#allocation5 + $0x2e28] sm:$0xff] }
 0x394   :  { %10372 = vmatpush1.bf16.msra.mxu1 %v14056_v56  ;;  %v351_v56 = vld [vmem:[#allocation5 + $0x550] sm:$0xff] }
 0x395   :  { %10454 = vmatpush1.bf16.msra.mxu0 %v12778_v57  ;;  %10382 = vmatprep.subr.bf16.mxu1 %v14065_v60  ;;  %v355_v57 = vld [vmem:[#allocation5 + $0x570] sm:$0xff]  ;;  %v14096_v60 = vcombine.low %v1622_v42, %v1626_v43  ;;  %v14129_v42 = vcombine.high %v1654_v33, %v1658_v34 }
 0x396   :  { %10464 = vmatprep.subr.bf16.mxu0 %v12787_v63  ;;  %v12818_v63 = vcombine.low %v343_v45, %v347_v46  ;;  %v12827_v1 = vcombine.high %v351_v56, %v355_v57  ;;  %v1662_v45 = vld [vmem:[#allocation5 + $0x2e48] sm:$0xff] }
 0x397   :  { %10374 = vmatmul.mubr.bf16.vlgmr.msra.gmra.mrb[4].mxu1 %v15231_v30  ;;  %v1666_v46 = vld [vmem:[#allocation5 + $0x2e68] sm:$0xff] }
 0x398   :  { %10383 = vmatpush1.bf16.msra.mxu1 %v14064_v5  ;;  %10456 = vmatmul.mubr.bf16.vlgmr.msra.gmra.mrb[4].mxu0 %v15153_v17  ;;  %v359_v5 = vld [vmem:[#allocation5 + $0x590] sm:$0xff] }
 0x399   :  { %10465 = vmatpush1.bf16.msra.mxu0 %v12786_v6  ;;  %10384 = vmatprep.subr.bf16.mxu1 %v14073_v8  ;;  %v363_v6 = vld [vmem:[#allocation5 + $0x5b0] sm:$0xff]  ;;  %v14104_v8 = vcombine.low %v1630_v53, %v1634_v55  ;;  %v14137_v53 = vcombine.high %v1662_v45, %v1666_v46 }
 0x39a   :  { %10466 = vmatprep.subr.bf16.mxu0 %v12795_v9  ;;  %10414 = vmatprep.mubr.bf16.mxu1 %v15233_v38  ;;  %v12826_v9 = vcombine.low %v351_v56, %v355_v57  ;;  %v12835_v12 = vcombine.high %v359_v5, %v363_v6  ;;  %v1670_v56 = vld [vmem:[#allocation5 + $0x2e88] sm:$0xff] }
 0x39b   :  { %10496 = vmatprep.mubr.bf16.mxu0 %v15149_v62  ;;  %v1674_v57 = vld [vmem:[#allocation5 + $0x2ea8] sm:$0xff] }
 0x39c   :  { %10385 = vmatpush1.bf16.msra.mxu1 %v14072_v19  ;;  %v367_v19 = vld [vmem:[#allocation5 + $0x5d0] sm:$0xff] }
 0x39d   :  { %10467 = vmatpush1.bf16.msra.mxu0 %v12794_v23  ;;  %10386 = vmatprep.subr.bf16.mxu1 %v14081_v24  ;;  %v371_v23 = vld [vmem:[#allocation5 + $0x5f0] sm:$0xff]  ;;  %v14112_v24 = vcombine.low %v1638_v2, %v1642_v4  ;;  %v14145_v2 = vcombine.high %v1670_v56, %v1674_v57 }
 0x39e   :  { %10468 = vmatprep.subr.bf16.mxu0 %v12803_v27  ;;  %v12834_v27 = vcombine.low %v359_v5, %v363_v6  ;;  %v12843_v31 = vcombine.high %v367_v19, %v371_v23  ;;  %v1678_v5 = vld [vmem:[#allocation5 + $0x2ec8] sm:$0xff] }
 0x39f   :  { %v1682_v6 = vld [vmem:[#allocation5 + $0x2ee8] sm:$0xff] }
 0x3a0   :  { %10387 = vmatpush1.bf16.msra.mxu1 %v14080_v35  ;;  %v375_v35 = vld [vmem:[#allocation5 + $0x610] sm:$0xff] }
 0x3a1   :  { %10469 = vmatpush1.bf16.msra.mxu0 %v12802_v37  ;;  %10388 = vmatprep.subr.bf16.mxu1 %v14089_v40  ;;  %v379_v37 = vld [vmem:[#allocation5 + $0x630] sm:$0xff]  ;;  %v14120_v40 = vcombine.low %v1646_v15, %v1650_v16  ;;  %v14153_v15 = vcombine.high %v1678_v5, %v1682_v6 }
 0x3a2   :  { %10470 = vmatprep.subr.bf16.mxu0 %v12811_v41  ;;  %v12842_v41 = vcombine.low %v367_v19, %v371_v23  ;;  %v12851_v43 = vcombine.high %v375_v35, %v379_v37  ;;  %v1686_v19 = vld [vmem:[#allocation5 + $0x2f08] sm:$0xff] }
 0x3a3   :  { %v1690_v23 = vld [vmem:[#allocation5 + $0x2f28] sm:$0xff] }
 0x3a4   :  { %10389 = vmatpush1.bf16.msra.mxu1 %v14088_v48  ;;  %v383_v48 = vld [vmem:[#allocation5 + $0x650] sm:$0xff] }
 0x3a5   :  { %10471 = vmatpush1.bf16.msra.mxu0 %v12810_v49  ;;  %10390 = vmatprep.subr.bf16.mxu1 %v14097_v50  ;;  %v387_v49 = vld [vmem:[#allocation5 + $0x670] sm:$0xff]  ;;  %v14128_v50 = vcombine.low %v1654_v33, %v1658_v34  ;;  %v14161_v33 = vcombine.high %v1686_v19, %v1690_v23 }
 0x3a6   :  { %10472 = vmatprep.subr.bf16.mxu0 %v12819_v52  ;;  %v12850_v52 = vcombine.low %v375_v35, %v379_v37  ;;  %v12859_v55 = vcombine.high %v383_v48, %v387_v49  ;;  %v1694_v35 = vld [vmem:[#allocation5 + $0x2f48] sm:$0xff] }
 0x3a7   :  { %v1698_v37 = vld [vmem:[#allocation5 + $0x2f68] sm:$0xff] }
 0x3a8   :  { %10391 = vmatpush1.bf16.msra.mxu1 %v14096_v60  ;;  %v391_v60 = vld [vmem:[#allocation5 + $0x690] sm:$0xff] }
 0x3a9   :  { %10473 = vmatpush1.bf16.msra.mxu0 %v12818_v63  ;;  %10392 = vmatprep.subr.bf16.mxu1 %v14105_v0  ;;  %v395_v63 = vld [vmem:[#allocation5 + $0x6b0] sm:$0xff]  ;;  %v14136_v0 = vcombine.low %v1662_v45, %v1666_v46  ;;  %v14169_v45 = vcombine.high %v1694_v35, %v1698_v37 }
 0x3aa   :  { %10474 = vmatprep.subr.bf16.mxu0 %v12827_v1  ;;  %v12858_v1 = vcombine.low %v383_v48, %v387_v49  ;;  %v12867_v4 = vcombine.high %v391_v60, %v395_v63  ;;  %v1702_v48 = vld [vmem:[#allocation5 + $0x2f88] sm:$0xff] }
 0x3ab   :  { %v1706_v49 = vld [vmem:[#allocation5 + $0x2fa8] sm:$0xff] }
 0x3ac   :  { %10393 = vmatpush1.bf16.msra.mxu1 %v14104_v8  ;;  %v399_v8 = vld [vmem:[#allocation5 + $0x6d0] sm:$0xff] }
 0x3ad   :  { %10475 = vmatpush1.bf16.msra.mxu0 %v12826_v9  ;;  %10394 = vmatprep.subr.bf16.mxu1 %v14113_v10  ;;  %v403_v9 = vld [vmem:[#allocation5 + $0x6f0] sm:$0xff]  ;;  %v14144_v10 = vcombine.low %v1670_v56, %v1674_v57  ;;  %v14177_v56 = vcombine.high %v1702_v48, %v1706_v49 }
 0x3ae   :  { %10476 = vmatprep.subr.bf16.mxu0 %v12835_v12  ;;  %v12866_v12 = vcombine.low %v391_v60, %v395_v63  ;;  %v12875_v16 = vcombine.high %v399_v8, %v403_v9  ;;  %v1710_v60 = vld [vmem:[#allocation5 + $0x2fc8] sm:$0xff] }
 0x3af   :  { %v1714_v63 = vld [vmem:[#allocation5 + $0x2fe8] sm:$0xff] }
 0x3b0   :  { %10395 = vmatpush1.bf16.msra.mxu1 %v14112_v24  ;;  %v407_v24 = vld [vmem:[#allocation5 + $0x710] sm:$0xff] }
 0x3b1   :  { %10477 = vmatpush1.bf16.msra.mxu0 %v12834_v27  ;;  %10396 = vmatprep.subr.bf16.mxu1 %v14121_v29  ;;  %v411_v27 = vld [vmem:[#allocation5 + $0x730] sm:$0xff]  ;;  %v14152_v29 = vcombine.low %v1678_v5, %v1682_v6  ;;  %v14185_v5 = vcombine.high %v1710_v60, %v1714_v63 }
 0x3b2   :  { %10478 = vmatprep.subr.bf16.mxu0 %v12843_v31  ;;  %v12874_v31 = vcombine.low %v399_v8, %v403_v9  ;;  %v12883_v34 = vcombine.high %v407_v24, %v411_v27  ;;  %v184_v8 = vld [vmem:[#allocation5 + $0x18] sm:$0xff] }
 0x3b3   :  { %v188_v9 = vld [vmem:[#allocation5 + $0x38] sm:$0xff] }
 0x3b4   :  { %10397 = vmatpush1.bf16.msra.mxu1 %v14120_v40  ;;  %v415_v40 = vld [vmem:[#allocation5 + $0x750] sm:$0xff] }
 0x3b5   :  { %10479 = vmatpush1.bf16.msra.mxu0 %v12842_v41  ;;  %10398 = vmatprep.subr.bf16.mxu1 %v14129_v42  ;;  %v419_v41 = vld [vmem:[#allocation5 + $0x770] sm:$0xff]  ;;  %v14160_v42 = vcombine.low %v1686_v19, %v1690_v23  ;;  %v12661_v19 = vcombine.high %v184_v8, %v188_v9 }
 0x3b6   :  { %10480 = vmatprep.subr.bf16.mxu0 %v12851_v43  ;;  %v12882_v43 = vcombine.low %v407_v24, %v411_v27  ;;  %v12891_v46 = vcombine.high %v415_v40, %v419_v41  ;;  %v192_v24 = vld [vmem:[#allocation5 + $0x58] sm:$0xff] }
 0x3b7   :  { %v196_v27 = vld [vmem:[#allocation5 + $0x78] sm:$0xff] }
 0x3b8   :  { %10399 = vmatpush1.bf16.msra.mxu1 %v14128_v50  ;;  %v423_v50 = vld [vmem:[#allocation5 + $0x790] sm:$0xff] }
 0x3b9   :  { %10481 = vmatpush1.bf16.msra.mxu0 %v12850_v52  ;;  %10400 = vmatprep.subr.bf16.mxu1 %v14137_v53  ;;  %v427_v52 = vld [vmem:[#allocation5 + $0x7b0] sm:$0xff]  ;;  %v14168_v53 = vcombine.low %v1694_v35, %v1698_v37  ;;  %v12669_v35 = vcombine.high %v192_v24, %v196_v27 }
 0x3ba   :  { %10482 = vmatprep.subr.bf16.mxu0 %v12859_v55  ;;  %v12890_v55 = vcombine.low %v415_v40, %v419_v41  ;;  %v12899_v57 = vcombine.high %v423_v50, %v427_v52  ;;  %v200_v40 = vld [vmem:[#allocation5 + $0x98] sm:$0xff] }
 0x3bb   :  { %v204_v41 = vld [vmem:[#allocation5 + $0xb8] sm:$0xff] }
 0x3bc   :  { %10401 = vmatpush1.bf16.msra.mxu1 %v14136_v0  ;;  %v431_v0 = vld [vmem:[#allocation5 + $0x7d0] sm:$0xff] }
 0x3bd   :  { %10483 = vmatpush1.bf16.msra.mxu0 %v12858_v1  ;;  %10402 = vmatprep.subr.bf16.mxu1 %v14145_v2  ;;  %v435_v1 = vld [vmem:[#allocation5 + $0x7f0] sm:$0xff]  ;;  %v14176_v2 = vcombine.low %v1702_v48, %v1706_v49  ;;  %v12677_v48 = vcombine.high %v200_v40, %v204_v41 }
 0x3be   :  { %10484 = vmatprep.subr.bf16.mxu0 %v12867_v4  ;;  %v12898_v4 = vcombine.low %v423_v50, %v427_v52  ;;  %v12907_v6 = vcombine.high %v431_v0, %v435_v1  ;;  %v208_v50 = vld [vmem:[#allocation5 + $0xd8] sm:$0xff] }
 0x3bf   :  { %v212_v52 = vld [vmem:[#allocation5 + $0xf8] sm:$0xff] }
 0x3c0   :  { %10403 = vmatpush1.bf16.msra.mxu1 %v14144_v10  ;;  %v439_v10 = vld [vmem:[#allocation5 + $0x810] sm:$0xff] }
 0x3c1   :  { %10485 = vmatpush1.bf16.msra.mxu0 %v12866_v12  ;;  %10404 = vmatprep.subr.bf16.mxu1 %v14153_v15  ;;  %v443_v12 = vld [vmem:[#allocation5 + $0x830] sm:$0xff]  ;;  %v14184_v15 = vcombine.low %v1710_v60, %v1714_v63  ;;  %v12685_v60 = vcombine.high %v208_v50, %v212_v52 }
 0x3c2   :  { %10486 = vmatprep.subr.bf16.mxu0 %v12875_v16  ;;  %v12906_v16 = vcombine.low %v431_v0, %v435_v1  ;;  %v12915_v23 = vcombine.high %v439_v10, %v443_v12  ;;  %v216_v0 = vld [vmem:[#allocation5 + $0x118] sm:$0xff] }
 0x3c3   :  { %v220_v1 = vld [vmem:[#allocation5 + $0x138] sm:$0xff] }
 0x3c4   :  { %10405 = vmatpush1.bf16.msra.mxu1 %v14152_v29  ;;  %v447_v29 = vld [vmem:[#allocation5 + $0x850] sm:$0xff] }
 0x3c5   :  { %10487 = vmatpush1.bf16.msra.mxu0 %v12874_v31  ;;  %10406 = vmatprep.subr.bf16.mxu1 %v14161_v33  ;;  %v451_v31 = vld [vmem:[#allocation5 + $0x870] sm:$0xff]  ;;  %v12660_v33 = vcombine.low %v184_v8, %v188_v9  ;;  %v12693_v8 = vcombine.high %v216_v0, %v220_v1  ;;  %v224_v9 = vld [vmem:[#allocation5 + $0x158] sm:$0xff] }
 0x3c6   :  { %10488 = vmatprep.subr.bf16.mxu0 %v12883_v34  ;;  %v12914_v34 = vcombine.low %v439_v10, %v443_v12  ;;  %v12923_v37 = vcombine.high %v447_v29, %v451_v31  ;;  %v228_v10 = vld [vmem:[#allocation5 + $0x178] sm:$0xff]  ;;  %v479_v12 = vld [vmem:[#allocation5 + $0x950] sm:$0xff] }
 0x3c8   :  { %10407 = vmatpush1.bf16.msra.mxu1 %v14160_v42  ;;  %v455_v42 = vld [vmem:[#allocation5 + $0x890] sm:$0xff] }
 0x3c9   :  { %10489 = vmatpush1.bf16.msra.mxu0 %v12882_v43  ;;  %10408 = vmatprep.subr.bf16.mxu1 %v14169_v45  ;;  %v459_v43 = vld [vmem:[#allocation5 + $0x8b0] sm:$0xff]  ;;  %v12668_v45 = vcombine.low %v192_v24, %v196_v27  ;;  %v232_v27 = vld [vmem:[#allocation5 + $0x198] sm:$0xff] }
 0x3ca   :  { %10490 = vmatprep.subr.bf16.mxu0 %v12891_v46  ;;  %v12922_v46 = vcombine.low %v447_v29, %v451_v31  ;;  %v12931_v49 = vcombine.high %v455_v42, %v459_v43  ;;  %v236_v29 = vld [vmem:[#allocation5 + $0x1b8] sm:$0xff]  ;;  %v487_v31 = vld [vmem:[#allocation5 + $0x990] sm:$0xff] }
 0x3cc   :  { %10409 = vmatpush1.bf16.msra.mxu1 %v14168_v53  ;;  %v463_v53 = vld [vmem:[#allocation5 + $0x8d0] sm:$0xff] }
 0x3cd   :  { %10491 = vmatpush1.bf16.msra.mxu0 %v12890_v55  ;;  %10410 = vmatprep.subr.bf16.mxu1 %v14177_v56  ;;  %v467_v55 = vld [vmem:[#allocation5 + $0x8f0] sm:$0xff]  ;;  %v12676_v56 = vcombine.low %v200_v40, %v204_v41  ;;  %v240_v41 = vld [vmem:[#allocation5 + $0x1d8] sm:$0xff] }
 0x3ce   :  { %10492 = vmatprep.subr.bf16.mxu0 %v12899_v57  ;;  %v12930_v57 = vcombine.low %v455_v42, %v459_v43  ;;  %v12939_v63 = vcombine.high %v463_v53, %v467_v55  ;;  %v244_v42 = vld [vmem:[#allocation5 + $0x1f8] sm:$0xff]  ;;  %v495_v43 = vld [vmem:[#allocation5 + $0x9d0] sm:$0xff] }
 0x3d0   :  { %10411 = vmatpush1.bf16.msra.mxu1 %v14176_v2  ;;  %v471_v2 = vld [vmem:[#allocation5 + $0x910] sm:$0xff] }
 0x3d1   :  { %10493 = vmatpush1.bf16.msra.mxu0 %v12898_v4  ;;  %10412 = vmatprep.subr.bf16.mxu1 %v14185_v5  ;;  %v475_v4 = vld [vmem:[#allocation5 + $0x930] sm:$0xff]  ;;  %v12684_v5 = vcombine.low %v208_v50, %v212_v52  ;;  %v248_v52 = vld [vmem:[#allocation5 + $0x218] sm:$0xff] }
 0x3d2   :  { %10494 = vmatprep.subr.bf16.mxu0 %v12907_v6  ;;  %v12938_v6 = vcombine.low %v463_v53, %v467_v55  ;;  %v252_v53 = vld [vmem:[#allocation5 + $0x238] sm:$0xff]  ;;  %v503_v55 = vld [vmem:[#allocation5 + $0xa10] sm:$0xff] }
 0x3d4   :  { %10413 = vmatpush1.bf16.msra.mxu1 %v14184_v15  ;;  %v483_v15 = vld [vmem:[#allocation5 + $0x970] sm:$0xff] }
 0x3d5   :  { %10495 = vmatpush1.bf16.msra.mxu0 %v12906_v16  ;;  %10915 = vmatprep.subr.bf16.mxu1 %v12661_v19  ;;  %v12692_v16 = vcombine.low %v216_v0, %v220_v1  ;;  %v12946_v19 = vcombine.low %v471_v2, %v475_v4  ;;  %v12955_v24 = vcombine.high %v479_v12, %v483_v15  ;;  %v256_v1 = vld [vmem:[#allocation5 + $0x258] sm:$0xff] }
 0x3d6   :  { %10505 = vmatprep.subr.bf16.mxu0 %v12915_v23  ;;  %v12701_v23 = vcombine.high %v224_v9, %v228_v10 }
 0x3d7   :  { %10415 = vmatmul.mubr.bf16.vlgmr.msra.gmra.mrb[4].mxu1 %v15239_v47 }
 0x3d8   :  { %10497 = vmatmul.mubr.bf16.vlgmr.msra.gmra.mrb[4].mxu0 %v15155_v22  ;;  %10916 = vmatpush1.bf16.msra.mxu1 %v12660_v33  ;;  %v491_v33 = vld [vmem:[#allocation5 + $0x9b0] sm:$0xff] }
 0x3d9   :  { %10506 = vmatpush1.bf16.msra.mxu0 %v12914_v34  ;;  %10917 = vmatprep.subr.bf16.mxu1 %v12669_v35  ;;  %v12700_v34 = vcombine.low %v224_v9, %v228_v10  ;;  %v12954_v35 = vcombine.low %v479_v12, %v483_v15  ;;  %v12963_v40 = vcombine.high %v487_v31, %v491_v33  ;;  %v264_v10 = vld [vmem:[#allocation5 + $0x298] sm:$0xff]  ;;  %v519_v15 = vld [vmem:[#allocation5 + $0xa90] sm:$0xff] }
 0x3da   :  { %10507 = vmatprep.subr.bf16.mxu0 %v12923_v37  ;;  %10537 = vmatprep.mubr.bf16.mxu0 %v15157_v28  ;;  %v12709_v37 = vcombine.high %v232_v27, %v236_v29  ;;  %v268_v12 = vld [vmem:[#allocation5 + $0x2b8] sm:$0xff] }
 0x3db   :  { %10947 = vmatprep.mubr.bf16.mxu1 %v15147_v58  ;;  %v12947_v58 = vcombine.high %v471_v2, %v475_v4  ;;  %v260_v2 = vld [vmem:[#allocation5 + $0x278] sm:$0xff]  ;;  %v511_v4 = vld [vmem:[#allocation5 + $0xa50] sm:$0xff] }
 0x3dc   :  { %10918 = vmatpush1.bf16.msra.mxu1 %v12668_v45  ;;  %v499_v45 = vld [vmem:[#allocation5 + $0x9f0] sm:$0xff] }
 0x3dd   :  { %10508 = vmatpush1.bf16.msra.mxu0 %v12922_v46  ;;  %10919 = vmatprep.subr.bf16.mxu1 %v12677_v48  ;;  %v12708_v46 = vcombine.low %v232_v27, %v236_v29  ;;  %v12962_v48 = vcombine.low %v487_v31, %v491_v33  ;;  %v12971_v50 = vcombine.high %v495_v43, %v499_v45  ;;  %v272_v29 = vld [vmem:[#allocation5 + $0x2d8] sm:$0xff]  ;;  %v527_v33 = vld [vmem:[#allocation5 + $0xad0] sm:$0xff] }
 0x3de   :  { %10509 = vmatprep.subr.bf16.mxu0 %v12931_v49  ;;  %v12717_v49 = vcombine.high %v240_v41, %v244_v42  ;;  %v276_v31 = vld [vmem:[#allocation5 + $0x2f8] sm:$0xff] }
 0x3e0   :  { %10920 = vmatpush1.bf16.msra.mxu1 %v12676_v56  ;;  %v507_v56 = vld [vmem:[#allocation5 + $0xa30] sm:$0xff] }
 0x3e1   :  { %10510 = vmatpush1.bf16.msra.mxu0 %v12930_v57  ;;  %10921 = vmatprep.subr.bf16.mxu1 %v12685_v60  ;;  %v12716_v57 = vcombine.low %v240_v41, %v244_v42  ;;  %v12970_v60 = vcombine.low %v495_v43, %v499_v45  ;;  %v12979_v0 = vcombine.high %v503_v55, %v507_v56  ;;  %v280_v42 = vld [vmem:[#allocation5 + $0x318] sm:$0xff]  ;;  %v535_v45 = vld [vmem:[#allocation5 + $0xb10] sm:$0xff] }
 0x3e2   :  { %10511 = vmatprep.subr.bf16.mxu0 %v12939_v63  ;;  %v12725_v63 = vcombine.high %v248_v52, %v252_v53  ;;  %v284_v43 = vld [vmem:[#allocation5 + $0x338] sm:$0xff] }
 0x3e4   :  { %10922 = vmatpush1.bf16.msra.mxu1 %v12684_v5  ;;  %v515_v5 = vld [vmem:[#allocation5 + $0xa70] sm:$0xff] }
 0x3e5   :  { %10512 = vmatpush1.bf16.msra.mxu0 %v12938_v6  ;;  %10923 = vmatprep.subr.bf16.mxu1 %v12693_v8  ;;  %v12724_v6 = vcombine.low %v248_v52, %v252_v53  ;;  %v12978_v8 = vcombine.low %v503_v55, %v507_v56  ;;  %v12987_v9 = vcombine.high %v511_v4, %v515_v5  ;;  %v288_v53 = vld [vmem:[#allocation5 + $0x358] sm:$0xff]  ;;  %v543_v56 = vld [vmem:[#allocation5 + $0xb50] sm:$0xff] }
 0x3e6   :  { %10513 = vmatprep.subr.bf16.mxu0 %v12947_v58  ;;  %v12733_v58 = vcombine.high %v256_v1, %v260_v2  ;;  %v292_v55 = vld [vmem:[#allocation5 + $0x378] sm:$0xff] }
 0x3e8   :  { %10924 = vmatpush1.bf16.msra.mxu1 %v12692_v16  ;;  %v523_v16 = vld [vmem:[#allocation5 + $0xab0] sm:$0xff] }
 0x3e9   :  { %10514 = vmatpush1.bf16.msra.mxu0 %v12946_v19  ;;  %10925 = vmatprep.subr.bf16.mxu1 %v12701_v23  ;;  %v12732_v19 = vcombine.low %v256_v1, %v260_v2  ;;  %v12986_v23 = vcombine.low %v511_v4, %v515_v5  ;;  %v12995_v27 = vcombine.high %v519_v15, %v523_v16  ;;  %v296_v2 = vld [vmem:[#allocation5 + $0x398] sm:$0xff]  ;;  %v551_v5 = vld [vmem:[#allocation5 + $0xb90] sm:$0xff] }
 0x3ea   :  { %10515 = vmatprep.subr.bf16.mxu0 %v12955_v24  ;;  %v12741_v24 = vcombine.high %v264_v10, %v268_v12  ;;  %v300_v4 = vld [vmem:[#allocation5 + $0x3b8] sm:$0xff] }
 0x3ec   :  { %10926 = vmatpush1.bf16.msra.mxu1 %v12700_v34  ;;  %v531_v34 = vld [vmem:[#allocation5 + $0xaf0] sm:$0xff] }
 0x3ed   :  { %10516 = vmatpush1.bf16.msra.mxu0 %v12954_v35  ;;  %10927 = vmatprep.subr.bf16.mxu1 %v12709_v37  ;;  %v12740_v35 = vcombine.low %v264_v10, %v268_v12  ;;  %v12994_v37 = vcombine.low %v519_v15, %v523_v16  ;;  %v13003_v41 = vcombine.high %v527_v33, %v531_v34  ;;  %v304_v12 = vld [vmem:[#allocation5 + $0x3d8] sm:$0xff]  ;;  %v559_v16 = vld [vmem:[#allocation5 + $0xbd0] sm:$0xff] }
 0x3ee   :  { %10517 = vmatprep.subr.bf16.mxu0 %v12963_v40  ;;  %v12749_v40 = vcombine.high %v272_v29, %v276_v31  ;;  %v308_v15 = vld [vmem:[#allocation5 + $0x3f8] sm:$0xff] }
 0x3f0   :  { %10928 = vmatpush1.bf16.msra.mxu1 %v12708_v46  ;;  %v539_v46 = vld [vmem:[#allocation5 + $0xb30] sm:$0xff] }
 0x3f1   :  { %10518 = vmatpush1.bf16.msra.mxu0 %v12962_v48  ;;  %10929 = vmatprep.subr.bf16.mxu1 %v12717_v49  ;;  %v12748_v48 = vcombine.low %v272_v29, %v276_v31  ;;  %v13002_v49 = vcombine.low %v527_v33, %v531_v34  ;;  %v13011_v52 = vcombine.high %v535_v45, %v539_v46  ;;  %v312_v31 = vld [vmem:[#allocation5 + $0x418] sm:$0xff]  ;;  %v567_v34 = vld [vmem:[#allocation5 + $0xc10] sm:$0xff] }
 0x3f2   :  { %10519 = vmatprep.subr.bf16.mxu0 %v12971_v50  ;;  %v12757_v50 = vcombine.high %v280_v42, %v284_v43  ;;  %v316_v33 = vld [vmem:[#allocation5 + $0x438] sm:$0xff] }
 0x3f4   :  { %10930 = vmatpush1.bf16.msra.mxu1 %v12716_v57  ;;  %v547_v57 = vld [vmem:[#allocation5 + $0xb70] sm:$0xff] }
 0x3f5   :  { %10520 = vmatpush1.bf16.msra.mxu0 %v12970_v60  ;;  %10931 = vmatprep.subr.bf16.mxu1 %v12725_v63  ;;  %v12756_v60 = vcombine.low %v280_v42, %v284_v43  ;;  %v13010_v63 = vcombine.low %v535_v45, %v539_v46  ;;  %v13019_v1 = vcombine.high %v543_v56, %v547_v57  ;;  %v320_v43 = vld [vmem:[#allocation5 + $0x458] sm:$0xff]  ;;  %v575_v46 = vld [vmem:[#allocation5 + $0xc50] sm:$0xff] }
 0x3f6   :  { %10521 = vmatprep.subr.bf16.mxu0 %v12979_v0  ;;  %v12765_v0 = vcombine.high %v288_v53, %v292_v55  ;;  %v324_v45 = vld [vmem:[#allocation5 + $0x478] sm:$0xff] }
 0x3f8   :  { %10932 = vmatpush1.bf16.msra.mxu1 %v12724_v6  ;;  %v555_v6 = vld [vmem:[#allocation5 + $0xbb0] sm:$0xff] }
 0x3f9   :  { %10522 = vmatpush1.bf16.msra.mxu0 %v12978_v8  ;;  %10933 = vmatprep.subr.bf16.mxu1 %v12733_v58  ;;  %v12764_v8 = vcombine.low %v288_v53, %v292_v55  ;;  %v13018_v58 = vcombine.low %v543_v56, %v547_v57  ;;  %v13027_v10 = vcombine.high %v551_v5, %v555_v6  ;;  %v328_v55 = vld [vmem:[#allocation5 + $0x498] sm:$0xff]  ;;  %v583_v57 = vld [vmem:[#allocation5 + $0xc90] sm:$0xff] }
 0x3fa   :  { %10523 = vmatprep.subr.bf16.mxu0 %v12987_v9  ;;  %v12773_v9 = vcombine.high %v296_v2, %v300_v4  ;;  %v332_v56 = vld [vmem:[#allocation5 + $0x4b8] sm:$0xff] }
 0x3fc   :  { %10934 = vmatpush1.bf16.msra.mxu1 %v12732_v19  ;;  %v563_v19 = vld [vmem:[#allocation5 + $0xbf0] sm:$0xff] }
 0x3fd   :  { %10524 = vmatpush1.bf16.msra.mxu0 %v12986_v23  ;;  %10935 = vmatprep.subr.bf16.mxu1 %v12741_v24  ;;  %v12772_v23 = vcombine.low %v296_v2, %v300_v4  ;;  %v13026_v24 = vcombine.low %v551_v5, %v555_v6  ;;  %v13035_v29 = vcombine.high %v559_v16, %v563_v19  ;;  %v1719_v2 = vlaneseq  ;;  %v336_v5 = vld [vmem:[#allocation5 + $0x4d8] sm:$0xff] }
 0x3fe   :  { %10525 = vmatprep.subr.bf16.mxu0 %v12995_v27  ;;  %v12781_v27 = vcombine.high %v304_v12, %v308_v15  ;;  %v340_v6 = vld [vmem:[#allocation5 + $0x4f8] sm:$0xff] }
 0x400   :  { %10936 = vmatpush1.bf16.msra.mxu1 %v12740_v35  ;;  %v571_v35 = vld [vmem:[#allocation5 + $0xc30] sm:$0xff] }
 0x401   :  { %10526 = vmatpush1.bf16.msra.mxu0 %v12994_v37  ;;  %10937 = vmatprep.subr.bf16.mxu1 %v12749_v40  ;;  %v12780_v37 = vcombine.low %v304_v12, %v308_v15  ;;  %v13034_v40 = vcombine.low %v559_v16, %v563_v19  ;;  %v13043_v42 = vcombine.high %v567_v34, %v571_v35  ;;  %v15257_v12 = vshrl.u32 %v1719_v2, 7  ;;  %v344_v16 = vld [vmem:[#allocation5 + $0x518] sm:$0xff] }
 0x402   :  { %10527 = vmatprep.subr.bf16.mxu0 %v13003_v41  ;;  %v12789_v41 = vcombine.high %v312_v31, %v316_v33  ;;  %v348_v19 = vld [vmem:[#allocation5 + $0x538] sm:$0xff] }
 0x403   :  { %v368_v2 = vld [vmem:[#allocation5 + $0x5d8] sm:$0xff] }
 0x404   :  { %10938 = vmatpush1.bf16.msra.mxu1 %v12748_v48  ;;  %v579_v48 = vld [vmem:[#allocation5 + $0xc70] sm:$0xff] }
 0x405   :  { %10528 = vmatpush1.bf16.msra.mxu0 %v13002_v49  ;;  %10939 = vmatprep.subr.bf16.mxu1 %v12757_v50  ;;  %v12788_v49 = vcombine.low %v312_v31, %v316_v33  ;;  %v13042_v50 = vcombine.low %v567_v34, %v571_v35  ;;  %v13051_v53 = vcombine.high %v575_v46, %v579_v48  ;;  %v15260_v31 = vsub.s32 0, %v15257_v12  ;;  %v352_v34 = vld [vmem:[#allocation5 + $0x558] sm:$0xff] }
 0x406   :  { %10529 = vmatprep.subr.bf16.mxu0 %v13011_v52  ;;  %v12797_v52 = vcombine.high %v320_v43, %v324_v45  ;;  %v356_v35 = vld [vmem:[#allocation5 + $0x578] sm:$0xff] }
 0x408   :  { %10940 = vmatpush1.bf16.msra.mxu1 %v12756_v60  ;;  %v587_v60 = vld [vmem:[#allocation5 + $0xcb0] sm:$0xff] }
 0x409   :  { %10530 = vmatpush1.bf16.msra.mxu0 %v13010_v63  ;;  %10941 = vmatprep.subr.bf16.mxu1 %v12765_v0  ;;  %v12796_v63 = vcombine.low %v320_v43, %v324_v45  ;;  %v13050_v0 = vcombine.low %v575_v46, %v579_v48  ;;  %v13059_v4 = vcombine.high %v583_v57, %v587_v60 }
 0x40a   :  { %10531 = vmatprep.subr.bf16.mxu0 %v13019_v1  ;;  %v12805_v1 = vcombine.high %v328_v55, %v332_v56  ;;  %v12820_v43 = vcombine.low %v344_v16, %v348_v19  ;;  %v12829_v46 = vcombine.high %v352_v34, %v356_v35 }
 0x40c   :  { %10942 = vmatpush1.bf16.msra.mxu1 %v12764_v8  ;;  %v591_v8 = vld [vmem:[#allocation5 + $0xcd0] sm:$0xff] }
 0x40d   :  { %10532 = vmatpush1.bf16.msra.mxu0 %v13018_v58  ;;  %10943 = vmatprep.subr.bf16.mxu1 %v12773_v9  ;;  %v595_v58 = vld [vmem:[#allocation5 + $0xcf0] sm:$0xff]  ;;  %v13058_v9 = vcombine.low %v583_v57, %v587_v60  ;;  %v12828_v57 = vcombine.low %v352_v34, %v356_v35 }
 0x40e   :  { %10533 = vmatprep.subr.bf16.mxu0 %v13027_v10  ;;  %v12813_v10 = vcombine.high %v336_v5, %v340_v6  ;;  %v13067_v15 = vcombine.high %v591_v8, %v595_v58 }
 0x410   :  { %10944 = vmatpush1.bf16.msra.mxu1 %v12772_v23  ;;  %v599_v23 = vld [vmem:[#allocation5 + $0xd10] sm:$0xff] }
 0x411   :  { %10534 = vmatpush1.bf16.msra.mxu0 %v13026_v24  ;;  %10945 = vmatprep.subr.bf16.mxu1 %v12781_v27  ;;  %v603_v24 = vld [vmem:[#allocation5 + $0xd30] sm:$0xff]  ;;  %v12812_v27 = vcombine.low %v336_v5, %v340_v6 }
 0x412   :  { %10535 = vmatprep.subr.bf16.mxu0 %v13035_v29  ;;  %v13066_v29 = vcombine.low %v591_v8, %v595_v58  ;;  %v13075_v33 = vcombine.high %v599_v23, %v603_v24  ;;  %v13074_v45 = vcombine.low %v599_v23, %v603_v24  ;;  %v623_v8 = vld [vmem:[#allocation5 + $0xdd0] sm:$0xff] }
 0x413   :  { %v627_v58 = vld [vmem:[#allocation5 + $0xdf0] sm:$0xff] }
 0x414   :  { %10946 = vmatpush1.bf16.msra.mxu1 %v12780_v37  ;;  %v1717_v37 = vld [vmem:[#allocation7] sm:$0xff]  ;;  %v13099_v24 = vcombine.high %v623_v8, %v627_v58  ;;  %v13098_v34 = vcombine.low %v623_v8, %v627_v58 }
 0x415   :  { %10536 = vmatpush1.bf16.msra.mxu0 %v13034_v40  ;;  %10956 = vmatprep.subr.bf16.mxu1 %v12789_v41  ;;  %v15263_v40 = vsub.s32 1, %v15257_v12  ;;  %v607_v41 = vld [vmem:[#allocation5 + $0xd50] sm:$0xff]  ;;  %v1722_v48 = vrot.slane %v1717_v37, %v15260_v31 }
 0x416   :  { %10546 = vmatprep.subr.bf16.mxu0 %v13043_v42  ;;  %v611_v42 = vld [vmem:[#allocation5 + $0xd70] sm:$0xff] }
 0x417   :  { %10948 = vmatmul.mubr.bf16.vlgmr.msra.gmra.mrb[8].mxu1 %v15153_v17  ;;  %v12804_v17 = vcombine.low %v328_v55, %v332_v56  ;;  %v615_v55 = vld [vmem:[#allocation5 + $0xd90] sm:$0xff]  ;;  %v13082_v60 = vcombine.low %v607_v41, %v611_v42 }
 0x418   :  { %10538 = vmatmul.mubr.bf16.vlgmr.msra.gmra.mrb[4].mxu0 %v15163_v36  ;;  %10957 = vmatpush1.bf16.msra.mxu1 %v12788_v49  ;;  %v13083_v49 = vcombine.high %v607_v41, %v611_v42  ;;  %v619_v56 = vld [vmem:[#allocation5 + $0xdb0] sm:$0xff]  ;;  %v384_v41 = vld [vmem:[#allocation5 + $0x658] sm:$0xff] }
 0x419   :  { %10547 = vmatpush1.bf16.msra.mxu0 %v13042_v50  ;;  %10958 = vmatprep.subr.bf16.mxu1 %v12797_v52  ;;  %v360_v50 = vld [vmem:[#allocation5 + $0x598] sm:$0xff] }
 0x41a   :  { %10548 = vmatprep.subr.bf16.mxu0 %v13051_v53  ;;  %10578 = vmatprep.mubr.bf16.mxu0 %v15165_v44  ;;  %v364_v52 = vld [vmem:[#allocation5 + $0x5b8] sm:$0xff]  ;;  %v1726_v53 = vrot.slane %v1717_v37, %v15263_v40 }
 0x41b   :  { %10988 = vmatprep.mubr.bf16.mxu1 %v15149_v62  ;;  %v12821_v62 = vcombine.high %v344_v16, %v348_v19  ;;  %v13090_v19 = vcombine.low %v615_v55, %v619_v56  ;;  %v388_v42 = vld [vmem:[#allocation5 + $0x678] sm:$0xff] }
 0x41c   :  { %10959 = vmatpush1.bf16.msra.mxu1 %v12796_v63  ;;  %v12837_v63 = vcombine.high %v360_v50, %v364_v52  ;;  %v9476_v5 = vadd.f32 %v15189_v7, %v1726_v53  ;;  %v380_v7 = vld [vmem:[#allocation5 + $0x638] sm:$0xff] }
 0x41d   :  { %10549 = vmatpush1.bf16.msra.mxu0 %v13050_v0  ;;  %10960 = vmatprep.subr.bf16.mxu1 %v12805_v1  ;;  %v9474_v0 = vadd.f32 %v15187_v3, %v1722_v48  ;;  %v13091_v1 = vcombine.high %v615_v55, %v619_v56  ;;  %v396_v53 = vld [vmem:[#allocation5 + $0x6b8] sm:$0xff]  ;;  %v647_v55 = vld [vmem:[#allocation5 + $0xe90] sm:$0xff] }
 0x41e   :  { %10550 = vmatprep.subr.bf16.mxu0 %v13059_v4  ;;  %v372_v4 = vld [vmem:[#allocation5 + $0x5f8] sm:$0xff]  ;;  %v651_v56 = vld [vmem:[#allocation5 + $0xeb0] sm:$0xff] }
 0x41f   :  { %v12845_v3 = vcombine.high %v368_v2, %v372_v4  ;;  %v13122_v8 = vcombine.low %v647_v55, %v651_v56 }
 0x420   :  { %10961 = vmatpush1.bf16.msra.mxu1 %v12804_v17 }
 0x421   :  { %10551 = vmatpush1.bf16.msra.mxu0 %v13058_v9  ;;  %10962 = vmatprep.subr.bf16.mxu1 %v12813_v10  ;;  %v12836_v10 = vcombine.low %v360_v50, %v364_v52  ;;  %v392_v52 = vld [vmem:[#allocation5 + $0x698] sm:$0xff] }
 0x422   :  { %10552 = vmatprep.subr.bf16.mxu0 %v13067_v15 }
 0x424   :  { %10963 = vmatpush1.bf16.msra.mxu1 %v12812_v27  ;;  %v376_v27 = vld [vmem:[#allocation5 + $0x618] sm:$0xff] }
 0x425   :  { %10553 = vmatpush1.bf16.msra.mxu0 %v13066_v29  ;;  %10964 = vmatprep.subr.bf16.mxu1 %v12821_v62  ;;  %v631_v29 = vld [vmem:[#allocation5 + $0xe10] sm:$0xff]  ;;  %v12853_v35 = vcombine.high %v376_v27, %v380_v7 }
 0x426   :  { %10554 = vmatprep.subr.bf16.mxu0 %v13075_v33  ;;  %v635_v62 = vld [vmem:[#allocation5 + $0xe30] sm:$0xff]  ;;  %v12844_v33 = vcombine.low %v368_v2, %v372_v4  ;;  %v404_v2 = vld [vmem:[#allocation5 + $0x6f8] sm:$0xff] }
 0x427   :  { %v13107_v37 = vcombine.high %v631_v29, %v635_v62  ;;  %v13106_v48 = vcombine.low %v631_v29, %v635_v62  ;;  %v655_v4 = vld [vmem:[#allocation5 + $0xed0] sm:$0xff]  ;;  %v416_v29 = vld [vmem:[#allocation5 + $0x758] sm:$0xff] }
 0x428   :  { %10965 = vmatpush1.bf16.msra.mxu1 %v12820_v43  ;;  %v639_v43 = vld [vmem:[#allocation5 + $0xe50] sm:$0xff]  ;;  %v420_v62 = vld [vmem:[#allocation5 + $0x778] sm:$0xff] }
 0x429   :  { %10555 = vmatpush1.bf16.msra.mxu0 %v13074_v45  ;;  %10966 = vmatprep.subr.bf16.mxu1 %v12829_v46  ;;  %v643_v45 = vld [vmem:[#allocation5 + $0xe70] sm:$0xff]  ;;  %v12852_v46 = vcombine.low %v376_v27, %v380_v7 }
 0x42a   :  { %10556 = vmatprep.subr.bf16.mxu0 %v13083_v49  ;;  %v12861_v49 = vcombine.high %v384_v41, %v388_v42  ;;  %v13115_v50 = vcombine.high %v639_v43, %v643_v45 }
 0x42b   :  { %v9924_v6 = vpop.f32.mrb[0].mxu0 }
 0x42c   :  { %v15269_v17 = vadd.f32 %v9924_v6, %v9474_v0  ;;  %v9926_v9 = vpop.f32.mrb[1].mxu0  ;;  %10967 = vmatpush1.bf16.msra.mxu1 %v12828_v57  ;;  %v12860_v57 = vcombine.low %v384_v41, %v388_v42  ;;  %v13123_v0 = vcombine.high %v647_v55, %v651_v56  ;;  %v12868_v6 = vcombine.low %v392_v52, %v396_v53  ;;  %v432_v55 = vld [vmem:[#allocation5 + $0x7d8] sm:$0xff] }
 0x42d   :  { %v15271_v15 = vadd.f32 %v9926_v9, %v9476_v5  ;;  %v9928_v16 = vpop.f32.mrb[2].mxu0  ;;  %10557 = vmatpush1.bf16.msra.mxu0 %v13082_v60  ;;  %10968 = vmatprep.subr.bf16.mxu1 %v12837_v63  ;;  %v13114_v60 = vcombine.low %v639_v43, %v643_v45  ;;  %v12869_v63 = vcombine.high %v392_v52, %v396_v53  ;;  %v659_v5 = vld [vmem:[#allocation5 + $0xef0] sm:$0xff]  ;;  %v424_v43 = vld [vmem:[#allocation5 + $0x798] sm:$0xff] }
 0x42e   :  { %v9929_v23 = vpop.f32.mrb[3].mxu0  ;;  %10558 = vmatprep.subr.bf16.mxu0 %v13091_v1  ;;  %v400_v1 = vld [vmem:[#allocation5 + $0x6d8] sm:$0xff]  ;;  %v13131_v9 = vcombine.high %v655_v4, %v659_v5  ;;  %v12893_v41 = vcombine.high %v416_v29, %v420_v62 }
 0x42f   :  { %v12877_v58 = vcombine.high %v400_v1, %v404_v2  ;;  %v412_v16 = vld [vmem:[#allocation5 + $0x738] sm:$0xff]  ;;  %v12876_v23 = vcombine.low %v400_v1, %v404_v2 }
 0x430   :  { %10969 = vmatpush1.bf16.msra.mxu1 %v12836_v10  ;;  %v408_v10 = vld [vmem:[#allocation5 + $0x718] sm:$0xff] }
 0x431   :  { %10559 = vmatpush1.bf16.msra.mxu0 %v13090_v19  ;;  %10970 = vmatprep.subr.bf16.mxu1 %v12845_v3  ;;  %v663_v19 = vld [vmem:[#allocation5 + $0xf10] sm:$0xff]  ;;  %v12885_v27 = vcombine.high %v408_v10, %v412_v16  ;;  %v428_v45 = vld [vmem:[#allocation5 + $0x7b8] sm:$0xff] }
 0x432   :  { %10560 = vmatprep.subr.bf16.mxu0 %v13099_v24  ;;  %v667_v3 = vld [vmem:[#allocation5 + $0xf30] sm:$0xff]  ;;  %v13130_v24 = vcombine.low %v655_v4, %v659_v5  ;;  %v12901_v52 = vcombine.high %v424_v43, %v428_v45  ;;  %v436_v56 = vld [vmem:[#allocation5 + $0x7f8] sm:$0xff] }
 0x433   :  { %v13139_v7 = vcombine.high %v663_v19, %v667_v3  ;;  %v12909_v1 = vcombine.high %v432_v55, %v436_v56  ;;  %v440_v4 = vld [vmem:[#allocation5 + $0x818] sm:$0xff] }
 0x434   :  { %10971 = vmatpush1.bf16.msra.mxu1 %v12844_v33  ;;  %v671_v33 = vld [vmem:[#allocation5 + $0xf50] sm:$0xff]  ;;  %v444_v5 = vld [vmem:[#allocation5 + $0x838] sm:$0xff] }
 0x435   :  { %10561 = vmatpush1.bf16.msra.mxu0 %v13098_v34  ;;  %10972 = vmatprep.subr.bf16.mxu1 %v12853_v35  ;;  %v675_v34 = vld [vmem:[#allocation5 + $0xf70] sm:$0xff]  ;;  %v12884_v35 = vcombine.low %v408_v10, %v412_v16  ;;  %v12917_v10 = vcombine.high %v440_v4, %v444_v5 }
 0x436   :  { %10562 = vmatprep.subr.bf16.mxu0 %v13107_v37  ;;  %v13138_v37 = vcombine.low %v663_v19, %v667_v3  ;;  %v13147_v42 = vcombine.high %v671_v33, %v675_v34  ;;  %v448_v19 = vld [vmem:[#allocation5 + $0x858] sm:$0xff] }
 0x437   :  { %v452_v3 = vld [vmem:[#allocation5 + $0x878] sm:$0xff] }
 0x438   :  { %10973 = vmatpush1.bf16.msra.mxu1 %v12852_v46  ;;  %v679_v46 = vld [vmem:[#allocation5 + $0xf90] sm:$0xff] }
 0x439   :  { %10563 = vmatpush1.bf16.msra.mxu0 %v13106_v48  ;;  %10974 = vmatprep.subr.bf16.mxu1 %v12861_v49  ;;  %v683_v48 = vld [vmem:[#allocation5 + $0xfb0] sm:$0xff]  ;;  %v12892_v49 = vcombine.low %v416_v29, %v420_v62  ;;  %v12925_v29 = vcombine.high %v448_v19, %v452_v3 }
 0x43a   :  { %10564 = vmatprep.subr.bf16.mxu0 %v13115_v50  ;;  %v13146_v50 = vcombine.low %v671_v33, %v675_v34  ;;  %v13155_v53 = vcombine.high %v679_v46, %v683_v48  ;;  %v456_v33 = vld [vmem:[#allocation5 + $0x898] sm:$0xff] }
 0x43b   :  { %v460_v34 = vld [vmem:[#allocation5 + $0x8b8] sm:$0xff] }
 0x43c   :  { %10975 = vmatpush1.bf16.msra.mxu1 %v12860_v57  ;;  %v687_v57 = vld [vmem:[#allocation5 + $0xfd0] sm:$0xff] }
 0x43d   :  { %10565 = vmatpush1.bf16.msra.mxu0 %v13114_v60  ;;  %10976 = vmatprep.subr.bf16.mxu1 %v12869_v63  ;;  %v691_v60 = vld [vmem:[#allocation5 + $0xff0] sm:$0xff]  ;;  %v12900_v63 = vcombine.low %v424_v43, %v428_v45  ;;  %v12933_v43 = vcombine.high %v456_v33, %v460_v34 }
 0x43e   :  { %10566 = vmatprep.subr.bf16.mxu0 %v13123_v0  ;;  %v13154_v0 = vcombine.low %v679_v46, %v683_v48  ;;  %v13163_v2 = vcombine.high %v687_v57, %v691_v60  ;;  %v464_v46 = vld [vmem:[#allocation5 + $0x8d8] sm:$0xff] }
 0x43f   :  { %v468_v48 = vld [vmem:[#allocation5 + $0x8f8] sm:$0xff] }
 0x440   :  { %10977 = vmatpush1.bf16.msra.mxu1 %v12868_v6  ;;  %v695_v6 = vld [vmem:[#allocation5 + $0x1010] sm:$0xff] }
 0x441   :  { %10567 = vmatpush1.bf16.msra.mxu0 %v13122_v8  ;;  %10978 = vmatprep.subr.bf16.mxu1 %v12877_v58  ;;  %v699_v8 = vld [vmem:[#allocation5 + $0x1030] sm:$0xff]  ;;  %v12908_v58 = vcombine.low %v432_v55, %v436_v56  ;;  %v472_v56 = vld [vmem:[#allocation5 + $0x918] sm:$0xff] }
 0x442   :  { %10568 = vmatprep.subr.bf16.mxu0 %v13131_v9  ;;  %v13162_v9 = vcombine.low %v687_v57, %v691_v60  ;;  %v13171_v16 = vcombine.high %v695_v6, %v699_v8  ;;  %v476_v57 = vld [vmem:[#allocation5 + $0x938] sm:$0xff]  ;;  %v727_v60 = vld [vmem:[#allocation5 + $0x1110] sm:$0xff] }
 0x444   :  { %10979 = vmatpush1.bf16.msra.mxu1 %v12876_v23  ;;  %v703_v23 = vld [vmem:[#allocation5 + $0x1050] sm:$0xff] }
 0x445   :  { %10569 = vmatpush1.bf16.msra.mxu0 %v13130_v24  ;;  %10980 = vmatprep.subr.bf16.mxu1 %v12885_v27  ;;  %v707_v24 = vld [vmem:[#allocation5 + $0x1070] sm:$0xff]  ;;  %v12916_v27 = vcombine.low %v440_v4, %v444_v5  ;;  %v480_v4 = vld [vmem:[#allocation5 + $0x958] sm:$0xff] }
 0x446   :  { %10570 = vmatprep.subr.bf16.mxu0 %v13139_v7  ;;  %v13170_v7 = vcombine.low %v695_v6, %v699_v8  ;;  %v13179_v62 = vcombine.high %v703_v23, %v707_v24  ;;  %v484_v5 = vld [vmem:[#allocation5 + $0x978] sm:$0xff]  ;;  %v735_v6 = vld [vmem:[#allocation5 + $0x1150] sm:$0xff] }
 0x447   :  { %v739_v8 = vld [vmem:[#allocation5 + $0x1170] sm:$0xff] }
 0x448   :  { %10981 = vmatpush1.bf16.msra.mxu1 %v12884_v35  ;;  %v711_v35 = vld [vmem:[#allocation5 + $0x1090] sm:$0xff] }
 0x449   :  { %10571 = vmatpush1.bf16.msra.mxu0 %v13138_v37  ;;  %10982 = vmatprep.subr.bf16.mxu1 %v12893_v41  ;;  %v715_v37 = vld [vmem:[#allocation5 + $0x10b0] sm:$0xff]  ;;  %v12924_v41 = vcombine.low %v448_v19, %v452_v3  ;;  %v488_v19 = vld [vmem:[#allocation5 + $0x998] sm:$0xff] }
 0x44a   :  { %10572 = vmatprep.subr.bf16.mxu0 %v13147_v42  ;;  %v13178_v42 = vcombine.low %v703_v23, %v707_v24  ;;  %v13187_v45 = vcombine.high %v711_v35, %v715_v37  ;;  %v492_v3 = vld [vmem:[#allocation5 + $0x9b8] sm:$0xff]  ;;  %v743_v23 = vld [vmem:[#allocation5 + $0x1190] sm:$0xff] }
 0x44b   :  { %v747_v24 = vld [vmem:[#allocation5 + $0x11b0] sm:$0xff] }
 0x44c   :  { %10983 = vmatpush1.bf16.msra.mxu1 %v12892_v49  ;;  %v719_v49 = vld [vmem:[#allocation5 + $0x10d0] sm:$0xff] }
 0x44d   :  { %10573 = vmatpush1.bf16.msra.mxu0 %v13146_v50  ;;  %10984 = vmatprep.subr.bf16.mxu1 %v12901_v52  ;;  %v723_v50 = vld [vmem:[#allocation5 + $0x10f0] sm:$0xff]  ;;  %v13186_v52 = vcombine.low %v711_v35, %v715_v37 }
 0x44e   :  { %10574 = vmatprep.subr.bf16.mxu0 %v13155_v53  ;;  %v12941_v53 = vcombine.high %v464_v46, %v468_v48  ;;  %v13195_v55 = vcombine.high %v719_v49, %v723_v50  ;;  %v751_v35 = vld [vmem:[#allocation5 + $0x11d0] sm:$0xff] }
 0x44f   :  { %v755_v37 = vld [vmem:[#allocation5 + $0x11f0] sm:$0xff] }
 0x450   :  { %10985 = vmatpush1.bf16.msra.mxu1 %v12900_v63  ;;  %v731_v63 = vld [vmem:[#allocation5 + $0x1130] sm:$0xff] }
 0x451   :  { %10575 = vmatpush1.bf16.msra.mxu0 %v13154_v0  ;;  %10986 = vmatprep.subr.bf16.mxu1 %v12909_v1  ;;  %v12940_v0 = vcombine.low %v464_v46, %v468_v48  ;;  %v13194_v1 = vcombine.low %v719_v49, %v723_v50  ;;  %v504_v46 = vld [vmem:[#allocation5 + $0xa18] sm:$0xff]  ;;  %v759_v49 = vld [vmem:[#allocation5 + $0x1210] sm:$0xff] }
 0x452   :  { %10576 = vmatprep.subr.bf16.mxu0 %v13163_v2  ;;  %v12949_v2 = vcombine.high %v472_v56, %v476_v57  ;;  %v508_v48 = vld [vmem:[#allocation5 + $0xa38] sm:$0xff]  ;;  %v763_v50 = vld [vmem:[#allocation5 + $0x1230] sm:$0xff] }
 0x454   :  { %10987 = vmatpush1.bf16.msra.mxu1 %v12908_v58  ;;  %v12948_v58 = vcombine.low %v472_v56, %v476_v57  ;;  %v512_v56 = vld [vmem:[#allocation5 + $0xa58] sm:$0xff] }
 0x455   :  { %10577 = vmatpush1.bf16.msra.mxu0 %v13162_v9  ;;  %10997 = vmatprep.subr.bf16.mxu1 %v12917_v10  ;;  %v13202_v9 = vcombine.low %v727_v60, %v731_v63  ;;  %v12957_v10 = vcombine.high %v480_v4, %v484_v5  ;;  %v516_v57 = vld [vmem:[#allocation5 + $0xa78] sm:$0xff] }
 0x456   :  { %10587 = vmatprep.subr.bf16.mxu0 %v13171_v16  ;;  %v13211_v16 = vcombine.high %v735_v6, %v739_v8 }
 0x457   :  { %10989 = vmatmul.mubr.bf16.vlgmr.msra.gmra.mrb[8].mxu1 %v15155_v22  ;;  %v12932_v22 = vcombine.low %v456_v33, %v460_v34  ;;  %v496_v33 = vld [vmem:[#allocation5 + $0x9d8] sm:$0xff] }
 0x458   :  { %10579 = vmatmul.mubr.bf16.vlgmr.msra.gmra.mrb[4].mxu0 %v15171_v54  ;;  %10998 = vmatpush1.bf16.msra.mxu1 %v12916_v27  ;;  %v12956_v27 = vcombine.low %v480_v4, %v484_v5  ;;  %v500_v34 = vld [vmem:[#allocation5 + $0x9f8] sm:$0xff] }
 0x459   :  { %10588 = vmatpush1.bf16.msra.mxu0 %v13170_v7  ;;  %10999 = vmatprep.subr.bf16.mxu1 %v12925_v29  ;;  %v13210_v7 = vcombine.low %v735_v6, %v739_v8  ;;  %v12965_v29 = vcombine.high %v488_v19, %v492_v3  ;;  %v520_v4 = vld [vmem:[#allocation5 + $0xa98] sm:$0xff]  ;;  %v775_v6 = vld [vmem:[#allocation5 + $0x1290] sm:$0xff] }
 0x45a   :  { %10589 = vmatprep.subr.bf16.mxu0 %v13179_v62  ;;  %10619 = vmatprep.mubr.bf16.mxu0 %v15173_v61  ;;  %v13219_v62 = vcombine.high %v743_v23, %v747_v24  ;;  %v524_v5 = vld [vmem:[#allocation5 + $0xab8] sm:$0xff]  ;;  %v779_v8 = vld [vmem:[#allocation5 + $0x12b0] sm:$0xff] }
 0x45b   :  { %11029 = vmatprep.mubr.bf16.mxu1 %v15157_v28  ;;  %v13203_v28 = vcombine.high %v727_v60, %v731_v63  ;;  %v767_v60 = vld [vmem:[#allocation5 + $0x1250] sm:$0xff] }
 0x45c   :  { %11000 = vmatpush1.bf16.msra.mxu1 %v12924_v41  ;;  %v12964_v41 = vcombine.low %v488_v19, %v492_v3  ;;  %v771_v63 = vld [vmem:[#allocation5 + $0x1270] sm:$0xff]  ;;  %v528_v19 = vld [vmem:[#allocation5 + $0xad8] sm:$0xff] }
 0x45d   :  { %10590 = vmatpush1.bf16.msra.mxu0 %v13178_v42  ;;  %11001 = vmatprep.subr.bf16.mxu1 %v12933_v43  ;;  %v13218_v42 = vcombine.low %v743_v23, %v747_v24  ;;  %v12973_v43 = vcombine.high %v496_v33, %v500_v34  ;;  %v532_v3 = vld [vmem:[#allocation5 + $0xaf8] sm:$0xff]  ;;  %v783_v23 = vld [vmem:[#allocation5 + $0x12d0] sm:$0xff] }
 0x45e   :  { %10591 = vmatprep.subr.bf16.mxu0 %v13187_v45  ;;  %v13227_v45 = vcombine.high %v751_v35, %v755_v37  ;;  %v787_v24 = vld [vmem:[#allocation5 + $0x12f0] sm:$0xff] }
 0x460   :  { %11002 = vmatpush1.bf16.msra.mxu1 %v12932_v22  ;;  %v12972_v22 = vcombine.low %v496_v33, %v500_v34  ;;  %v536_v33 = vld [vmem:[#allocation5 + $0xb18] sm:$0xff] }
 0x461   :  { %10592 = vmatpush1.bf16.msra.mxu0 %v13186_v52  ;;  %11003 = vmatprep.subr.bf16.mxu1 %v12941_v53  ;;  %v13226_v52 = vcombine.low %v751_v35, %v755_v37  ;;  %v12981_v53 = vcombine.high %v504_v46, %v508_v48  ;;  %v540_v34 = vld [vmem:[#allocation5 + $0xb38] sm:$0xff]  ;;  %v791_v35 = vld [vmem:[#allocation5 + $0x1310] sm:$0xff] }
 0x462   :  { %10593 = vmatprep.subr.bf16.mxu0 %v13195_v55  ;;  %v13235_v55 = vcombine.high %v759_v49, %v763_v50  ;;  %v795_v37 = vld [vmem:[#allocation5 + $0x1330] sm:$0xff] }
 0x464   :  { %11004 = vmatpush1.bf16.msra.mxu1 %v12940_v0  ;;  %v12980_v0 = vcombine.low %v504_v46, %v508_v48  ;;  %v544_v46 = vld [vmem:[#allocation5 + $0xb58] sm:$0xff] }
 0x465   :  { %10594 = vmatpush1.bf16.msra.mxu0 %v13194_v1  ;;  %11005 = vmatprep.subr.bf16.mxu1 %v12949_v2  ;;  %v13234_v1 = vcombine.low %v759_v49, %v763_v50  ;;  %v12989_v2 = vcombine.high %v512_v56, %v516_v57  ;;  %v548_v48 = vld [vmem:[#allocation5 + $0xb78] sm:$0xff]  ;;  %v799_v49 = vld [vmem:[#allocation5 + $0x1350] sm:$0xff] }
 0x466   :  { %10595 = vmatprep.subr.bf16.mxu0 %v13203_v28  ;;  %v13243_v28 = vcombine.high %v767_v60, %v771_v63  ;;  %v803_v50 = vld [vmem:[#allocation5 + $0x1370] sm:$0xff] }
 0x468   :  { %11006 = vmatpush1.bf16.msra.mxu1 %v12948_v58  ;;  %v12988_v58 = vcombine.low %v512_v56, %v516_v57  ;;  %v552_v56 = vld [vmem:[#allocation5 + $0xb98] sm:$0xff] }
 0x469   :  { %10596 = vmatpush1.bf16.msra.mxu0 %v13202_v9  ;;  %11007 = vmatprep.subr.bf16.mxu1 %v12957_v10  ;;  %v13242_v9 = vcombine.low %v767_v60, %v771_v63  ;;  %v12997_v10 = vcombine.high %v520_v4, %v524_v5  ;;  %v556_v57 = vld [vmem:[#allocation5 + $0xbb8] sm:$0xff]  ;;  %v807_v60 = vld [vmem:[#allocation5 + $0x1390] sm:$0xff] }
 0x46a   :  { %10597 = vmatprep.subr.bf16.mxu0 %v13211_v16  ;;  %v13251_v16 = vcombine.high %v775_v6, %v779_v8  ;;  %v811_v63 = vld [vmem:[#allocation5 + $0x13b0] sm:$0xff] }
 0x46c   :  { %11008 = vmatpush1.bf16.msra.mxu1 %v12956_v27  ;;  %v12996_v27 = vcombine.low %v520_v4, %v524_v5  ;;  %v560_v4 = vld [vmem:[#allocation5 + $0xbd8] sm:$0xff] }
 0x46d   :  { %10598 = vmatpush1.bf16.msra.mxu0 %v13210_v7  ;;  %11009 = vmatprep.subr.bf16.mxu1 %v12965_v29  ;;  %v13250_v7 = vcombine.low %v775_v6, %v779_v8  ;;  %v13005_v29 = vcombine.high %v528_v19, %v532_v3  ;;  %v564_v5 = vld [vmem:[#allocation5 + $0xbf8] sm:$0xff]  ;;  %v815_v6 = vld [vmem:[#allocation5 + $0x13d0] sm:$0xff] }
 0x46e   :  { %10599 = vmatprep.subr.bf16.mxu0 %v13219_v62  ;;  %v13259_v62 = vcombine.high %v783_v23, %v787_v24  ;;  %v819_v8 = vld [vmem:[#allocation5 + $0x13f0] sm:$0xff] }
 0x470   :  { %11010 = vmatpush1.bf16.msra.mxu1 %v12964_v41  ;;  %v13004_v41 = vcombine.low %v528_v19, %v532_v3  ;;  %v568_v19 = vld [vmem:[#allocation5 + $0xc18] sm:$0xff] }
 0x471   :  { %10600 = vmatpush1.bf16.msra.mxu0 %v13218_v42  ;;  %11011 = vmatprep.subr.bf16.mxu1 %v12973_v43  ;;  %v13258_v42 = vcombine.low %v783_v23, %v787_v24  ;;  %v13013_v43 = vcombine.high %v536_v33, %v540_v34  ;;  %v572_v3 = vld [vmem:[#allocation5 + $0xc38] sm:$0xff]  ;;  %v823_v23 = vld [vmem:[#allocation5 + $0x1410] sm:$0xff] }
 0x472   :  { %10601 = vmatprep.subr.bf16.mxu0 %v13227_v45  ;;  %v13267_v45 = vcombine.high %v791_v35, %v795_v37  ;;  %v827_v24 = vld [vmem:[#allocation5 + $0x1430] sm:$0xff] }
 0x474   :  { %11012 = vmatpush1.bf16.msra.mxu1 %v12972_v22  ;;  %v13012_v22 = vcombine.low %v536_v33, %v540_v34  ;;  %v576_v33 = vld [vmem:[#allocation5 + $0xc58] sm:$0xff] }
 0x475   :  { %10602 = vmatpush1.bf16.msra.mxu0 %v13226_v52  ;;  %11013 = vmatprep.subr.bf16.mxu1 %v12981_v53  ;;  %v13266_v52 = vcombine.low %v791_v35, %v795_v37  ;;  %v13021_v53 = vcombine.high %v544_v46, %v548_v48  ;;  %v580_v34 = vld [vmem:[#allocation5 + $0xc78] sm:$0xff]  ;;  %v831_v35 = vld [vmem:[#allocation5 + $0x1450] sm:$0xff] }
 0x476   :  { %10603 = vmatprep.subr.bf16.mxu0 %v13235_v55  ;;  %v13275_v55 = vcombine.high %v799_v49, %v803_v50  ;;  %v835_v37 = vld [vmem:[#allocation5 + $0x1470] sm:$0xff] }
 0x478   :  { %11014 = vmatpush1.bf16.msra.mxu1 %v12980_v0  ;;  %v13020_v0 = vcombine.low %v544_v46, %v548_v48  ;;  %v584_v46 = vld [vmem:[#allocation5 + $0xc98] sm:$0xff] }
 0x479   :  { %10604 = vmatpush1.bf16.msra.mxu0 %v13234_v1  ;;  %11015 = vmatprep.subr.bf16.mxu1 %v12989_v2  ;;  %v13274_v1 = vcombine.low %v799_v49, %v803_v50  ;;  %v13029_v2 = vcombine.high %v552_v56, %v556_v57  ;;  %v588_v48 = vld [vmem:[#allocation5 + $0xcb8] sm:$0xff]  ;;  %v839_v49 = vld [vmem:[#allocation5 + $0x1490] sm:$0xff] }
 0x47a   :  { %10605 = vmatprep.subr.bf16.mxu0 %v13243_v28  ;;  %v13283_v28 = vcombine.high %v807_v60, %v811_v63  ;;  %v843_v50 = vld [vmem:[#allocation5 + $0x14b0] sm:$0xff] }
 0x47c   :  { %11016 = vmatpush1.bf16.msra.mxu1 %v12988_v58  ;;  %v13028_v58 = vcombine.low %v552_v56, %v556_v57  ;;  %v592_v56 = vld [vmem:[#allocation5 + $0xcd8] sm:$0xff] }
 0x47d   :  { %10606 = vmatpush1.bf16.msra.mxu0 %v13242_v9  ;;  %11017 = vmatprep.subr.bf16.mxu1 %v12997_v10  ;;  %v13282_v9 = vcombine.low %v807_v60, %v811_v63  ;;  %v13037_v10 = vcombine.high %v560_v4, %v564_v5  ;;  %v596_v57 = vld [vmem:[#allocation5 + $0xcf8] sm:$0xff]  ;;  %v847_v60 = vld [vmem:[#allocation5 + $0x14d0] sm:$0xff] }
 0x47e   :  { %10607 = vmatprep.subr.bf16.mxu0 %v13251_v16  ;;  %v13291_v16 = vcombine.high %v815_v6, %v819_v8  ;;  %v851_v63 = vld [vmem:[#allocation5 + $0x14f0] sm:$0xff] }
 0x480   :  { %11018 = vmatpush1.bf16.msra.mxu1 %v12996_v27  ;;  %v13036_v27 = vcombine.low %v560_v4, %v564_v5  ;;  %v604_v4 = vld [vmem:[#allocation5 + $0xd38] sm:$0xff]  ;;  %v855_v5 = vld [vmem:[#allocation5 + $0x1510] sm:$0xff] }
 0x481   :  { %10608 = vmatpush1.bf16.msra.mxu0 %v13250_v7  ;;  %11019 = vmatprep.subr.bf16.mxu1 %v13005_v29  ;;  %v13290_v7 = vcombine.low %v815_v6, %v819_v8  ;;  %v13045_v29 = vcombine.high %v568_v19, %v572_v3  ;;  %v859_v6 = vld [vmem:[#allocation5 + $0x1530] sm:$0xff]  ;;  %v13068_v8 = vcombine.low %v592_v56, %v596_v57 }
 0x482   :  { %10609 = vmatprep.subr.bf16.mxu0 %v13259_v62  ;;  %v13299_v62 = vcombine.high %v823_v23, %v827_v24 }
 0x484   :  { %11020 = vmatpush1.bf16.msra.mxu1 %v13004_v41  ;;  %v13044_v41 = vcombine.low %v568_v19, %v572_v3  ;;  %v863_v19 = vld [vmem:[#allocation5 + $0x1550] sm:$0xff] }
 0x485   :  { %10610 = vmatpush1.bf16.msra.mxu0 %v13258_v42  ;;  %11021 = vmatprep.subr.bf16.mxu1 %v13013_v43  ;;  %v13298_v42 = vcombine.low %v823_v23, %v827_v24  ;;  %v13053_v43 = vcombine.high %v576_v33, %v580_v34  ;;  %v867_v3 = vld [vmem:[#allocation5 + $0x1570] sm:$0xff]  ;;  %v13330_v24 = vcombine.low %v855_v5, %v859_v6 }
 0x486   :  { %10611 = vmatprep.subr.bf16.mxu0 %v13267_v45  ;;  %v13307_v45 = vcombine.high %v831_v35, %v835_v37 }
 0x488   :  { %11022 = vmatpush1.bf16.msra.mxu1 %v13012_v22  ;;  %v13052_v22 = vcombine.low %v576_v33, %v580_v34  ;;  %v871_v33 = vld [vmem:[#allocation5 + $0x1590] sm:$0xff] }
 0x489   :  { %10612 = vmatpush1.bf16.msra.mxu0 %v13266_v52  ;;  %11023 = vmatprep.subr.bf16.mxu1 %v13021_v53  ;;  %v13306_v52 = vcombine.low %v831_v35, %v835_v37  ;;  %v13061_v53 = vcombine.high %v584_v46, %v588_v48  ;;  %v875_v34 = vld [vmem:[#allocation5 + $0x15b0] sm:$0xff]  ;;  %v13338_v37 = vcombine.low %v863_v19, %v867_v3 }
 0x48a   :  { %10613 = vmatprep.subr.bf16.mxu0 %v13275_v55  ;;  %v13315_v55 = vcombine.high %v839_v49, %v843_v50 }
 0x48c   :  { %11024 = vmatpush1.bf16.msra.mxu1 %v13020_v0  ;;  %v13314_v0 = vcombine.low %v839_v49, %v843_v50  ;;  %v879_v49 = vld [vmem:[#allocation5 + $0x15d0] sm:$0xff] }
 0x48d   :  { %10614 = vmatpush1.bf16.msra.mxu0 %v13274_v1  ;;  %11025 = vmatprep.subr.bf16.mxu1 %v13029_v2  ;;  %v13069_v1 = vcombine.high %v592_v56, %v596_v57  ;;  %v13323_v2 = vcombine.high %v847_v60, %v851_v63  ;;  %v883_v50 = vld [vmem:[#allocation5 + $0x15f0] sm:$0xff] }
 0x48e   :  { %10615 = vmatprep.subr.bf16.mxu0 %v13283_v28  ;;  %v600_v28 = vld [vmem:[#allocation5 + $0xd18] sm:$0xff]  ;;  %v13355_v57 = vcombine.high %v879_v49, %v883_v50 }
 0x48f   :  { %v13076_v23 = vcombine.low %v600_v28, %v604_v4 }
 0x490   :  { %11026 = vmatpush1.bf16.msra.mxu1 %v13028_v58  ;;  %v13322_v58 = vcombine.low %v847_v60, %v851_v63  ;;  %v632_v60 = vld [vmem:[#allocation5 + $0xe18] sm:$0xff] }
 0x491   :  { %10616 = vmatpush1.bf16.msra.mxu0 %v13282_v9  ;;  %11027 = vmatprep.subr.bf16.mxu1 %v13037_v10  ;;  %v13077_v9 = vcombine.high %v600_v28, %v604_v4  ;;  %v608_v10 = vld [vmem:[#allocation5 + $0xd58] sm:$0xff] }
 0x492   :  { %10617 = vmatprep.subr.bf16.mxu0 %v13291_v16  ;;  %v612_v16 = vld [vmem:[#allocation5 + $0xd78] sm:$0xff] }
 0x493   :  { %v13084_v35 = vcombine.low %v608_v10, %v612_v16  ;;  %v636_v63 = vld [vmem:[#allocation5 + $0xe38] sm:$0xff] }
 0x494   :  { %11028 = vmatpush1.bf16.msra.mxu1 %v13036_v27  ;;  %v13085_v27 = vcombine.high %v608_v10, %v612_v16  ;;  %v13109_v28 = vcombine.high %v632_v60, %v636_v63 }
 0x495   :  { %10618 = vmatpush1.bf16.msra.mxu0 %v13290_v7  ;;  %11038 = vmatprep.subr.bf16.mxu1 %v13045_v29  ;;  %v13339_v7 = vcombine.high %v863_v19, %v867_v3  ;;  %v616_v29 = vld [vmem:[#allocation5 + $0xd98] sm:$0xff] }
 0x496   :  { %10628 = vmatprep.subr.bf16.mxu0 %v13299_v62  ;;  %v620_v62 = vld [vmem:[#allocation5 + $0xdb8] sm:$0xff] }
 0x497   :  { %11030 = vmatmul.mubr.bf16.vlgmr.msra.gmra.mrb[8].mxu1 %v15163_v36  ;;  %v13060_v36 = vcombine.low %v584_v46, %v588_v48  ;;  %v628_v46 = vld [vmem:[#allocation5 + $0xdf8] sm:$0xff] }
 0x498   :  { %10620 = vmatmul.mubr.bf16.vlgmr.msra.gmra.mrb[4].mxu0 %v15179_v14  ;;  %11039 = vmatpush1.bf16.msra.mxu1 %v13044_v41  ;;  %v13093_v41 = vcombine.high %v616_v29, %v620_v62  ;;  %v648_v19 = vld [vmem:[#allocation5 + $0xe98] sm:$0xff] }
 0x499   :  { %10629 = vmatpush1.bf16.msra.mxu0 %v13298_v42  ;;  %11040 = vmatprep.subr.bf16.mxu1 %v13053_v43  ;;  %v13347_v43 = vcombine.high %v871_v33, %v875_v34  ;;  %v652_v3 = vld [vmem:[#allocation5 + $0xeb8] sm:$0xff] }
 0x49a   :  { %10630 = vmatprep.subr.bf16.mxu0 %v13307_v45  ;;  %10660 = vmatprep.mubr.bf16.mxu0 %v15181_v21  ;;  %v624_v45 = vld [vmem:[#allocation5 + $0xdd8] sm:$0xff] }
 0x49b   :  { %11070 = vmatprep.mubr.bf16.mxu1 %v15165_v44  ;;  %v13331_v44 = vcombine.high %v855_v5, %v859_v6  ;;  %v13101_v56 = vcombine.high %v624_v45, %v628_v46  ;;  %v640_v5 = vld [vmem:[#allocation5 + $0xe58] sm:$0xff] }
 0x49c   :  { %11041 = vmatpush1.bf16.msra.mxu1 %v13052_v22  ;;  %v644_v6 = vld [vmem:[#allocation5 + $0xe78] sm:$0xff] }
 0x49d   :  { %10631 = vmatpush1.bf16.msra.mxu0 %v13306_v52  ;;  %11042 = vmatprep.subr.bf16.mxu1 %v13061_v53  ;;  %v13092_v52 = vcombine.low %v616_v29, %v620_v62  ;;  %v13117_v10 = vcombine.high %v640_v5, %v644_v6  ;;  %v13125_v29 = vcombine.high %v648_v19, %v652_v3 }
 0x49e   :  { %10632 = vmatprep.subr.bf16.mxu0 %v13315_v55  ;;  %v13346_v55 = vcombine.low %v871_v33, %v875_v34  ;;  %v656_v33 = vld [vmem:[#allocation5 + $0xed8] sm:$0xff] }
 0x49f   :  { %v660_v34 = vld [vmem:[#allocation5 + $0xef8] sm:$0xff] }
 0x4a0   :  { %11043 = vmatpush1.bf16.msra.mxu1 %v13060_v36  ;;  %v887_v36 = vld [vmem:[#allocation5 + $0x1610] sm:$0xff] }
 0x4a1   :  { %10633 = vmatpush1.bf16.msra.mxu0 %v13314_v0  ;;  %11044 = vmatprep.subr.bf16.mxu1 %v13069_v1  ;;  %v891_v0 = vld [vmem:[#allocation5 + $0x1630] sm:$0xff]  ;;  %v13100_v1 = vcombine.low %v624_v45, %v628_v46  ;;  %v13133_v45 = vcombine.high %v656_v33, %v660_v34 }
 0x4a2   :  { %10634 = vmatprep.subr.bf16.mxu0 %v13323_v2  ;;  %v13354_v2 = vcombine.low %v879_v49, %v883_v50  ;;  %v13363_v4 = vcombine.high %v887_v36, %v891_v0  ;;  %v664_v49 = vld [vmem:[#allocation5 + $0xf18] sm:$0xff] }
 0x4a3   :  { %v668_v50 = vld [vmem:[#allocation5 + $0xf38] sm:$0xff] }
 0x4a4   :  { %11045 = vmatpush1.bf16.msra.mxu1 %v13068_v8  ;;  %v895_v8 = vld [vmem:[#allocation5 + $0x1650] sm:$0xff] }
 0x4a5   :  { %10635 = vmatpush1.bf16.msra.mxu0 %v13322_v58  ;;  %11046 = vmatprep.subr.bf16.mxu1 %v13077_v9  ;;  %v899_v58 = vld [vmem:[#allocation5 + $0x1670] sm:$0xff]  ;;  %v13108_v9 = vcombine.low %v632_v60, %v636_v63  ;;  %v672_v60 = vld [vmem:[#allocation5 + $0xf58] sm:$0xff] }
 0x4a6   :  { %10636 = vmatprep.subr.bf16.mxu0 %v13331_v44  ;;  %v13362_v44 = vcombine.low %v887_v36, %v891_v0  ;;  %v13371_v16 = vcombine.high %v895_v8, %v899_v58  ;;  %v676_v63 = vld [vmem:[#allocation5 + $0xf78] sm:$0xff]  ;;  %v927_v36 = vld [vmem:[#allocation5 + $0x1750] sm:$0xff] }
 0x4a7   :  { %v931_v0 = vld [vmem:[#allocation5 + $0x1770] sm:$0xff] }
 0x4a8   :  { %11047 = vmatpush1.bf16.msra.mxu1 %v13076_v23  ;;  %v903_v23 = vld [vmem:[#allocation5 + $0x1690] sm:$0xff] }
 0x4a9   :  { %10637 = vmatpush1.bf16.msra.mxu0 %v13330_v24  ;;  %11048 = vmatprep.subr.bf16.mxu1 %v13085_v27  ;;  %v907_v24 = vld [vmem:[#allocation5 + $0x16b0] sm:$0xff]  ;;  %v13116_v27 = vcombine.low %v640_v5, %v644_v6  ;;  %v680_v5 = vld [vmem:[#allocation5 + $0xf98] sm:$0xff] }
 0x4aa   :  { %v15281_v42 = vpop.f32.mrb[4].mxu1  ;;  %10638 = vmatprep.subr.bf16.mxu0 %v13339_v7  ;;  %v13370_v7 = vcombine.low %v895_v8, %v899_v58  ;;  %v13379_v62 = vcombine.high %v903_v23, %v907_v24  ;;  %v684_v6 = vld [vmem:[#allocation5 + $0xfb8] sm:$0xff]  ;;  %v935_v8 = vld [vmem:[#allocation5 + $0x1790] sm:$0xff] }
 0x4ab   :  { %v15283_v48 = vpop.f32.mrb[5].mxu1  ;;  %v939_v58 = vld [vmem:[#allocation5 + $0x17b0] sm:$0xff] }
 0x4ac   :  { %v10420_v22 = vpop.f32.mrb[6].mxu1  ;;  %11049 = vmatpush1.bf16.msra.mxu1 %v13084_v35  ;;  %v911_v35 = vld [vmem:[#allocation5 + $0x16d0] sm:$0xff] }
 0x4ad   :  { %10639 = vmatpush1.bf16.msra.mxu0 %v13338_v37  ;;  %v10421_v53 = vpop.f32.mrb[7].mxu1  ;;  %11050 = vmatprep.subr.bf16.mxu1 %v13093_v41  ;;  %v915_v37 = vld [vmem:[#allocation5 + $0x16f0] sm:$0xff]  ;;  %v13124_v41 = vcombine.low %v648_v19, %v652_v3  ;;  %v688_v19 = vld [vmem:[#allocation5 + $0xfd8] sm:$0xff] }
 0x4ae   :  { %10640 = vmatprep.subr.bf16.mxu0 %v13347_v43  ;;  %v13378_v43 = vcombine.low %v903_v23, %v907_v24  ;;  %v13387_v46 = vcombine.high %v911_v35, %v915_v37  ;;  %v919_v22 = vld [vmem:[#allocation5 + $0x1710] sm:$0xff]  ;;  %v13132_v53 = vcombine.low %v656_v33, %v660_v34  ;;  %v692_v3 = vld [vmem:[#allocation5 + $0xff8] sm:$0xff] }
 0x4af   :  { %v943_v23 = vld [vmem:[#allocation5 + $0x17d0] sm:$0xff]  ;;  %v696_v33 = vld [vmem:[#allocation5 + $0x1018] sm:$0xff] }
 0x4b0   :  { %11051 = vmatpush1.bf16.msra.mxu1 %v13092_v52  ;;  %v923_v52 = vld [vmem:[#allocation5 + $0x1730] sm:$0xff]  ;;  %v700_v34 = vld [vmem:[#allocation5 + $0x1038] sm:$0xff] }
 0x4b1   :  { %10641 = vmatpush1.bf16.msra.mxu0 %v13346_v55  ;;  %11052 = vmatprep.subr.bf16.mxu1 %v13101_v56  ;;  %v13386_v55 = vcombine.low %v911_v35, %v915_v37  ;;  %v13141_v56 = vcombine.high %v664_v49, %v668_v50  ;;  %v947_v24 = vld [vmem:[#allocation5 + $0x17f0] sm:$0xff] }
 0x4b2   :  { %10642 = vmatprep.subr.bf16.mxu0 %v13355_v57  ;;  %v13395_v57 = vcombine.high %v919_v22, %v923_v52  ;;  %v951_v35 = vld [vmem:[#allocation5 + $0x1810] sm:$0xff] }
 0x4b3   :  { %v955_v37 = vld [vmem:[#allocation5 + $0x1830] sm:$0xff] }
 0x4b4   :  { %11053 = vmatpush1.bf16.msra.mxu1 %v13100_v1  ;;  %v13140_v1 = vcombine.low %v664_v49, %v668_v50  ;;  %v704_v49 = vld [vmem:[#allocation5 + $0x1058] sm:$0xff] }
 0x4b5   :  { %10643 = vmatpush1.bf16.msra.mxu0 %v13354_v2  ;;  %11054 = vmatprep.subr.bf16.mxu1 %v13109_v28  ;;  %v13394_v2 = vcombine.low %v919_v22, %v923_v52  ;;  %v13149_v28 = vcombine.high %v672_v60, %v676_v63  ;;  %v708_v50 = vld [vmem:[#allocation5 + $0x1078] sm:$0xff]  ;;  %v959_v22 = vld [vmem:[#allocation5 + $0x1850] sm:$0xff] }
 0x4b6   :  { %10644 = vmatprep.subr.bf16.mxu0 %v13363_v4  ;;  %v13403_v4 = vcombine.high %v927_v36, %v931_v0  ;;  %v963_v52 = vld [vmem:[#allocation5 + $0x1870] sm:$0xff] }
 0x4b8   :  { %11055 = vmatpush1.bf16.msra.mxu1 %v13108_v9  ;;  %v13148_v9 = vcombine.low %v672_v60, %v676_v63  ;;  %v712_v60 = vld [vmem:[#allocation5 + $0x1098] sm:$0xff] }
 0x4b9   :  { %10645 = vmatpush1.bf16.msra.mxu0 %v13362_v44  ;;  %11056 = vmatprep.subr.bf16.mxu1 %v13117_v10  ;;  %v13402_v44 = vcombine.low %v927_v36, %v931_v0  ;;  %v13157_v10 = vcombine.high %v680_v5, %v684_v6  ;;  %v716_v63 = vld [vmem:[#allocation5 + $0x10b8] sm:$0xff]  ;;  %v967_v36 = vld [vmem:[#allocation5 + $0x1890] sm:$0xff] }
 0x4ba   :  { %10646 = vmatprep.subr.bf16.mxu0 %v13371_v16  ;;  %v13411_v16 = vcombine.high %v935_v8, %v939_v58  ;;  %v971_v0 = vld [vmem:[#allocation5 + $0x18b0] sm:$0xff] }
 0x4bc   :  { %11057 = vmatpush1.bf16.msra.mxu1 %v13116_v27  ;;  %v13156_v27 = vcombine.low %v680_v5, %v684_v6  ;;  %v720_v5 = vld [vmem:[#allocation5 + $0x10d8] sm:$0xff] }
 0x4bd   :  { %10647 = vmatpush1.bf16.msra.mxu0 %v13370_v7  ;;  %11058 = vmatprep.subr.bf16.mxu1 %v13125_v29  ;;  %v13410_v7 = vcombine.low %v935_v8, %v939_v58  ;;  %v13165_v29 = vcombine.high %v688_v19, %v692_v3  ;;  %v724_v6 = vld [vmem:[#allocation5 + $0x10f8] sm:$0xff]  ;;  %v975_v8 = vld [vmem:[#allocation5 + $0x18d0] sm:$0xff] }
 0x4be   :  { %10648 = vmatprep.subr.bf16.mxu0 %v13379_v62  ;;  %v13419_v62 = vcombine.high %v943_v23, %v947_v24  ;;  %v979_v58 = vld [vmem:[#allocation5 + $0x18f0] sm:$0xff] }
 0x4c0   :  { %11059 = vmatpush1.bf16.msra.mxu1 %v13124_v41  ;;  %v13164_v41 = vcombine.low %v688_v19, %v692_v3  ;;  %v732_v19 = vld [vmem:[#allocation5 + $0x1138] sm:$0xff]  ;;  %v983_v3 = vld [vmem:[#allocation5 + $0x1910] sm:$0xff] }
 0x4c1   :  { %10649 = vmatpush1.bf16.msra.mxu0 %v13378_v43  ;;  %11060 = vmatprep.subr.bf16.mxu1 %v13133_v45  ;;  %v13418_v43 = vcombine.low %v943_v23, %v947_v24  ;;  %v13173_v45 = vcombine.high %v696_v33, %v700_v34  ;;  %v987_v23 = vld [vmem:[#allocation5 + $0x1930] sm:$0xff]  ;;  %v13196_v24 = vcombine.low %v720_v5, %v724_v6 }
 0x4c2   :  { %10650 = vmatprep.subr.bf16.mxu0 %v13387_v46  ;;  %v13427_v46 = vcombine.high %v951_v35, %v955_v37 }
 0x4c4   :  { %11061 = vmatpush1.bf16.msra.mxu1 %v13132_v53  ;;  %v13172_v53 = vcombine.low %v696_v33, %v700_v34  ;;  %v991_v33 = vld [vmem:[#allocation5 + $0x1950] sm:$0xff] }
 0x4c5   :  { %10651 = vmatpush1.bf16.msra.mxu0 %v13386_v55  ;;  %11062 = vmatprep.subr.bf16.mxu1 %v13141_v56  ;;  %v13426_v55 = vcombine.low %v951_v35, %v955_v37  ;;  %v13181_v56 = vcombine.high %v704_v49, %v708_v50  ;;  %v995_v34 = vld [vmem:[#allocation5 + $0x1970] sm:$0xff]  ;;  %v13458_v37 = vcombine.low %v983_v3, %v987_v23 }
 0x4c6   :  { %10652 = vmatprep.subr.bf16.mxu0 %v13395_v57  ;;  %v13435_v57 = vcombine.high %v959_v22, %v963_v52 }
 0x4c8   :  { %11063 = vmatpush1.bf16.msra.mxu1 %v13140_v1  ;;  %v13180_v1 = vcombine.low %v704_v49, %v708_v50  ;;  %v999_v49 = vld [vmem:[#allocation5 + $0x1990] sm:$0xff] }
 0x4c9   :  { %10653 = vmatpush1.bf16.msra.mxu0 %v13394_v2  ;;  %11064 = vmatprep.subr.bf16.mxu1 %v13149_v28  ;;  %v13434_v2 = vcombine.low %v959_v22, %v963_v52  ;;  %v13189_v28 = vcombine.high %v712_v60, %v716_v63  ;;  %v1003_v50 = vld [vmem:[#allocation5 + $0x19b0] sm:$0xff]  ;;  %v13466_v52 = vcombine.low %v991_v33, %v995_v34 }
 0x4ca   :  { %10654 = vmatprep.subr.bf16.mxu0 %v13403_v4  ;;  %v13443_v4 = vcombine.high %v967_v36, %v971_v0 }
 0x4cc   :  { %11065 = vmatpush1.bf16.msra.mxu1 %v13148_v9  ;;  %v13442_v9 = vcombine.low %v967_v36, %v971_v0  ;;  %v13474_v0 = vcombine.low %v999_v49, %v1003_v50 }
 0x4cd   :  { %10655 = vmatpush1.bf16.msra.mxu0 %v13402_v44  ;;  %11066 = vmatprep.subr.bf16.mxu1 %v13157_v10  ;;  %v13197_v44 = vcombine.high %v720_v5, %v724_v6  ;;  %v13451_v10 = vcombine.high %v975_v8, %v979_v58  ;;  %v1015_v5 = vld [vmem:[#allocation5 + $0x1a10] sm:$0xff] }
 0x4ce   :  { %10656 = vmatprep.subr.bf16.mxu0 %v13411_v16  ;;  %v728_v16 = vld [vmem:[#allocation5 + $0x1118] sm:$0xff]  ;;  %v1019_v6 = vld [vmem:[#allocation5 + $0x1a30] sm:$0xff] }
 0x4cf   :  { %v13204_v35 = vcombine.low %v728_v16, %v732_v19 }
 0x4d0   :  { %11067 = vmatpush1.bf16.msra.mxu1 %v13156_v27  ;;  %v13450_v27 = vcombine.low %v975_v8, %v979_v58 }
 0x4d1   :  { %10657 = vmatpush1.bf16.msra.mxu0 %v13410_v7  ;;  %11068 = vmatprep.subr.bf16.mxu1 %v13165_v29  ;;  %v13205_v7 = vcombine.high %v728_v16, %v732_v19  ;;  %v736_v29 = vld [vmem:[#allocation5 + $0x1158] sm:$0xff]  ;;  %v1023_v16 = vld [vmem:[#allocation5 + $0x1a50] sm:$0xff] }
 0x4d2   :  { %10658 = vmatprep.subr.bf16.mxu0 %v13419_v62  ;;  %v740_v62 = vld [vmem:[#allocation5 + $0x1178] sm:$0xff]  ;;  %v1027_v19 = vld [vmem:[#allocation5 + $0x1a70] sm:$0xff] }
 0x4d3   :  { %v13212_v22 = vcombine.low %v736_v29, %v740_v62 }
 0x4d4   :  { %11069 = vmatpush1.bf16.msra.mxu1 %v13164_v41  ;;  %v13213_v41 = vcombine.high %v736_v29, %v740_v62  ;;  %v1031_v29 = vld [vmem:[#allocation5 + $0x1a90] sm:$0xff] }
 0x4d5   :  { %10659 = vmatpush1.bf16.msra.mxu0 %v13418_v43  ;;  %11079 = vmatprep.subr.bf16.mxu1 %v13173_v45  ;;  %v13467_v43 = vcombine.high %v991_v33, %v995_v34  ;;  %v744_v45 = vld [vmem:[#allocation5 + $0x1198] sm:$0xff]  ;;  %v1035_v62 = vld [vmem:[#allocation5 + $0x1ab0] sm:$0xff]  ;;  %v13498_v34 = vcombine.low %v1023_v16, %v1027_v19 }
 0x4d6   :  { %10669 = vmatprep.subr.bf16.mxu0 %v13427_v46  ;;  %v748_v46 = vld [vmem:[#allocation5 + $0x11b8] sm:$0xff] }
 0x4d7   :  { %11071 = vmatmul.mubr.bf16.vlgmr.msra.gmra.mrb[8].mxu1 %v15171_v54  ;;  %v13188_v54 = vcombine.low %v712_v60, %v716_v63  ;;  %v1007_v60 = vld [vmem:[#allocation5 + $0x19d0] sm:$0xff]  ;;  %v13220_v36 = vcombine.low %v744_v45, %v748_v46 }
 0x4d8   :  { %10661 = vmatmul.mubr.bf16.vlgmr.msra.gmra.mrb[4].mxu0 %v15191_v51  ;;  %11080 = vmatpush1.bf16.msra.mxu1 %v13172_v53  ;;  %v13221_v53 = vcombine.high %v744_v45, %v748_v46  ;;  %v1011_v63 = vld [vmem:[#allocation5 + $0x19f0] sm:$0xff] }
 0x4d9   :  { %10670 = vmatpush1.bf16.msra.mxu0 %v13426_v55  ;;  %11081 = vmatprep.subr.bf16.mxu1 %v13181_v56  ;;  %v13475_v55 = vcombine.high %v999_v49, %v1003_v50  ;;  %v752_v56 = vld [vmem:[#allocation5 + $0x11d8] sm:$0xff]  ;;  %v13482_v58 = vcombine.low %v1007_v60, %v1011_v63  ;;  %v1039_v45 = vld [vmem:[#allocation5 + $0x1ad0] sm:$0xff]  ;;  %v13506_v50 = vcombine.low %v1031_v29, %v1035_v62 }
 0x4da   :  { %10671 = vmatprep.subr.bf16.mxu0 %v13435_v57  ;;  %10701 = vmatprep.mubr.bf16.mxu0 %v15193_v59  ;;  %v756_v57 = vld [vmem:[#allocation5 + $0x11f8] sm:$0xff]  ;;  %v1043_v46 = vld [vmem:[#allocation5 + $0x1af0] sm:$0xff] }
 0x4db   :  { %11111 = vmatprep.mubr.bf16.mxu1 %v15173_v61  ;;  %v13459_v61 = vcombine.high %v983_v3, %v987_v23  ;;  %v13228_v8 = vcombine.low %v752_v56, %v756_v57  ;;  %v13490_v23 = vcombine.low %v1015_v5, %v1019_v6 }
 0x4dc   :  { %11082 = vmatpush1.bf16.msra.mxu1 %v13180_v1  ;;  %v13229_v1 = vcombine.high %v752_v56, %v756_v57  ;;  %v1047_v56 = vld [vmem:[#allocation5 + $0x1b10] sm:$0xff] }
 0x4dd   :  { %10672 = vmatpush1.bf16.msra.mxu0 %v13434_v2  ;;  %11083 = vmatprep.subr.bf16.mxu1 %v13189_v28  ;;  %v13483_v2 = vcombine.high %v1007_v60, %v1011_v63  ;;  %v760_v28 = vld [vmem:[#allocation5 + $0x1218] sm:$0xff]  ;;  %v1051_v57 = vld [vmem:[#allocation5 + $0x1b30] sm:$0xff]  ;;  %v13514_v63 = vcombine.low %v1039_v45, %v1043_v46 }
 0x4de   :  { %10673 = vmatprep.subr.bf16.mxu0 %v13443_v4  ;;  %v764_v4 = vld [vmem:[#allocation5 + $0x1238] sm:$0xff] }
 0x4df   :  { %v13236_v3 = vcombine.low %v760_v28, %v764_v4 }
 0x4e0   :  { %11084 = vmatpush1.bf16.msra.mxu1 %v13188_v54  ;;  %v13237_v54 = vcombine.high %v760_v28, %v764_v4  ;;  %v1055_v28 = vld [vmem:[#allocation5 + $0x1b50] sm:$0xff] }
 0x4e1   :  { %10674 = vmatpush1.bf16.msra.mxu0 %v13442_v9  ;;  %11085 = vmatprep.subr.bf16.mxu1 %v13197_v44  ;;  %v13491_v9 = vcombine.high %v1015_v5, %v1019_v6  ;;  %v768_v44 = vld [vmem:[#allocation5 + $0x1258] sm:$0xff]  ;;  %v1059_v4 = vld [vmem:[#allocation5 + $0x1b70] sm:$0xff]  ;;  %v13522_v6 = vcombine.low %v1047_v56, %v1051_v57 }
 0x4e2   :  { %10675 = vmatprep.subr.bf16.mxu0 %v13451_v10  ;;  %v772_v10 = vld [vmem:[#allocation5 + $0x1278] sm:$0xff] }
 0x4e3   :  { %v13244_v33 = vcombine.low %v768_v44, %v772_v10 }
 0x4e4   :  { %11086 = vmatpush1.bf16.msra.mxu1 %v13196_v24  ;;  %v13245_v24 = vcombine.high %v768_v44, %v772_v10  ;;  %v1063_v44 = vld [vmem:[#allocation5 + $0x1b90] sm:$0xff] }
 0x4e5   :  { %10676 = vmatpush1.bf16.msra.mxu0 %v13450_v27  ;;  %11087 = vmatprep.subr.bf16.mxu1 %v13205_v7  ;;  %v13499_v27 = vcombine.high %v1023_v16, %v1027_v19  ;;  %v776_v7 = vld [vmem:[#allocation5 + $0x1298] sm:$0xff]  ;;  %v1067_v10 = vld [vmem:[#allocation5 + $0x1bb0] sm:$0xff]  ;;  %v13530_v19 = vcombine.low %v1055_v28, %v1059_v4 }
 0x4e6   :  { %10677 = vmatprep.subr.bf16.mxu0 %v13459_v61  ;;  %v780_v61 = vld [vmem:[#allocation5 + $0x12b8] sm:$0xff] }
 0x4e7   :  { %v13252_v49 = vcombine.low %v776_v7, %v780_v61 }
 0x4e8   :  { %11088 = vmatpush1.bf16.msra.mxu1 %v13204_v35  ;;  %v13253_v35 = vcombine.high %v776_v7, %v780_v61  ;;  %v1071_v7 = vld [vmem:[#allocation5 + $0x1bd0] sm:$0xff] }
 0x4e9   :  { %10678 = vmatpush1.bf16.msra.mxu0 %v13458_v37  ;;  %11089 = vmatprep.subr.bf16.mxu1 %v13213_v41  ;;  %v13507_v37 = vcombine.high %v1031_v29, %v1035_v62  ;;  %v784_v41 = vld [vmem:[#allocation5 + $0x12d8] sm:$0xff]  ;;  %v1075_v61 = vld [vmem:[#allocation5 + $0x1bf0] sm:$0xff]  ;;  %v13538_v62 = vcombine.low %v1063_v44, %v1067_v10 }
 0x4ea   :  { %10679 = vmatprep.subr.bf16.mxu0 %v13467_v43  ;;  %v788_v43 = vld [vmem:[#allocation5 + $0x12f8] sm:$0xff] }
 0x4eb   :  { %v13260_v60 = vcombine.low %v784_v41, %v788_v43 }
 0x4ec   :  { %11090 = vmatpush1.bf16.msra.mxu1 %v13212_v22  ;;  %v13261_v22 = vcombine.high %v784_v41, %v788_v43  ;;  %v1079_v41 = vld [vmem:[#allocation5 + $0x1c10] sm:$0xff] }
 0x4ed   :  { %10680 = vmatpush1.bf16.msra.mxu0 %v13466_v52  ;;  %11091 = vmatprep.subr.bf16.mxu1 %v13221_v53  ;;  %v13515_v52 = vcombine.high %v1039_v45, %v1043_v46  ;;  %v792_v53 = vld [vmem:[#allocation5 + $0x1318] sm:$0xff]  ;;  %v1083_v43 = vld [vmem:[#allocation5 + $0x1c30] sm:$0xff]  ;;  %v13546_v46 = vcombine.low %v1071_v7, %v1075_v61 }
 0x4ee   :  { %10681 = vmatprep.subr.bf16.mxu0 %v13475_v55  ;;  %v796_v55 = vld [vmem:[#allocation5 + $0x1338] sm:$0xff] }
 0x4ef   :  { %v13268_v5 = vcombine.low %v792_v53, %v796_v55 }
 0x4f0   :  { %11092 = vmatpush1.bf16.msra.mxu1 %v13220_v36  ;;  %v13269_v36 = vcombine.high %v792_v53, %v796_v55  ;;  %v1087_v53 = vld [vmem:[#allocation5 + $0x1c50] sm:$0xff] }
 0x4f1   :  { %10682 = vmatpush1.bf16.msra.mxu0 %v13474_v0  ;;  %11093 = vmatprep.subr.bf16.mxu1 %v13229_v1  ;;  %v13523_v0 = vcombine.high %v1047_v56, %v1051_v57  ;;  %v800_v1 = vld [vmem:[#allocation5 + $0x1358] sm:$0xff]  ;;  %v1091_v55 = vld [vmem:[#allocation5 + $0x1c70] sm:$0xff]  ;;  %v13554_v57 = vcombine.low %v1079_v41, %v1083_v43 }
 0x4f2   :  { %10683 = vmatprep.subr.bf16.mxu0 %v13483_v2  ;;  %v804_v2 = vld [vmem:[#allocation5 + $0x1378] sm:$0xff] }
 0x4f3   :  { %v13276_v16 = vcombine.low %v800_v1, %v804_v2 }
 0x4f4   :  { %11094 = vmatpush1.bf16.msra.mxu1 %v13228_v8  ;;  %v13277_v8 = vcombine.high %v800_v1, %v804_v2  ;;  %v1095_v1 = vld [vmem:[#allocation5 + $0x1c90] sm:$0xff] }
 0x4f5   :  { %10684 = vmatpush1.bf16.msra.mxu0 %v13482_v58  ;;  %11095 = vmatprep.subr.bf16.mxu1 %v13237_v54  ;;  %v13531_v58 = vcombine.high %v1055_v28, %v1059_v4  ;;  %v808_v54 = vld [vmem:[#allocation5 + $0x1398] sm:$0xff]  ;;  %v1099_v2 = vld [vmem:[#allocation5 + $0x1cb0] sm:$0xff]  ;;  %v13562_v4 = vcombine.low %v1087_v53, %v1091_v55 }
 0x4f6   :  { %10685 = vmatprep.subr.bf16.mxu0 %v13491_v9  ;;  %v812_v9 = vld [vmem:[#allocation5 + $0x13b8] sm:$0xff] }
 0x4f7   :  { %v13284_v29 = vcombine.low %v808_v54, %v812_v9 }
 0x4f8   :  { %11096 = vmatpush1.bf16.msra.mxu1 %v13236_v3  ;;  %v13285_v3 = vcombine.high %v808_v54, %v812_v9  ;;  %v1103_v54 = vld [vmem:[#allocation5 + $0x1cd0] sm:$0xff] }
 0x4f9   :  { %10686 = vmatpush1.bf16.msra.mxu0 %v13490_v23  ;;  %11097 = vmatprep.subr.bf16.mxu1 %v13245_v24  ;;  %v13539_v23 = vcombine.high %v1063_v44, %v1067_v10  ;;  %v816_v24 = vld [vmem:[#allocation5 + $0x13d8] sm:$0xff]  ;;  %v1107_v9 = vld [vmem:[#allocation5 + $0x1cf0] sm:$0xff]  ;;  %v13570_v44 = vcombine.low %v1095_v1, %v1099_v2 }
 0x4fa   :  { %10687 = vmatprep.subr.bf16.mxu0 %v13499_v27  ;;  %v820_v27 = vld [vmem:[#allocation5 + $0x13f8] sm:$0xff] }
 0x4fb   :  { %v13292_v45 = vcombine.low %v816_v24, %v820_v27 }
 0x4fc   :  { %11098 = vmatpush1.bf16.msra.mxu1 %v13244_v33  ;;  %v13293_v33 = vcombine.high %v816_v24, %v820_v27  ;;  %v1115_v24 = vld [vmem:[#allocation5 + $0x1d30] sm:$0xff] }
 0x4fd   :  { %10688 = vmatpush1.bf16.msra.mxu0 %v13498_v34  ;;  %11099 = vmatprep.subr.bf16.mxu1 %v13253_v35  ;;  %v13547_v34 = vcombine.high %v1071_v7, %v1075_v61  ;;  %v824_v35 = vld [vmem:[#allocation5 + $0x1418] sm:$0xff]  ;;  %v13578_v7 = vcombine.low %v1103_v54, %v1107_v9 }
 0x4fe   :  { %10689 = vmatprep.subr.bf16.mxu0 %v13507_v37  ;;  %v828_v37 = vld [vmem:[#allocation5 + $0x1438] sm:$0xff] }
 0x4ff   :  { %v13300_v56 = vcombine.low %v824_v35, %v828_v37 }
 0x500   :  { %11100 = vmatpush1.bf16.msra.mxu1 %v13252_v49  ;;  %v13301_v49 = vcombine.high %v824_v35, %v828_v37 }
 0x501   :  { %10690 = vmatpush1.bf16.msra.mxu0 %v13506_v50  ;;  %11101 = vmatprep.subr.bf16.mxu1 %v13261_v22  ;;  %v13555_v50 = vcombine.high %v1079_v41, %v1083_v43  ;;  %v832_v22 = vld [vmem:[#allocation5 + $0x1458] sm:$0xff] }
 0x502   :  { %10691 = vmatprep.subr.bf16.mxu0 %v13515_v52  ;;  %v836_v52 = vld [vmem:[#allocation5 + $0x1478] sm:$0xff] }
 0x503   :  { %v13308_v28 = vcombine.low %v832_v22, %v836_v52 }
 0x504   :  { %11102 = vmatpush1.bf16.msra.mxu1 %v13260_v60  ;;  %v13309_v60 = vcombine.high %v832_v22, %v836_v52 }
 0x505   :  { %10692 = vmatpush1.bf16.msra.mxu0 %v13514_v63  ;;  %11103 = vmatprep.subr.bf16.mxu1 %v13269_v36  ;;  %v13563_v63 = vcombine.high %v1087_v53, %v1091_v55  ;;  %v840_v36 = vld [vmem:[#allocation5 + $0x1498] sm:$0xff] }
 0x506   :  { %10693 = vmatprep.subr.bf16.mxu0 %v13523_v0  ;;  %v844_v0 = vld [vmem:[#allocation5 + $0x14b8] sm:$0xff] }
 0x508   :  { %11104 = vmatpush1.bf16.msra.mxu1 %v13268_v5  ;;  %v13317_v5 = vcombine.high %v840_v36, %v844_v0 }
 0x509   :  { %10694 = vmatpush1.bf16.msra.mxu0 %v13522_v6  ;;  %11105 = vmatprep.subr.bf16.mxu1 %v13277_v8  ;;  %v13571_v6 = vcombine.high %v1095_v1, %v1099_v2  ;;  %v848_v8 = vld [vmem:[#allocation5 + $0x14d8] sm:$0xff] }
 0x50a   :  { %10695 = vmatprep.subr.bf16.mxu0 %v13531_v58  ;;  %v852_v58 = vld [vmem:[#allocation5 + $0x14f8] sm:$0xff] }
 0x50b   :  { %v13325_v10 = vcombine.high %v848_v8, %v852_v58  ;;  %v13324_v27 = vcombine.low %v848_v8, %v852_v58 }
 0x50c   :  { %11106 = vmatpush1.bf16.msra.mxu1 %v13276_v16  ;;  %v13579_v16 = vcombine.high %v1103_v54, %v1107_v9 }
 0x50d   :  { %10696 = vmatpush1.bf16.msra.mxu0 %v13530_v19  ;;  %11107 = vmatprep.subr.bf16.mxu1 %v13285_v3  ;;  %v856_v19 = vld [vmem:[#allocation5 + $0x1518] sm:$0xff] }
 0x50e   :  { %10697 = vmatprep.subr.bf16.mxu0 %v13539_v23  ;;  %v860_v3 = vld [vmem:[#allocation5 + $0x1538] sm:$0xff]  ;;  %v1111_v23 = vld [vmem:[#allocation5 + $0x1d10] sm:$0xff] }
 0x50f   :  { %v13333_v61 = vcombine.high %v856_v19, %v860_v3  ;;  %v13332_v35 = vcombine.low %v856_v19, %v860_v3  ;;  %v13586_v37 = vcombine.low %v1111_v23, %v1115_v24 }
 0x510   :  { %11108 = vmatpush1.bf16.msra.mxu1 %v13284_v29  ;;  %v864_v29 = vld [vmem:[#allocation5 + $0x1558] sm:$0xff] }
 0x511   :  { %10698 = vmatpush1.bf16.msra.mxu0 %v13538_v62  ;;  %11109 = vmatprep.subr.bf16.mxu1 %v13293_v33  ;;  %v868_v62 = vld [vmem:[#allocation5 + $0x1578] sm:$0xff]  ;;  %v1119_v33 = vld [vmem:[#allocation5 + $0x1d50] sm:$0xff] }
 0x512   :  { %10699 = vmatprep.subr.bf16.mxu0 %v13547_v34  ;;  %v1123_v34 = vld [vmem:[#allocation5 + $0x1d70] sm:$0xff]  ;;  %v13341_v41 = vcombine.high %v864_v29, %v868_v62  ;;  %v13340_v22 = vcombine.low %v864_v29, %v868_v62 }
 0x513   :  { %v13595_v43 = vcombine.high %v1119_v33, %v1123_v34  ;;  %v13594_v52 = vcombine.low %v1119_v33, %v1123_v34 }
 0x514   :  { %11110 = vmatpush1.bf16.msra.mxu1 %v13292_v45  ;;  %v872_v45 = vld [vmem:[#allocation5 + $0x1598] sm:$0xff] }
 0x515   :  { %10700 = vmatpush1.bf16.msra.mxu0 %v13546_v46  ;;  %11120 = vmatprep.subr.bf16.mxu1 %v13301_v49  ;;  %v876_v46 = vld [vmem:[#allocation5 + $0x15b8] sm:$0xff]  ;;  %v1127_v49 = vld [vmem:[#allocation5 + $0x1d90] sm:$0xff] }
 0x516   :  { %10710 = vmatprep.subr.bf16.mxu0 %v13555_v50  ;;  %v1131_v50 = vld [vmem:[#allocation5 + $0x1db0] sm:$0xff]  ;;  %v13349_v53 = vcombine.high %v872_v45, %v876_v46 }
 0x517   :  { %11112 = vmatmul.mubr.bf16.vlgmr.msra.gmra.mrb[8].mxu1 %v15179_v14  ;;  %v13316_v14 = vcombine.low %v840_v36, %v844_v0  ;;  %v13603_v55 = vcombine.high %v1127_v49, %v1131_v50  ;;  %v13348_v36 = vcombine.low %v872_v45, %v876_v46  ;;  %v13602_v0 = vcombine.low %v1127_v49, %v1131_v50 }
 0x518   :  { %10702 = vmatmul.mubr.bf16.vlgmr.msra.gmra.mrb[4].mxu0 %v15199_v32  ;;  %11121 = vmatpush1.bf16.msra.mxu1 %v13300_v56  ;;  %v880_v56 = vld [vmem:[#allocation5 + $0x15d8] sm:$0xff] }
 0x519   :  { %10711 = vmatpush1.bf16.msra.mxu0 %v13554_v57  ;;  %11122 = vmatprep.subr.bf16.mxu1 %v13309_v60  ;;  %v884_v57 = vld [vmem:[#allocation5 + $0x15f8] sm:$0xff]  ;;  %v1135_v60 = vld [vmem:[#allocation5 + $0x1dd0] sm:$0xff] }
 0x51a   :  { %10712 = vmatprep.subr.bf16.mxu0 %v13563_v63  ;;  %10742 = vmatprep.mubr.bf16.mxu0 %v15201_v39  ;;  %v1139_v63 = vld [vmem:[#allocation5 + $0x1df0] sm:$0xff]  ;;  %v13357_v1 = vcombine.high %v880_v56, %v884_v57  ;;  %v13356_v8 = vcombine.low %v880_v56, %v884_v57 }
 0x51b   :  { %11152 = vmatprep.mubr.bf16.mxu1 %v15181_v21  ;;  %v13587_v21 = vcombine.high %v1111_v23, %v1115_v24  ;;  %v13611_v2 = vcombine.high %v1135_v60, %v1139_v63  ;;  %v13610_v58 = vcombine.low %v1135_v60, %v1139_v63 }
 0x51c   :  { %11123 = vmatpush1.bf16.msra.mxu1 %v13308_v28  ;;  %v888_v28 = vld [vmem:[#allocation5 + $0x1618] sm:$0xff] }
 0x51d   :  { %10713 = vmatpush1.bf16.msra.mxu0 %v13562_v4  ;;  %11124 = vmatprep.subr.bf16.mxu1 %v13317_v5  ;;  %v892_v4 = vld [vmem:[#allocation5 + $0x1638] sm:$0xff]  ;;  %v1143_v5 = vld [vmem:[#allocation5 + $0x1e10] sm:$0xff] }
 0x51e   :  { %10714 = vmatprep.subr.bf16.mxu0 %v13571_v6  ;;  %v1147_v6 = vld [vmem:[#allocation5 + $0x1e30] sm:$0xff]  ;;  %v13365_v54 = vcombine.high %v888_v28, %v892_v4  ;;  %v13364_v19 = vcombine.low %v888_v28, %v892_v4 }
 0x51f   :  { %v13619_v9 = vcombine.high %v1143_v5, %v1147_v6  ;;  %v13618_v3 = vcombine.low %v1143_v5, %v1147_v6 }
 0x520   :  { %11125 = vmatpush1.bf16.msra.mxu1 %v13316_v14  ;;  %v896_v14 = vld [vmem:[#allocation5 + $0x1658] sm:$0xff] }
 0x521   :  { %10715 = vmatpush1.bf16.msra.mxu0 %v13570_v44  ;;  %11126 = vmatprep.subr.bf16.mxu1 %v13325_v10  ;;  %v900_v44 = vld [vmem:[#allocation5 + $0x1678] sm:$0xff]  ;;  %v1151_v10 = vld [vmem:[#allocation5 + $0x1e50] sm:$0xff] }
 0x522   :  { %10716 = vmatprep.subr.bf16.mxu0 %v13579_v16  ;;  %v1155_v16 = vld [vmem:[#allocation5 + $0x1e70] sm:$0xff]  ;;  %v13373_v23 = vcombine.high %v896_v14, %v900_v44  ;;  %v13372_v29 = vcombine.low %v896_v14, %v900_v44 }
 0x523   :  { %v13627_v24 = vcombine.high %v1151_v10, %v1155_v16  ;;  %v13626_v62 = vcombine.low %v1151_v10, %v1155_v16 }
 0x524   :  { %11127 = vmatpush1.bf16.msra.mxu1 %v13324_v27  ;;  %v904_v27 = vld [vmem:[#allocation5 + $0x1698] sm:$0xff] }
 0x525   :  { %10717 = vmatpush1.bf16.msra.mxu0 %v13578_v7  ;;  %11128 = vmatprep.subr.bf16.mxu1 %v13333_v61  ;;  %v908_v7 = vld [vmem:[#allocation5 + $0x16b8] sm:$0xff]  ;;  %v1159_v61 = vld [vmem:[#allocation5 + $0x1e90] sm:$0xff] }
 0x526   :  { %10718 = vmatprep.subr.bf16.mxu0 %v13587_v21  ;;  %v1163_v21 = vld [vmem:[#allocation5 + $0x1eb0] sm:$0xff]  ;;  %v13381_v33 = vcombine.high %v904_v27, %v908_v7  ;;  %v13380_v45 = vcombine.low %v904_v27, %v908_v7 }
 0x527   :  { %v13635_v34 = vcombine.high %v1159_v61, %v1163_v21  ;;  %v13634_v46 = vcombine.low %v1159_v61, %v1163_v21 }
 0x528   :  { %11129 = vmatpush1.bf16.msra.mxu1 %v13332_v35  ;;  %v912_v35 = vld [vmem:[#allocation5 + $0x16d8] sm:$0xff] }
 0x529   :  { %10719 = vmatpush1.bf16.msra.mxu0 %v13586_v37  ;;  %11130 = vmatprep.subr.bf16.mxu1 %v13341_v41  ;;  %v916_v37 = vld [vmem:[#allocation5 + $0x16f8] sm:$0xff]  ;;  %v1167_v41 = vld [vmem:[#allocation5 + $0x1ed0] sm:$0xff] }
 0x52a   :  { %10720 = vmatprep.subr.bf16.mxu0 %v13595_v43  ;;  %v1171_v43 = vld [vmem:[#allocation5 + $0x1ef0] sm:$0xff]  ;;  %v13389_v49 = vcombine.high %v912_v35, %v916_v37  ;;  %v13388_v56 = vcombine.low %v912_v35, %v916_v37 }
 0x52b   :  { %v13643_v50 = vcombine.high %v1167_v41, %v1171_v43  ;;  %v13642_v57 = vcombine.low %v1167_v41, %v1171_v43 }
 0x52c   :  { %11131 = vmatpush1.bf16.msra.mxu1 %v13340_v22  ;;  %v920_v22 = vld [vmem:[#allocation5 + $0x1718] sm:$0xff] }
 0x52d   :  { %10721 = vmatpush1.bf16.msra.mxu0 %v13594_v52  ;;  %11132 = vmatprep.subr.bf16.mxu1 %v13349_v53  ;;  %v924_v52 = vld [vmem:[#allocation5 + $0x1738] sm:$0xff]  ;;  %v1175_v53 = vld [vmem:[#allocation5 + $0x1f10] sm:$0xff] }
 0x52e   :  { %10722 = vmatprep.subr.bf16.mxu0 %v13603_v55  ;;  %v1179_v55 = vld [vmem:[#allocation5 + $0x1f30] sm:$0xff]  ;;  %v13397_v60 = vcombine.high %v920_v22, %v924_v52  ;;  %v13396_v28 = vcombine.low %v920_v22, %v924_v52 }
 0x52f   :  { %v13651_v63 = vcombine.high %v1175_v53, %v1179_v55  ;;  %v13650_v4 = vcombine.low %v1175_v53, %v1179_v55 }
 0x530   :  { %11133 = vmatpush1.bf16.msra.mxu1 %v13348_v36  ;;  %v928_v36 = vld [vmem:[#allocation5 + $0x1758] sm:$0xff] }
 0x531   :  { %10723 = vmatpush1.bf16.msra.mxu0 %v13602_v0  ;;  %11134 = vmatprep.subr.bf16.mxu1 %v13357_v1  ;;  %v932_v0 = vld [vmem:[#allocation5 + $0x1778] sm:$0xff]  ;;  %v1183_v1 = vld [vmem:[#allocation5 + $0x1f50] sm:$0xff] }
 0x532   :  { %10724 = vmatprep.subr.bf16.mxu0 %v13611_v2  ;;  %v1187_v2 = vld [vmem:[#allocation5 + $0x1f70] sm:$0xff]  ;;  %v13405_v5 = vcombine.high %v928_v36, %v932_v0  ;;  %v13404_v14 = vcombine.low %v928_v36, %v932_v0 }
 0x533   :  { %v13659_v6 = vcombine.high %v1183_v1, %v1187_v2  ;;  %v13658_v44 = vcombine.low %v1183_v1, %v1187_v2 }
 0x534   :  { %11135 = vmatpush1.bf16.msra.mxu1 %v13356_v8  ;;  %v936_v8 = vld [vmem:[#allocation5 + $0x1798] sm:$0xff] }
 0x535   :  { %10725 = vmatpush1.bf16.msra.mxu0 %v13610_v58  ;;  %11136 = vmatprep.subr.bf16.mxu1 %v13365_v54  ;;  %v940_v58 = vld [vmem:[#allocation5 + $0x17b8] sm:$0xff]  ;;  %v1191_v54 = vld [vmem:[#allocation5 + $0x1f90] sm:$0xff] }
 0x536   :  { %10726 = vmatprep.subr.bf16.mxu0 %v13619_v9  ;;  %v1195_v9 = vld [vmem:[#allocation5 + $0x1fb0] sm:$0xff]  ;;  %v13413_v10 = vcombine.high %v936_v8, %v940_v58  ;;  %v13412_v27 = vcombine.low %v936_v8, %v940_v58 }
 0x537   :  { %v13667_v16 = vcombine.high %v1191_v54, %v1195_v9  ;;  %v13666_v7 = vcombine.low %v1191_v54, %v1195_v9  ;;  %v984_v9 = vld [vmem:[#allocation5 + $0x1918] sm:$0xff] }
 0x538   :  { %11137 = vmatpush1.bf16.msra.mxu1 %v13364_v19  ;;  %v944_v19 = vld [vmem:[#allocation5 + $0x17d8] sm:$0xff] }
 0x539   :  { %10727 = vmatpush1.bf16.msra.mxu0 %v13618_v3  ;;  %11138 = vmatprep.subr.bf16.mxu1 %v13373_v23  ;;  %v948_v3 = vld [vmem:[#allocation5 + $0x17f8] sm:$0xff]  ;;  %v1199_v23 = vld [vmem:[#allocation5 + $0x1fd0] sm:$0xff] }
 0x53a   :  { %10728 = vmatprep.subr.bf16.mxu0 %v13627_v24  ;;  %v1203_v24 = vld [vmem:[#allocation5 + $0x1ff0] sm:$0xff]  ;;  %v13421_v61 = vcombine.high %v944_v19, %v948_v3  ;;  %v13420_v35 = vcombine.low %v944_v19, %v948_v3 }
 0x53b   :  { %v13675_v21 = vcombine.high %v1199_v23, %v1203_v24  ;;  %v13674_v37 = vcombine.low %v1199_v23, %v1203_v24  ;;  %v992_v23 = vld [vmem:[#allocation5 + $0x1958] sm:$0xff] }
 0x53c   :  { %11139 = vmatpush1.bf16.msra.mxu1 %v13372_v29  ;;  %v952_v29 = vld [vmem:[#allocation5 + $0x1818] sm:$0xff] }
 0x53d   :  { %10729 = vmatpush1.bf16.msra.mxu0 %v13626_v62  ;;  %11140 = vmatprep.subr.bf16.mxu1 %v13381_v33  ;;  %v956_v62 = vld [vmem:[#allocation5 + $0x1838] sm:$0xff]  ;;  %v1207_v33 = vld [vmem:[#allocation5 + $0x2010] sm:$0xff] }
 0x53e   :  { %10730 = vmatprep.subr.bf16.mxu0 %v13635_v34  ;;  %v1211_v34 = vld [vmem:[#allocation5 + $0x2030] sm:$0xff]  ;;  %v13429_v41 = vcombine.high %v952_v29, %v956_v62  ;;  %v13428_v22 = vcombine.low %v952_v29, %v956_v62  ;;  %v996_v24 = vld [vmem:[#allocation5 + $0x1978] sm:$0xff] }
 0x53f   :  { %v13683_v43 = vcombine.high %v1207_v33, %v1211_v34  ;;  %v13682_v52 = vcombine.low %v1207_v33, %v1211_v34  ;;  %v13469_v29 = vcombine.high %v992_v23, %v996_v24  ;;  %v1000_v33 = vld [vmem:[#allocation5 + $0x1998] sm:$0xff] }
 0x540   :  { %11141 = vmatpush1.bf16.msra.mxu1 %v13380_v45  ;;  %v960_v45 = vld [vmem:[#allocation5 + $0x1858] sm:$0xff] }
 0x541   :  { %10731 = vmatpush1.bf16.msra.mxu0 %v13634_v46  ;;  %11142 = vmatprep.subr.bf16.mxu1 %v13389_v49  ;;  %v964_v46 = vld [vmem:[#allocation5 + $0x1878] sm:$0xff]  ;;  %v1215_v49 = vld [vmem:[#allocation5 + $0x2050] sm:$0xff] }
 0x542   :  { %10732 = vmatprep.subr.bf16.mxu0 %v13643_v50  ;;  %v1219_v50 = vld [vmem:[#allocation5 + $0x2070] sm:$0xff]  ;;  %v13437_v53 = vcombine.high %v960_v45, %v964_v46  ;;  %v13436_v36 = vcombine.low %v960_v45, %v964_v46  ;;  %v1004_v34 = vld [vmem:[#allocation5 + $0x19b8] sm:$0xff] }
 0x543   :  { %v13691_v55 = vcombine.high %v1215_v49, %v1219_v50  ;;  %v13690_v0 = vcombine.low %v1215_v49, %v1219_v50  ;;  %v13477_v45 = vcombine.high %v1000_v33, %v1004_v34  ;;  %v1008_v49 = vld [vmem:[#allocation5 + $0x19d8] sm:$0xff] }
 0x544   :  { %11143 = vmatpush1.bf16.msra.mxu1 %v13388_v56  ;;  %v968_v56 = vld [vmem:[#allocation5 + $0x1898] sm:$0xff] }
 0x545   :  { %10733 = vmatpush1.bf16.msra.mxu0 %v13642_v57  ;;  %11144 = vmatprep.subr.bf16.mxu1 %v13397_v60  ;;  %v972_v57 = vld [vmem:[#allocation5 + $0x18b8] sm:$0xff]  ;;  %v1223_v60 = vld [vmem:[#allocation5 + $0x2090] sm:$0xff] }
 0x546   :  { %10734 = vmatprep.subr.bf16.mxu0 %v13651_v63  ;;  %v1227_v63 = vld [vmem:[#allocation5 + $0x20b0] sm:$0xff]  ;;  %v13445_v1 = vcombine.high %v968_v56, %v972_v57  ;;  %v1012_v50 = vld [vmem:[#allocation5 + $0x19f8] sm:$0xff] }
 0x547   :  { %v13699_v2 = vcombine.high %v1223_v60, %v1227_v63  ;;  %v13698_v8 = vcombine.low %v1223_v60, %v1227_v63  ;;  %v1016_v60 = vld [vmem:[#allocation5 + $0x1a18] sm:$0xff] }
 0x548   :  { %11145 = vmatpush1.bf16.msra.mxu1 %v13396_v28  ;;  %v976_v28 = vld [vmem:[#allocation5 + $0x18d8] sm:$0xff] }
 0x549   :  { %10735 = vmatpush1.bf16.msra.mxu0 %v13650_v4  ;;  %11146 = vmatprep.subr.bf16.mxu1 %v13405_v5  ;;  %v980_v4 = vld [vmem:[#allocation5 + $0x18f8] sm:$0xff]  ;;  %v1231_v5 = vld [vmem:[#allocation5 + $0x20d0] sm:$0xff] }
 0x54a   :  { %10736 = vmatprep.subr.bf16.mxu0 %v13659_v6  ;;  %v1235_v6 = vld [vmem:[#allocation5 + $0x20f0] sm:$0xff]  ;;  %v13453_v58 = vcombine.high %v976_v28, %v980_v4  ;;  %v1020_v63 = vld [vmem:[#allocation5 + $0x1a38] sm:$0xff] }
 0x54b   :  { %v13707_v54 = vcombine.high %v1231_v5, %v1235_v6  ;;  %v13706_v19 = vcombine.low %v1231_v5, %v1235_v6  ;;  %v1024_v5 = vld [vmem:[#allocation5 + $0x1a58] sm:$0xff] }
 0x54c   :  { %11147 = vmatpush1.bf16.msra.mxu1 %v13404_v14  ;;  %v988_v14 = vld [vmem:[#allocation5 + $0x1938] sm:$0xff] }
 0x54d   :  { %10737 = vmatpush1.bf16.msra.mxu0 %v13658_v44  ;;  %11148 = vmatprep.subr.bf16.mxu1 %v13413_v10  ;;  %v1239_v44 = vld [vmem:[#allocation5 + $0x2110] sm:$0xff]  ;;  %v13461_v3 = vcombine.high %v984_v9, %v988_v14  ;;  %v1028_v6 = vld [vmem:[#allocation5 + $0x1a78] sm:$0xff] }
 0x54e   :  { %10738 = vmatprep.subr.bf16.mxu0 %v13667_v16  ;;  %v1243_v10 = vld [vmem:[#allocation5 + $0x2130] sm:$0xff]  ;;  %v13452_v16 = vcombine.low %v976_v28, %v980_v4  ;;  %v13493_v28 = vcombine.high %v1016_v60, %v1020_v63 }
 0x550   :  { %11149 = vmatpush1.bf16.msra.mxu1 %v13412_v27  ;;  %v1247_v27 = vld [vmem:[#allocation5 + $0x2150] sm:$0xff] }
 0x551   :  { %10739 = vmatpush1.bf16.msra.mxu0 %v13666_v7  ;;  %11150 = vmatprep.subr.bf16.mxu1 %v13421_v61  ;;  %v1251_v7 = vld [vmem:[#allocation5 + $0x2170] sm:$0xff]  ;;  %v13460_v61 = vcombine.low %v984_v9, %v988_v14  ;;  %v13501_v9 = vcombine.high %v1024_v5, %v1028_v6 }
 0x552   :  { %10740 = vmatprep.subr.bf16.mxu0 %v13675_v21  ;;  %v13714_v21 = vcombine.low %v1239_v44, %v1243_v10  ;;  %v13723_v62 = vcombine.high %v1247_v27, %v1251_v7 }
 0x554   :  { %11151 = vmatpush1.bf16.msra.mxu1 %v13420_v35  ;;  %v1255_v35 = vld [vmem:[#allocation5 + $0x2190] sm:$0xff] }
 0x555   :  { %10741 = vmatpush1.bf16.msra.mxu0 %v13674_v37  ;;  %11161 = vmatprep.subr.bf16.mxu1 %v13429_v41  ;;  %v1259_v37 = vld [vmem:[#allocation5 + $0x21b0] sm:$0xff]  ;;  %v13468_v41 = vcombine.low %v992_v23, %v996_v24 }
 0x556   :  { %10751 = vmatprep.subr.bf16.mxu0 %v13683_v43  ;;  %v13722_v43 = vcombine.low %v1247_v27, %v1251_v7  ;;  %v13731_v46 = vcombine.high %v1255_v35, %v1259_v37  ;;  %v1040_v27 = vld [vmem:[#allocation5 + $0x1ad8] sm:$0xff] }
 0x557   :  { %11153 = vmatmul.mubr.bf16.vlgmr.msra.gmra.mrb[8].mxu1 %v15191_v51  ;;  %v13444_v51 = vcombine.low %v968_v56, %v972_v57  ;;  %v13485_v56 = vcombine.high %v1008_v49, %v1012_v50  ;;  %v1044_v7 = vld [vmem:[#allocation5 + $0x1af8] sm:$0xff] }
 0x558   :  { %10743 = vmatmul.mubr.bf16.vlgmr.msra.gmra.mrb[4].mxu0 %v15207_v18  ;;  %11162 = vmatpush1.bf16.msra.mxu1 %v13428_v22  ;;  %v1263_v22 = vld [vmem:[#allocation5 + $0x21d0] sm:$0xff] }
 0x559   :  { %10752 = vmatpush1.bf16.msra.mxu0 %v13682_v52  ;;  %11163 = vmatprep.subr.bf16.mxu1 %v13437_v53  ;;  %v1267_v52 = vld [vmem:[#allocation5 + $0x21f0] sm:$0xff]  ;;  %v13476_v53 = vcombine.low %v1000_v33, %v1004_v34  ;;  %v13517_v33 = vcombine.high %v1040_v27, %v1044_v7 }
 0x55a   :  { %10753 = vmatprep.subr.bf16.mxu0 %v13691_v55  ;;  %10783 = vmatprep.mubr.bf16.mxu0 %v15209_v26  ;;  %v13730_v55 = vcombine.low %v1255_v35, %v1259_v37  ;;  %v13739_v57 = vcombine.high %v1263_v22, %v1267_v52  ;;  %v1048_v35 = vld [vmem:[#allocation5 + $0x1b18] sm:$0xff] }
 0x55b   :  { %11193 = vmatprep.mubr.bf16.mxu1 %v15193_v59  ;;  %v13715_v59 = vcombine.high %v1239_v44, %v1243_v10  ;;  %v1032_v44 = vld [vmem:[#allocation5 + $0x1a98] sm:$0xff] }
 0x55c   :  { %11164 = vmatpush1.bf16.msra.mxu1 %v13436_v36  ;;  %v1271_v36 = vld [vmem:[#allocation5 + $0x2210] sm:$0xff]  ;;  %v1036_v10 = vld [vmem:[#allocation5 + $0x1ab8] sm:$0xff] }
 0x55d   :  { %10754 = vmatpush1.bf16.msra.mxu0 %v13690_v0  ;;  %11165 = vmatprep.subr.bf16.mxu1 %v13445_v1  ;;  %v1275_v0 = vld [vmem:[#allocation5 + $0x2230] sm:$0xff]  ;;  %v13484_v1 = vcombine.low %v1008_v49, %v1012_v50  ;;  %v13509_v23 = vcombine.high %v1032_v44, %v1036_v10  ;;  %v1052_v37 = vld [vmem:[#allocation5 + $0x1b38] sm:$0xff] }
 0x55e   :  { %10755 = vmatprep.subr.bf16.mxu0 %v13699_v2  ;;  %v13738_v2 = vcombine.low %v1263_v22, %v1267_v52  ;;  %v13747_v4 = vcombine.high %v1271_v36, %v1275_v0  ;;  %v13525_v49 = vcombine.high %v1048_v35, %v1052_v37  ;;  %v1056_v22 = vld [vmem:[#allocation5 + $0x1b58] sm:$0xff] }
 0x55f   :  { %v1060_v52 = vld [vmem:[#allocation5 + $0x1b78] sm:$0xff] }
 0x560   :  { %11166 = vmatpush1.bf16.msra.mxu1 %v13444_v51  ;;  %v1279_v51 = vld [vmem:[#allocation5 + $0x2250] sm:$0xff] }
 0x561   :  { %10756 = vmatpush1.bf16.msra.mxu0 %v13698_v8  ;;  %11167 = vmatprep.subr.bf16.mxu1 %v13453_v58  ;;  %v1283_v8 = vld [vmem:[#allocation5 + $0x2270] sm:$0xff]  ;;  %v13492_v58 = vcombine.low %v1016_v60, %v1020_v63  ;;  %v13533_v60 = vcombine.high %v1056_v22, %v1060_v52 }
 0x562   :  { %10757 = vmatprep.subr.bf16.mxu0 %v13707_v54  ;;  %v13746_v54 = vcombine.low %v1271_v36, %v1275_v0  ;;  %v13755_v14 = vcombine.high %v1279_v51, %v1283_v8  ;;  %v1064_v36 = vld [vmem:[#allocation5 + $0x1b98] sm:$0xff] }
 0x563   :  { %v1068_v0 = vld [vmem:[#allocation5 + $0x1bb8] sm:$0xff] }
 0x564   :  { %11168 = vmatpush1.bf16.msra.mxu1 %v13452_v16  ;;  %v1287_v16 = vld [vmem:[#allocation5 + $0x2290] sm:$0xff] }
 0x565   :  { %10758 = vmatpush1.bf16.msra.mxu0 %v13706_v19  ;;  %11169 = vmatprep.subr.bf16.mxu1 %v13461_v3  ;;  %v1291_v19 = vld [vmem:[#allocation5 + $0x22b0] sm:$0xff]  ;;  %v13500_v3 = vcombine.low %v1024_v5, %v1028_v6  ;;  %v13541_v5 = vcombine.high %v1064_v36, %v1068_v0 }
 0x566   :  { %10759 = vmatprep.subr.bf16.mxu0 %v13715_v59  ;;  %v13754_v59 = vcombine.low %v1279_v51, %v1283_v8  ;;  %v13763_v24 = vcombine.high %v1287_v16, %v1291_v19  ;;  %v1072_v51 = vld [vmem:[#allocation5 + $0x1bd8] sm:$0xff] }
 0x567   :  { %v1076_v8 = vld [vmem:[#allocation5 + $0x1bf8] sm:$0xff] }
 0x568   :  { %11170 = vmatpush1.bf16.msra.mxu1 %v13460_v61  ;;  %v1295_v61 = vld [vmem:[#allocation5 + $0x22d0] sm:$0xff] }
 0x569   :  { %10760 = vmatpush1.bf16.msra.mxu0 %v13714_v21  ;;  %11171 = vmatprep.subr.bf16.mxu1 %v13469_v29  ;;  %v1299_v21 = vld [vmem:[#allocation5 + $0x22f0] sm:$0xff]  ;;  %v13508_v29 = vcombine.low %v1032_v44, %v1036_v10  ;;  %v13549_v44 = vcombine.high %v1072_v51, %v1076_v8 }
 0x56a   :  { %10761 = vmatprep.subr.bf16.mxu0 %v13723_v62  ;;  %v13762_v62 = vcombine.low %v1287_v16, %v1291_v19  ;;  %v13771_v34 = vcombine.high %v1295_v61, %v1299_v21  ;;  %v1080_v16 = vld [vmem:[#allocation5 + $0x1c18] sm:$0xff] }
 0x56b   :  { %v1084_v19 = vld [vmem:[#allocation5 + $0x1c38] sm:$0xff] }
 0x56c   :  { %11172 = vmatpush1.bf16.msra.mxu1 %v13468_v41  ;;  %v1303_v41 = vld [vmem:[#allocation5 + $0x2310] sm:$0xff] }
 0x56d   :  { %10762 = vmatpush1.bf16.msra.mxu0 %v13722_v43  ;;  %11173 = vmatprep.subr.bf16.mxu1 %v13477_v45  ;;  %v1307_v43 = vld [vmem:[#allocation5 + $0x2330] sm:$0xff]  ;;  %v13516_v45 = vcombine.low %v1040_v27, %v1044_v7  ;;  %v13557_v27 = vcombine.high %v1080_v16, %v1084_v19 }
 0x56e   :  { %10763 = vmatprep.subr.bf16.mxu0 %v13731_v46  ;;  %v13770_v46 = vcombine.low %v1295_v61, %v1299_v21  ;;  %v13779_v50 = vcombine.high %v1303_v41, %v1307_v43  ;;  %v1088_v61 = vld [vmem:[#allocation5 + $0x1c58] sm:$0xff] }
 0x56f   :  { %v1092_v21 = vld [vmem:[#allocation5 + $0x1c78] sm:$0xff] }
 0x570   :  { %11174 = vmatpush1.bf16.msra.mxu1 %v13476_v53  ;;  %v1311_v53 = vld [vmem:[#allocation5 + $0x2350] sm:$0xff] }
 0x571   :  { %10764 = vmatpush1.bf16.msra.mxu0 %v13730_v55  ;;  %11175 = vmatprep.subr.bf16.mxu1 %v13485_v56  ;;  %v1315_v55 = vld [vmem:[#allocation5 + $0x2370] sm:$0xff]  ;;  %v13524_v56 = vcombine.low %v1048_v35, %v1052_v37  ;;  %v13565_v35 = vcombine.high %v1088_v61, %v1092_v21 }
 0x572   :  { %10765 = vmatprep.subr.bf16.mxu0 %v13739_v57  ;;  %v13778_v57 = vcombine.low %v1303_v41, %v1307_v43  ;;  %v13787_v63 = vcombine.high %v1311_v53, %v1315_v55  ;;  %v1096_v41 = vld [vmem:[#allocation5 + $0x1c98] sm:$0xff] }
 0x573   :  { %v1100_v43 = vld [vmem:[#allocation5 + $0x1cb8] sm:$0xff] }
 0x574   :  { %11176 = vmatpush1.bf16.msra.mxu1 %v13484_v1  ;;  %v1319_v1 = vld [vmem:[#allocation5 + $0x2390] sm:$0xff] }
 0x575   :  { %10766 = vmatpush1.bf16.msra.mxu0 %v13738_v2  ;;  %11177 = vmatprep.subr.bf16.mxu1 %v13493_v28  ;;  %v1323_v2 = vld [vmem:[#allocation5 + $0x23b0] sm:$0xff]  ;;  %v13532_v28 = vcombine.low %v1056_v22, %v1060_v52  ;;  %v13573_v22 = vcombine.high %v1096_v41, %v1100_v43 }
 0x576   :  { %10767 = vmatprep.subr.bf16.mxu0 %v13747_v4  ;;  %v13786_v4 = vcombine.low %v1311_v53, %v1315_v55  ;;  %v13795_v6 = vcombine.high %v1319_v1, %v1323_v2  ;;  %v1104_v53 = vld [vmem:[#allocation5 + $0x1cd8] sm:$0xff] }
 0x577   :  { %v1108_v55 = vld [vmem:[#allocation5 + $0x1cf8] sm:$0xff] }
 0x578   :  { %11178 = vmatpush1.bf16.msra.mxu1 %v13492_v58  ;;  %v1327_v58 = vld [vmem:[#allocation5 + $0x23d0] sm:$0xff] }
 0x579   :  { %10768 = vmatpush1.bf16.msra.mxu0 %v13746_v54  ;;  %11179 = vmatprep.subr.bf16.mxu1 %v13501_v9  ;;  %v1331_v54 = vld [vmem:[#allocation5 + $0x23f0] sm:$0xff]  ;;  %v13540_v9 = vcombine.low %v1064_v36, %v1068_v0  ;;  %v1112_v0 = vld [vmem:[#allocation5 + $0x1d18] sm:$0xff] }
 0x57a   :  { %10769 = vmatprep.subr.bf16.mxu0 %v13755_v14  ;;  %v13794_v14 = vcombine.low %v1319_v1, %v1323_v2  ;;  %v13803_v10 = vcombine.high %v1327_v58, %v1331_v54  ;;  %v1116_v1 = vld [vmem:[#allocation5 + $0x1d38] sm:$0xff]  ;;  %v1367_v2 = vld [vmem:[#allocation5 + $0x2510] sm:$0xff] }
 0x57c   :  { %11180 = vmatpush1.bf16.msra.mxu1 %v13500_v3  ;;  %v1335_v3 = vld [vmem:[#allocation5 + $0x2410] sm:$0xff] }
 0x57d   :  { %10770 = vmatpush1.bf16.msra.mxu0 %v13754_v59  ;;  %11181 = vmatprep.subr.bf16.mxu1 %v13509_v23  ;;  %v1339_v59 = vld [vmem:[#allocation5 + $0x2430] sm:$0xff]  ;;  %v13548_v23 = vcombine.low %v1072_v51, %v1076_v8  ;;  %v1120_v51 = vld [vmem:[#allocation5 + $0x1d58] sm:$0xff] }
 0x57e   :  { %10771 = vmatprep.subr.bf16.mxu0 %v13763_v24  ;;  %v13802_v24 = vcombine.low %v1327_v58, %v1331_v54  ;;  %v13811_v7 = vcombine.high %v1335_v3, %v1339_v59  ;;  %v1124_v8 = vld [vmem:[#allocation5 + $0x1d78] sm:$0xff]  ;;  %v1375_v58 = vld [vmem:[#allocation5 + $0x2550] sm:$0xff] }
 0x57f   :  { %v1379_v54 = vld [vmem:[#allocation5 + $0x2570] sm:$0xff] }
 0x580   :  { %11182 = vmatpush1.bf16.msra.mxu1 %v13508_v29  ;;  %v1343_v29 = vld [vmem:[#allocation5 + $0x2450] sm:$0xff] }
 0x581   :  { %10772 = vmatpush1.bf16.msra.mxu0 %v13762_v62  ;;  %11183 = vmatprep.subr.bf16.mxu1 %v13517_v33  ;;  %v1347_v62 = vld [vmem:[#allocation5 + $0x2470] sm:$0xff]  ;;  %v13556_v33 = vcombine.low %v1080_v16, %v1084_v19  ;;  %v1128_v16 = vld [vmem:[#allocation5 + $0x1d98] sm:$0xff] }
 0x582   :  { %10773 = vmatprep.subr.bf16.mxu0 %v13771_v34  ;;  %v13810_v34 = vcombine.low %v1335_v3, %v1339_v59  ;;  %v13819_v37 = vcombine.high %v1343_v29, %v1347_v62  ;;  %v1132_v19 = vld [vmem:[#allocation5 + $0x1db8] sm:$0xff]  ;;  %v1383_v3 = vld [vmem:[#allocation5 + $0x2590] sm:$0xff] }
 0x583   :  { %v1387_v59 = vld [vmem:[#allocation5 + $0x25b0] sm:$0xff] }
 0x584   :  { %11184 = vmatpush1.bf16.msra.mxu1 %v13516_v45  ;;  %v1351_v45 = vld [vmem:[#allocation5 + $0x2490] sm:$0xff] }
 0x585   :  { %10774 = vmatpush1.bf16.msra.mxu0 %v13770_v46  ;;  %11185 = vmatprep.subr.bf16.mxu1 %v13525_v49  ;;  %v1355_v46 = vld [vmem:[#allocation5 + $0x24b0] sm:$0xff]  ;;  %v13564_v49 = vcombine.low %v1088_v61, %v1092_v21  ;;  %v1136_v61 = vld [vmem:[#allocation5 + $0x1dd8] sm:$0xff] }
 0x586   :  { %10775 = vmatprep.subr.bf16.mxu0 %v13779_v50  ;;  %v13818_v50 = vcombine.low %v1343_v29, %v1347_v62  ;;  %v13827_v52 = vcombine.high %v1351_v45, %v1355_v46  ;;  %v1140_v21 = vld [vmem:[#allocation5 + $0x1df8] sm:$0xff]  ;;  %v1391_v29 = vld [vmem:[#allocation5 + $0x25d0] sm:$0xff] }
 0x587   :  { %v1395_v62 = vld [vmem:[#allocation5 + $0x25f0] sm:$0xff] }
 0x588   :  { %11186 = vmatpush1.bf16.msra.mxu1 %v13524_v56  ;;  %v1359_v56 = vld [vmem:[#allocation5 + $0x24d0] sm:$0xff] }
 0x589   :  { %10776 = vmatpush1.bf16.msra.mxu0 %v13778_v57  ;;  %11187 = vmatprep.subr.bf16.mxu1 %v13533_v60  ;;  %v1363_v57 = vld [vmem:[#allocation5 + $0x24f0] sm:$0xff]  ;;  %v13826_v60 = vcombine.low %v1351_v45, %v1355_v46 }
 0x58a   :  { %10777 = vmatprep.subr.bf16.mxu0 %v13787_v63  ;;  %v13581_v63 = vcombine.high %v1104_v53, %v1108_v55  ;;  %v13835_v36 = vcombine.high %v1359_v56, %v1363_v57  ;;  %v1399_v45 = vld [vmem:[#allocation5 + $0x2610] sm:$0xff] }
 0x58b   :  { %v1403_v46 = vld [vmem:[#allocation5 + $0x2630] sm:$0xff] }
 0x58c   :  { %11188 = vmatpush1.bf16.msra.mxu1 %v13532_v28  ;;  %v1371_v28 = vld [vmem:[#allocation5 + $0x2530] sm:$0xff] }
 0x58d   :  { %10778 = vmatpush1.bf16.msra.mxu0 %v13786_v4  ;;  %11189 = vmatprep.subr.bf16.mxu1 %v13541_v5  ;;  %v13580_v4 = vcombine.low %v1104_v53, %v1108_v55  ;;  %v13834_v5 = vcombine.low %v1359_v56, %v1363_v57  ;;  %v1152_v53 = vld [vmem:[#allocation5 + $0x1e58] sm:$0xff]  ;;  %v1407_v56 = vld [vmem:[#allocation5 + $0x2650] sm:$0xff] }
 0x58e   :  { %10779 = vmatprep.subr.bf16.mxu0 %v13795_v6  ;;  %v13589_v6 = vcombine.high %v1112_v0, %v1116_v1  ;;  %v1156_v55 = vld [vmem:[#allocation5 + $0x1e78] sm:$0xff]  ;;  %v1411_v57 = vld [vmem:[#allocation5 + $0x2670] sm:$0xff] }
 0x590   :  { %11190 = vmatpush1.bf16.msra.mxu1 %v13540_v9  ;;  %v13588_v9 = vcombine.low %v1112_v0, %v1116_v1  ;;  %v1160_v0 = vld [vmem:[#allocation5 + $0x1e98] sm:$0xff] }
 0x591   :  { %10780 = vmatpush1.bf16.msra.mxu0 %v13794_v14  ;;  %11191 = vmatprep.subr.bf16.mxu1 %v13549_v44  ;;  %v13842_v14 = vcombine.low %v1367_v2, %v1371_v28  ;;  %v13597_v44 = vcombine.high %v1120_v51, %v1124_v8  ;;  %v1164_v1 = vld [vmem:[#allocation5 + $0x1eb8] sm:$0xff] }
 0x592   :  { %10781 = vmatprep.subr.bf16.mxu0 %v13803_v10  ;;  %v13851_v10 = vcombine.high %v1375_v58, %v1379_v54 }
 0x594   :  { %11192 = vmatpush1.bf16.msra.mxu1 %v13548_v23  ;;  %v13596_v23 = vcombine.low %v1120_v51, %v1124_v8  ;;  %v1168_v51 = vld [vmem:[#allocation5 + $0x1ed8] sm:$0xff] }
 0x595   :  { %10782 = vmatpush1.bf16.msra.mxu0 %v13802_v24  ;;  %11202 = vmatprep.subr.bf16.mxu1 %v13557_v27  ;;  %v13850_v24 = vcombine.low %v1375_v58, %v1379_v54  ;;  %v13605_v27 = vcombine.high %v1128_v16, %v1132_v19  ;;  %v1172_v8 = vld [vmem:[#allocation5 + $0x1ef8] sm:$0xff]  ;;  %v1423_v58 = vld [vmem:[#allocation5 + $0x26d0] sm:$0xff] }
 0x596   :  { %10792 = vmatprep.subr.bf16.mxu0 %v13811_v7  ;;  %v13859_v7 = vcombine.high %v1383_v3, %v1387_v59  ;;  %v1427_v54 = vld [vmem:[#allocation5 + $0x26f0] sm:$0xff] }
 0x597   :  { %11194 = vmatmul.mubr.bf16.vlgmr.msra.gmra.mrb[8].mxu1 %v15199_v32  ;;  %v13572_v32 = vcombine.low %v1096_v41, %v1100_v43  ;;  %v1144_v41 = vld [vmem:[#allocation5 + $0x1e18] sm:$0xff] }
 0x598   :  { %10784 = vmatmul.mubr.bf16.vlgmr.msra.gmra.mrb[4].mxu0 %v15215_v11  ;;  %11203 = vmatpush1.bf16.msra.mxu1 %v13556_v33  ;;  %v13604_v33 = vcombine.low %v1128_v16, %v1132_v19  ;;  %v1148_v43 = vld [vmem:[#allocation5 + $0x1e38] sm:$0xff] }
 0x599   :  { %10793 = vmatpush1.bf16.msra.mxu0 %v13810_v34  ;;  %11204 = vmatprep.subr.bf16.mxu1 %v13565_v35  ;;  %v13858_v34 = vcombine.low %v1383_v3, %v1387_v59  ;;  %v13613_v35 = vcombine.high %v1136_v61, %v1140_v21  ;;  %v1176_v16 = vld [vmem:[#allocation5 + $0x1f18] sm:$0xff]  ;;  %v1431_v3 = vld [vmem:[#allocation5 + $0x2710] sm:$0xff] }
 0x59a   :  { %10794 = vmatprep.subr.bf16.mxu0 %v13819_v37  ;;  %10824 = vmatprep.mubr.bf16.mxu0 %v15217_v20  ;;  %v13867_v37 = vcombine.high %v1391_v29, %v1395_v62  ;;  %v1180_v19 = vld [vmem:[#allocation5 + $0x1f38] sm:$0xff]  ;;  %v1435_v59 = vld [vmem:[#allocation5 + $0x2730] sm:$0xff] }
 0x59b   :  { %11234 = vmatprep.mubr.bf16.mxu1 %v15201_v39  ;;  %v13843_v39 = vcombine.high %v1367_v2, %v1371_v28  ;;  %v1415_v2 = vld [vmem:[#allocation5 + $0x2690] sm:$0xff] }
 0x59c   :  { %11205 = vmatpush1.bf16.msra.mxu1 %v13564_v49  ;;  %v13612_v49 = vcombine.low %v1136_v61, %v1140_v21  ;;  %v1419_v28 = vld [vmem:[#allocation5 + $0x26b0] sm:$0xff]  ;;  %v1184_v61 = vld [vmem:[#allocation5 + $0x1f58] sm:$0xff] }
 0x59d   :  { %10795 = vmatpush1.bf16.msra.mxu0 %v13818_v50  ;;  %11206 = vmatprep.subr.bf16.mxu1 %v13573_v22  ;;  %v13866_v50 = vcombine.low %v1391_v29, %v1395_v62  ;;  %v13621_v22 = vcombine.high %v1144_v41, %v1148_v43  ;;  %v1188_v21 = vld [vmem:[#allocation5 + $0x1f78] sm:$0xff]  ;;  %v1439_v29 = vld [vmem:[#allocation5 + $0x2750] sm:$0xff] }
 0x59e   :  { %10796 = vmatprep.subr.bf16.mxu0 %v13827_v52  ;;  %v13875_v52 = vcombine.high %v1399_v45, %v1403_v46  ;;  %v1443_v62 = vld [vmem:[#allocation5 + $0x2770] sm:$0xff] }
 0x5a0   :  { %11207 = vmatpush1.bf16.msra.mxu1 %v13572_v32  ;;  %v13620_v32 = vcombine.low %v1144_v41, %v1148_v43  ;;  %v1192_v41 = vld [vmem:[#allocation5 + $0x1f98] sm:$0xff] }
 0x5a1   :  { %10797 = vmatpush1.bf16.msra.mxu0 %v13826_v60  ;;  %11208 = vmatprep.subr.bf16.mxu1 %v13581_v63  ;;  %v13874_v60 = vcombine.low %v1399_v45, %v1403_v46  ;;  %v13629_v63 = vcombine.high %v1152_v53, %v1156_v55  ;;  %v1196_v43 = vld [vmem:[#allocation5 + $0x1fb8] sm:$0xff]  ;;  %v1447_v45 = vld [vmem:[#allocation5 + $0x2790] sm:$0xff] }
 0x5a2   :  { %10798 = vmatprep.subr.bf16.mxu0 %v13835_v36  ;;  %v13883_v36 = vcombine.high %v1407_v56, %v1411_v57  ;;  %v1451_v46 = vld [vmem:[#allocation5 + $0x27b0] sm:$0xff] }
 0x5a4   :  { %11209 = vmatpush1.bf16.msra.mxu1 %v13580_v4  ;;  %v13628_v4 = vcombine.low %v1152_v53, %v1156_v55  ;;  %v1200_v53 = vld [vmem:[#allocation5 + $0x1fd8] sm:$0xff] }
 0x5a5   :  { %10799 = vmatpush1.bf16.msra.mxu0 %v13834_v5  ;;  %11210 = vmatprep.subr.bf16.mxu1 %v13589_v6  ;;  %v13882_v5 = vcombine.low %v1407_v56, %v1411_v57  ;;  %v13637_v6 = vcombine.high %v1160_v0, %v1164_v1  ;;  %v1204_v55 = vld [vmem:[#allocation5 + $0x1ff8] sm:$0xff]  ;;  %v1455_v56 = vld [vmem:[#allocation5 + $0x27d0] sm:$0xff] }
 0x5a6   :  { %10800 = vmatprep.subr.bf16.mxu0 %v13843_v39  ;;  %v13891_v39 = vcombine.high %v1415_v2, %v1419_v28  ;;  %v1459_v57 = vld [vmem:[#allocation5 + $0x27f0] sm:$0xff] }
 0x5a8   :  { %11211 = vmatpush1.bf16.msra.mxu1 %v13588_v9  ;;  %v13636_v9 = vcombine.low %v1160_v0, %v1164_v1  ;;  %v1208_v0 = vld [vmem:[#allocation5 + $0x2018] sm:$0xff] }
 0x5a9   :  { %10801 = vmatpush1.bf16.msra.mxu0 %v13842_v14  ;;  %11212 = vmatprep.subr.bf16.mxu1 %v13597_v44  ;;  %v13890_v14 = vcombine.low %v1415_v2, %v1419_v28  ;;  %v13645_v44 = vcombine.high %v1168_v51, %v1172_v8  ;;  %v1212_v1 = vld [vmem:[#allocation5 + $0x2038] sm:$0xff]  ;;  %v1463_v2 = vld [vmem:[#allocation5 + $0x2810] sm:$0xff] }
 0x5aa   :  { %10802 = vmatprep.subr.bf16.mxu0 %v13851_v10  ;;  %v13899_v10 = vcombine.high %v1423_v58, %v1427_v54  ;;  %v1467_v28 = vld [vmem:[#allocation5 + $0x2830] sm:$0xff] }
 0x5ac   :  { %11213 = vmatpush1.bf16.msra.mxu1 %v13596_v23  ;;  %v13644_v23 = vcombine.low %v1168_v51, %v1172_v8  ;;  %v1216_v51 = vld [vmem:[#allocation5 + $0x2058] sm:$0xff] }
 0x5ad   :  { %10803 = vmatpush1.bf16.msra.mxu0 %v13850_v24  ;;  %11214 = vmatprep.subr.bf16.mxu1 %v13605_v27  ;;  %v13898_v24 = vcombine.low %v1423_v58, %v1427_v54  ;;  %v13653_v27 = vcombine.high %v1176_v16, %v1180_v19  ;;  %v1220_v8 = vld [vmem:[#allocation5 + $0x2078] sm:$0xff]  ;;  %v1471_v58 = vld [vmem:[#allocation5 + $0x2850] sm:$0xff] }
 0x5ae   :  { %10804 = vmatprep.subr.bf16.mxu0 %v13859_v7  ;;  %v13907_v7 = vcombine.high %v1431_v3, %v1435_v59  ;;  %v1475_v54 = vld [vmem:[#allocation5 + $0x2870] sm:$0xff] }
 0x5b0   :  { %11215 = vmatpush1.bf16.msra.mxu1 %v13604_v33  ;;  %v13652_v33 = vcombine.low %v1176_v16, %v1180_v19  ;;  %v1224_v16 = vld [vmem:[#allocation5 + $0x2098] sm:$0xff] }
 0x5b1   :  { %10805 = vmatpush1.bf16.msra.mxu0 %v13858_v34  ;;  %11216 = vmatprep.subr.bf16.mxu1 %v13613_v35  ;;  %v13906_v34 = vcombine.low %v1431_v3, %v1435_v59  ;;  %v13661_v35 = vcombine.high %v1184_v61, %v1188_v21  ;;  %v1228_v19 = vld [vmem:[#allocation5 + $0x20b8] sm:$0xff]  ;;  %v1479_v3 = vld [vmem:[#allocation5 + $0x2890] sm:$0xff] }
 0x5b2   :  { %10806 = vmatprep.subr.bf16.mxu0 %v13867_v37  ;;  %v13915_v37 = vcombine.high %v1439_v29, %v1443_v62  ;;  %v1483_v59 = vld [vmem:[#allocation5 + $0x28b0] sm:$0xff] }
 0x5b4   :  { %11217 = vmatpush1.bf16.msra.mxu1 %v13612_v49  ;;  %v13660_v49 = vcombine.low %v1184_v61, %v1188_v21  ;;  %v1232_v61 = vld [vmem:[#allocation5 + $0x20d8] sm:$0xff] }
 0x5b5   :  { %10807 = vmatpush1.bf16.msra.mxu0 %v13866_v50  ;;  %11218 = vmatprep.subr.bf16.mxu1 %v13621_v22  ;;  %v13914_v50 = vcombine.low %v1439_v29, %v1443_v62  ;;  %v13669_v22 = vcombine.high %v1192_v41, %v1196_v43  ;;  %v1236_v21 = vld [vmem:[#allocation5 + $0x20f8] sm:$0xff]  ;;  %v1487_v29 = vld [vmem:[#allocation5 + $0x28d0] sm:$0xff] }
 0x5b6   :  { %10808 = vmatprep.subr.bf16.mxu0 %v13875_v52  ;;  %v13923_v52 = vcombine.high %v1447_v45, %v1451_v46  ;;  %v1491_v62 = vld [vmem:[#allocation5 + $0x28f0] sm:$0xff] }
 0x5b8   :  { %11219 = vmatpush1.bf16.msra.mxu1 %v13620_v32  ;;  %v13668_v32 = vcombine.low %v1192_v41, %v1196_v43  ;;  %v1244_v41 = vld [vmem:[#allocation5 + $0x2138] sm:$0xff]  ;;  %v1495_v43 = vld [vmem:[#allocation5 + $0x2910] sm:$0xff] }
 0x5b9   :  { %10809 = vmatpush1.bf16.msra.mxu0 %v13874_v60  ;;  %11220 = vmatprep.subr.bf16.mxu1 %v13629_v63  ;;  %v13922_v60 = vcombine.low %v1447_v45, %v1451_v46  ;;  %v13677_v63 = vcombine.high %v1200_v53, %v1204_v55  ;;  %v1499_v45 = vld [vmem:[#allocation5 + $0x2930] sm:$0xff]  ;;  %v13708_v46 = vcombine.low %v1232_v61, %v1236_v21 }
 0x5ba   :  { %10810 = vmatprep.subr.bf16.mxu0 %v13883_v36  ;;  %v13931_v36 = vcombine.high %v1455_v56, %v1459_v57 }
 0x5bc   :  { %11221 = vmatpush1.bf16.msra.mxu1 %v13628_v4  ;;  %v13676_v4 = vcombine.low %v1200_v53, %v1204_v55  ;;  %v1503_v53 = vld [vmem:[#allocation5 + $0x2950] sm:$0xff] }
 0x5bd   :  { %10811 = vmatpush1.bf16.msra.mxu0 %v13882_v5  ;;  %11222 = vmatprep.subr.bf16.mxu1 %v13637_v6  ;;  %v13930_v5 = vcombine.low %v1455_v56, %v1459_v57  ;;  %v13685_v6 = vcombine.high %v1208_v0, %v1212_v1  ;;  %v1507_v55 = vld [vmem:[#allocation5 + $0x2970] sm:$0xff]  ;;  %v13970_v57 = vcombine.low %v1495_v43, %v1499_v45 }
 0x5be   :  { %10812 = vmatprep.subr.bf16.mxu0 %v13891_v39  ;;  %v13939_v39 = vcombine.high %v1463_v2, %v1467_v28 }
 0x5c0   :  { %11223 = vmatpush1.bf16.msra.mxu1 %v13636_v9  ;;  %v13684_v9 = vcombine.low %v1208_v0, %v1212_v1  ;;  %v1511_v0 = vld [vmem:[#allocation5 + $0x2990] sm:$0xff] }
 0x5c1   :  { %10813 = vmatpush1.bf16.msra.mxu0 %v13890_v14  ;;  %11224 = vmatprep.subr.bf16.mxu1 %v13645_v44  ;;  %v13938_v14 = vcombine.low %v1463_v2, %v1467_v28  ;;  %v13693_v44 = vcombine.high %v1216_v51, %v1220_v8  ;;  %v1515_v1 = vld [vmem:[#allocation5 + $0x29b0] sm:$0xff]  ;;  %v13978_v28 = vcombine.low %v1503_v53, %v1507_v55 }
 0x5c2   :  { %10814 = vmatprep.subr.bf16.mxu0 %v13899_v10  ;;  %v13947_v10 = vcombine.high %v1471_v58, %v1475_v54 }
 0x5c4   :  { %11225 = vmatpush1.bf16.msra.mxu1 %v13644_v23  ;;  %v13692_v23 = vcombine.low %v1216_v51, %v1220_v8  ;;  %v1519_v51 = vld [vmem:[#allocation5 + $0x29d0] sm:$0xff] }
 0x5c5   :  { %10815 = vmatpush1.bf16.msra.mxu0 %v13898_v24  ;;  %11226 = vmatprep.subr.bf16.mxu1 %v13653_v27  ;;  %v13946_v24 = vcombine.low %v1471_v58, %v1475_v54  ;;  %v13701_v27 = vcombine.high %v1224_v16, %v1228_v19  ;;  %v1523_v8 = vld [vmem:[#allocation5 + $0x29f0] sm:$0xff]  ;;  %v13986_v54 = vcombine.low %v1511_v0, %v1515_v1 }
 0x5c6   :  { %10816 = vmatprep.subr.bf16.mxu0 %v13907_v7  ;;  %v13955_v7 = vcombine.high %v1479_v3, %v1483_v59 }
 0x5c8   :  { %11227 = vmatpush1.bf16.msra.mxu1 %v13652_v33  ;;  %v13954_v33 = vcombine.low %v1479_v3, %v1483_v59  ;;  %v13994_v59 = vcombine.low %v1519_v51, %v1523_v8 }
 0x5c9   :  { %10817 = vmatpush1.bf16.msra.mxu0 %v13906_v34  ;;  %11228 = vmatprep.subr.bf16.mxu1 %v13661_v35  ;;  %v13709_v34 = vcombine.high %v1232_v61, %v1236_v21  ;;  %v13963_v35 = vcombine.high %v1487_v29, %v1491_v62  ;;  %v1535_v61 = vld [vmem:[#allocation5 + $0x2a50] sm:$0xff] }
 0x5ca   :  { %10818 = vmatprep.subr.bf16.mxu0 %v13915_v37  ;;  %v1240_v37 = vld [vmem:[#allocation5 + $0x2118] sm:$0xff]  ;;  %v1539_v21 = vld [vmem:[#allocation5 + $0x2a70] sm:$0xff] }
 0x5cb   :  { %v13716_v56 = vcombine.low %v1240_v37, %v1244_v41 }
 0x5cc   :  { %11229 = vmatpush1.bf16.msra.mxu1 %v13660_v49  ;;  %v13962_v49 = vcombine.low %v1487_v29, %v1491_v62 }
 0x5cd   :  { %10819 = vmatpush1.bf16.msra.mxu0 %v13914_v50  ;;  %11230 = vmatprep.subr.bf16.mxu1 %v13669_v22  ;;  %v13717_v50 = vcombine.high %v1240_v37, %v1244_v41  ;;  %v1248_v22 = vld [vmem:[#allocation5 + $0x2158] sm:$0xff]  ;;  %v1543_v37 = vld [vmem:[#allocation5 + $0x2a90] sm:$0xff] }
 0x5ce   :  { %10820 = vmatprep.subr.bf16.mxu0 %v13923_v52  ;;  %v1252_v52 = vld [vmem:[#allocation5 + $0x2178] sm:$0xff]  ;;  %v1547_v41 = vld [vmem:[#allocation5 + $0x2ab0] sm:$0xff] }
 0x5cf   :  { %v13724_v2 = vcombine.low %v1248_v22, %v1252_v52 }
 0x5d0   :  { %11231 = vmatpush1.bf16.msra.mxu1 %v13668_v32  ;;  %v13725_v32 = vcombine.high %v1248_v22, %v1252_v52  ;;  %v1551_v22 = vld [vmem:[#allocation5 + $0x2ad0] sm:$0xff] }
 0x5d1   :  { %10821 = vmatpush1.bf16.msra.mxu0 %v13922_v60  ;;  %11232 = vmatprep.subr.bf16.mxu1 %v13677_v63  ;;  %v13979_v60 = vcombine.high %v1503_v53, %v1507_v55  ;;  %v1256_v63 = vld [vmem:[#allocation5 + $0x2198] sm:$0xff]  ;;  %v1555_v52 = vld [vmem:[#allocation5 + $0x2af0] sm:$0xff]  ;;  %v14018_v55 = vcombine.low %v1543_v37, %v1547_v41 }
 0x5d2   :  { %10822 = vmatprep.subr.bf16.mxu0 %v13931_v36  ;;  %v1260_v36 = vld [vmem:[#allocation5 + $0x21b8] sm:$0xff] }
 0x5d3   :  { %v13732_v58 = vcombine.low %v1256_v63, %v1260_v36 }
 0x5d4   :  { %11233 = vmatpush1.bf16.msra.mxu1 %v13676_v4  ;;  %v13733_v4 = vcombine.high %v1256_v63, %v1260_v36  ;;  %v1559_v63 = vld [vmem:[#allocation5 + $0x2b10] sm:$0xff] }
 0x5d5   :  { %10823 = vmatpush1.bf16.msra.mxu0 %v13930_v5  ;;  %11243 = vmatprep.subr.bf16.mxu1 %v13685_v6  ;;  %v13987_v5 = vcombine.high %v1511_v0, %v1515_v1  ;;  %v1264_v6 = vld [vmem:[#allocation5 + $0x21d8] sm:$0xff]  ;;  %v1563_v36 = vld [vmem:[#allocation5 + $0x2b30] sm:$0xff]  ;;  %v14026_v1 = vcombine.low %v1551_v22, %v1555_v52 }
 0x5d6   :  { %10833 = vmatprep.subr.bf16.mxu0 %v13939_v39  ;;  %v1268_v39 = vld [vmem:[#allocation5 + $0x21f8] sm:$0xff] }
 0x5d7   :  { %11235 = vmatmul.mubr.bf16.vlgmr.msra.gmra.mrb[8].mxu1 %v15207_v18  ;;  %v13700_v18 = vcombine.low %v1224_v16, %v1228_v19  ;;  %v1527_v16 = vld [vmem:[#allocation5 + $0x2a10] sm:$0xff]  ;;  %v13740_v3 = vcombine.low %v1264_v6, %v1268_v39 }
 0x5d8   :  { %10825 = vmatmul.mubr.bf16.vlgmr.msra.gmra.mrb[4].mxu0 %v15223_v13  ;;  %11244 = vmatpush1.bf16.msra.mxu1 %v13684_v9  ;;  %v13741_v9 = vcombine.high %v1264_v6, %v1268_v39  ;;  %v1531_v19 = vld [vmem:[#allocation5 + $0x2a30] sm:$0xff] }
 0x5d9   :  { %10834 = vmatpush1.bf16.msra.mxu0 %v13938_v14  ;;  %11245 = vmatprep.subr.bf16.mxu1 %v13693_v44  ;;  %v13995_v14 = vcombine.high %v1519_v51, %v1523_v8  ;;  %v1272_v44 = vld [vmem:[#allocation5 + $0x2218] sm:$0xff]  ;;  %v14002_v62 = vcombine.low %v1527_v16, %v1531_v19  ;;  %v1567_v6 = vld [vmem:[#allocation5 + $0x2b50] sm:$0xff]  ;;  %v14034_v8 = vcombine.low %v1559_v63, %v1563_v36 }
 0x5da   :  { %10835 = vmatprep.subr.bf16.mxu0 %v13947_v10  ;;  %10865 = vmatprep.mubr.bf16.mxu0 %v15225_v25  ;;  %v1276_v10 = vld [vmem:[#allocation5 + $0x2238] sm:$0xff]  ;;  %v1571_v39 = vld [vmem:[#allocation5 + $0x2b70] sm:$0xff] }
 0x5db   :  { %11275 = vmatprep.mubr.bf16.mxu1 %v15209_v26  ;;  %v13971_v26 = vcombine.high %v1495_v43, %v1499_v45  ;;  %v13748_v29 = vcombine.low %v1272_v44, %v1276_v10  ;;  %v14010_v45 = vcombine.low %v1535_v61, %v1539_v21 }
 0x5dc   :  { %11246 = vmatpush1.bf16.msra.mxu1 %v13692_v23  ;;  %v13749_v23 = vcombine.high %v1272_v44, %v1276_v10  ;;  %v1575_v44 = vld [vmem:[#allocation5 + $0x2b90] sm:$0xff] }
 0x5dd   :  { %10836 = vmatpush1.bf16.msra.mxu0 %v13946_v24  ;;  %11247 = vmatprep.subr.bf16.mxu1 %v13701_v27  ;;  %v14003_v24 = vcombine.high %v1527_v16, %v1531_v19  ;;  %v1280_v27 = vld [vmem:[#allocation5 + $0x2258] sm:$0xff]  ;;  %v1579_v10 = vld [vmem:[#allocation5 + $0x2bb0] sm:$0xff]  ;;  %v14042_v19 = vcombine.low %v1567_v6, %v1571_v39 }
 0x5de   :  { %10837 = vmatprep.subr.bf16.mxu0 %v13955_v7  ;;  %v1284_v7 = vld [vmem:[#allocation5 + $0x2278] sm:$0xff] }
 0x5df   :  { %v13756_v43 = vcombine.low %v1280_v27, %v1284_v7 }
 0x5e0   :  { %11248 = vmatpush1.bf16.msra.mxu1 %v13700_v18  ;;  %v13757_v18 = vcombine.high %v1280_v27, %v1284_v7  ;;  %v1583_v27 = vld [vmem:[#allocation5 + $0x2bd0] sm:$0xff] }
 0x5e1   :  { %10838 = vmatpush1.bf16.msra.mxu0 %v13954_v33  ;;  %11249 = vmatprep.subr.bf16.mxu1 %v13709_v34  ;;  %v14011_v33 = vcombine.high %v1535_v61, %v1539_v21  ;;  %v1288_v34 = vld [vmem:[#allocation5 + $0x2298] sm:$0xff]  ;;  %v1587_v7 = vld [vmem:[#allocation5 + $0x2bf0] sm:$0xff]  ;;  %v14050_v21 = vcombine.low %v1575_v44, %v1579_v10 }
 0x5e2   :  { %10839 = vmatprep.subr.bf16.mxu0 %v13963_v35  ;;  %v1292_v35 = vld [vmem:[#allocation5 + $0x22b8] sm:$0xff] }
 0x5e3   :  { %v13764_v53 = vcombine.low %v1288_v34, %v1292_v35 }
 0x5e4   :  { %11250 = vmatpush1.bf16.msra.mxu1 %v13708_v46  ;;  %v13765_v46 = vcombine.high %v1288_v34, %v1292_v35  ;;  %v1591_v34 = vld [vmem:[#allocation5 + $0x2c10] sm:$0xff] }
 0x5e5   :  { %10840 = vmatpush1.bf16.msra.mxu0 %v13962_v49  ;;  %11251 = vmatprep.subr.bf16.mxu1 %v13717_v50  ;;  %v14019_v49 = vcombine.high %v1543_v37, %v1547_v41  ;;  %v1296_v50 = vld [vmem:[#allocation5 + $0x22d8] sm:$0xff]  ;;  %v1595_v35 = vld [vmem:[#allocation5 + $0x2c30] sm:$0xff]  ;;  %v14058_v41 = vcombine.low %v1583_v27, %v1587_v7 }
 0x5e6   :  { %10841 = vmatprep.subr.bf16.mxu0 %v13971_v26  ;;  %v1300_v26 = vld [vmem:[#allocation5 + $0x22f8] sm:$0xff] }
 0x5e7   :  { %v13772_v0 = vcombine.low %v1296_v50, %v1300_v26 }
 0x5e8   :  { %11252 = vmatpush1.bf16.msra.mxu1 %v13716_v56  ;;  %v13773_v56 = vcombine.high %v1296_v50, %v1300_v26  ;;  %v1599_v50 = vld [vmem:[#allocation5 + $0x2c50] sm:$0xff] }
 0x5e9   :  { %10842 = vmatpush1.bf16.msra.mxu0 %v13970_v57  ;;  %11253 = vmatprep.subr.bf16.mxu1 %v13725_v32  ;;  %v14027_v57 = vcombine.high %v1551_v22, %v1555_v52  ;;  %v1304_v32 = vld [vmem:[#allocation5 + $0x2318] sm:$0xff]  ;;  %v1603_v26 = vld [vmem:[#allocation5 + $0x2c70] sm:$0xff]  ;;  %v14066_v52 = vcombine.low %v1591_v34, %v1595_v35 }
 0x5ea   :  { %10843 = vmatprep.subr.bf16.mxu0 %v13979_v60  ;;  %v1308_v60 = vld [vmem:[#allocation5 + $0x2338] sm:$0xff] }
 0x5eb   :  { %v13780_v51 = vcombine.low %v1304_v32, %v1308_v60 }
 0x5ec   :  { %11254 = vmatpush1.bf16.msra.mxu1 %v13724_v2  ;;  %v13781_v2 = vcombine.high %v1304_v32, %v1308_v60  ;;  %v1607_v32 = vld [vmem:[#allocation5 + $0x2c90] sm:$0xff] }
 0x5ed   :  { %10844 = vmatpush1.bf16.msra.mxu0 %v13978_v28  ;;  %11255 = vmatprep.subr.bf16.mxu1 %v13733_v4  ;;  %v14035_v28 = vcombine.high %v1559_v63, %v1563_v36  ;;  %v1312_v4 = vld [vmem:[#allocation5 + $0x2358] sm:$0xff]  ;;  %v1611_v60 = vld [vmem:[#allocation5 + $0x2cb0] sm:$0xff]  ;;  %v14074_v36 = vcombine.low %v1599_v50, %v1603_v26 }
 0x5ee   :  { %10845 = vmatprep.subr.bf16.mxu0 %v13987_v5  ;;  %v1316_v5 = vld [vmem:[#allocation5 + $0x2378] sm:$0xff] }
 0x5ef   :  { %v13788_v16 = vcombine.low %v1312_v4, %v1316_v5 }
 0x5f0   :  { %11256 = vmatpush1.bf16.msra.mxu1 %v13732_v58  ;;  %v13789_v58 = vcombine.high %v1312_v4, %v1316_v5  ;;  %v1615_v4 = vld [vmem:[#allocation5 + $0x2cd0] sm:$0xff] }
 0x5f1   :  { %10846 = vmatpush1.bf16.msra.mxu0 %v13986_v54  ;;  %11257 = vmatprep.subr.bf16.mxu1 %v13741_v9  ;;  %v14043_v54 = vcombine.high %v1567_v6, %v1571_v39  ;;  %v1320_v9 = vld [vmem:[#allocation5 + $0x2398] sm:$0xff]  ;;  %v1619_v5 = vld [vmem:[#allocation5 + $0x2cf0] sm:$0xff]  ;;  %v14082_v6 = vcombine.low %v1607_v32, %v1611_v60 }
 0x5f2   :  { %10847 = vmatprep.subr.bf16.mxu0 %v13995_v14  ;;  %v1324_v14 = vld [vmem:[#allocation5 + $0x23b8] sm:$0xff] }
 0x5f3   :  { %v13796_v61 = vcombine.low %v1320_v9, %v1324_v14 }
 0x5f4   :  { %11258 = vmatpush1.bf16.msra.mxu1 %v13740_v3  ;;  %v13797_v3 = vcombine.high %v1320_v9, %v1324_v14  ;;  %v1627_v9 = vld [vmem:[#allocation5 + $0x2d30] sm:$0xff] }
 0x5f5   :  { %10848 = vmatpush1.bf16.msra.mxu0 %v13994_v59  ;;  %11259 = vmatprep.subr.bf16.mxu1 %v13749_v23  ;;  %v14051_v59 = vcombine.high %v1575_v44, %v1579_v10  ;;  %v1328_v23 = vld [vmem:[#allocation5 + $0x23d8] sm:$0xff]  ;;  %v14090_v44 = vcombine.low %v1615_v4, %v1619_v5 }
 0x5f6   :  { %10849 = vmatprep.subr.bf16.mxu0 %v14003_v24  ;;  %v1332_v24 = vld [vmem:[#allocation5 + $0x23f8] sm:$0xff] }
 0x5f7   :  { %v13804_v37 = vcombine.low %v1328_v23, %v1332_v24 }
 0x5f8   :  { %11260 = vmatpush1.bf16.msra.mxu1 %v13748_v29  ;;  %v13805_v29 = vcombine.high %v1328_v23, %v1332_v24 }
 0x5f9   :  { %10850 = vmatpush1.bf16.msra.mxu0 %v14002_v62  ;;  %11261 = vmatprep.subr.bf16.mxu1 %v13757_v18  ;;  %v14059_v62 = vcombine.high %v1583_v27, %v1587_v7  ;;  %v1336_v18 = vld [vmem:[#allocation5 + $0x2418] sm:$0xff] }
 0x5fa   :  { %10851 = vmatprep.subr.bf16.mxu0 %v14011_v33  ;;  %v1340_v33 = vld [vmem:[#allocation5 + $0x2438] sm:$0xff] }
 0x5fb   :  { %v13812_v22 = vcombine.low %v1336_v18, %v1340_v33 }
 0x5fc   :  { %11262 = vmatpush1.bf16.msra.mxu1 %v13756_v43  ;;  %v13813_v43 = vcombine.high %v1336_v18, %v1340_v33 }
 0x5fd   :  { %10852 = vmatpush1.bf16.msra.mxu0 %v14010_v45  ;;  %11263 = vmatprep.subr.bf16.mxu1 %v13765_v46  ;;  %v14067_v45 = vcombine.high %v1591_v34, %v1595_v35  ;;  %v1344_v46 = vld [vmem:[#allocation5 + $0x2458] sm:$0xff] }
 0x5fe   :  { %10853 = vmatprep.subr.bf16.mxu0 %v14019_v49  ;;  %v1348_v49 = vld [vmem:[#allocation5 + $0x2478] sm:$0xff] }
 0x5ff   :  { %v13820_v63 = vcombine.low %v1344_v46, %v1348_v49 }
 0x600   :  { %11264 = vmatpush1.bf16.msra.mxu1 %v13764_v53  ;;  %v13821_v53 = vcombine.high %v1344_v46, %v1348_v49 }
 0x601   :  { %10854 = vmatpush1.bf16.msra.mxu0 %v14018_v55  ;;  %11265 = vmatprep.subr.bf16.mxu1 %v13773_v56  ;;  %v14075_v55 = vcombine.high %v1599_v50, %v1603_v26  ;;  %v1352_v56 = vld [vmem:[#allocation5 + $0x2498] sm:$0xff] }
 0x602   :  { %10855 = vmatprep.subr.bf16.mxu0 %v14027_v57  ;;  %v1356_v57 = vld [vmem:[#allocation5 + $0x24b8] sm:$0xff] }
 0x604   :  { %11266 = vmatpush1.bf16.msra.mxu1 %v13772_v0  ;;  %v13829_v0 = vcombine.high %v1352_v56, %v1356_v57 }
 0x605   :  { %10856 = vmatpush1.bf16.msra.mxu0 %v14026_v1  ;;  %11267 = vmatprep.subr.bf16.mxu1 %v13781_v2  ;;  %v14083_v1 = vcombine.high %v1607_v32, %v1611_v60  ;;  %v1360_v2 = vld [vmem:[#allocation5 + $0x24d8] sm:$0xff] }
 0x606   :  { %10857 = vmatprep.subr.bf16.mxu0 %v14035_v28  ;;  %v1364_v28 = vld [vmem:[#allocation5 + $0x24f8] sm:$0xff] }
 0x607   :  { %v13837_v39 = vcombine.high %v1360_v2, %v1364_v28  ;;  %v13836_v14 = vcombine.low %v1360_v2, %v1364_v28 }
 0x608   :  { %11268 = vmatpush1.bf16.msra.mxu1 %v13780_v51  ;;  %v14091_v51 = vcombine.high %v1615_v4, %v1619_v5 }
 0x609   :  { %10858 = vmatpush1.bf16.msra.mxu0 %v14034_v8  ;;  %11269 = vmatprep.subr.bf16.mxu1 %v13789_v58  ;;  %v1368_v8 = vld [vmem:[#allocation5 + $0x2518] sm:$0xff] }
 0x60a   :  { %10859 = vmatprep.subr.bf16.mxu0 %v14043_v54  ;;  %v1372_v58 = vld [vmem:[#allocation5 + $0x2538] sm:$0xff]  ;;  %v1623_v54 = vld [vmem:[#allocation5 + $0x2d10] sm:$0xff] }
 0x60b   :  { %v13845_v10 = vcombine.high %v1368_v8, %v1372_v58  ;;  %v13844_v23 = vcombine.low %v1368_v8, %v1372_v58  ;;  %v14098_v24 = vcombine.low %v1623_v54, %v1627_v9 }
 0x60c   :  { %11270 = vmatpush1.bf16.msra.mxu1 %v13788_v16  ;;  %v1376_v16 = vld [vmem:[#allocation5 + $0x2558] sm:$0xff] }
 0x60d   :  { %10860 = vmatpush1.bf16.msra.mxu0 %v14042_v19  ;;  %11271 = vmatprep.subr.bf16.mxu1 %v13797_v3  ;;  %v1380_v19 = vld [vmem:[#allocation5 + $0x2578] sm:$0xff]  ;;  %v1631_v3 = vld [vmem:[#allocation5 + $0x2d50] sm:$0xff] }
 0x60e   :  { %10861 = vmatprep.subr.bf16.mxu0 %v14051_v59  ;;  %v1635_v59 = vld [vmem:[#allocation5 + $0x2d70] sm:$0xff]  ;;  %v13853_v27 = vcombine.high %v1376_v16, %v1380_v19  ;;  %v13852_v18 = vcombine.low %v1376_v16, %v1380_v19 }
 0x60f   :  { %v14107_v7 = vcombine.high %v1631_v3, %v1635_v59  ;;  %v14106_v33 = vcombine.low %v1631_v3, %v1635_v59 }
 0x610   :  { %11272 = vmatpush1.bf16.msra.mxu1 %v13796_v61  ;;  %v1384_v61 = vld [vmem:[#allocation5 + $0x2598] sm:$0xff] }
 0x611   :  { %10862 = vmatpush1.bf16.msra.mxu0 %v14050_v21  ;;  %11273 = vmatprep.subr.bf16.mxu1 %v13805_v29  ;;  %v1388_v21 = vld [vmem:[#allocation5 + $0x25b8] sm:$0xff]  ;;  %v1639_v29 = vld [vmem:[#allocation5 + $0x2d90] sm:$0xff] }
 0x612   :  { %10863 = vmatprep.subr.bf16.mxu0 %v14059_v62  ;;  %v1643_v62 = vld [vmem:[#allocation5 + $0x2db0] sm:$0xff]  ;;  %v13861_v34 = vcombine.high %v1384_v61, %v1388_v21  ;;  %v13860_v46 = vcombine.low %v1384_v61, %v1388_v21 }
 0x613   :  { %v14115_v35 = vcombine.high %v1639_v29, %v1643_v62  ;;  %v14114_v49 = vcombine.low %v1639_v29, %v1643_v62 }
 0x614   :  { %11274 = vmatpush1.bf16.msra.mxu1 %v13804_v37  ;;  %v1392_v37 = vld [vmem:[#allocation5 + $0x25d8] sm:$0xff] }
 0x615   :  { %10864 = vmatpush1.bf16.msra.mxu0 %v14058_v41  ;;  %11284 = vmatprep.subr.bf16.mxu1 %v13813_v43  ;;  %v1396_v41 = vld [vmem:[#allocation5 + $0x25f8] sm:$0xff]  ;;  %v1647_v43 = vld [vmem:[#allocation5 + $0x2dd0] sm:$0xff] }
 0x616   :  { %10874 = vmatprep.subr.bf16.mxu0 %v14067_v45  ;;  %v1651_v45 = vld [vmem:[#allocation5 + $0x2df0] sm:$0xff]  ;;  %v13869_v50 = vcombine.high %v1392_v37, %v1396_v41 }
 0x617   :  { %11276 = vmatmul.mubr.bf16.vlgmr.msra.gmra.mrb[8].mxu1 %v15215_v11  ;;  %v13828_v11 = vcombine.low %v1352_v56, %v1356_v57  ;;  %v14123_v26 = vcombine.high %v1647_v43, %v1651_v45  ;;  %v13868_v56 = vcombine.low %v1392_v37, %v1396_v41  ;;  %v14122_v57 = vcombine.low %v1647_v43, %v1651_v45 }
 0x618   :  { %10866 = vmatmul.mubr.bf16.vlgmr.msra.gmra.mrb[4].mxu0 %v15231_v30  ;;  %11285 = vmatpush1.bf16.msra.mxu1 %v13812_v22  ;;  %v1400_v22 = vld [vmem:[#allocation5 + $0x2618] sm:$0xff] }
 0x619   :  { %10875 = vmatpush1.bf16.msra.mxu0 %v14066_v52  ;;  %11286 = vmatprep.subr.bf16.mxu1 %v13821_v53  ;;  %v1404_v52 = vld [vmem:[#allocation5 + $0x2638] sm:$0xff]  ;;  %v1655_v53 = vld [vmem:[#allocation5 + $0x2e10] sm:$0xff] }
 0x61a   :  { %10876 = vmatprep.subr.bf16.mxu0 %v14075_v55  ;;  %10906 = vmatprep.mubr.bf16.mxu0 %v15233_v38  ;;  %v1659_v55 = vld [vmem:[#allocation5 + $0x2e30] sm:$0xff]  ;;  %v13877_v32 = vcombine.high %v1400_v22, %v1404_v52  ;;  %v13876_v2 = vcombine.low %v1400_v22, %v1404_v52 }
 0x61b   :  { %11316 = vmatprep.mubr.bf16.mxu1 %v15217_v20  ;;  %v14099_v20 = vcombine.high %v1623_v54, %v1627_v9  ;;  %v14131_v60 = vcombine.high %v1655_v53, %v1659_v55  ;;  %v14130_v28 = vcombine.low %v1655_v53, %v1659_v55 }
 0x61c   :  { %11287 = vmatpush1.bf16.msra.mxu1 %v13820_v63  ;;  %v1408_v63 = vld [vmem:[#allocation5 + $0x2658] sm:$0xff] }
 0x61d   :  { %10877 = vmatpush1.bf16.msra.mxu0 %v14074_v36  ;;  %11288 = vmatprep.subr.bf16.mxu1 %v13829_v0  ;;  %v1412_v36 = vld [vmem:[#allocation5 + $0x2678] sm:$0xff]  ;;  %v1663_v0 = vld [vmem:[#allocation5 + $0x2e50] sm:$0xff] }
 0x61e   :  { %10878 = vmatprep.subr.bf16.mxu0 %v14083_v1  ;;  %v1667_v1 = vld [vmem:[#allocation5 + $0x2e70] sm:$0xff]  ;;  %v13885_v4 = vcombine.high %v1408_v63, %v1412_v36  ;;  %v13884_v8 = vcombine.low %v1408_v63, %v1412_v36 }
 0x61f   :  { %v14139_v5 = vcombine.high %v1663_v0, %v1667_v1  ;;  %v14138_v58 = vcombine.low %v1663_v0, %v1667_v1 }
 0x620   :  { %11289 = vmatpush1.bf16.msra.mxu1 %v13828_v11  ;;  %v1416_v11 = vld [vmem:[#allocation5 + $0x2698] sm:$0xff] }
 0x621   :  { %10879 = vmatpush1.bf16.msra.mxu0 %v14082_v6  ;;  %11290 = vmatprep.subr.bf16.mxu1 %v13837_v39  ;;  %v1420_v6 = vld [vmem:[#allocation5 + $0x26b8] sm:$0xff]  ;;  %v1671_v39 = vld [vmem:[#allocation5 + $0x2e90] sm:$0xff] }
 0x622   :  { %10880 = vmatprep.subr.bf16.mxu0 %v14091_v51  ;;  %v1675_v51 = vld [vmem:[#allocation5 + $0x2eb0] sm:$0xff]  ;;  %v13893_v54 = vcombine.high %v1416_v11, %v1420_v6  ;;  %v13892_v16 = vcombine.low %v1416_v11, %v1420_v6 }
 0x623   :  { %v14147_v9 = vcombine.high %v1671_v39, %v1675_v51  ;;  %v14146_v19 = vcombine.low %v1671_v39, %v1675_v51  ;;  %v14561_v6 = vld [vmem:[#allocation8 + $0x4] ss:$8 sps:$4 sm:$0xff]   ;;  %v11408_v39 = vmax.f32 %v15271_v15, 0.0  ;;  %v1472_v51 = vld [vmem:[#allocation5 + $0x2858] sm:$0xff] }
 0x624   :  { %11291 = vmatpush1.bf16.msra.mxu1 %v13836_v14  ;;  %v1424_v14 = vld [vmem:[#allocation5 + $0x26d8] sm:$0xff] }
 0x625   :  { %10881 = vmatpush1.bf16.msra.mxu0 %v14090_v44  ;;  %11292 = vmatprep.subr.bf16.mxu1 %v13845_v10  ;;  %v1428_v44 = vld [vmem:[#allocation5 + $0x26f8] sm:$0xff]  ;;  %v1679_v10 = vld [vmem:[#allocation5 + $0x2ed0] sm:$0xff] }
 0x626   :  { %10882 = vmatprep.subr.bf16.mxu0 %v14099_v20  ;;  %v1683_v20 = vld [vmem:[#allocation5 + $0x2ef0] sm:$0xff]  ;;  %v13901_v3 = vcombine.high %v1424_v14, %v1428_v44  ;;  %v13900_v61 = vcombine.low %v1424_v14, %v1428_v44  ;;  %v14564_v14 = vld [vmem:[#allocation8 + $0x14] ss:$8 sps:$4 sm:$0xff]   ;;  %v14562_v15 = vld [vmem:[#allocation8 + $0x10] ss:$8 sps:$4 sm:$0xff]  }
 0x627   :  { %v14155_v59 = vcombine.high %v1679_v10, %v1683_v20  ;;  %v14154_v21 = vcombine.low %v1679_v10, %v1683_v20  ;;  %v1480_v44 = vld [vmem:[#allocation5 + $0x2898] sm:$0xff]  ;;  %v11416_v20 = vpack.c.bf16 %v11408_v39, %v11408_v39 }
 0x628   :  { %11293 = vmatpush1.bf16.msra.mxu1 %v13844_v23  ;;  %v1432_v23 = vld [vmem:[#allocation5 + $0x2718] sm:$0xff] }
 0x629   :  { %10883 = vmatpush1.bf16.msra.mxu0 %v14098_v24  ;;  %11294 = vmatprep.subr.bf16.mxu1 %v13853_v27  ;;  %v1436_v24 = vld [vmem:[#allocation5 + $0x2738] sm:$0xff]  ;;  %v1687_v27 = vld [vmem:[#allocation5 + $0x2f10] sm:$0xff] }
 0x62a   :  { %10884 = vmatprep.subr.bf16.mxu0 %v14107_v7  ;;  %v1691_v7 = vld [vmem:[#allocation5 + $0x2f30] sm:$0xff]  ;;  %v13909_v29 = vcombine.high %v1432_v23, %v1436_v24  ;;  %v13908_v37 = vcombine.low %v1432_v23, %v1436_v24  ;;  %v1484_v10 = vld [vmem:[#allocation5 + $0x28b8] sm:$0xff] }
 0x62b   :  { %v14163_v62 = vcombine.high %v1687_v27, %v1691_v7  ;;  %v14162_v41 = vcombine.low %v1687_v27, %v1691_v7  ;;  %v1492_v23 = vld [vmem:[#allocation5 + $0x28f8] sm:$0xff]  ;;  %v13956_v24 = vcombine.low %v1480_v44, %v1484_v10 }
 0x62c   :  { %11295 = vmatpush1.bf16.msra.mxu1 %v13852_v18  ;;  %v1440_v18 = vld [vmem:[#allocation5 + $0x2758] sm:$0xff] }
 0x62d   :  { %10885 = vmatpush1.bf16.msra.mxu0 %v14106_v33  ;;  %11296 = vmatprep.subr.bf16.mxu1 %v13861_v34  ;;  %v1444_v33 = vld [vmem:[#allocation5 + $0x2778] sm:$0xff]  ;;  %v1695_v34 = vld [vmem:[#allocation5 + $0x2f50] sm:$0xff] }
 0x62e   :  { %10886 = vmatprep.subr.bf16.mxu0 %v14115_v35  ;;  %v1699_v35 = vld [vmem:[#allocation5 + $0x2f70] sm:$0xff]  ;;  %v13917_v43 = vcombine.high %v1440_v18, %v1444_v33  ;;  %v13916_v22 = vcombine.low %v1440_v18, %v1444_v33  ;;  %v14570_v7 = vld [vmem:[#allocation8 + $0x34] ss:$8 sps:$4 sm:$0xff]  }
 0x62f   :  { %v14171_v45 = vcombine.high %v1695_v34, %v1699_v35  ;;  %v14170_v52 = vcombine.low %v1695_v34, %v1699_v35  ;;  %v14573_v33 = vld [vmem:[#allocation8 + $0x44] ss:$8 sps:$4 sm:$0xff]   ;;  %v1504_v34 = vld [vmem:[#allocation5 + $0x2958] sm:$0xff] }
 0x630   :  { %11297 = vmatpush1.bf16.msra.mxu1 %v13860_v46  ;;  %v1448_v46 = vld [vmem:[#allocation5 + $0x2798] sm:$0xff] }
 0x631   :  { %10887 = vmatpush1.bf16.msra.mxu0 %v14114_v49  ;;  %11298 = vmatprep.subr.bf16.mxu1 %v13869_v50  ;;  %v1452_v49 = vld [vmem:[#allocation5 + $0x27b8] sm:$0xff]  ;;  %v1703_v50 = vld [vmem:[#allocation5 + $0x2f90] sm:$0xff] }
 0x632   :  { %10888 = vmatprep.subr.bf16.mxu0 %v14123_v26  ;;  %v1707_v26 = vld [vmem:[#allocation5 + $0x2fb0] sm:$0xff]  ;;  %v13925_v53 = vcombine.high %v1448_v46, %v1452_v49  ;;  %v13924_v63 = vcombine.low %v1448_v46, %v1452_v49  ;;  %v1516_v46 = vld [vmem:[#allocation5 + $0x29b8] sm:$0xff] }
 0x633   :  { %v14179_v55 = vcombine.high %v1703_v50, %v1707_v26  ;;  %v14178_v36 = vcombine.low %v1703_v50, %v1707_v26  ;;  %v14574_v50 = vld [vmem:[#allocation8 + $0x50] ss:$8 sps:$4 sm:$0xff]   ;;  %v14588_v39 = vld [vmem:[#allocation8 + $0x94] ss:$8 sps:$4 sm:$0xff]  }
 0x634   :  { %11299 = vmatpush1.bf16.msra.mxu1 %v13868_v56  ;;  %v1456_v56 = vld [vmem:[#allocation5 + $0x27d8] sm:$0xff] }
 0x635   :  { %10889 = vmatpush1.bf16.msra.mxu0 %v14122_v57  ;;  %11300 = vmatprep.subr.bf16.mxu1 %v13877_v32  ;;  %v1460_v57 = vld [vmem:[#allocation5 + $0x27f8] sm:$0xff]  ;;  %v1711_v32 = vld [vmem:[#allocation5 + $0x2fd0] sm:$0xff] }
 0x636   :  { %10890 = vmatprep.subr.bf16.mxu0 %v14131_v60  ;;  %v1715_v60 = vld [vmem:[#allocation5 + $0x2ff0] sm:$0xff]  ;;  %v13933_v0 = vcombine.high %v1456_v56, %v1460_v57 }
 0x637   :  { %v14187_v1 = vcombine.high %v1711_v32, %v1715_v60 }
 0x638   :  { %11301 = vmatpush1.bf16.msra.mxu1 %v13876_v2  ;;  %v1464_v2 = vld [vmem:[#allocation5 + $0x2818] sm:$0xff] }
 0x639   :  { %10891 = vmatpush1.bf16.msra.mxu0 %v14130_v28  ;;  %11302 = vmatprep.subr.bf16.mxu1 %v13885_v4  ;;  %v1468_v28 = vld [vmem:[#allocation5 + $0x2838] sm:$0xff]  ;;  %v13932_v4 = vcombine.low %v1456_v56, %v1460_v57  ;;  %v14577_v56 = vld [vmem:[#allocation8 + $0x60] ss:$8 sps:$4 sm:$0xff]  }
 0x63a   :  { %10892 = vmatprep.subr.bf16.mxu0 %v14139_v5  ;;  %v14186_v5 = vcombine.low %v1711_v32, %v1715_v60  ;;  %v13941_v11 = vcombine.high %v1464_v2, %v1468_v28  ;;  %v14582_v32 = vld [vmem:[#allocation8 + $0x74] ss:$8 sps:$4 sm:$0xff]  }
 0x63b   :  { %v1528_v60 = vld [vmem:[#allocation5 + $0x2a18] sm:$0xff] }
 0x63c   :  { %11303 = vmatpush1.bf16.msra.mxu1 %v13884_v8  ;;  %v1476_v8 = vld [vmem:[#allocation5 + $0x2878] sm:$0xff] }
 0x63d   :  { %10893 = vmatpush1.bf16.msra.mxu0 %v14138_v58  ;;  %11304 = vmatprep.subr.bf16.mxu1 %v13893_v54  ;;  %v13940_v58 = vcombine.low %v1464_v2, %v1468_v28  ;;  %v14559_v54 = vld [vmem:[#allocation8] ss:$8 sps:$4 sm:$0xff]   ;;  %v14585_v2 = vld [vmem:[#allocation8 + $0x84] ss:$8 sps:$4 sm:$0xff]   ;;  %v1536_v28 = vld [vmem:[#allocation5 + $0x2a58] sm:$0xff] }
 0x63e   :  { %10894 = vmatprep.subr.bf16.mxu0 %v14147_v9  ;;  %v13949_v9 = vcombine.high %v1472_v51, %v1476_v8 }
 0x640   :  { %11305 = vmatpush1.bf16.msra.mxu1 %v13892_v16  ;;  %v13948_v16 = vcombine.low %v1472_v51, %v1476_v8  ;;  %v1544_v51 = vld [vmem:[#allocation5 + $0x2a98] sm:$0xff] }
 0x641   :  { %10895 = vmatpush1.bf16.msra.mxu0 %v14146_v19  ;;  %11306 = vmatprep.subr.bf16.mxu1 %v13901_v3  ;;  %v13957_v19 = vcombine.high %v1480_v44, %v1484_v10  ;;  %v14567_v3 = vld [vmem:[#allocation8 + $0x24] ss:$8 sps:$4 sm:$0xff]   ;;  %v1548_v8 = vld [vmem:[#allocation5 + $0x2ab8] sm:$0xff] }
 0x642   :  { %10896 = vmatprep.subr.bf16.mxu0 %v14155_v59  ;;  %v1488_v59 = vld [vmem:[#allocation5 + $0x28d8] sm:$0xff] }
 0x643   :  { %v13965_v27 = vcombine.high %v1488_v59, %v1492_v23  ;;  %v1552_v44 = vld [vmem:[#allocation5 + $0x2ad8] sm:$0xff] }
 0x644   :  { %11307 = vmatpush1.bf16.msra.mxu1 %v13900_v61  ;;  %v1496_v61 = vld [vmem:[#allocation5 + $0x2918] sm:$0xff] }
 0x645   :  { %10897 = vmatpush1.bf16.msra.mxu0 %v14154_v21  ;;  %11308 = vmatprep.subr.bf16.mxu1 %v13909_v29  ;;  %v1500_v21 = vld [vmem:[#allocation5 + $0x2938] sm:$0xff]  ;;  %v13964_v29 = vcombine.low %v1488_v59, %v1492_v23 }
 0x646   :  { %10898 = vmatprep.subr.bf16.mxu0 %v14163_v62  ;;  %v14568_v62 = vld [vmem:[#allocation8 + $0x30] ss:$8 sps:$4 sm:$0xff]   ;;  %v13973_v18 = vcombine.high %v1496_v61, %v1500_v21  ;;  %v13972_v35 = vcombine.low %v1496_v61, %v1500_v21 }
 0x647   :  { %v1556_v10 = vld [vmem:[#allocation5 + $0x2af8] sm:$0xff] }
 0x648   :  { %11309 = vmatpush1.bf16.msra.mxu1 %v13908_v37  ;;  %v14571_v37 = vld [vmem:[#allocation8 + $0x40] ss:$8 sps:$4 sm:$0xff]   ;;  %v1564_v59 = vld [vmem:[#allocation5 + $0x2b38] sm:$0xff]  ;;  %v14028_v23 = vcombine.low %v1552_v44, %v1556_v10 }
 0x649   :  { %10899 = vmatpush1.bf16.msra.mxu0 %v14162_v41  ;;  %11310 = vmatprep.subr.bf16.mxu1 %v13917_v43  ;;  %v14576_v43 = vld [vmem:[#allocation8 + $0x54] ss:$8 sps:$4 sm:$0xff]  }
 0x64a   :  { %10900 = vmatprep.subr.bf16.mxu0 %v14171_v45  ;;  %v1512_v45 = vld [vmem:[#allocation5 + $0x2998] sm:$0xff] }
 0x64b   :  { %v13989_v26 = vcombine.high %v1512_v45, %v1516_v46  ;;  %v1572_v61 = vld [vmem:[#allocation5 + $0x2b78] sm:$0xff] }
 0x64c   :  { %11311 = vmatpush1.bf16.msra.mxu1 %v13916_v22  ;;  %v14579_v22 = vld [vmem:[#allocation8 + $0x64] ss:$8 sps:$4 sm:$0xff]  }
 0x64d   :  { %10901 = vmatpush1.bf16.msra.mxu0 %v14170_v52  ;;  %11312 = vmatprep.subr.bf16.mxu1 %v13925_v53  ;;  %v1520_v52 = vld [vmem:[#allocation5 + $0x29d8] sm:$0xff] }
 0x64e   :  { %10902 = vmatprep.subr.bf16.mxu0 %v14179_v55  ;;  %v1524_v53 = vld [vmem:[#allocation5 + $0x29f8] sm:$0xff]  ;;  %v13988_v55 = vcombine.low %v1512_v45, %v1516_v46 }
 0x64f   :  { %v13997_v57 = vcombine.high %v1520_v52, %v1524_v53  ;;  %v1584_v45 = vld [vmem:[#allocation5 + $0x2bd8] sm:$0xff] }
 0x650   :  { %11313 = vmatpush1.bf16.msra.mxu1 %v13924_v63  ;;  %v1532_v63 = vld [vmem:[#allocation5 + $0x2a38] sm:$0xff] }
 0x651   :  { %10903 = vmatpush1.bf16.msra.mxu0 %v14178_v36  ;;  %11314 = vmatprep.subr.bf16.mxu1 %v13933_v0  ;;  %v13996_v36 = vcombine.low %v1520_v52, %v1524_v53  ;;  %v14580_v0 = vld [vmem:[#allocation8 + $0x70] ss:$8 sps:$4 sm:$0xff]   ;;  %v14606_v53 = vld [vmem:[#allocation8 + $0xf4] ss:$8 sps:$4 sm:$0xff]  }
 0x652   :  { %10904 = vmatprep.subr.bf16.mxu0 %v14187_v1  ;;  %v14005_v1 = vcombine.high %v1528_v60, %v1532_v63  ;;  %v1588_v46 = vld [vmem:[#allocation5 + $0x2bf8] sm:$0xff] }
 0x653   :  { %v14061_v52 = vcombine.high %v1584_v45, %v1588_v46 }
 0x654   :  { %11315 = vmatpush1.bf16.msra.mxu1 %v13932_v4  ;;  %v1540_v4 = vld [vmem:[#allocation5 + $0x2a78] sm:$0xff] }
 0x655   :  { %10905 = vmatpush1.bf16.msra.mxu0 %v14186_v5  ;;  %11325 = vmatprep.subr.bf16.mxu1 %v13941_v11  ;;  %v14004_v5 = vcombine.low %v1528_v60, %v1532_v63  ;;  %v14583_v11 = vld [vmem:[#allocation8 + $0x80] ss:$8 sps:$4 sm:$0xff]   ;;  %v14604_v60 = vld [vmem:[#allocation8 + $0xf0] ss:$8 sps:$4 sm:$0xff]  }
 0x656   :  { %12203 = vmatprep.subr.bf16.mxu0 %v14561_v6  ;;  %v14013_v6 = vcombine.high %v1536_v28, %v1540_v4 }
 0x657   :  { %11317 = vmatmul.mubr.bf16.vlgmr.msra.gmra.mrb[8].mxu1 %v15223_v13  ;;  %v14565_v13 = vld [vmem:[#allocation8 + $0x20] ss:$8 sps:$4 sm:$0xff]  }
 0x658   :  { %10907 = vmatmul.mubr.bf16.vlgmr.msra.gmra.mrb[4].mxu0 %v15239_v47  ;;  %11326 = vmatpush1.bf16.msra.mxu1 %v13940_v58  ;;  %v14012_v58 = vcombine.low %v1536_v28, %v1540_v4  ;;  %v1604_v28 = vld [vmem:[#allocation5 + $0x2c78] sm:$0xff] }
 0x659   :  { %12204 = vmatpush1.bf16.msra.mxu0 %v14559_v54  ;;  %12235 = vmatprep.mubr.bf16.mxu0 %v11416_v20  ;;  %v14586_v54 = vld [vmem:[#allocation8 + $0x90] ss:$8 sps:$4 sm:$0xff]   ;;  %v14020_v20 = vcombine.low %v1544_v51, %v1548_v8 }
 0x65a   :  { %11327 = vmatprep.subr.bf16.mxu1 %v13949_v9  ;;  %12205 = vmatprep.subr.bf16.mxu0 %v14564_v14  ;;  %v14021_v9 = vcombine.high %v1544_v51, %v1548_v8  ;;  %v14591_v14 = vld [vmem:[#allocation8 + $0xa4] ss:$8 sps:$4 sm:$0xff]   ;;  %v1612_v51 = vld [vmem:[#allocation5 + $0x2cb8] sm:$0xff] }
 0x65b   :  { %11357 = vmatprep.mubr.bf16.mxu1 %v15225_v25  ;;  %v1508_v25 = vld [vmem:[#allocation5 + $0x2978] sm:$0xff] }
 0x65c   :  { %11328 = vmatpush1.bf16.msra.mxu1 %v13948_v16  ;;  %v13981_v41 = vcombine.high %v1504_v34, %v1508_v25  ;;  %v13980_v49 = vcombine.low %v1504_v34, %v1508_v25  ;;  %v14589_v16 = vld [vmem:[#allocation8 + $0xa0] ss:$8 sps:$4 sm:$0xff]   ;;  %v1580_v34 = vld [vmem:[#allocation5 + $0x2bb8] sm:$0xff]  ;;  %v1733_v25 = vsub.s32 3, %v15257_v12 }
 0x65d   :  { %12206 = vmatpush1.bf16.msra.mxu0 %v14562_v15  ;;  %11329 = vmatprep.subr.bf16.mxu1 %v13957_v19  ;;  %v14029_v15 = vcombine.high %v1552_v44, %v1556_v10  ;;  %v14594_v19 = vld [vmem:[#allocation8 + $0xb4] ss:$8 sps:$4 sm:$0xff]  }
 0x65e   :  { %12207 = vmatprep.subr.bf16.mxu0 %v14567_v3  ;;  %v1560_v3 = vld [vmem:[#allocation5 + $0x2b18] sm:$0xff] }
 0x65f   :  { %v14036_v21 = vcombine.low %v1560_v3, %v1564_v59  ;;  %v1620_v44 = vld [vmem:[#allocation5 + $0x2cf8] sm:$0xff] }
 0x660   :  { %11330 = vmatpush1.bf16.msra.mxu1 %v13956_v24  ;;  %v14592_v24 = vld [vmem:[#allocation8 + $0xb0] ss:$8 sps:$4 sm:$0xff]  }
 0x661   :  { %12208 = vmatpush1.bf16.msra.mxu0 %v14565_v13  ;;  %11331 = vmatprep.subr.bf16.mxu1 %v13965_v27  ;;  %v14037_v13 = vcombine.high %v1560_v3, %v1564_v59  ;;  %v14597_v27 = vld [vmem:[#allocation8 + $0xc4] ss:$8 sps:$4 sm:$0xff]   ;;  %v14616_v59 = vld [vmem:[#allocation8 + $0x130] ss:$8 sps:$4 sm:$0xff]  }
 0x662   :  { %12209 = vmatprep.subr.bf16.mxu0 %v14570_v7  ;;  %v1568_v7 = vld [vmem:[#allocation5 + $0x2b58] sm:$0xff] }
 0x664   :  { %11332 = vmatpush1.bf16.msra.mxu1 %v13964_v29  ;;  %v14595_v29 = vld [vmem:[#allocation8 + $0xc0] ss:$8 sps:$4 sm:$0xff]  }
 0x665   :  { %12210 = vmatpush1.bf16.msra.mxu0 %v14568_v62  ;;  %11333 = vmatprep.subr.bf16.mxu1 %v13973_v18  ;;  %v14045_v62 = vcombine.high %v1568_v7, %v1572_v61  ;;  %v14600_v18 = vld [vmem:[#allocation8 + $0xd4] ss:$8 sps:$4 sm:$0xff]  }
 0x666   :  { %12211 = vmatprep.subr.bf16.mxu0 %v14573_v33  ;;  %v1576_v33 = vld [vmem:[#allocation5 + $0x2b98] sm:$0xff] }
 0x668   :  { %11334 = vmatpush1.bf16.msra.mxu1 %v13972_v35  ;;  %v14044_v35 = vcombine.low %v1568_v7, %v1572_v61  ;;  %v14619_v7 = vld [vmem:[#allocation8 + $0x140] ss:$8 sps:$4 sm:$0xff]  }
 0x669   :  { %12212 = vmatpush1.bf16.msra.mxu0 %v14571_v37  ;;  %11335 = vmatprep.subr.bf16.mxu1 %v13981_v41  ;;  %v14598_v37 = vld [vmem:[#allocation8 + $0xd0] ss:$8 sps:$4 sm:$0xff]   ;;  %v14053_v41 = vcombine.high %v1576_v33, %v1580_v34 }
 0x66a   :  { %12213 = vmatprep.subr.bf16.mxu0 %v14576_v43  ;;  %v14603_v43 = vld [vmem:[#allocation8 + $0xe4] ss:$8 sps:$4 sm:$0xff]  }
 0x66c   :  { %11336 = vmatpush1.bf16.msra.mxu1 %v13980_v49  ;;  %v15314_v49 = vld [vmem:[#allocation7] sm:$0xff] }
 0x66d   :  { %12214 = vmatpush1.bf16.msra.mxu0 %v14574_v50  ;;  %11337 = vmatprep.subr.bf16.mxu1 %v13989_v26  ;;  %v1734_v50 = vrot.slane %v15314_v49, %v1733_v25  ;;  %v14052_v26 = vcombine.low %v1576_v33, %v1580_v34  ;;  %v14622_v33 = vld [vmem:[#allocation8 + $0x150] ss:$8 sps:$4 sm:$0xff]   ;;  %v14627_v25 = vld [vmem:[#allocation8 + $0x164] ss:$8 sps:$4 sm:$0xff]  }
 0x66e   :  { %12215 = vmatprep.subr.bf16.mxu0 %v14579_v22  ;;  %v14601_v22 = vld [vmem:[#allocation8 + $0xe0] ss:$8 sps:$4 sm:$0xff]  }
 0x670   :  { %11338 = vmatpush1.bf16.msra.mxu1 %v13988_v55  ;;  %v1592_v55 = vld [vmem:[#allocation5 + $0x2c18] sm:$0xff] }
 0x671   :  { %12216 = vmatpush1.bf16.msra.mxu0 %v14577_v56  ;;  %11339 = vmatprep.subr.bf16.mxu1 %v13997_v57  ;;  %v1596_v56 = vld [vmem:[#allocation5 + $0x2c38] sm:$0xff]  ;;  %v14356_v57 = vadd.f32 %v15283_v48, %v1734_v50 }
 0x672   :  { %12217 = vmatprep.subr.bf16.mxu0 %v14582_v32  ;;  %v14060_v32 = vcombine.low %v1584_v45, %v1588_v46  ;;  %v14069_v63 = vcombine.high %v1592_v55, %v1596_v56  ;;  %v14068_v4 = vcombine.low %v1592_v55, %v1596_v56  ;;  %v14630_v46 = vld [vmem:[#allocation8 + $0x174] ss:$8 sps:$4 sm:$0xff]   ;;  %v14633_v55 = vld [vmem:[#allocation8 + $0x184] ss:$8 sps:$4 sm:$0xff]  }
 0x673   :  { %v1656_v50 = vld [vmem:[#allocation5 + $0x2e18] sm:$0xff] }
 0x674   :  { %11340 = vmatpush1.bf16.msra.mxu1 %v13996_v36  ;;  %v11407_v36 = vmax.f32 %v15269_v17, 0.0  ;;  %v1664_v56 = vld [vmem:[#allocation5 + $0x2e58] sm:$0xff] }
 0x675   :  { %12218 = vmatpush1.bf16.msra.mxu0 %v14580_v0  ;;  %11341 = vmatprep.subr.bf16.mxu1 %v14005_v1  ;;  %v14609_v0 = vld [vmem:[#allocation8 + $0x104] ss:$8 sps:$4 sm:$0xff]   ;;  %v11410_v1 = vmax.f32 %v14356_v57, 0.0  ;;  %v1668_v57 = vld [vmem:[#allocation5 + $0x2e78] sm:$0xff] }
 0x676   :  { %12219 = vmatprep.subr.bf16.mxu0 %v14585_v2  ;;  %v1600_v2 = vld [vmem:[#allocation5 + $0x2c58] sm:$0xff] }
 0x677   :  { %v14077_v48 = vcombine.high %v1600_v2, %v1604_v28  ;;  %v11418_v8 = vpack.c.bf16 %v11410_v1, %v11410_v1  ;;  %v14076_v17 = vcombine.low %v1600_v2, %v1604_v28  ;;  %v1676_v1 = vld [vmem:[#allocation5 + $0x2eb8] sm:$0xff]  ;;  %v14140_v2 = vcombine.low %v1664_v56, %v1668_v57 }
 0x678   :  { %11342 = vmatpush1.bf16.msra.mxu1 %v14004_v5  ;;  %v14607_v5 = vld [vmem:[#allocation8 + $0x100] ss:$8 sps:$4 sm:$0xff]   ;;  %v14634_v28 = vld [vmem:[#allocation8 + $0x190] ss:$8 sps:$4 sm:$0xff]  }
 0x679   :  { %12220 = vmatpush1.bf16.msra.mxu0 %v14583_v11  ;;  %11343 = vmatprep.subr.bf16.mxu1 %v14013_v6  ;;  %v11415_v11 = vpack.c.bf16 %v11407_v36, %v11407_v36  ;;  %v14612_v6 = vld [vmem:[#allocation8 + $0x114] ss:$8 sps:$4 sm:$0xff]  }
 0x67a   :  { %12221 = vmatprep.subr.bf16.mxu0 %v14588_v39  ;;  %v1608_v39 = vld [vmem:[#allocation5 + $0x2c98] sm:$0xff] }
 0x67b   :  { %v14084_v10 = vcombine.low %v1608_v39, %v1612_v51  ;;  %v14636_v36 = vld [vmem:[#allocation8 + $0x194] ss:$8 sps:$4 sm:$0xff]  }
 0x67c   :  { %11344 = vmatpush1.bf16.msra.mxu1 %v14012_v58  ;;  %v14610_v58 = vld [vmem:[#allocation8 + $0x110] ss:$8 sps:$4 sm:$0xff]  }
 0x67d   :  { %12222 = vmatpush1.bf16.msra.mxu0 %v14586_v54  ;;  %11345 = vmatprep.subr.bf16.mxu1 %v14021_v9  ;;  %v14085_v54 = vcombine.high %v1608_v39, %v1612_v51  ;;  %v14615_v9 = vld [vmem:[#allocation8 + $0x124] ss:$8 sps:$4 sm:$0xff]   ;;  %v14637_v39 = vld [vmem:[#allocation8 + $0x1a0] ss:$8 sps:$4 sm:$0xff]  }
 0x67e   :  { %12223 = vmatprep.subr.bf16.mxu0 %v14591_v14  ;;  %v1616_v14 = vld [vmem:[#allocation5 + $0x2cd8] sm:$0xff] }
 0x67f   :  { %v14092_v3 = vcombine.low %v1616_v14, %v1620_v44 }
 0x680   :  { %11346 = vmatpush1.bf16.msra.mxu1 %v14020_v20  ;;  %v14613_v20 = vld [vmem:[#allocation8 + $0x120] ss:$8 sps:$4 sm:$0xff]  }
 0x681   :  { %12224 = vmatpush1.bf16.msra.mxu0 %v14589_v16  ;;  %11347 = vmatprep.subr.bf16.mxu1 %v14029_v15  ;;  %v14618_v16 = vld [vmem:[#allocation8 + $0x134] ss:$8 sps:$4 sm:$0xff]  }
 0x682   :  { %12225 = vmatprep.subr.bf16.mxu0 %v14594_v19  ;;  %v1624_v15 = vld [vmem:[#allocation5 + $0x2d18] sm:$0xff] }
 0x683   :  { %v1628_v19 = vld [vmem:[#allocation5 + $0x2d38] sm:$0xff] }
 0x684   :  { %11348 = vmatpush1.bf16.msra.mxu1 %v14028_v23  ;;  %v14101_v23 = vcombine.high %v1624_v15, %v1628_v19 }
 0x685   :  { %12226 = vmatpush1.bf16.msra.mxu0 %v14592_v24  ;;  %11349 = vmatprep.subr.bf16.mxu1 %v14037_v13  ;;  %v14621_v24 = vld [vmem:[#allocation8 + $0x144] ss:$8 sps:$4 sm:$0xff]   ;;  %v1632_v13 = vld [vmem:[#allocation5 + $0x2d58] sm:$0xff] }
 0x686   :  { %12227 = vmatprep.subr.bf16.mxu0 %v14597_v27  ;;  %v14100_v27 = vcombine.low %v1624_v15, %v1628_v19  ;;  %v1729_v19 = vsub.s32 2, %v15257_v12 }
 0x688   :  { %11350 = vmatpush1.bf16.msra.mxu1 %v14036_v21  ;;  %v14624_v21 = vld [vmem:[#allocation8 + $0x154] ss:$8 sps:$4 sm:$0xff]  }
 0x689   :  { %12228 = vmatpush1.bf16.msra.mxu0 %v14595_v29  ;;  %11351 = vmatprep.subr.bf16.mxu1 %v14045_v62  ;;  %v1640_v29 = vld [vmem:[#allocation5 + $0x2d98] sm:$0xff] }
 0x68a   :  { %12229 = vmatprep.subr.bf16.mxu0 %v14600_v18  ;;  %v1644_v62 = vld [vmem:[#allocation5 + $0x2db8] sm:$0xff] }
 0x68b   :  { %v14117_v34 = vcombine.high %v1640_v29, %v1644_v62 }
 0x68c   :  { %11352 = vmatpush1.bf16.msra.mxu1 %v14044_v35  ;;  %v1648_v35 = vld [vmem:[#allocation5 + $0x2dd8] sm:$0xff] }
 0x68d   :  { %12230 = vmatpush1.bf16.msra.mxu0 %v14598_v37  ;;  %11353 = vmatprep.subr.bf16.mxu1 %v14053_v41  ;;  %v1652_v37 = vld [vmem:[#allocation5 + $0x2df8] sm:$0xff]  ;;  %v14116_v41 = vcombine.low %v1640_v29, %v1644_v62  ;;  %v14649_v62 = vld [vmem:[#allocation8 + $0x1e0] ss:$8 sps:$4 sm:$0xff]  }
 0x68e   :  { %12231 = vmatprep.subr.bf16.mxu0 %v14603_v43  ;;  %v14625_v43 = vld [vmem:[#allocation8 + $0x160] ss:$8 sps:$4 sm:$0xff]   ;;  %v14125_v45 = vcombine.high %v1648_v35, %v1652_v37 }
 0x690   :  { %11354 = vmatpush1.bf16.msra.mxu1 %v14052_v26  ;;  %v1660_v26 = vld [vmem:[#allocation5 + $0x2e38] sm:$0xff] }
 0x691   :  { %12232 = vmatpush1.bf16.msra.mxu0 %v14601_v22  ;;  %11355 = vmatprep.subr.bf16.mxu1 %v14061_v52  ;;  %v14124_v22 = vcombine.low %v1648_v35, %v1652_v37  ;;  %v14628_v52 = vld [vmem:[#allocation8 + $0x170] ss:$8 sps:$4 sm:$0xff]  }
 0x692   :  { %12233 = vmatprep.subr.bf16.mxu0 %v14606_v53  ;;  %v14133_v53 = vcombine.high %v1656_v50, %v1660_v26  ;;  %v14652_v35 = vld [vmem:[#allocation8 + $0x1f0] ss:$8 sps:$4 sm:$0xff]  }
 0x694   :  { %11356 = vmatpush1.bf16.msra.mxu1 %v14060_v32  ;;  %v14132_v32 = vcombine.low %v1656_v50, %v1660_v26  ;;  %v14663_v50 = vld [vmem:[#allocation8 + $0x224] ss:$8 sps:$4 sm:$0xff]   ;;  %v14661_v26 = vld [vmem:[#allocation8 + $0x220] ss:$8 sps:$4 sm:$0xff]  }
 0x695   :  { %12234 = vmatpush1.bf16.msra.mxu0 %v14604_v60  ;;  %11366 = vmatprep.subr.bf16.mxu1 %v14069_v63  ;;  %v14631_v60 = vld [vmem:[#allocation8 + $0x180] ss:$8 sps:$4 sm:$0xff]   ;;  %v14141_v63 = vcombine.high %v1664_v56, %v1668_v57  ;;  %v14672_v56 = vld [vmem:[#allocation8 + $0x254] ss:$8 sps:$4 sm:$0xff]   ;;  %v14670_v57 = vld [vmem:[#allocation8 + $0x250] ss:$8 sps:$4 sm:$0xff]  }
 0x696   :  { %12244 = vmatprep.subr.bf16.mxu0 %v14609_v0  ;;  %v1672_v0 = vld [vmem:[#allocation5 + $0x2e98] sm:$0xff] }
 0x697   :  { %11358 = vmatmul.mubr.bf16.vlgmr.msra.gmra.mrb[8].mxu1 %v15231_v30  ;;  %v14093_v30 = vcombine.high %v1616_v14, %v1620_v44  ;;  %v14645_v44 = vld [vmem:[#allocation8 + $0x1c4] ss:$8 sps:$4 sm:$0xff]  }
 0x698   :  { %12236 = vmatmul.mubr.bf16.vlgmr.msra.gmra.mrb[8].mxu0 %v11415_v11  ;;  %11367 = vmatpush1.bf16.msra.mxu1 %v14068_v4  ;;  %v14149_v4 = vcombine.high %v1672_v0, %v1676_v1  ;;  %v1680_v11 = vld [vmem:[#allocation5 + $0x2ed8] sm:$0xff] }
 0x699   :  { %12245 = vmatpush1.bf16.msra.mxu0 %v14607_v5  ;;  %12276 = vmatprep.mubr.bf16.mxu0 %v11418_v8  ;;  %v14639_v5 = vld [vmem:[#allocation8 + $0x1a4] ss:$8 sps:$4 sm:$0xff]   ;;  %v14642_v8 = vld [vmem:[#allocation8 + $0x1b4] ss:$8 sps:$4 sm:$0xff]  }
 0x69a   :  { %11368 = vmatprep.subr.bf16.mxu1 %v14077_v48  ;;  %12246 = vmatprep.subr.bf16.mxu0 %v14612_v6  ;;  %v1684_v48 = vld [vmem:[#allocation5 + $0x2ef8] sm:$0xff]  ;;  %v14148_v6 = vcombine.low %v1672_v0, %v1676_v1  ;;  %v14679_v0 = vld [vmem:[#allocation8 + $0x280] ss:$8 sps:$4 sm:$0xff]  }
 0x69b   :  { %11398 = vmatprep.mubr.bf16.mxu1 %v15233_v38  ;;  %v1636_v38 = vld [vmem:[#allocation5 + $0x2d78] sm:$0xff]  ;;  %v14157_v51 = vcombine.high %v1680_v11, %v1684_v48 }
 0x69c   :  { %11369 = vmatpush1.bf16.msra.mxu1 %v14076_v17  ;;  %v14109_v61 = vcombine.high %v1632_v13, %v1636_v38  ;;  %v14108_v18 = vcombine.low %v1632_v13, %v1636_v38  ;;  %v1688_v17 = vld [vmem:[#allocation5 + $0x2f18] sm:$0xff] }
 0x69d   :  { %12247 = vmatpush1.bf16.msra.mxu0 %v14610_v58  ;;  %11370 = vmatprep.subr.bf16.mxu1 %v14085_v54  ;;  %v1692_v58 = vld [vmem:[#allocation5 + $0x2f38] sm:$0xff]  ;;  %v14156_v54 = vcombine.low %v1680_v11, %v1684_v48  ;;  %v14693_v48 = vld [vmem:[#allocation8 + $0x2c4] ss:$8 sps:$4 sm:$0xff]  }
 0x69e   :  { %12248 = vmatprep.subr.bf16.mxu0 %v14615_v9  ;;  %v14640_v9 = vld [vmem:[#allocation8 + $0x1b0] ss:$8 sps:$4 sm:$0xff]   ;;  %v14165_v14 = vcombine.high %v1688_v17, %v1692_v58  ;;  %v14684_v1 = vld [vmem:[#allocation8 + $0x294] ss:$8 sps:$4 sm:$0xff]  }
 0x69f   :  { %v14646_v13 = vld [vmem:[#allocation8 + $0x1d0] ss:$8 sps:$4 sm:$0xff]  }
 0x6a0   :  { %11371 = vmatpush1.bf16.msra.mxu1 %v14084_v10  ;;  %v1696_v10 = vld [vmem:[#allocation5 + $0x2f58] sm:$0xff] }
 0x6a1   :  { %12249 = vmatpush1.bf16.msra.mxu0 %v14613_v20  ;;  %11372 = vmatprep.subr.bf16.mxu1 %v14093_v30  ;;  %v1700_v20 = vld [vmem:[#allocation5 + $0x2f78] sm:$0xff]  ;;  %v14164_v30 = vcombine.low %v1688_v17, %v1692_v58  ;;  %v14697_v17 = vld [vmem:[#allocation8 + $0x2e0] ss:$8 sps:$4 sm:$0xff]  }
 0x6a2   :  { %12250 = vmatprep.subr.bf16.mxu0 %v14618_v16  ;;  %v14643_v16 = vld [vmem:[#allocation8 + $0x1c0] ss:$8 sps:$4 sm:$0xff]   ;;  %v14173_v15 = vcombine.high %v1696_v10, %v1700_v20  ;;  %v14688_v11 = vld [vmem:[#allocation8 + $0x2b0] ss:$8 sps:$4 sm:$0xff]   ;;  %v14702_v58 = vld [vmem:[#allocation8 + $0x2f4] ss:$8 sps:$4 sm:$0xff]  }
 0x6a4   :  { %11373 = vmatpush1.bf16.msra.mxu1 %v14092_v3  ;;  %v14648_v3 = vld [vmem:[#allocation8 + $0x1d4] ss:$8 sps:$4 sm:$0xff]  }
 0x6a5   :  { %12251 = vmatpush1.bf16.msra.mxu0 %v14616_v59  ;;  %11374 = vmatprep.subr.bf16.mxu1 %v14101_v23  ;;  %v1704_v59 = vld [vmem:[#allocation5 + $0x2f98] sm:$0xff] }
 0x6a6   :  { %12252 = vmatprep.subr.bf16.mxu0 %v14621_v24  ;;  %v1708_v23 = vld [vmem:[#allocation5 + $0x2fb8] sm:$0xff]  ;;  %v14172_v24 = vcombine.low %v1696_v10, %v1700_v20 }
 0x6a7   :  { %v14181_v38 = vcombine.high %v1704_v59, %v1708_v23  ;;  %v14180_v29 = vcombine.low %v1704_v59, %v1708_v23 }
 0x6a8   :  { %11375 = vmatpush1.bf16.msra.mxu1 %v14100_v27  ;;  %v1730_v27 = vrot.slane %v15314_v49, %v1729_v19 }
 0x6a9   :  { %12253 = vmatpush1.bf16.msra.mxu0 %v14619_v7  ;;  %11376 = vmatprep.subr.bf16.mxu1 %v14109_v61  ;;  %v14651_v7 = vld [vmem:[#allocation8 + $0x1e4] ss:$8 sps:$4 sm:$0xff]   ;;  %v1712_v61 = vld [vmem:[#allocation5 + $0x2fd8] sm:$0xff] }
 0x6aa   :  { %12254 = vmatprep.subr.bf16.mxu0 %v14624_v21  ;;  %v1716_v21 = vld [vmem:[#allocation5 + $0x2ff8] sm:$0xff] }
 0x6ac   :  { %11377 = vmatpush1.bf16.msra.mxu1 %v14108_v18  ;;  %v14189_v18 = vcombine.high %v1712_v61, %v1716_v21 }
 0x6ad   :  { %12255 = vmatpush1.bf16.msra.mxu0 %v14622_v33  ;;  %11378 = vmatprep.subr.bf16.mxu1 %v14117_v34  ;;  %v14355_v33 = vadd.f32 %v15281_v42, %v1730_v27  ;;  %v14654_v34 = vld [vmem:[#allocation8 + $0x1f4] ss:$8 sps:$4 sm:$0xff]   ;;  %v14658_v42 = vld [vmem:[#allocation8 + $0x210] ss:$8 sps:$4 sm:$0xff]  }
 0x6ae   :  { %12256 = vmatprep.subr.bf16.mxu0 %v14627_v25  ;;  %v14188_v25 = vcombine.low %v1712_v61, %v1716_v21  ;;  %v14751_v61 = vld [vmem:[#allocation11] ss:$8 sps:$4 sm:$0xff]   ;;  %v14753_v21 = vld [vmem:[#allocation11 + $0x4] ss:$8 sps:$4 sm:$0xff]  }
 0x6af   :  { %v11409_v37 = vmax.f32 %v14355_v33, 0.0  ;;  %v14754_v33 = vld [vmem:[#allocation11 + $0x10] ss:$8 sps:$4 sm:$0xff]  }
 0x6b0   :  { %11379 = vmatpush1.bf16.msra.mxu1 %v14116_v41  ;;  %v14657_v41 = vld [vmem:[#allocation8 + $0x204] ss:$8 sps:$4 sm:$0xff]  }
 0x6b1   :  { %12257 = vmatpush1.bf16.msra.mxu0 %v14625_v43  ;;  %11380 = vmatprep.subr.bf16.mxu1 %v14125_v45  ;;  %v14655_v43 = vld [vmem:[#allocation8 + $0x200] ss:$8 sps:$4 sm:$0xff]   ;;  %v11417_v45 = vpack.c.bf16 %v11409_v37, %v11409_v37 }
 0x6b2   :  { %12258 = vmatprep.subr.bf16.mxu0 %v14630_v46  ;;  %v14660_v46 = vld [vmem:[#allocation8 + $0x214] ss:$8 sps:$4 sm:$0xff]   ;;  %v14757_v37 = vld [vmem:[#allocation11 + $0x20] ss:$8 sps:$4 sm:$0xff]  }
 0x6b4   :  { %11381 = vmatpush1.bf16.msra.mxu1 %v14124_v22  ;;  %v14666_v22 = vld [vmem:[#allocation8 + $0x234] ss:$8 sps:$4 sm:$0xff]  }
 0x6b5   :  { %12259 = vmatpush1.bf16.msra.mxu0 %v14628_v52  ;;  %11382 = vmatprep.subr.bf16.mxu1 %v14133_v53  ;;  %v14664_v52 = vld [vmem:[#allocation8 + $0x230] ss:$8 sps:$4 sm:$0xff]   ;;  %v14669_v53 = vld [vmem:[#allocation8 + $0x244] ss:$8 sps:$4 sm:$0xff]  }
 0x6b6   :  { %12260 = vmatprep.subr.bf16.mxu0 %v14633_v55  ;;  %v14667_v55 = vld [vmem:[#allocation8 + $0x240] ss:$8 sps:$4 sm:$0xff]  }
 0x6b8   :  { %11383 = vmatpush1.bf16.msra.mxu1 %v14132_v32  ;;  %v14673_v32 = vld [vmem:[#allocation8 + $0x260] ss:$8 sps:$4 sm:$0xff]  }
 0x6b9   :  { %12261 = vmatpush1.bf16.msra.mxu0 %v14631_v60  ;;  %11384 = vmatprep.subr.bf16.mxu1 %v14141_v63  ;;  %v14678_v60 = vld [vmem:[#allocation8 + $0x274] ss:$8 sps:$4 sm:$0xff]   ;;  %v14676_v63 = vld [vmem:[#allocation8 + $0x270] ss:$8 sps:$4 sm:$0xff]  }
 0x6ba   :  { %12262 = vmatprep.subr.bf16.mxu0 %v14636_v36  ;;  %v14681_v36 = vld [vmem:[#allocation8 + $0x284] ss:$8 sps:$4 sm:$0xff]  }
 0x6bc   :  { %11385 = vmatpush1.bf16.msra.mxu1 %v14140_v2  ;;  %v14682_v2 = vld [vmem:[#allocation8 + $0x290] ss:$8 sps:$4 sm:$0xff]  }
 0x6bd   :  { %12263 = vmatpush1.bf16.msra.mxu0 %v14634_v28  ;;  %11386 = vmatprep.subr.bf16.mxu1 %v14149_v4  ;;  %v14687_v28 = vld [vmem:[#allocation8 + $0x2a4] ss:$8 sps:$4 sm:$0xff]   ;;  %v14685_v4 = vld [vmem:[#allocation8 + $0x2a0] ss:$8 sps:$4 sm:$0xff]  }
 0x6be   :  { %12264 = vmatprep.subr.bf16.mxu0 %v14639_v5  ;;  %v14690_v5 = vld [vmem:[#allocation8 + $0x2b4] ss:$8 sps:$4 sm:$0xff]  }
 0x6c0   :  { %11387 = vmatpush1.bf16.msra.mxu1 %v14148_v6  ;;  %v14691_v6 = vld [vmem:[#allocation8 + $0x2c0] ss:$8 sps:$4 sm:$0xff]  }
 0x6c1   :  { %12265 = vmatpush1.bf16.msra.mxu0 %v14637_v39  ;;  %11388 = vmatprep.subr.bf16.mxu1 %v14157_v51  ;;  %v14696_v39 = vld [vmem:[#allocation8 + $0x2d4] ss:$8 sps:$4 sm:$0xff]   ;;  %v14694_v51 = vld [vmem:[#allocation8 + $0x2d0] ss:$8 sps:$4 sm:$0xff]  }
 0x6c2   :  { %12266 = vmatprep.subr.bf16.mxu0 %v14642_v8  ;;  %v14699_v8 = vld [vmem:[#allocation8 + $0x2e4] ss:$8 sps:$4 sm:$0xff]  }
 0x6c4   :  { %11389 = vmatpush1.bf16.msra.mxu1 %v14156_v54  ;;  %v14700_v54 = vld [vmem:[#allocation8 + $0x2f0] ss:$8 sps:$4 sm:$0xff]  }
 0x6c5   :  { %12267 = vmatpush1.bf16.msra.mxu0 %v14640_v9  ;;  %11390 = vmatprep.subr.bf16.mxu1 %v14165_v14  ;;  %v14705_v9 = vld [vmem:[#allocation8 + $0x304] ss:$8 sps:$4 sm:$0xff]   ;;  %v1737_v14 = vsub.s32 4, %v15257_v12 }
 0x6c6   :  { %12268 = vmatprep.subr.bf16.mxu0 %v14645_v44  ;;  %v1741_v44 = vsub.s32 5, %v15257_v12 }
 0x6c7   :  { %v1738_v10 = vrot.slane %v15314_v49, %v1737_v14  ;;  %v14741_v14 = vld [vmem:[#allocation8 + $0x3c4] ss:$8 sps:$4 sm:$0xff]  }
 0x6c8   :  { %11391 = vmatpush1.bf16.msra.mxu1 %v14164_v30  ;;  %v1742_v20 = vrot.slane %v15314_v49, %v1741_v44  ;;  %v14784_v44 = vld [vmem:[#allocation11 + $0xb0] ss:$8 sps:$4 sm:$0xff]  }
 0x6c9   :  { %12269 = vmatpush1.bf16.msra.mxu0 %v14643_v16  ;;  %11392 = vmatprep.subr.bf16.mxu1 %v14173_v15 }
 0x6ca   :  { %12270 = vmatprep.subr.bf16.mxu0 %v14648_v3 }
 0x6cc   :  { %11393 = vmatpush1.bf16.msra.mxu1 %v14172_v24 }
 0x6cd   :  { %12271 = vmatpush1.bf16.msra.mxu0 %v14646_v13  ;;  %11394 = vmatprep.subr.bf16.mxu1 %v14181_v38  ;;  %v14703_v38 = vld [vmem:[#allocation8 + $0x300] ss:$8 sps:$4 sm:$0xff]  }
 0x6ce   :  { %12272 = vmatprep.subr.bf16.mxu0 %v14651_v7  ;;  %v14708_v7 = vld [vmem:[#allocation8 + $0x314] ss:$8 sps:$4 sm:$0xff]  }
 0x6d0   :  { %11395 = vmatpush1.bf16.msra.mxu1 %v14180_v29  ;;  %v14756_v29 = vld [vmem:[#allocation11 + $0x14] ss:$8 sps:$4 sm:$0xff]  }
 0x6d1   :  { %12273 = vmatpush1.bf16.msra.mxu0 %v14649_v62  ;;  %11396 = vmatprep.subr.bf16.mxu1 %v14189_v18  ;;  %v14706_v62 = vld [vmem:[#allocation8 + $0x310] ss:$8 sps:$4 sm:$0xff]   ;;  %v14711_v18 = vld [vmem:[#allocation8 + $0x324] ss:$8 sps:$4 sm:$0xff]  }
 0x6d2   :  { %12274 = vmatprep.subr.bf16.mxu0 %v14654_v34  ;;  %v14759_v34 = vld [vmem:[#allocation11 + $0x24] ss:$8 sps:$4 sm:$0xff]  }
 0x6d4   :  { %11397 = vmatpush1.bf16.msra.mxu1 %v14188_v25  ;;  %v14709_v25 = vld [vmem:[#allocation8 + $0x320] ss:$8 sps:$4 sm:$0xff]  }
 0x6d5   :  { %12275 = vmatpush1.bf16.msra.mxu0 %v14652_v35  ;;  %12575 = vmatprep.subr.bf16.mxu1 %v14753_v21  ;;  %v14714_v35 = vld [vmem:[#allocation8 + $0x334] ss:$8 sps:$4 sm:$0xff]  }
 0x6d6   :  { %12285 = vmatprep.subr.bf16.mxu0 %v14657_v41  ;;  %v14762_v41 = vld [vmem:[#allocation11 + $0x34] ss:$8 sps:$4 sm:$0xff]  }
 0x6d7   :  { %11399 = vmatmul.mubr.bf16.vlgmr.msra.gmra.mrb[8].mxu1 %v15239_v47  ;;  %v14675_v47 = vld [vmem:[#allocation8 + $0x264] ss:$8 sps:$4 sm:$0xff]  }
 0x6d8   :  { %12277 = vmatmul.mubr.bf16.vlgmr.msra.gmra.mrb[8].mxu0 %v11417_v45  ;;  %12576 = vmatpush1.bf16.msra.mxu1 %v14751_v61  ;;  %v14717_v45 = vld [vmem:[#allocation8 + $0x344] ss:$8 sps:$4 sm:$0xff]  }
 0x6d9   :  { %12286 = vmatpush1.bf16.msra.mxu0 %v14655_v43  ;;  %12577 = vmatprep.subr.bf16.mxu1 %v14756_v29  ;;  %v14712_v43 = vld [vmem:[#allocation8 + $0x330] ss:$8 sps:$4 sm:$0xff]  }
 0x6da   :  { %12287 = vmatprep.subr.bf16.mxu0 %v14660_v46  ;;  %v14760_v46 = vld [vmem:[#allocation11 + $0x30] ss:$8 sps:$4 sm:$0xff]  }
 0x6dc   :  { %12578 = vmatpush1.bf16.msra.mxu1 %v14754_v33 }
 0x6dd   :  { %12288 = vmatpush1.bf16.msra.mxu0 %v14658_v42  ;;  %12579 = vmatprep.subr.bf16.mxu1 %v14759_v34  ;;  %v14765_v42 = vld [vmem:[#allocation11 + $0x44] ss:$8 sps:$4 sm:$0xff]  }
 0x6de   :  { %12289 = vmatprep.subr.bf16.mxu0 %v14663_v50  ;;  %v14715_v50 = vld [vmem:[#allocation8 + $0x340] ss:$8 sps:$4 sm:$0xff]  }
 0x6e0   :  { %12580 = vmatpush1.bf16.msra.mxu1 %v14757_v37 }
 0x6e1   :  { %12290 = vmatpush1.bf16.msra.mxu0 %v14661_v26  ;;  %12581 = vmatprep.subr.bf16.mxu1 %v14762_v41  ;;  %v14720_v26 = vld [vmem:[#allocation8 + $0x354] ss:$8 sps:$4 sm:$0xff]  }
 0x6e2   :  { %12291 = vmatprep.subr.bf16.mxu0 %v14666_v22  ;;  %v14763_v22 = vld [vmem:[#allocation11 + $0x40] ss:$8 sps:$4 sm:$0xff]  }
 0x6e4   :  { %12582 = vmatpush1.bf16.msra.mxu1 %v14760_v46  ;;  %v14796_v46 = vld [vmem:[#allocation11 + $0xf0] ss:$8 sps:$4 sm:$0xff]  }
 0x6e5   :  { %12292 = vmatpush1.bf16.msra.mxu0 %v14664_v52  ;;  %12583 = vmatprep.subr.bf16.mxu1 %v14765_v42  ;;  %v14768_v52 = vld [vmem:[#allocation11 + $0x54] ss:$8 sps:$4 sm:$0xff]  }
 0x6e6   :  { %12293 = vmatprep.subr.bf16.mxu0 %v14669_v53  ;;  %v14718_v53 = vld [vmem:[#allocation8 + $0x350] ss:$8 sps:$4 sm:$0xff]  }
 0x6e8   :  { %12584 = vmatpush1.bf16.msra.mxu1 %v14763_v22 }
 0x6e9   :  { %12294 = vmatpush1.bf16.msra.mxu0 %v14667_v55  ;;  %v14723_v55 = vld [vmem:[#allocation8 + $0x364] ss:$8 sps:$4 sm:$0xff]   ;;  %12585 = vmatprep.subr.bf16.mxu1 %v14768_v52 }
 0x6ea   :  { %12295 = vmatprep.subr.bf16.mxu0 %v14672_v56  ;;  %v14766_v56 = vld [vmem:[#allocation11 + $0x50] ss:$8 sps:$4 sm:$0xff]  }
 0x6ec   :  { %12586 = vmatpush1.bf16.msra.mxu1 %v14766_v56 }
 0x6ed   :  { %12296 = vmatpush1.bf16.msra.mxu0 %v14670_v57  ;;  %v14771_v57 = vld [vmem:[#allocation11 + $0x64] ss:$8 sps:$4 sm:$0xff]  }
 0x6ee   :  { %12297 = vmatprep.subr.bf16.mxu0 %v14675_v47  ;;  %v14721_v47 = vld [vmem:[#allocation8 + $0x360] ss:$8 sps:$4 sm:$0xff]   ;;  %12587 = vmatprep.subr.bf16.mxu1 %v14771_v57 }
 0x6f1   :  { %12298 = vmatpush1.bf16.msra.mxu0 %v14673_v32  ;;  %v14726_v32 = vld [vmem:[#allocation8 + $0x374] ss:$8 sps:$4 sm:$0xff]  }
 0x6f2   :  { %12299 = vmatprep.subr.bf16.mxu0 %v14678_v60  ;;  %v14769_v60 = vld [vmem:[#allocation11 + $0x60] ss:$8 sps:$4 sm:$0xff]  }
 0x6f3   :  { %12588 = vmatpush1.bf16.msra.mxu1 %v14769_v60 }
 0x6f5   :  { %12300 = vmatpush1.bf16.msra.mxu0 %v14676_v63  ;;  %v14774_v63 = vld [vmem:[#allocation11 + $0x74] ss:$8 sps:$4 sm:$0xff]  }
 0x6f6   :  { %12301 = vmatprep.subr.bf16.mxu0 %v14681_v36  ;;  %v14724_v36 = vld [vmem:[#allocation8 + $0x370] ss:$8 sps:$4 sm:$0xff]   ;;  %12589 = vmatprep.subr.bf16.mxu1 %v14774_v63  ;;  %v12403_v63 = vld [vmem:[#allocation13] sm:$0x3] }
 0x6f9   :  { %12302 = vmatpush1.bf16.msra.mxu0 %v14679_v0  ;;  %v14729_v0 = vld [vmem:[#allocation8 + $0x384] ss:$8 sps:$4 sm:$0xff]  }
 0x6fa   :  { %12303 = vmatprep.subr.bf16.mxu0 %v14684_v1  ;;  %v14772_v1 = vld [vmem:[#allocation11 + $0x70] ss:$8 sps:$4 sm:$0xff]  }
 0x6fb   :  { %12590 = vmatpush1.bf16.msra.mxu1 %v14772_v1  ;;  %v12618_v1 = vld [vmem:[#allocation14] sm:$0x3] }
 0x6fd   :  { %12304 = vmatpush1.bf16.msra.mxu0 %v14682_v2  ;;  %v14777_v2 = vld [vmem:[#allocation11 + $0x84] ss:$8 sps:$4 sm:$0xff]  }
 0x6fe   :  { %12305 = vmatprep.subr.bf16.mxu0 %v14687_v28  ;;  %v14727_v28 = vld [vmem:[#allocation8 + $0x380] ss:$8 sps:$4 sm:$0xff]   ;;  %12591 = vmatprep.subr.bf16.mxu1 %v14777_v2 }
 0x701   :  { %12306 = vmatpush1.bf16.msra.mxu0 %v14685_v4  ;;  %v14732_v4 = vld [vmem:[#allocation8 + $0x394] ss:$8 sps:$4 sm:$0xff]  }
 0x702   :  { %12307 = vmatprep.subr.bf16.mxu0 %v14690_v5  ;;  %v14775_v5 = vld [vmem:[#allocation11 + $0x80] ss:$8 sps:$4 sm:$0xff]  }
 0x703   :  { %12592 = vmatpush1.bf16.msra.mxu1 %v14775_v5  ;;  %v12623_v5 = vrot.slane %v12618_v1, %v15260_v31 }
 0x705   :  { %12308 = vmatpush1.bf16.msra.mxu0 %v14688_v11  ;;  %v14780_v11 = vld [vmem:[#allocation11 + $0x94] ss:$8 sps:$4 sm:$0xff]  }
 0x706   :  { %12309 = vmatprep.subr.bf16.mxu0 %v14693_v48  ;;  %v14730_v48 = vld [vmem:[#allocation8 + $0x390] ss:$8 sps:$4 sm:$0xff]   ;;  %12593 = vmatprep.subr.bf16.mxu1 %v14780_v11 }
 0x709   :  { %12310 = vmatpush1.bf16.msra.mxu0 %v14691_v6  ;;  %v14735_v6 = vld [vmem:[#allocation8 + $0x3a4] ss:$8 sps:$4 sm:$0xff]  }
 0x70a   :  { %12311 = vmatprep.subr.bf16.mxu0 %v14696_v39  ;;  %v14778_v39 = vld [vmem:[#allocation11 + $0x90] ss:$8 sps:$4 sm:$0xff]  }
 0x70b   :  { %12594 = vmatpush1.bf16.msra.mxu1 %v14778_v39 }
 0x70d   :  { %12312 = vmatpush1.bf16.msra.mxu0 %v14694_v51  ;;  %v14783_v51 = vld [vmem:[#allocation11 + $0xa4] ss:$8 sps:$4 sm:$0xff]  }
 0x70e   :  { %12313 = vmatprep.subr.bf16.mxu0 %v14699_v8  ;;  %v14733_v8 = vld [vmem:[#allocation8 + $0x3a0] ss:$8 sps:$4 sm:$0xff]   ;;  %12595 = vmatprep.subr.bf16.mxu1 %v14783_v51 }
 0x711   :  { %12314 = vmatpush1.bf16.msra.mxu0 %v14697_v17  ;;  %v14738_v17 = vld [vmem:[#allocation8 + $0x3b4] ss:$8 sps:$4 sm:$0xff]  }
 0x712   :  { %12315 = vmatprep.subr.bf16.mxu0 %v14702_v58  ;;  %v14781_v58 = vld [vmem:[#allocation11 + $0xa0] ss:$8 sps:$4 sm:$0xff]  }
 0x713   :  { %12596 = vmatpush1.bf16.msra.mxu1 %v14781_v58 }
 0x715   :  { %12316 = vmatpush1.bf16.msra.mxu0 %v14700_v54  ;;  %v14786_v54 = vld [vmem:[#allocation11 + $0xb4] ss:$8 sps:$4 sm:$0xff]  }
 0x716   :  { %12326 = vmatprep.subr.bf16.mxu0 %v14705_v9  ;;  %v14736_v9 = vld [vmem:[#allocation8 + $0x3b0] ss:$8 sps:$4 sm:$0xff]   ;;  %12597 = vmatprep.subr.bf16.mxu1 %v14786_v54 }
 0x717   :  { %12598 = vmatpush1.bf16.msra.mxu1 %v14784_v44 }
 0x72b   :  { %v10908_v30 = vpop.f32.mrb[4].mxu0 }
 0x72c   :  { %v14357_v16 = vadd.f32 %v10908_v30, %v1738_v10  ;;  %v10910_v15 = vpop.f32.mrb[5].mxu0  ;;  %v14789_v10 = vld [vmem:[#allocation11 + $0xc4] ss:$8 sps:$4 sm:$0xff]   ;;  %v14744_v30 = vld [vmem:[#allocation8 + $0x3d4] ss:$8 sps:$4 sm:$0xff]  }
 0x72d   :  { %v14358_v19 = vadd.f32 %v10910_v15, %v1742_v20  ;;  %v10912_v3 = vpop.f32.mrb[6].mxu0  ;;  %v14739_v20 = vld [vmem:[#allocation8 + $0x3c0] ss:$8 sps:$4 sm:$0xff]   ;;  %12599 = vmatprep.subr.bf16.mxu1 %v14789_v10 }
 0x72e   :  { %v11411_v59 = vmax.f32 %v14357_v16, 0.0  ;;  %v10913_v23 = vpop.f32.mrb[7].mxu0  ;;  %v14787_v16 = vld [vmem:[#allocation11 + $0xc0] ss:$8 sps:$4 sm:$0xff]   ;;  %v14792_v15 = vld [vmem:[#allocation11 + $0xd4] ss:$8 sps:$4 sm:$0xff]  }
 0x72f   :  { %v11412_v24 = vmax.f32 %v14358_v19, 0.0  ;;  %v14742_v19 = vld [vmem:[#allocation8 + $0x3d0] ss:$8 sps:$4 sm:$0xff]   ;;  %v14747_v3 = vld [vmem:[#allocation8 + $0x3e4] ss:$8 sps:$4 sm:$0xff]   ;;  %12600 = vmatpush1.bf16.msra.mxu1 %v14787_v16 }
 0x730   :  { %v11419_v27 = vpack.c.bf16 %v11411_v59, %v11411_v59  ;;  %v14790_v59 = vld [vmem:[#allocation11 + $0xd0] ss:$8 sps:$4 sm:$0xff]   ;;  %12601 = vmatprep.subr.bf16.mxu1 %v14792_v15  ;;  %v14745_v23 = vld [vmem:[#allocation8 + $0x3e0] ss:$8 sps:$4 sm:$0xff]  }
 0x731   :  { %v11420_v13 = vpack.c.bf16 %v11412_v24, %v11412_v24  ;;  %v14750_v24 = vld [vmem:[#allocation8 + $0x3f4] ss:$8 sps:$4 sm:$0xff]  }
 0x733   :  { %12317 = vmatprep.mubr.bf16.mxu0 %v11420_v13  ;;  %12602 = vmatpush1.bf16.msra.mxu1 %v14790_v59  ;;  %v14748_v13 = vld [vmem:[#allocation8 + $0x3f0] ss:$8 sps:$4 sm:$0xff]  }
 0x734   :  { %12318 = vmatmul.mubr.bf16.vlgmr.msra.gmra.mrb[8].mxu0 %v11419_v27  ;;  %v1749_v27 = vsub.s32 7, %v15257_v12 }
 0x735   :  { %12327 = vmatpush1.bf16.msra.mxu0 %v14703_v38  ;;  %v1745_v38 = vsub.s32 6, %v15257_v12  ;;  %v14798_v12 = vld [vmem:[#allocation11 + $0xf4] ss:$8 sps:$4 sm:$0xff]  }
 0x736   :  { %12328 = vmatprep.subr.bf16.mxu0 %v14708_v7  ;;  %v1750_v61 = vrot.slane %v15314_v49, %v1749_v27 }
 0x737   :  { %v1746_v7 = vrot.slane %v15314_v49, %v1745_v38  ;;  %v11551_v49 = vld [vmem:[#allocation10] sm:$0x3] }
 0x738   :  { %v11556_v42 = vrot.slane %v11551_v49, %v15260_v31 }
 0x739   :  { %12329 = vmatpush1.bf16.msra.mxu0 %v14706_v62 }
 0x73a   :  { %12330 = vmatprep.subr.bf16.mxu0 %v14711_v18 }
 0x73d   :  { %12331 = vmatpush1.bf16.msra.mxu0 %v14709_v25 }
 0x73e   :  { %12332 = vmatprep.subr.bf16.mxu0 %v14714_v35 }
 0x741   :  { %12333 = vmatpush1.bf16.msra.mxu0 %v14712_v43  ;;  %v14795_v43 = vld [vmem:[#allocation11 + $0xe4] ss:$8 sps:$4 sm:$0xff]  }
 0x742   :  { %12334 = vmatprep.subr.bf16.mxu0 %v14717_v45  ;;  %v14793_v45 = vld [vmem:[#allocation11 + $0xe0] ss:$8 sps:$4 sm:$0xff]   ;;  %12603 = vmatprep.subr.bf16.mxu1 %v14795_v43 }
 0x743   :  { %12604 = vmatpush1.bf16.msra.mxu1 %v14793_v45 }
 0x744   :  { %12605 = vmatprep.subr.bf16.mxu1 %v14798_v12 }
 0x745   :  { %12335 = vmatpush1.bf16.msra.mxu0 %v14715_v50  ;;  %v11560_v50 = vrot.slane %v11551_v49, %v15263_v40 }
 0x746   :  { %12336 = vmatprep.subr.bf16.mxu0 %v14720_v26 }
 0x747   :  { %12606 = vmatpush1.bf16.msra.mxu1 %v14796_v46 }
 0x749   :  { %12337 = vmatpush1.bf16.msra.mxu0 %v14718_v53 }
 0x74a   :  { %12338 = vmatprep.subr.bf16.mxu0 %v14723_v55 }
 0x74d   :  { %12339 = vmatpush1.bf16.msra.mxu0 %v14721_v47 }
 0x74e   :  { %12340 = vmatprep.subr.bf16.mxu0 %v14726_v32 }
 0x751   :  { %12341 = vmatpush1.bf16.msra.mxu0 %v14724_v36  ;;  %v12408_v36 = vrot.slane %v12403_v63, %v15260_v31 }
 0x752   :  { %12342 = vmatprep.subr.bf16.mxu0 %v14729_v0  ;;  %v12412_v0 = vrot.slane %v12403_v63, %v15263_v40 }
 0x755   :  { %12343 = vmatpush1.bf16.msra.mxu0 %v14727_v28 }
 0x756   :  { %12344 = vmatprep.subr.bf16.mxu0 %v14732_v4 }
 0x759   :  { %12345 = vmatpush1.bf16.msra.mxu0 %v14730_v48 }
 0x75a   :  { %12346 = vmatprep.subr.bf16.mxu0 %v14735_v6  ;;  %v12627_v6 = vrot.slane %v12618_v1, %v15263_v40 }
 0x75d   :  { %12347 = vmatpush1.bf16.msra.mxu0 %v14733_v8 }
 0x75e   :  { %12348 = vmatprep.subr.bf16.mxu0 %v14738_v17 }
 0x761   :  { %12349 = vmatpush1.bf16.msra.mxu0 %v14736_v9  ;;  %v14350_v9 = vld [vmem:[#allocation2] ss:$0 sm:$0xff] }
 0x762   :  { %12350 = vmatprep.subr.bf16.mxu0 %v14741_v14 }
 0x765   :  { %12351 = vmatpush1.bf16.msra.mxu0 %v14739_v20 }
 0x766   :  { %12352 = vmatprep.subr.bf16.mxu0 %v14744_v30 }
 0x769   :  { %12353 = vmatpush1.bf16.msra.mxu0 %v14742_v19 }
 0x76a   :  { %12354 = vmatprep.subr.bf16.mxu0 %v14747_v3 }
 0x76d   :  { %12355 = vmatpush1.bf16.msra.mxu0 %v14745_v23 }
 0x76e   :  { %12356 = vmatprep.subr.bf16.mxu0 %v14750_v24 }
 0x771   :  { %12357 = vmatpush1.bf16.msra.mxu0 %v14748_v13 }
 0x7aa   :  { %v11400_v21 = vpop.f32.mrb[8].mxu1 }
 0x7ab   :  { %v14359_v29 = vadd.f32 %v11400_v21, %v1746_v7  ;;  %v11402_v62 = vpop.f32.mrb[9].mxu1 }
 0x7ac   :  { %v14360_v18 = vadd.f32 %v11402_v62, %v1750_v61  ;;  %v11404_v33 = vpop.f32.mrb[10].mxu1 }
 0x7ad   :  { %v11413_v34 = vmax.f32 %v14359_v29, 0.0  ;;  %v11405_v25 = vpop.f32.mrb[11].mxu1 }
 0x7ae   :  { %v11414_v35 = vmax.f32 %v14360_v18, 0.0 }
 0x7af   :  { %v11421_v41 = vpack.c.bf16 %v11413_v34, %v11413_v34 }
 0x7b0   :  { %v11422_v37 = vpack.c.bf16 %v11414_v35, %v11414_v35 }
 0x7b2   :  { %12358 = vmatprep.mubr.bf16.mxu0 %v11422_v37 }
 0x7b3   :  { %12359 = vmatmul.mubr.bf16.vlgmr.msra.gmra.mrb[8].mxu0 %v11421_v41 }
 0x886   :  { %v12360_v26 = vpop.f32.mrb[8].mxu0 }
 0x887   :  { %v14361_v22 = vadd.f32 %v12360_v26, %v11556_v42  ;;  %v12362_v52 = vpop.f32.mrb[9].mxu0 }
 0x888   :  { %v14362_v53 = vadd.f32 %v12362_v52, %v11560_v50  ;;  %v12364_v55 = vpop.f32.mrb[10].mxu0 }
 0x889   :  { %v12367_v56 = vmax.f32 %v14361_v22, 0.0  ;;  %v12365_v57 = vpop.f32.mrb[11].mxu0 }
 0x88a   :  { %v12368_v47 = vmax.f32 %v14362_v53, 0.0 }
 0x88b   :  { %v12369_v60 = vpack.c.bf16 %v12367_v56, %v12367_v56 }
 0x88c   :  { %v12370_v32 = vpack.c.bf16 %v12368_v47, %v12368_v47 }
 0x88e   :  { %12607 = vmatprep.mubr.bf16.mxu1 %v12370_v32 }
 0x88f   :  { %12608 = vmatmul.mubr.bf16.vlgmr.msra.gmra.mrb[12].mxu1 %v12369_v60 }
 0x962   :  { %v12609_v2 = vpop.f32.mrb[12].mxu1 }
 0x963   :  { %v12610_v28 = vadd.f32 %v12609_v2, %v12408_v36  ;;  %v12611_v4 = vpop.f32.mrb[13].mxu1 }
 0x964   :  { %v12612_v11 = vadd.f32 %v12611_v4, %v12412_v0  ;;  %v12613_v48 = vpop.f32.mrb[14].mxu1 }
 0x965   :  { %v12616_v39 = vmax.f32 %v12610_v28, 0.0  ;;  %v12614_v51 = vpop.f32.mrb[15].mxu1 }
 0x966   :  { %v12617_v8 = vmax.f32 %v12612_v11, 0.0 }
 0x967   :  { %v12630_v17 = vmul.f32 %v12623_v5, %v12616_v39 }
 0x968   :  { %v12631_v58 = vmul.f32 %v12627_v6, %v12617_v8 }
 0x96a   :  { %v12632_v54 = vadd.f32 %v12631_v58, %v12630_v17 }
 0x96c   :  { %12633 = vadd.xlane.f32.xlu0 %v12632_v54 }
 0x9f9   :  { %v12634_v14 = vpop.xlane.xlu0 %12633 }
 0x9fa   :  { %v12642_v44 = vadd.f32 %v14350_v9, %v12634_v14 }
 0x9fc   :  { %12644 = vst.msk [vmem:[%s15351_s9] sm:$0xff] %vm12643_vm0, %v12642_v44 }
 0x9fd   :  { %12649 = vsyncpa [#allocation4], 1 }
 0x9fe   :  { %12650 = vsyncpa [#allocation6], 1 }
 0x9ff   :  { %12651 = vsyncpa [#allocation9], 1 }
 0xa00   :  { %12652 = vsyncpa [#allocation12], 1 }
 0xa01   :  { %12653 = vsyncpa [#allocation15], 1 }

</bundles_post_ra>
